<compile_context>
chip_gen: v6e
topology: v6e:2x2x1
jax: 0.10.0
libtpu: 0.0.40
codegen_flags: <defaults>
</compile_context>

<pallas_src>
import functools

import jax
import jax.numpy as jnp
from jax import lax
from jax.experimental import pallas as pl
from jax.experimental.pallas import tpu as pltpu

KSIZE = 5
DILATION = 2
PAD = 4        # "same" padding for kernel 5, dilation 2
ROW_LO = 8     # fallback layout: leading row pad -> sublane-aligned interior


# ---------------------------------------------------------------------------
# conv + sigmoid epilogues (two scratch layouts)
# ---------------------------------------------------------------------------
def _conv_sigmoid_hbw(avg, mx, w_ref, b_ref, o_ref, pad_sc, *, H, W):
    """Rows on the outer scratch dim: pad_sc is (2, Hp, B, Wp), Hp = H + 2*PAD.

    kh row offsets index the outer dim (free addressing); only the 10 (c, kw)
    lane shifts relayout data, and only one shifted plane is live at a time.
    """
    B = avg.shape[0]
    Hp = H + 2 * PAD
    Wp = W + 2 * PAD

    row_zeros = jnp.zeros((2, PAD, B, Wp), jnp.float32)
    col_zeros = jnp.zeros((2, H, B, PAD), jnp.float32)
    pad_sc[:, 0:PAD] = row_zeros
    pad_sc[:, PAD + H:Hp] = row_zeros
    pad_sc[:, PAD:PAD + H, :, 0:PAD] = col_zeros
    pad_sc[:, PAD:PAD + H, :, PAD + W:Wp] = col_zeros
    # (B, H, W) -> (H, B, W): the only relayouts in this path (2 per step).
    pad_sc[0, PAD:PAD + H, :, PAD:PAD + W] = pltpu.einshape("bhw->hbw", avg)
    pad_sc[1, PAD:PAD + H, :, PAD:PAD + W] = pltpu.einshape("bhw->hbw", mx)

    acc = jnp.full((H, B, W), b_ref[0], dtype=jnp.float32)
    for c in range(2):
        for kw in range(KSIZE):
            col0 = kw * DILATION
            plane = pad_sc[c, :, :, col0:col0 + W]           # (Hp, B, W)
            for kh in range(KSIZE):
                row0 = kh * DILATION
                wv = w_ref[c * KSIZE * KSIZE + kh * KSIZE + kw]
                acc = acc + wv * plane[row0:row0 + H]        # outer-dim slice
    out = 0.5 * jnp.tanh(0.5 * acc) + 0.5                    # sigmoid via EUP
    o_ref[...] = pltpu.einshape("hbw->bhw", out).astype(o_ref.dtype)


def _conv_sigmoid_bhw(avg, mx, w_ref, b_ref, o_ref, pad_sc, *, H, W):
    """Fallback: rows on sublanes (validated layout), (c,kw)-outer / kh-inner
    ordering and row-trimmed planes so only one plane is live at a time."""
    B = avg.shape[0]
    Hp = ROW_LO + H + PAD
    Wp = W + 2 * PAD
    lo = ROW_LO - PAD          # first scratch row any tap actually reads

    pad_sc[:, :, lo:ROW_LO, :] = jnp.zeros((2, B, PAD, Wp), jnp.float32)
    pad_sc[:, :, ROW_LO + H:Hp, :] = jnp.zeros((2, B, PAD, Wp), jnp.float32)
    pad_sc[:, :, :, 0:PAD] = jnp.zeros((2, B, Hp, PAD), jnp.float32)
    pad_sc[:, :, :, PAD + W:Wp] = jnp.zeros((2, B, Hp, PAD), jnp.float32)
    pad_sc[0, :, ROW_LO:ROW_LO + H, PAD:PAD + W] = avg
    pad_sc[1, :, ROW_LO:ROW_LO + H, PAD:PAD + W] = mx

    acc = jnp.full((B, H, W), b_ref[0], dtype=jnp.float32)
    for c in range(2):
        for kw in range(KSIZE):
            col0 = kw * DILATION
            # only the H + 2*PAD rows actually read; one plane live at a time
            plane = pad_sc[c, :, lo:Hp, col0:col0 + W]       # (B, H+2*PAD, W)
            for kh in range(KSIZE):
                row0 = kh * DILATION
                wv = w_ref[c * KSIZE * KSIZE + kh * KSIZE + kw]
                acc = acc + wv * plane[:, row0:row0 + H, :]
    o_ref[...] = (0.5 * jnp.tanh(0.5 * acc) + 0.5).astype(o_ref.dtype)


# ---------------------------------------------------------------------------
# kernel
# ---------------------------------------------------------------------------
def _sam_kernel(x_ref, w_ref, b_ref, o_ref, sum_sc, max_sc, pad_sc,
                *, C, H, W, hbw):
    # x_ref: (B, Cb, H, W) VMEM   w_ref: (50,) SMEM   b_ref: (1,) SMEM
    # o_ref: (B, H, W) VMEM (written only at the last channel step)
    # sum_sc / max_sc: (B, H, W) running channel sum / max
    # pad_sc: padded avg/max planes (layout chosen by `hbw`)
    B, Cb = x_ref.shape[0], x_ref.shape[1]
    k = pl.program_id(1)

    @pl.when(k == 0)
    def _init():
        sum_sc[...] = jnp.zeros((B, H, W), jnp.float32)
        max_sc[...] = jnp.full((B, H, W), -jnp.inf, jnp.float32)

    # Streaming channel reduce: one (B, H, W) slice live per channel.
    s = sum_sc[...]
    m = max_sc[...]
    for c in range(Cb):
        xc = x_ref[:, c].astype(jnp.float32)
        s = s + xc
        m = jnp.maximum(m, xc)
    sum_sc[...] = s
    max_sc[...] = m

    @pl.when(k == pl.num_programs(1) - 1)
    def _finish():
        avg = s * jnp.float32(1.0 / C)
        if hbw:
            _conv_sigmoid_hbw(avg, m, w_ref, b_ref, o_ref, pad_sc, H=H, W=W)
        else:
            _conv_sigmoid_bhw(avg, m, w_ref, b_ref, o_ref, pad_sc, H=H, W=W)


# ---------------------------------------------------------------------------
# wrapper
# ---------------------------------------------------------------------------
def _largest_divisor_leq(n, cap):
    cap = max(1, min(cap, n))
    d = cap
    while n % d:
        d -= 1
    return d


def _vmem_capacity_bytes():
    try:
        cap = getattr(pltpu.get_tpu_info(), "vmem_capacity_bytes", None)
        if cap:
            return int(cap)
    except Exception:
        pass
    return 64 << 20     # conservative default (v7x per-core VMEM)


def _pick_blocks(N, C, H, W, itemsize, vmem_cap):
    # batch block: <= 8 keeps the batch inside one sublane tile of the conv
    # scratch (bounds live vregs); keep >= 2 grid steps (>= 4 when N >= 4) so a
    # v7x megacore gets >= 2 pipelined steps per TensorCore.
    if N >= 4:
        step_cap = N // 4
    elif N >= 2:
        step_cap = N // 2
    else:
        step_cap = N
    block_n = _largest_divisor_leq(N, min(8, step_cap))
    # channel block: cap the per-step input tile; larger target on 128 MiB
    # (v5e/v6e) parts than on 64 MiB (v7x) parts.
    target = (4 << 20) if vmem_cap > (96 << 20) else (2 << 20)
    c_cap = max(1, target // max(1, block_n * H * W * itemsize))
    block_c = _largest_divisor_leq(C, c_cap)
    return block_n, block_c


def _build_call(N, C, H, W, dtype, block_n, block_c, hbw, vmem_cap):
    itemsize = jnp.dtype(dtype).itemsize
    Wp = W + 2 * PAD
    Hp = (H + 2 * PAD) if hbw else (ROW_LO + H + PAD)
    pad_shape = (2, Hp, block_n, Wp) if hbw else (2, block_n, Hp, Wp)

    in_bytes = block_n * block_c * H * W * itemsize
    out_bytes = block_n * H * W * itemsize
    scratch_bytes = (2 * block_n * H * W + 2 * Hp * block_n * Wp) * 4
    need = 2 * (in_bytes + out_bytes) + scratch_bytes + (4 << 20)
    vmem_limit = int(min(max(need, 32 << 20), (vmem_cap * 3) // 4))

    kernel = functools.partial(_sam_kernel, C=C, H=H, W=W, hbw=hbw)
    return pl.pallas_call(
        kernel,
        out_shape=jax.ShapeDtypeStruct((N, H, W), dtype),
        grid=(N // block_n, C // block_c),
        in_specs=[
            pl.BlockSpec((block_n, block_c, H, W), lambda n, k: (n, k, 0, 0)),
            pl.BlockSpec(memory_space=pltpu.SMEM),   # flat conv weight (50,)
            pl.BlockSpec(memory_space=pltpu.SMEM),   # conv bias (1,)
        ],
        out_specs=pl.BlockSpec((block_n, H, W), lambda n, k: (n, 0, 0)),
        scratch_shapes=[
            pltpu.VMEM((block_n, H, W), jnp.float32),    # running channel sum
            pltpu.VMEM((block_n, H, W), jnp.float32),    # running channel max
            pltpu.VMEM(pad_shape, jnp.float32),          # padded avg/max planes
        ],
        compiler_params=pltpu.CompilerParams(
            dimension_semantics=("parallel", "arbitrary"),
            vmem_limit_bytes=vmem_limit),
    )


_HBW_SUPPORTED = None   # lazily probed: does the (H, B, W) relayout lower here?


def spatial_attention(x, weight, bias, *, block_n=None, block_c=None):
    """x: (N, C, H, W); weight: (1, 2, 5, 5); bias: (1,) -> (N, 1, H, W)."""
    global _HBW_SUPPORTED
    N, C, H, W = x.shape
    w_flat = weight.reshape(-1).astype(jnp.float32)
    b_flat = bias.reshape(-1).astype(jnp.float32)

    vmem_cap = _vmem_capacity_bytes()
    auto_n, auto_c = _pick_blocks(N, C, H, W, jnp.dtype(x.dtype).itemsize,
                                  vmem_cap)
    block_n = auto_n if block_n is None else block_n
    block_c = auto_c if block_c is None else block_c
    assert N % block_n == 0 and C % block_c == 0

    layouts = (True, False) if _HBW_SUPPORTED in (None, True) else (False,)
    err = None
    for hbw in layouts:
        call = _build_call(N, C, H, W, x.dtype, block_n, block_c, hbw, vmem_cap)
        try:
            raw = jax.block_until_ready(call(x, w_flat, b_flat))
        except Exception as e:                      # noqa: BLE001
            if hbw:          # relayout unsupported here -> use fallback layout
                _HBW_SUPPORTED = False
                err = e
                continue
            raise
        if hbw:
            _HBW_SUPPORTED = True
        return raw.reshape(N, 1, H, W)
    raise err


# ---------------------------------------------------------------------------
# reference & self-test
# ---------------------------------------------------------------------------
def _reference(x, weight, bias):
    avg = jnp.mean(x, axis=1, keepdims=True)
    mx = jnp.max(x, axis=1, keepdims=True)
    out = jnp.concatenate([avg, mx], axis=1)
    conv = lax.conv_general_dilated(
        out, weight, window_strides=(1, 1),
        padding=((PAD, PAD), (PAD, PAD)), rhs_dilation=(DILATION, DILATION),
        dimension_numbers=("NCHW", "OIHW", "NCHW"))
    return jax.nn.sigmoid(conv + bias.reshape(1, 1, 1, 1))


if __name__ == "__main__":
    key = jax.random.PRNGKey(0)
    kx, kw_, kb, kx2 = jax.random.split(key, 4)

    # Conv2d(2, 1, kernel_size=5, dilation=2, padding=4) parameters.
    weight = 0.1 * jax.random.normal(kw_, (1, 2, KSIZE, KSIZE), dtype=jnp.float32)
    bias = 0.1 * jax.random.normal(kb, (1,), dtype=jnp.float32)

    # Case 1: spec shapes (block_n = 1, 2 batch grid steps).
    N, C, H, W = 2, 4, 16, 16
    x = jax.random.normal(kx, (N, C, H, W), dtype=jnp.float32)
    out = jax.block_until_ready(spatial_attention(x, weight, bias))
    ref = jax.block_until_ready(_reference(x, weight, bias))
    assert out.shape == (N, 1, H, W)
    err1 = float(jnp.max(jnp.abs(out - ref)))
    assert err1 < 1e-5, f"mismatch vs reference (case 1): {err1}"

    # Case 2: larger batch (block_n = 2, 4 batch grid steps).
    N2 = 8
    x2 = jax.random.normal(kx2, (N2, C, H, W), dtype=jnp.float32)
    out2 = jax.block_until_ready(spatial_attention(x2, weight, bias))
    ref2 = jax.block_until_ready(_reference(x2, weight, bias))
    assert out2.shape == (N2, 1, H, W)
    err2 = float(jnp.max(jnp.abs(out2 - ref2)))
    assert err2 < 1e-5, f"mismatch vs reference (case 2): {err2}"

    print("KERNEL_OK")
</pallas_src>

<mosaic_0001>
module attributes {stable_mosaic.version = 11 : i64} {
  func.func @_sam_kernel(%arg0: i32, %arg1: i32, %arg2: memref<1x4x16x16xf32, #tpu.memory_space<vmem>>, %arg3: memref<50xf32, #tpu.memory_space<smem>>, %arg4: memref<1xf32, #tpu.memory_space<smem>>, %arg5: memref<1x16x16xf32, #tpu.memory_space<vmem>>, %arg6: memref<1x16x16xf32, #tpu.memory_space<vmem>>, %arg7: memref<1x16x16xf32, #tpu.memory_space<vmem>>, %arg8: memref<2x24x1x24xf32, #tpu.memory_space<vmem>>) attributes {dimension_semantics = [#tpu.dimension_semantics<parallel>, #tpu.dimension_semantics<arbitrary>], iteration_bounds = array<i64: 2, 1>, scalar_prefetch = 0 : i64, scratch_operands = 3 : i64, tpu.core_type = #tpu.core_type<tc>, window_params = [{transform_indices = @transform_0, window_bounds = array<i64: 1, 4, 16, 16>}, {transform_indices = @transform_1, window_bounds = array<i64: 50>}, {transform_indices = @transform_2, window_bounds = array<i64: 1>}, {transform_indices = @transform_3, window_bounds = array<i64: 1, 16, 16>}]} {
    %c0_i32 = arith.constant 0 : i32
    %0 = arith.cmpi eq, %arg1, %c0_i32 : i32
    %1 = arith.extui %0 : i1 to i32
    %c0_i32_0 = arith.constant 0 : i32
    %2 = arith.cmpi ne, %1, %c0_i32_0 : i32
    scf.if %2 {
      %cst = arith.constant 0.000000e+00 : f32
      %26 = vector.broadcast %cst : f32 to vector<1x16x16xf32>
      %c0_27 = arith.constant 0 : index
      %c0_28 = arith.constant 0 : index
      %c0_29 = arith.constant 0 : index
      %27 = vector.load %arg6[%c0_27, %c0_28, %c0_29] : memref<1x16x16xf32, #tpu.memory_space<vmem>>, vector<1x16x16xf32>
      tpu.vector_store %arg6[%c0_27, %c0_28, %c0_29], %26 {strides = array<i32>} : memref<1x16x16xf32, #tpu.memory_space<vmem>>, vector<1x16x16xf32>,
      %cst_30 = arith.constant 0xFF800000 : f32
      %28 = vector.broadcast %cst_30 : f32 to vector<1x16x16xf32>
      %c0_31 = arith.constant 0 : index
      %c0_32 = arith.constant 0 : index
      %c0_33 = arith.constant 0 : index
      %29 = vector.load %arg7[%c0_31, %c0_32, %c0_33] : memref<1x16x16xf32, #tpu.memory_space<vmem>>, vector<1x16x16xf32>
      tpu.vector_store %arg7[%c0_31, %c0_32, %c0_33], %28 {strides = array<i32>} : memref<1x16x16xf32, #tpu.memory_space<vmem>>, vector<1x16x16xf32>,
    } else {
    }
    %c0 = arith.constant 0 : index
    %c0_1 = arith.constant 0 : index
    %c0_2 = arith.constant 0 : index
    %3 = vector.load %arg6[%c0, %c0_1, %c0_2] : memref<1x16x16xf32, #tpu.memory_space<vmem>>, vector<1x16x16xf32>
    %c0_3 = arith.constant 0 : index
    %c0_4 = arith.constant 0 : index
    %c0_5 = arith.constant 0 : index
    %4 = vector.load %arg7[%c0_3, %c0_4, %c0_5] : memref<1x16x16xf32, #tpu.memory_space<vmem>>, vector<1x16x16xf32>
    %c0_6 = arith.constant 0 : index
    %c0_7 = arith.constant 0 : index
    %c0_8 = arith.constant 0 : index
    %c0_9 = arith.constant 0 : index
    %5 = vector.load %arg2[%c0_6, %c0_7, %c0_8, %c0_9] : memref<1x4x16x16xf32, #tpu.memory_space<vmem>>, vector<1x1x16x16xf32>
    %6 = vector.shape_cast %5 : vector<1x1x16x16xf32> to vector<1x16x16xf32>
    %7 = arith.addf %3, %6 : vector<1x16x16xf32>
    %8 = arith.maximumf %4, %6 : vector<1x16x16xf32>
    %c0_10 = arith.constant 0 : index
    %c1 = arith.constant 1 : index
    %c0_11 = arith.constant 0 : index
    %c0_12 = arith.constant 0 : index
    %9 = vector.load %arg2[%c0_10, %c1, %c0_11, %c0_12] : memref<1x4x16x16xf32, #tpu.memory_space<vmem>>, vector<1x1x16x16xf32>
    %10 = vector.shape_cast %9 : vector<1x1x16x16xf32> to vector<1x16x16xf32>
    %11 = arith.addf %7, %10 : vector<1x16x16xf32>
    %12 = arith.maximumf %8, %10 : vector<1x16x16xf32>
    %c0_13 = arith.constant 0 : index
    %c2 = arith.constant 2 : index
    %c0_14 = arith.constant 0 : index
    %c0_15 = arith.constant 0 : index
    %13 = vector.load %arg2[%c0_13, %c2, %c0_14, %c0_15] : memref<1x4x16x16xf32, #tpu.memory_space<vmem>>, vector<1x1x16x16xf32>
    %14 = vector.shape_cast %13 : vector<1x1x16x16xf32> to vector<1x16x16xf32>
    %15 = arith.addf %11, %14 : vector<1x16x16xf32>
    %16 = arith.maximumf %12, %14 : vector<1x16x16xf32>
    %c0_16 = arith.constant 0 : index
    %c3 = arith.constant 3 : index
    %c0_17 = arith.constant 0 : index
    %c0_18 = arith.constant 0 : index
    %17 = vector.load %arg2[%c0_16, %c3, %c0_17, %c0_18] : memref<1x4x16x16xf32, #tpu.memory_space<vmem>>, vector<1x1x16x16xf32>
    %18 = vector.shape_cast %17 : vector<1x1x16x16xf32> to vector<1x16x16xf32>
    %19 = arith.addf %15, %18 : vector<1x16x16xf32>
    %20 = arith.maximumf %16, %18 : vector<1x16x16xf32>
    %c0_19 = arith.constant 0 : index
    %c0_20 = arith.constant 0 : index
    %c0_21 = arith.constant 0 : index
    %21 = vector.load %arg6[%c0_19, %c0_20, %c0_21] : memref<1x16x16xf32, #tpu.memory_space<vmem>>, vector<1x16x16xf32>
    tpu.vector_store %arg6[%c0_19, %c0_20, %c0_21], %19 {strides = array<i32>} : memref<1x16x16xf32, #tpu.memory_space<vmem>>, vector<1x16x16xf32>,
    %c0_22 = arith.constant 0 : index
    %c0_23 = arith.constant 0 : index
    %c0_24 = arith.constant 0 : index
    %22 = vector.load %arg7[%c0_22, %c0_23, %c0_24] : memref<1x16x16xf32, #tpu.memory_space<vmem>>, vector<1x16x16xf32>
    tpu.vector_store %arg7[%c0_22, %c0_23, %c0_24], %20 {strides = array<i32>} : memref<1x16x16xf32, #tpu.memory_space<vmem>>, vector<1x16x16xf32>,
    %c0_i32_25 = arith.constant 0 : i32
    %23 = arith.cmpi eq, %arg1, %c0_i32_25 : i32
    %24 = arith.extui %23 : i1 to i32
    %c0_i32_26 = arith.constant 0 : i32
    %25 = arith.cmpi ne, %24, %c0_i32_26 : i32
    scf.if %25 {
      %cst = arith.constant 2.500000e-01 : f32
      %26 = vector.broadcast %cst : f32 to vector<1x16x16xf32>
      %27 = arith.mulf %19, %26 : vector<1x16x16xf32>
      %cst_27 = arith.constant 0.000000e+00 : f32
      %28 = vector.broadcast %cst_27 : f32 to vector<2x4x1x24xf32>
      %cst_28 = arith.constant 0.000000e+00 : f32
      %29 = vector.broadcast %cst_28 : f32 to vector<2x16x1x4xf32>
      %c0_29 = arith.constant 0 : index
      %c0_30 = arith.constant 0 : index
      %c0_31 = arith.constant 0 : index
      %c0_32 = arith.constant 0 : index
      %30 = vector.load %arg8[%c0_29, %c0_30, %c0_31, %c0_32] : memref<2x24x1x24xf32, #tpu.memory_space<vmem>>, vector<2x4x1x24xf32>
      tpu.vector_store %arg8[%c0_29, %c0_30, %c0_31, %c0_32], %28 {strides = array<i32>} : memref<2x24x1x24xf32, #tpu.memory_space<vmem>>, vector<2x4x1x24xf32>,
      %c0_33 = arith.constant 0 : index
      %c20 = arith.constant 20 : index
      %c0_34 = arith.constant 0 : index
      %c0_35 = arith.constant 0 : index
      %31 = vector.load %arg8[%c0_33, %c20, %c0_34, %c0_35] : memref<2x24x1x24xf32, #tpu.memory_space<vmem>>, vector<2x4x1x24xf32>
      tpu.vector_store %arg8[%c0_33, %c20, %c0_34, %c0_35], %28 {strides = array<i32>} : memref<2x24x1x24xf32, #tpu.memory_space<vmem>>, vector<2x4x1x24xf32>,
      %c0_36 = arith.constant 0 : index
      %c4 = arith.constant 4 : index
      %c0_37 = arith.constant 0 : index
      %c0_38 = arith.constant 0 : index
      %32 = vector.load %arg8[%c0_36, %c4, %c0_37, %c0_38] : memref<2x24x1x24xf32, #tpu.memory_space<vmem>>, vector<2x16x1x4xf32>
      tpu.vector_store %arg8[%c0_36, %c4, %c0_37, %c0_38], %29 {strides = array<i32>} : memref<2x24x1x24xf32, #tpu.memory_space<vmem>>, vector<2x16x1x4xf32>,
      %c0_39 = arith.constant 0 : index
      %c4_40 = arith.constant 4 : index
      %c0_41 = arith.constant 0 : index
      %c20_42 = arith.constant 20 : index
      %33 = vector.load %arg8[%c0_39, %c4_40, %c0_41, %c20_42] : memref<2x24x1x24xf32, #tpu.memory_space<vmem>>, vector<2x16x1x4xf32>
      tpu.vector_store %arg8[%c0_39, %c4_40, %c0_41, %c20_42], %29 {strides = array<i32>} : memref<2x24x1x24xf32, #tpu.memory_space<vmem>>, vector<2x16x1x4xf32>,
      %34 = tpu.transpose %27, [1, 0, 2] : vector<1x16x16xf32> -> vector<16x1x16xf32>
      %c0_43 = arith.constant 0 : index
      %c4_44 = arith.constant 4 : index
      %c0_45 = arith.constant 0 : index
      %c4_46 = arith.constant 4 : index
      %35 = vector.load %arg8[%c0_43, %c4_44, %c0_45, %c4_46] : memref<2x24x1x24xf32, #tpu.memory_space<vmem>>, vector<1x16x1x16xf32>
      %36 = vector.shape_cast %35 : vector<1x16x1x16xf32> to vector<16x1x16xf32>
      %37 = vector.shape_cast %34 : vector<16x1x16xf32> to vector<1x16x1x16xf32>
      tpu.vector_store %arg8[%c0_43, %c4_44, %c0_45, %c4_46], %37 {strides = array<i32>} : memref<2x24x1x24xf32, #tpu.memory_space<vmem>>, vector<1x16x1x16xf32>,
      %38 = tpu.transpose %20, [1, 0, 2] : vector<1x16x16xf32> -> vector<16x1x16xf32>
      %c1_47 = arith.constant 1 : index
      %c4_48 = arith.constant 4 : index
      %c0_49 = arith.constant 0 : index
      %c4_50 = arith.constant 4 : index
      %39 = vector.load %arg8[%c1_47, %c4_48, %c0_49, %c4_50] : memref<2x24x1x24xf32, #tpu.memory_space<vmem>>, vector<1x16x1x16xf32>
      %40 = vector.shape_cast %39 : vector<1x16x1x16xf32> to vector<16x1x16xf32>
      %41 = vector.shape_cast %38 : vector<16x1x16xf32> to vector<1x16x1x16xf32>
      tpu.vector_store %arg8[%c1_47, %c4_48, %c0_49, %c4_50], %41 {strides = array<i32>} : memref<2x24x1x24xf32, #tpu.memory_space<vmem>>, vector<1x16x1x16xf32>,
      %c0_51 = arith.constant 0 : index
      %42 = memref.load %arg4[%c0_51] : memref<1xf32, #tpu.memory_space<smem>>
      %43 = vector.broadcast %42 : f32 to vector<16x1x16xf32>
      %c0_52 = arith.constant 0 : index
      %c0_53 = arith.constant 0 : index
      %c0_54 = arith.constant 0 : index
      %c0_55 = arith.constant 0 : index
      %44 = vector.load %arg8[%c0_52, %c0_53, %c0_54, %c0_55] : memref<2x24x1x24xf32, #tpu.memory_space<vmem>>, vector<1x24x1x16xf32>
      %45 = vector.shape_cast %44 : vector<1x24x1x16xf32> to vector<24x1x16xf32>
      %c0_56 = arith.constant 0 : index
      %46 = memref.load %arg3[%c0_56] : memref<50xf32, #tpu.memory_space<smem>>
      %47 = vector.extract_strided_slice %45 {offsets = [0, 0, 0], sizes = [16, 1, 16], strides = [1, 1, 1]} : vector<24x1x16xf32> to vector<16x1x16xf32>
      %48 = vector.broadcast %46 : f32 to vector<16x1x16xf32>
      %49 = arith.mulf %48, %47 : vector<16x1x16xf32>
      %50 = arith.addf %43, %49 : vector<16x1x16xf32>
      %c5 = arith.constant 5 : index
      %51 = memref.load %arg3[%c5] : memref<50xf32, #tpu.memory_space<smem>>
      %52 = vector.extract_strided_slice %45 {offsets = [2, 0, 0], sizes = [16, 1, 16], strides = [1, 1, 1]} : vector<24x1x16xf32> to vector<16x1x16xf32>
      %53 = vector.broadcast %51 : f32 to vector<16x1x16xf32>
      %54 = arith.mulf %53, %52 : vector<16x1x16xf32>
      %55 = arith.addf %50, %54 : vector<16x1x16xf32>
      %c10 = arith.constant 10 : index
      %56 = memref.load %arg3[%c10] : memref<50xf32, #tpu.memory_space<smem>>
      %57 = vector.extract_strided_slice %45 {offsets = [4, 0, 0], sizes = [16, 1, 16], strides = [1, 1, 1]} : vector<24x1x16xf32> to vector<16x1x16xf32>
      %58 = vector.broadcast %56 : f32 to vector<16x1x16xf32>
      %59 = arith.mulf %58, %57 : vector<16x1x16xf32>
      %60 = arith.addf %55, %59 : vector<16x1x16xf32>
      %c15 = arith.constant 15 : index
      %61 = memref.load %arg3[%c15] : memref<50xf32, #tpu.memory_space<smem>>
      %62 = vector.extract_strided_slice %45 {offsets = [6, 0, 0], sizes = [16, 1, 16], strides = [1, 1, 1]} : vector<24x1x16xf32> to vector<16x1x16xf32>
      %63 = vector.broadcast %61 : f32 to vector<16x1x16xf32>
      %64 = arith.mulf %63, %62 : vector<16x1x16xf32>
      %65 = arith.addf %60, %64 : vector<16x1x16xf32>
      %c20_57 = arith.constant 20 : index
      %66 = memref.load %arg3[%c20_57] : memref<50xf32, #tpu.memory_space<smem>>
      %67 = vector.extract_strided_slice %45 {offsets = [8, 0, 0], sizes = [16, 1, 16], strides = [1, 1, 1]} : vector<24x1x16xf32> to vector<16x1x16xf32>
      %68 = vector.broadcast %66 : f32 to vector<16x1x16xf32>
      %69 = arith.mulf %68, %67 : vector<16x1x16xf32>
      %70 = arith.addf %65, %69 : vector<16x1x16xf32>
      %c0_58 = arith.constant 0 : index
      %c0_59 = arith.constant 0 : index
      %c0_60 = arith.constant 0 : index
      %c2_61 = arith.constant 2 : index
      %71 = vector.load %arg8[%c0_58, %c0_59, %c0_60, %c2_61] : memref<2x24x1x24xf32, #tpu.memory_space<vmem>>, vector<1x24x1x16xf32>
      %72 = vector.shape_cast %71 : vector<1x24x1x16xf32> to vector<24x1x16xf32>
      %c1_62 = arith.constant 1 : index
      %73 = memref.load %arg3[%c1_62] : memref<50xf32, #tpu.memory_space<smem>>
      %74 = vector.extract_strided_slice %72 {offsets = [0, 0, 0], sizes = [16, 1, 16], strides = [1, 1, 1]} : vector<24x1x16xf32> to vector<16x1x16xf32>
      %75 = vector.broadcast %73 : f32 to vector<16x1x16xf32>
      %76 = arith.mulf %75, %74 : vector<16x1x16xf32>
      %77 = arith.addf %70, %76 : vector<16x1x16xf32>
      %c6 = arith.constant 6 : index
      %78 = memref.load %arg3[%c6] : memref<50xf32, #tpu.memory_space<smem>>
      %79 = vector.extract_strided_slice %72 {offsets = [2, 0, 0], sizes = [16, 1, 16], strides = [1, 1, 1]} : vector<24x1x16xf32> to vector<16x1x16xf32>
      %80 = vector.broadcast %78 : f32 to vector<16x1x16xf32>
      %81 = arith.mulf %80, %79 : vector<16x1x16xf32>
      %82 = arith.addf %77, %81 : vector<16x1x16xf32>
      %c11 = arith.constant 11 : index
      %83 = memref.load %arg3[%c11] : memref<50xf32, #tpu.memory_space<smem>>
      %84 = vector.extract_strided_slice %72 {offsets = [4, 0, 0], sizes = [16, 1, 16], strides = [1, 1, 1]} : vector<24x1x16xf32> to vector<16x1x16xf32>
      %85 = vector.broadcast %83 : f32 to vector<16x1x16xf32>
      %86 = arith.mulf %85, %84 : vector<16x1x16xf32>
      %87 = arith.addf %82, %86 : vector<16x1x16xf32>
      %c16 = arith.constant 16 : index
      %88 = memref.load %arg3[%c16] : memref<50xf32, #tpu.memory_space<smem>>
      %89 = vector.extract_strided_slice %72 {offsets = [6, 0, 0], sizes = [16, 1, 16], strides = [1, 1, 1]} : vector<24x1x16xf32> to vector<16x1x16xf32>
      %90 = vector.broadcast %88 : f32 to vector<16x1x16xf32>
      %91 = arith.mulf %90, %89 : vector<16x1x16xf32>
      %92 = arith.addf %87, %91 : vector<16x1x16xf32>
      %c21 = arith.constant 21 : index
      %93 = memref.load %arg3[%c21] : memref<50xf32, #tpu.memory_space<smem>>
      %94 = vector.extract_strided_slice %72 {offsets = [8, 0, 0], sizes = [16, 1, 16], strides = [1, 1, 1]} : vector<24x1x16xf32> to vector<16x1x16xf32>
      %95 = vector.broadcast %93 : f32 to vector<16x1x16xf32>
      %96 = arith.mulf %95, %94 : vector<16x1x16xf32>
      %97 = arith.addf %92, %96 : vector<16x1x16xf32>
      %c0_63 = arith.constant 0 : index
      %c0_64 = arith.constant 0 : index
      %c0_65 = arith.constant 0 : index
      %c4_66 = arith.constant 4 : index
      %98 = vector.load %arg8[%c0_63, %c0_64, %c0_65, %c4_66] : memref<2x24x1x24xf32, #tpu.memory_space<vmem>>, vector<1x24x1x16xf32>
      %99 = vector.shape_cast %98 : vector<1x24x1x16xf32> to vector<24x1x16xf32>
      %c2_67 = arith.constant 2 : index
      %100 = memref.load %arg3[%c2_67] : memref<50xf32, #tpu.memory_space<smem>>
      %101 = vector.extract_strided_slice %99 {offsets = [0, 0, 0], sizes = [16, 1, 16], strides = [1, 1, 1]} : vector<24x1x16xf32> to vector<16x1x16xf32>
      %102 = vector.broadcast %100 : f32 to vector<16x1x16xf32>
      %103 = arith.mulf %102, %101 : vector<16x1x16xf32>
      %104 = arith.addf %97, %103 : vector<16x1x16xf32>
      %c7 = arith.constant 7 : index
      %105 = memref.load %arg3[%c7] : memref<50xf32, #tpu.memory_space<smem>>
      %106 = vector.extract_strided_slice %99 {offsets = [2, 0, 0], sizes = [16, 1, 16], strides = [1, 1, 1]} : vector<24x1x16xf32> to vector<16x1x16xf32>
      %107 = vector.broadcast %105 : f32 to vector<16x1x16xf32>
      %108 = arith.mulf %107, %106 : vector<16x1x16xf32>
      %109 = arith.addf %104, %108 : vector<16x1x16xf32>
      %c12 = arith.constant 12 : index
      %110 = memref.load %arg3[%c12] : memref<50xf32, #tpu.memory_space<smem>>
      %111 = vector.extract_strided_slice %99 {offsets = [4, 0, 0], sizes = [16, 1, 16], strides = [1, 1, 1]} : vector<24x1x16xf32> to vector<16x1x16xf32>
      %112 = vector.broadcast %110 : f32 to vector<16x1x16xf32>
      %113 = arith.mulf %112, %111 : vector<16x1x16xf32>
      %114 = arith.addf %109, %113 : vector<16x1x16xf32>
      %c17 = arith.constant 17 : index
      %115 = memref.load %arg3[%c17] : memref<50xf32, #tpu.memory_space<smem>>
      %116 = vector.extract_strided_slice %99 {offsets = [6, 0, 0], sizes = [16, 1, 16], strides = [1, 1, 1]} : vector<24x1x16xf32> to vector<16x1x16xf32>
      %117 = vector.broadcast %115 : f32 to vector<16x1x16xf32>
      %118 = arith.mulf %117, %116 : vector<16x1x16xf32>
      %119 = arith.addf %114, %118 : vector<16x1x16xf32>
      %c22 = arith.constant 22 : index
      %120 = memref.load %arg3[%c22] : memref<50xf32, #tpu.memory_space<smem>>
      %121 = vector.extract_strided_slice %99 {offsets = [8, 0, 0], sizes = [16, 1, 16], strides = [1, 1, 1]} : vector<24x1x16xf32> to vector<16x1x16xf32>
      %122 = vector.broadcast %120 : f32 to vector<16x1x16xf32>
      %123 = arith.mulf %122, %121 : vector<16x1x16xf32>
      %124 = arith.addf %119, %123 : vector<16x1x16xf32>
      %c0_68 = arith.constant 0 : index
      %c0_69 = arith.constant 0 : index
      %c0_70 = arith.constant 0 : index
      %c6_71 = arith.constant 6 : index
      %125 = vector.load %arg8[%c0_68, %c0_69, %c0_70, %c6_71] : memref<2x24x1x24xf32, #tpu.memory_space<vmem>>, vector<1x24x1x16xf32>
      %126 = vector.shape_cast %125 : vector<1x24x1x16xf32> to vector<24x1x16xf32>
      %c3_72 = arith.constant 3 : index
      %127 = memref.load %arg3[%c3_72] : memref<50xf32, #tpu.memory_space<smem>>
      %128 = vector.extract_strided_slice %126 {offsets = [0, 0, 0], sizes = [16, 1, 16], strides = [1, 1, 1]} : vector<24x1x16xf32> to vector<16x1x16xf32>
      %129 = vector.broadcast %127 : f32 to vector<16x1x16xf32>
      %130 = arith.mulf %129, %128 : vector<16x1x16xf32>
      %131 = arith.addf %124, %130 : vector<16x1x16xf32>
      %c8 = arith.constant 8 : index
      %132 = memref.load %arg3[%c8] : memref<50xf32, #tpu.memory_space<smem>>
      %133 = vector.extract_strided_slice %126 {offsets = [2, 0, 0], sizes = [16, 1, 16], strides = [1, 1, 1]} : vector<24x1x16xf32> to vector<16x1x16xf32>
      %134 = vector.broadcast %132 : f32 to vector<16x1x16xf32>
      %135 = arith.mulf %134, %133 : vector<16x1x16xf32>
      %136 = arith.addf %131, %135 : vector<16x1x16xf32>
      %c13 = arith.constant 13 : index
      %137 = memref.load %arg3[%c13] : memref<50xf32, #tpu.memory_space<smem>>
      %138 = vector.extract_strided_slice %126 {offsets = [4, 0, 0], sizes = [16, 1, 16], strides = [1, 1, 1]} : vector<24x1x16xf32> to vector<16x1x16xf32>
      %139 = vector.broadcast %137 : f32 to vector<16x1x16xf32>
      %140 = arith.mulf %139, %138 : vector<16x1x16xf32>
      %141 = arith.addf %136, %140 : vector<16x1x16xf32>
      %c18 = arith.constant 18 : index
      %142 = memref.load %arg3[%c18] : memref<50xf32, #tpu.memory_space<smem>>
      %143 = vector.extract_strided_slice %126 {offsets = [6, 0, 0], sizes = [16, 1, 16], strides = [1, 1, 1]} : vector<24x1x16xf32> to vector<16x1x16xf32>
      %144 = vector.broadcast %142 : f32 to vector<16x1x16xf32>
      %145 = arith.mulf %144, %143 : vector<16x1x16xf32>
      %146 = arith.addf %141, %145 : vector<16x1x16xf32>
      %c23 = arith.constant 23 : index
      %147 = memref.load %arg3[%c23] : memref<50xf32, #tpu.memory_space<smem>>
      %148 = vector.extract_strided_slice %126 {offsets = [8, 0, 0], sizes = [16, 1, 16], strides = [1, 1, 1]} : vector<24x1x16xf32> to vector<16x1x16xf32>
      %149 = vector.broadcast %147 : f32 to vector<16x1x16xf32>
      %150 = arith.mulf %149, %148 : vector<16x1x16xf32>
      %151 = arith.addf %146, %150 : vector<16x1x16xf32>
      %c0_73 = arith.constant 0 : index
      %c0_74 = arith.constant 0 : index
      %c0_75 = arith.constant 0 : index
      %c8_76 = arith.constant 8 : index
      %152 = vector.load %arg8[%c0_73, %c0_74, %c0_75, %c8_76] : memref<2x24x1x24xf32, #tpu.memory_space<vmem>>, vector<1x24x1x16xf32>
      %153 = vector.shape_cast %152 : vector<1x24x1x16xf32> to vector<24x1x16xf32>
      %c4_77 = arith.constant 4 : index
      %154 = memref.load %arg3[%c4_77] : memref<50xf32, #tpu.memory_space<smem>>
      %155 = vector.extract_strided_slice %153 {offsets = [0, 0, 0], sizes = [16, 1, 16], strides = [1, 1, 1]} : vector<24x1x16xf32> to vector<16x1x16xf32>
      %156 = vector.broadcast %154 : f32 to vector<16x1x16xf32>
      %157 = arith.mulf %156, %155 : vector<16x1x16xf32>
      %158 = arith.addf %151, %157 : vector<16x1x16xf32>
      %c9 = arith.constant 9 : index
      %159 = memref.load %arg3[%c9] : memref<50xf32, #tpu.memory_space<smem>>
      %160 = vector.extract_strided_slice %153 {offsets = [2, 0, 0], sizes = [16, 1, 16], strides = [1, 1, 1]} : vector<24x1x16xf32> to vector<16x1x16xf32>
      %161 = vector.broadcast %159 : f32 to vector<16x1x16xf32>
      %162 = arith.mulf %161, %160 : vector<16x1x16xf32>
      %163 = arith.addf %158, %162 : vector<16x1x16xf32>
      %c14 = arith.constant 14 : index
      %164 = memref.load %arg3[%c14] : memref<50xf32, #tpu.memory_space<smem>>
      %165 = vector.extract_strided_slice %153 {offsets = [4, 0, 0], sizes = [16, 1, 16], strides = [1, 1, 1]} : vector<24x1x16xf32> to vector<16x1x16xf32>
      %166 = vector.broadcast %164 : f32 to vector<16x1x16xf32>
      %167 = arith.mulf %166, %165 : vector<16x1x16xf32>
      %168 = arith.addf %163, %167 : vector<16x1x16xf32>
      %c19 = arith.constant 19 : index
      %169 = memref.load %arg3[%c19] : memref<50xf32, #tpu.memory_space<smem>>
      %170 = vector.extract_strided_slice %153 {offsets = [6, 0, 0], sizes = [16, 1, 16], strides = [1, 1, 1]} : vector<24x1x16xf32> to vector<16x1x16xf32>
      %171 = vector.broadcast %169 : f32 to vector<16x1x16xf32>
      %172 = arith.mulf %171, %170 : vector<16x1x16xf32>
      %173 = arith.addf %168, %172 : vector<16x1x16xf32>
      %c24 = arith.constant 24 : index
      %174 = memref.load %arg3[%c24] : memref<50xf32, #tpu.memory_space<smem>>
      %175 = vector.extract_strided_slice %153 {offsets = [8, 0, 0], sizes = [16, 1, 16], strides = [1, 1, 1]} : vector<24x1x16xf32> to vector<16x1x16xf32>
      %176 = vector.broadcast %174 : f32 to vector<16x1x16xf32>
      %177 = arith.mulf %176, %175 : vector<16x1x16xf32>
      %178 = arith.addf %173, %177 : vector<16x1x16xf32>
      %c1_78 = arith.constant 1 : index
      %c0_79 = arith.constant 0 : index
      %c0_80 = arith.constant 0 : index
      %c0_81 = arith.constant 0 : index
      %179 = vector.load %arg8[%c1_78, %c0_79, %c0_80, %c0_81] : memref<2x24x1x24xf32, #tpu.memory_space<vmem>>, vector<1x24x1x16xf32>
      %180 = vector.shape_cast %179 : vector<1x24x1x16xf32> to vector<24x1x16xf32>
      %c25 = arith.constant 25 : index
      %181 = memref.load %arg3[%c25] : memref<50xf32, #tpu.memory_space<smem>>
      %182 = vector.extract_strided_slice %180 {offsets = [0, 0, 0], sizes = [16, 1, 16], strides = [1, 1, 1]} : vector<24x1x16xf32> to vector<16x1x16xf32>
      %183 = vector.broadcast %181 : f32 to vector<16x1x16xf32>
      %184 = arith.mulf %183, %182 : vector<16x1x16xf32>
      %185 = arith.addf %178, %184 : vector<16x1x16xf32>
      %c30 = arith.constant 30 : index
      %186 = memref.load %arg3[%c30] : memref<50xf32, #tpu.memory_space<smem>>
      %187 = vector.extract_strided_slice %180 {offsets = [2, 0, 0], sizes = [16, 1, 16], strides = [1, 1, 1]} : vector<24x1x16xf32> to vector<16x1x16xf32>
      %188 = vector.broadcast %186 : f32 to vector<16x1x16xf32>
      %189 = arith.mulf %188, %187 : vector<16x1x16xf32>
      %190 = arith.addf %185, %189 : vector<16x1x16xf32>
      %c35 = arith.constant 35 : index
      %191 = memref.load %arg3[%c35] : memref<50xf32, #tpu.memory_space<smem>>
      %192 = vector.extract_strided_slice %180 {offsets = [4, 0, 0], sizes = [16, 1, 16], strides = [1, 1, 1]} : vector<24x1x16xf32> to vector<16x1x16xf32>
      %193 = vector.broadcast %191 : f32 to vector<16x1x16xf32>
      %194 = arith.mulf %193, %192 : vector<16x1x16xf32>
      %195 = arith.addf %190, %194 : vector<16x1x16xf32>
      %c40 = arith.constant 40 : index
      %196 = memref.load %arg3[%c40] : memref<50xf32, #tpu.memory_space<smem>>
      %197 = vector.extract_strided_slice %180 {offsets = [6, 0, 0], sizes = [16, 1, 16], strides = [1, 1, 1]} : vector<24x1x16xf32> to vector<16x1x16xf32>
      %198 = vector.broadcast %196 : f32 to vector<16x1x16xf32>
      %199 = arith.mulf %198, %197 : vector<16x1x16xf32>
      %200 = arith.addf %195, %199 : vector<16x1x16xf32>
      %c45 = arith.constant 45 : index
      %201 = memref.load %arg3[%c45] : memref<50xf32, #tpu.memory_space<smem>>
      %202 = vector.extract_strided_slice %180 {offsets = [8, 0, 0], sizes = [16, 1, 16], strides = [1, 1, 1]} : vector<24x1x16xf32> to vector<16x1x16xf32>
      %203 = vector.broadcast %201 : f32 to vector<16x1x16xf32>
      %204 = arith.mulf %203, %202 : vector<16x1x16xf32>
      %205 = arith.addf %200, %204 : vector<16x1x16xf32>
      %c1_82 = arith.constant 1 : index
      %c0_83 = arith.constant 0 : index
      %c0_84 = arith.constant 0 : index
      %c2_85 = arith.constant 2 : index
      %206 = vector.load %arg8[%c1_82, %c0_83, %c0_84, %c2_85] : memref<2x24x1x24xf32, #tpu.memory_space<vmem>>, vector<1x24x1x16xf32>
      %207 = vector.shape_cast %206 : vector<1x24x1x16xf32> to vector<24x1x16xf32>
      %c26 = arith.constant 26 : index
      %208 = memref.load %arg3[%c26] : memref<50xf32, #tpu.memory_space<smem>>
      %209 = vector.extract_strided_slice %207 {offsets = [0, 0, 0], sizes = [16, 1, 16], strides = [1, 1, 1]} : vector<24x1x16xf32> to vector<16x1x16xf32>
      %210 = vector.broadcast %208 : f32 to vector<16x1x16xf32>
      %211 = arith.mulf %210, %209 : vector<16x1x16xf32>
      %212 = arith.addf %205, %211 : vector<16x1x16xf32>
      %c31 = arith.constant 31 : index
      %213 = memref.load %arg3[%c31] : memref<50xf32, #tpu.memory_space<smem>>
      %214 = vector.extract_strided_slice %207 {offsets = [2, 0, 0], sizes = [16, 1, 16], strides = [1, 1, 1]} : vector<24x1x16xf32> to vector<16x1x16xf32>
      %215 = vector.broadcast %213 : f32 to vector<16x1x16xf32>
      %216 = arith.mulf %215, %214 : vector<16x1x16xf32>
      %217 = arith.addf %212, %216 : vector<16x1x16xf32>
      %c36 = arith.constant 36 : index
      %218 = memref.load %arg3[%c36] : memref<50xf32, #tpu.memory_space<smem>>
      %219 = vector.extract_strided_slice %207 {offsets = [4, 0, 0], sizes = [16, 1, 16], strides = [1, 1, 1]} : vector<24x1x16xf32> to vector<16x1x16xf32>
      %220 = vector.broadcast %218 : f32 to vector<16x1x16xf32>
      %221 = arith.mulf %220, %219 : vector<16x1x16xf32>
      %222 = arith.addf %217, %221 : vector<16x1x16xf32>
      %c41 = arith.constant 41 : index
      %223 = memref.load %arg3[%c41] : memref<50xf32, #tpu.memory_space<smem>>
      %224 = vector.extract_strided_slice %207 {offsets = [6, 0, 0], sizes = [16, 1, 16], strides = [1, 1, 1]} : vector<24x1x16xf32> to vector<16x1x16xf32>
      %225 = vector.broadcast %223 : f32 to vector<16x1x16xf32>
      %226 = arith.mulf %225, %224 : vector<16x1x16xf32>
      %227 = arith.addf %222, %226 : vector<16x1x16xf32>
      %c46 = arith.constant 46 : index
      %228 = memref.load %arg3[%c46] : memref<50xf32, #tpu.memory_space<smem>>
      %229 = vector.extract_strided_slice %207 {offsets = [8, 0, 0], sizes = [16, 1, 16], strides = [1, 1, 1]} : vector<24x1x16xf32> to vector<16x1x16xf32>
      %230 = vector.broadcast %228 : f32 to vector<16x1x16xf32>
      %231 = arith.mulf %230, %229 : vector<16x1x16xf32>
      %232 = arith.addf %227, %231 : vector<16x1x16xf32>
      %c1_86 = arith.constant 1 : index
      %c0_87 = arith.constant 0 : index
      %c0_88 = arith.constant 0 : index
      %c4_89 = arith.constant 4 : index
      %233 = vector.load %arg8[%c1_86, %c0_87, %c0_88, %c4_89] : memref<2x24x1x24xf32, #tpu.memory_space<vmem>>, vector<1x24x1x16xf32>
      %234 = vector.shape_cast %233 : vector<1x24x1x16xf32> to vector<24x1x16xf32>
      %c27 = arith.constant 27 : index
      %235 = memref.load %arg3[%c27] : memref<50xf32, #tpu.memory_space<smem>>
      %236 = vector.extract_strided_slice %234 {offsets = [0, 0, 0], sizes = [16, 1, 16], strides = [1, 1, 1]} : vector<24x1x16xf32> to vector<16x1x16xf32>
      %237 = vector.broadcast %235 : f32 to vector<16x1x16xf32>
      %238 = arith.mulf %237, %236 : vector<16x1x16xf32>
      %239 = arith.addf %232, %238 : vector<16x1x16xf32>
      %c32 = arith.constant 32 : index
      %240 = memref.load %arg3[%c32] : memref<50xf32, #tpu.memory_space<smem>>
      %241 = vector.extract_strided_slice %234 {offsets = [2, 0, 0], sizes = [16, 1, 16], strides = [1, 1, 1]} : vector<24x1x16xf32> to vector<16x1x16xf32>
      %242 = vector.broadcast %240 : f32 to vector<16x1x16xf32>
      %243 = arith.mulf %242, %241 : vector<16x1x16xf32>
      %244 = arith.addf %239, %243 : vector<16x1x16xf32>
      %c37 = arith.constant 37 : index
      %245 = memref.load %arg3[%c37] : memref<50xf32, #tpu.memory_space<smem>>
      %246 = vector.extract_strided_slice %234 {offsets = [4, 0, 0], sizes = [16, 1, 16], strides = [1, 1, 1]} : vector<24x1x16xf32> to vector<16x1x16xf32>
      %247 = vector.broadcast %245 : f32 to vector<16x1x16xf32>
      %248 = arith.mulf %247, %246 : vector<16x1x16xf32>
      %249 = arith.addf %244, %248 : vector<16x1x16xf32>
      %c42 = arith.constant 42 : index
      %250 = memref.load %arg3[%c42] : memref<50xf32, #tpu.memory_space<smem>>
      %251 = vector.extract_strided_slice %234 {offsets = [6, 0, 0], sizes = [16, 1, 16], strides = [1, 1, 1]} : vector<24x1x16xf32> to vector<16x1x16xf32>
      %252 = vector.broadcast %250 : f32 to vector<16x1x16xf32>
      %253 = arith.mulf %252, %251 : vector<16x1x16xf32>
      %254 = arith.addf %249, %253 : vector<16x1x16xf32>
      %c47 = arith.constant 47 : index
      %255 = memref.load %arg3[%c47] : memref<50xf32, #tpu.memory_space<smem>>
      %256 = vector.extract_strided_slice %234 {offsets = [8, 0, 0], sizes = [16, 1, 16], strides = [1, 1, 1]} : vector<24x1x16xf32> to vector<16x1x16xf32>
      %257 = vector.broadcast %255 : f32 to vector<16x1x16xf32>
      %258 = arith.mulf %257, %256 : vector<16x1x16xf32>
      %259 = arith.addf %254, %258 : vector<16x1x16xf32>
      %c1_90 = arith.constant 1 : index
      %c0_91 = arith.constant 0 : index
      %c0_92 = arith.constant 0 : index
      %c6_93 = arith.constant 6 : index
      %260 = vector.load %arg8[%c1_90, %c0_91, %c0_92, %c6_93] : memref<2x24x1x24xf32, #tpu.memory_space<vmem>>, vector<1x24x1x16xf32>
      %261 = vector.shape_cast %260 : vector<1x24x1x16xf32> to vector<24x1x16xf32>
      %c28 = arith.constant 28 : index
      %262 = memref.load %arg3[%c28] : memref<50xf32, #tpu.memory_space<smem>>
      %263 = vector.extract_strided_slice %261 {offsets = [0, 0, 0], sizes = [16, 1, 16], strides = [1, 1, 1]} : vector<24x1x16xf32> to vector<16x1x16xf32>
      %264 = vector.broadcast %262 : f32 to vector<16x1x16xf32>
      %265 = arith.mulf %264, %263 : vector<16x1x16xf32>
      %266 = arith.addf %259, %265 : vector<16x1x16xf32>
      %c33 = arith.constant 33 : index
      %267 = memref.load %arg3[%c33] : memref<50xf32, #tpu.memory_space<smem>>
      %268 = vector.extract_strided_slice %261 {offsets = [2, 0, 0], sizes = [16, 1, 16], strides = [1, 1, 1]} : vector<24x1x16xf32> to vector<16x1x16xf32>
      %269 = vector.broadcast %267 : f32 to vector<16x1x16xf32>
      %270 = arith.mulf %269, %268 : vector<16x1x16xf32>
      %271 = arith.addf %266, %270 : vector<16x1x16xf32>
      %c38 = arith.constant 38 : index
      %272 = memref.load %arg3[%c38] : memref<50xf32, #tpu.memory_space<smem>>
      %273 = vector.extract_strided_slice %261 {offsets = [4, 0, 0], sizes = [16, 1, 16], strides = [1, 1, 1]} : vector<24x1x16xf32> to vector<16x1x16xf32>
      %274 = vector.broadcast %272 : f32 to vector<16x1x16xf32>
      %275 = arith.mulf %274, %273 : vector<16x1x16xf32>
      %276 = arith.addf %271, %275 : vector<16x1x16xf32>
      %c43 = arith.constant 43 : index
      %277 = memref.load %arg3[%c43] : memref<50xf32, #tpu.memory_space<smem>>
      %278 = vector.extract_strided_slice %261 {offsets = [6, 0, 0], sizes = [16, 1, 16], strides = [1, 1, 1]} : vector<24x1x16xf32> to vector<16x1x16xf32>
      %279 = vector.broadcast %277 : f32 to vector<16x1x16xf32>
      %280 = arith.mulf %279, %278 : vector<16x1x16xf32>
      %281 = arith.addf %276, %280 : vector<16x1x16xf32>
      %c48 = arith.constant 48 : index
      %282 = memref.load %arg3[%c48] : memref<50xf32, #tpu.memory_space<smem>>
      %283 = vector.extract_strided_slice %261 {offsets = [8, 0, 0], sizes = [16, 1, 16], strides = [1, 1, 1]} : vector<24x1x16xf32> to vector<16x1x16xf32>
      %284 = vector.broadcast %282 : f32 to vector<16x1x16xf32>
      %285 = arith.mulf %284, %283 : vector<16x1x16xf32>
      %286 = arith.addf %281, %285 : vector<16x1x16xf32>
      %c1_94 = arith.constant 1 : index
      %c0_95 = arith.constant 0 : index
      %c0_96 = arith.constant 0 : index
      %c8_97 = arith.constant 8 : index
      %287 = vector.load %arg8[%c1_94, %c0_95, %c0_96, %c8_97] : memref<2x24x1x24xf32, #tpu.memory_space<vmem>>, vector<1x24x1x16xf32>
      %288 = vector.shape_cast %287 : vector<1x24x1x16xf32> to vector<24x1x16xf32>
      %c29 = arith.constant 29 : index
      %289 = memref.load %arg3[%c29] : memref<50xf32, #tpu.memory_space<smem>>
      %290 = vector.extract_strided_slice %288 {offsets = [0, 0, 0], sizes = [16, 1, 16], strides = [1, 1, 1]} : vector<24x1x16xf32> to vector<16x1x16xf32>
      %291 = vector.broadcast %289 : f32 to vector<16x1x16xf32>
      %292 = arith.mulf %291, %290 : vector<16x1x16xf32>
      %293 = arith.addf %286, %292 : vector<16x1x16xf32>
      %c34 = arith.constant 34 : index
      %294 = memref.load %arg3[%c34] : memref<50xf32, #tpu.memory_space<smem>>
      %295 = vector.extract_strided_slice %288 {offsets = [2, 0, 0], sizes = [16, 1, 16], strides = [1, 1, 1]} : vector<24x1x16xf32> to vector<16x1x16xf32>
      %296 = vector.broadcast %294 : f32 to vector<16x1x16xf32>
      %297 = arith.mulf %296, %295 : vector<16x1x16xf32>
      %298 = arith.addf %293, %297 : vector<16x1x16xf32>
      %c39 = arith.constant 39 : index
      %299 = memref.load %arg3[%c39] : memref<50xf32, #tpu.memory_space<smem>>
      %300 = vector.extract_strided_slice %288 {offsets = [4, 0, 0], sizes = [16, 1, 16], strides = [1, 1, 1]} : vector<24x1x16xf32> to vector<16x1x16xf32>
      %301 = vector.broadcast %299 : f32 to vector<16x1x16xf32>
      %302 = arith.mulf %301, %300 : vector<16x1x16xf32>
      %303 = arith.addf %298, %302 : vector<16x1x16xf32>
      %c44 = arith.constant 44 : index
      %304 = memref.load %arg3[%c44] : memref<50xf32, #tpu.memory_space<smem>>
      %305 = vector.extract_strided_slice %288 {offsets = [6, 0, 0], sizes = [16, 1, 16], strides = [1, 1, 1]} : vector<24x1x16xf32> to vector<16x1x16xf32>
      %306 = vector.broadcast %304 : f32 to vector<16x1x16xf32>
      %307 = arith.mulf %306, %305 : vector<16x1x16xf32>
      %308 = arith.addf %303, %307 : vector<16x1x16xf32>
      %c49 = arith.constant 49 : index
      %309 = memref.load %arg3[%c49] : memref<50xf32, #tpu.memory_space<smem>>
      %310 = vector.extract_strided_slice %288 {offsets = [8, 0, 0], sizes = [16, 1, 16], strides = [1, 1, 1]} : vector<24x1x16xf32> to vector<16x1x16xf32>
      %311 = vector.broadcast %309 : f32 to vector<16x1x16xf32>
      %312 = arith.mulf %311, %310 : vector<16x1x16xf32>
      %313 = arith.addf %308, %312 : vector<16x1x16xf32>
      %cst_98 = arith.constant 5.000000e-01 : f32
      %314 = vector.broadcast %cst_98 : f32 to vector<16x1x16xf32>
      %315 = arith.mulf %314, %313 : vector<16x1x16xf32>
      %316 = math.tanh %315 : vector<16x1x16xf32>
      %cst_99 = arith.constant 5.000000e-01 : f32
      %317 = vector.broadcast %cst_99 : f32 to vector<16x1x16xf32>
      %318 = arith.mulf %317, %316 : vector<16x1x16xf32>
      %cst_100 = arith.constant 5.000000e-01 : f32
      %319 = vector.broadcast %cst_100 : f32 to vector<16x1x16xf32>
      %320 = arith.addf %318, %319 : vector<16x1x16xf32>
      %321 = tpu.transpose %320, [1, 0, 2] : vector<16x1x16xf32> -> vector<1x16x16xf32>
      %c0_101 = arith.constant 0 : index
      %c0_102 = arith.constant 0 : index
      %c0_103 = arith.constant 0 : index
      %322 = vector.load %arg5[%c0_101, %c0_102, %c0_103] : memref<1x16x16xf32, #tpu.memory_space<vmem>>, vector<1x16x16xf32>
      tpu.vector_store %arg5[%c0_101, %c0_102, %c0_103], %321 {strides = array<i32>} : memref<1x16x16xf32, #tpu.memory_space<vmem>>, vector<1x16x16xf32>,
    } else {
    }
    return
  }
  func.func @transform_0(%arg0: i32, %arg1: i32) -> (i32, i32, i32, i32) {
    %c0_i32 = arith.constant 0 : i32
    %c0_i32_0 = arith.constant 0 : i32
    %c0_i32_1 = arith.constant 0 : i32
    return %arg0, %arg1, %c0_i32, %c0_i32_0 : i32, i32, i32, i32
  }
  func.func @transform_1(%arg0: i32, %arg1: i32) -> i32 {
    %c0_i32 = arith.constant 0 : i32
    %c0_i32_0 = arith.constant 0 : i32
    return %c0_i32 : i32
  }
  func.func @transform_2(%arg0: i32, %arg1: i32) -> i32 {
    %c0_i32 = arith.constant 0 : i32
    %c0_i32_0 = arith.constant 0 : i32
    return %c0_i32 : i32
  }
  func.func @transform_3(%arg0: i32, %arg1: i32) -> (i32, i32, i32) {
    %c0_i32 = arith.constant 0 : i32
    %c0_i32_0 = arith.constant 0 : i32
    %c0_i32_1 = arith.constant 0 : i32
    return %arg0, %c0_i32, %c0_i32_0 : i32, i32, i32
  }
}

module attributes {stable_mosaic.version = 11 : i64} {
  func.func @_sam_kernel(%arg0: i32, %arg1: i32, %arg2: memref<1x4x16x16xf32, #tpu.memory_space<vmem>>, %arg3: memref<50xf32, #tpu.memory_space<smem>>, %arg4: memref<1xf32, #tpu.memory_space<smem>>, %arg5: memref<1x16x16xf32, #tpu.memory_space<vmem>>, %arg6: memref<1x16x16xf32, #tpu.memory_space<vmem>>, %arg7: memref<1x16x16xf32, #tpu.memory_space<vmem>>, %arg8: memref<2x1x28x24xf32, #tpu.memory_space<vmem>>) attributes {dimension_semantics = [#tpu.dimension_semantics<parallel>, #tpu.dimension_semantics<arbitrary>], iteration_bounds = array<i64: 2, 1>, scalar_prefetch = 0 : i64, scratch_operands = 3 : i64, tpu.core_type = #tpu.core_type<tc>, window_params = [{transform_indices = @transform_0, window_bounds = array<i64: 1, 4, 16, 16>}, {transform_indices = @transform_1, window_bounds = array<i64: 50>}, {transform_indices = @transform_2, window_bounds = array<i64: 1>}, {transform_indices = @transform_3, window_bounds = array<i64: 1, 16, 16>}]} {
    %c0_i32 = arith.constant 0 : i32
    %0 = arith.cmpi eq, %arg1, %c0_i32 : i32
    %1 = arith.extui %0 : i1 to i32
    %c0_i32_0 = arith.constant 0 : i32
    %2 = arith.cmpi ne, %1, %c0_i32_0 : i32
    scf.if %2 {
      %cst = arith.constant 0.000000e+00 : f32
      %26 = vector.broadcast %cst : f32 to vector<1x16x16xf32>
      %c0_27 = arith.constant 0 : index
      %c0_28 = arith.constant 0 : index
      %c0_29 = arith.constant 0 : index
      %27 = vector.load %arg6[%c0_27, %c0_28, %c0_29] : memref<1x16x16xf32, #tpu.memory_space<vmem>>, vector<1x16x16xf32>
      tpu.vector_store %arg6[%c0_27, %c0_28, %c0_29], %26 {strides = array<i32>} : memref<1x16x16xf32, #tpu.memory_space<vmem>>, vector<1x16x16xf32>,
      %cst_30 = arith.constant 0xFF800000 : f32
      %28 = vector.broadcast %cst_30 : f32 to vector<1x16x16xf32>
      %c0_31 = arith.constant 0 : index
      %c0_32 = arith.constant 0 : index
      %c0_33 = arith.constant 0 : index
      %29 = vector.load %arg7[%c0_31, %c0_32, %c0_33] : memref<1x16x16xf32, #tpu.memory_space<vmem>>, vector<1x16x16xf32>
      tpu.vector_store %arg7[%c0_31, %c0_32, %c0_33], %28 {strides = array<i32>} : memref<1x16x16xf32, #tpu.memory_space<vmem>>, vector<1x16x16xf32>,
    } else {
    }
    %c0 = arith.constant 0 : index
    %c0_1 = arith.constant 0 : index
    %c0_2 = arith.constant 0 : index
    %3 = vector.load %arg6[%c0, %c0_1, %c0_2] : memref<1x16x16xf32, #tpu.memory_space<vmem>>, vector<1x16x16xf32>
    %c0_3 = arith.constant 0 : index
    %c0_4 = arith.constant 0 : index
    %c0_5 = arith.constant 0 : index
    %4 = vector.load %arg7[%c0_3, %c0_4, %c0_5] : memref<1x16x16xf32, #tpu.memory_space<vmem>>, vector<1x16x16xf32>
    %c0_6 = arith.constant 0 : index
    %c0_7 = arith.constant 0 : index
    %c0_8 = arith.constant 0 : index
    %c0_9 = arith.constant 0 : index
    %5 = vector.load %arg2[%c0_6, %c0_7, %c0_8, %c0_9] : memref<1x4x16x16xf32, #tpu.memory_space<vmem>>, vector<1x1x16x16xf32>
    %6 = vector.shape_cast %5 : vector<1x1x16x16xf32> to vector<1x16x16xf32>
    %7 = arith.addf %3, %6 : vector<1x16x16xf32>
    %8 = arith.maximumf %4, %6 : vector<1x16x16xf32>
    %c0_10 = arith.constant 0 : index
    %c1 = arith.constant 1 : index
    %c0_11 = arith.constant 0 : index
    %c0_12 = arith.constant 0 : index
    %9 = vector.load %arg2[%c0_10, %c1, %c0_11, %c0_12] : memref<1x4x16x16xf32, #tpu.memory_space<vmem>>, vector<1x1x16x16xf32>
    %10 = vector.shape_cast %9 : vector<1x1x16x16xf32> to vector<1x16x16xf32>
    %11 = arith.addf %7, %10 : vector<1x16x16xf32>
    %12 = arith.maximumf %8, %10 : vector<1x16x16xf32>
    %c0_13 = arith.constant 0 : index
    %c2 = arith.constant 2 : index
    %c0_14 = arith.constant 0 : index
    %c0_15 = arith.constant 0 : index
    %13 = vector.load %arg2[%c0_13, %c2, %c0_14, %c0_15] : memref<1x4x16x16xf32, #tpu.memory_space<vmem>>, vector<1x1x16x16xf32>
    %14 = vector.shape_cast %13 : vector<1x1x16x16xf32> to vector<1x16x16xf32>
    %15 = arith.addf %11, %14 : vector<1x16x16xf32>
    %16 = arith.maximumf %12, %14 : vector<1x16x16xf32>
    %c0_16 = arith.constant 0 : index
    %c3 = arith.constant 3 : index
    %c0_17 = arith.constant 0 : index
    %c0_18 = arith.constant 0 : index
    %17 = vector.load %arg2[%c0_16, %c3, %c0_17, %c0_18] : memref<1x4x16x16xf32, #tpu.memory_space<vmem>>, vector<1x1x16x16xf32>
    %18 = vector.shape_cast %17 : vector<1x1x16x16xf32> to vector<1x16x16xf32>
    %19 = arith.addf %15, %18 : vector<1x16x16xf32>
    %20 = arith.maximumf %16, %18 : vector<1x16x16xf32>
    %c0_19 = arith.constant 0 : index
    %c0_20 = arith.constant 0 : index
    %c0_21 = arith.constant 0 : index
    %21 = vector.load %arg6[%c0_19, %c0_20, %c0_21] : memref<1x16x16xf32, #tpu.memory_space<vmem>>, vector<1x16x16xf32>
    tpu.vector_store %arg6[%c0_19, %c0_20, %c0_21], %19 {strides = array<i32>} : memref<1x16x16xf32, #tpu.memory_space<vmem>>, vector<1x16x16xf32>,
    %c0_22 = arith.constant 0 : index
    %c0_23 = arith.constant 0 : index
    %c0_24 = arith.constant 0 : index
    %22 = vector.load %arg7[%c0_22, %c0_23, %c0_24] : memref<1x16x16xf32, #tpu.memory_space<vmem>>, vector<1x16x16xf32>
    tpu.vector_store %arg7[%c0_22, %c0_23, %c0_24], %20 {strides = array<i32>} : memref<1x16x16xf32, #tpu.memory_space<vmem>>, vector<1x16x16xf32>,
    %c0_i32_25 = arith.constant 0 : i32
    %23 = arith.cmpi eq, %arg1, %c0_i32_25 : i32
    %24 = arith.extui %23 : i1 to i32
    %c0_i32_26 = arith.constant 0 : i32
    %25 = arith.cmpi ne, %24, %c0_i32_26 : i32
    scf.if %25 {
      %cst = arith.constant 2.500000e-01 : f32
      %26 = vector.broadcast %cst : f32 to vector<1x16x16xf32>
      %27 = arith.mulf %19, %26 : vector<1x16x16xf32>
      %cst_27 = arith.constant 0.000000e+00 : f32
      %28 = vector.broadcast %cst_27 : f32 to vector<2x1x4x24xf32>
      %c0_28 = arith.constant 0 : index
      %c0_29 = arith.constant 0 : index
      %c4 = arith.constant 4 : index
      %c0_30 = arith.constant 0 : index
      %29 = vector.load %arg8[%c0_28, %c0_29, %c4, %c0_30] : memref<2x1x28x24xf32, #tpu.memory_space<vmem>>, vector<2x1x4x24xf32>
      tpu.vector_store %arg8[%c0_28, %c0_29, %c4, %c0_30], %28 {strides = array<i32>} : memref<2x1x28x24xf32, #tpu.memory_space<vmem>>, vector<2x1x4x24xf32>,
      %cst_31 = arith.constant 0.000000e+00 : f32
      %30 = vector.broadcast %cst_31 : f32 to vector<2x1x4x24xf32>
      %c0_32 = arith.constant 0 : index
      %c0_33 = arith.constant 0 : index
      %c24 = arith.constant 24 : index
      %c0_34 = arith.constant 0 : index
      %31 = vector.load %arg8[%c0_32, %c0_33, %c24, %c0_34] : memref<2x1x28x24xf32, #tpu.memory_space<vmem>>, vector<2x1x4x24xf32>
      tpu.vector_store %arg8[%c0_32, %c0_33, %c24, %c0_34], %30 {strides = array<i32>} : memref<2x1x28x24xf32, #tpu.memory_space<vmem>>, vector<2x1x4x24xf32>,
      %cst_35 = arith.constant 0.000000e+00 : f32
      %32 = vector.broadcast %cst_35 : f32 to vector<2x1x28x4xf32>
      %c0_36 = arith.constant 0 : index
      %c0_37 = arith.constant 0 : index
      %c0_38 = arith.constant 0 : index
      %c0_39 = arith.constant 0 : index
      %33 = vector.load %arg8[%c0_36, %c0_37, %c0_38, %c0_39] : memref<2x1x28x24xf32, #tpu.memory_space<vmem>>, vector<2x1x28x4xf32>
      tpu.vector_store %arg8[%c0_36, %c0_37, %c0_38, %c0_39], %32 {strides = array<i32>} : memref<2x1x28x24xf32, #tpu.memory_space<vmem>>, vector<2x1x28x4xf32>,
      %cst_40 = arith.constant 0.000000e+00 : f32
      %34 = vector.broadcast %cst_40 : f32 to vector<2x1x28x4xf32>
      %c0_41 = arith.constant 0 : index
      %c0_42 = arith.constant 0 : index
      %c0_43 = arith.constant 0 : index
      %c20 = arith.constant 20 : index
      %35 = vector.load %arg8[%c0_41, %c0_42, %c0_43, %c20] : memref<2x1x28x24xf32, #tpu.memory_space<vmem>>, vector<2x1x28x4xf32>
      tpu.vector_store %arg8[%c0_41, %c0_42, %c0_43, %c20], %34 {strides = array<i32>} : memref<2x1x28x24xf32, #tpu.memory_space<vmem>>, vector<2x1x28x4xf32>,
      %c0_44 = arith.constant 0 : index
      %c0_45 = arith.constant 0 : index
      %c8 = arith.constant 8 : index
      %c4_46 = arith.constant 4 : index
      %36 = vector.load %arg8[%c0_44, %c0_45, %c8, %c4_46] : memref<2x1x28x24xf32, #tpu.memory_space<vmem>>, vector<1x1x16x16xf32>
      %37 = vector.shape_cast %36 : vector<1x1x16x16xf32> to vector<1x16x16xf32>
      %38 = vector.shape_cast %27 : vector<1x16x16xf32> to vector<1x1x16x16xf32>
      tpu.vector_store %arg8[%c0_44, %c0_45, %c8, %c4_46], %38 {strides = array<i32>} : memref<2x1x28x24xf32, #tpu.memory_space<vmem>>, vector<1x1x16x16xf32>,
      %c1_47 = arith.constant 1 : index
      %c0_48 = arith.constant 0 : index
      %c8_49 = arith.constant 8 : index
      %c4_50 = arith.constant 4 : index
      %39 = vector.load %arg8[%c1_47, %c0_48, %c8_49, %c4_50] : memref<2x1x28x24xf32, #tpu.memory_space<vmem>>, vector<1x1x16x16xf32>
      %40 = vector.shape_cast %39 : vector<1x1x16x16xf32> to vector<1x16x16xf32>
      %41 = vector.shape_cast %20 : vector<1x16x16xf32> to vector<1x1x16x16xf32>
      tpu.vector_store %arg8[%c1_47, %c0_48, %c8_49, %c4_50], %41 {strides = array<i32>} : memref<2x1x28x24xf32, #tpu.memory_space<vmem>>, vector<1x1x16x16xf32>,
      %c0_51 = arith.constant 0 : index
      %42 = memref.load %arg4[%c0_51] : memref<1xf32, #tpu.memory_space<smem>>
      %43 = vector.broadcast %42 : f32 to vector<1x16x16xf32>
      %c0_52 = arith.constant 0 : index
      %c0_53 = arith.constant 0 : index
      %c4_54 = arith.constant 4 : index
      %c0_55 = arith.constant 0 : index
      %44 = vector.load %arg8[%c0_52, %c0_53, %c4_54, %c0_55] : memref<2x1x28x24xf32, #tpu.memory_space<vmem>>, vector<1x1x24x16xf32>
      %45 = vector.shape_cast %44 : vector<1x1x24x16xf32> to vector<1x24x16xf32>
      %c0_56 = arith.constant 0 : index
      %46 = memref.load %arg3[%c0_56] : memref<50xf32, #tpu.memory_space<smem>>
      %47 = vector.extract_strided_slice %45 {offsets = [0, 0, 0], sizes = [1, 16, 16], strides = [1, 1, 1]} : vector<1x24x16xf32> to vector<1x16x16xf32>
      %48 = vector.broadcast %46 : f32 to vector<1x16x16xf32>
      %49 = arith.mulf %48, %47 : vector<1x16x16xf32>
      %50 = arith.addf %43, %49 : vector<1x16x16xf32>
      %c5 = arith.constant 5 : index
      %51 = memref.load %arg3[%c5] : memref<50xf32, #tpu.memory_space<smem>>
      %52 = vector.extract_strided_slice %45 {offsets = [0, 2, 0], sizes = [1, 16, 16], strides = [1, 1, 1]} : vector<1x24x16xf32> to vector<1x16x16xf32>
      %53 = vector.broadcast %51 : f32 to vector<1x16x16xf32>
      %54 = arith.mulf %53, %52 : vector<1x16x16xf32>
      %55 = arith.addf %50, %54 : vector<1x16x16xf32>
      %c10 = arith.constant 10 : index
      %56 = memref.load %arg3[%c10] : memref<50xf32, #tpu.memory_space<smem>>
      %57 = vector.extract_strided_slice %45 {offsets = [0, 4, 0], sizes = [1, 16, 16], strides = [1, 1, 1]} : vector<1x24x16xf32> to vector<1x16x16xf32>
      %58 = vector.broadcast %56 : f32 to vector<1x16x16xf32>
      %59 = arith.mulf %58, %57 : vector<1x16x16xf32>
      %60 = arith.addf %55, %59 : vector<1x16x16xf32>
      %c15 = arith.constant 15 : index
      %61 = memref.load %arg3[%c15] : memref<50xf32, #tpu.memory_space<smem>>
      %62 = vector.extract_strided_slice %45 {offsets = [0, 6, 0], sizes = [1, 16, 16], strides = [1, 1, 1]} : vector<1x24x16xf32> to vector<1x16x16xf32>
      %63 = vector.broadcast %61 : f32 to vector<1x16x16xf32>
      %64 = arith.mulf %63, %62 : vector<1x16x16xf32>
      %65 = arith.addf %60, %64 : vector<1x16x16xf32>
      %c20_57 = arith.constant 20 : index
      %66 = memref.load %arg3[%c20_57] : memref<50xf32, #tpu.memory_space<smem>>
      %67 = vector.extract_strided_slice %45 {offsets = [0, 8, 0], sizes = [1, 16, 16], strides = [1, 1, 1]} : vector<1x24x16xf32> to vector<1x16x16xf32>
      %68 = vector.broadcast %66 : f32 to vector<1x16x16xf32>
      %69 = arith.mulf %68, %67 : vector<1x16x16xf32>
      %70 = arith.addf %65, %69 : vector<1x16x16xf32>
      %c0_58 = arith.constant 0 : index
      %c0_59 = arith.constant 0 : index
      %c4_60 = arith.constant 4 : index
      %c2_61 = arith.constant 2 : index
      %71 = vector.load %arg8[%c0_58, %c0_59, %c4_60, %c2_61] : memref<2x1x28x24xf32, #tpu.memory_space<vmem>>, vector<1x1x24x16xf32>
      %72 = vector.shape_cast %71 : vector<1x1x24x16xf32> to vector<1x24x16xf32>
      %c1_62 = arith.constant 1 : index
      %73 = memref.load %arg3[%c1_62] : memref<50xf32, #tpu.memory_space<smem>>
      %74 = vector.extract_strided_slice %72 {offsets = [0, 0, 0], sizes = [1, 16, 16], strides = [1, 1, 1]} : vector<1x24x16xf32> to vector<1x16x16xf32>
      %75 = vector.broadcast %73 : f32 to vector<1x16x16xf32>
      %76 = arith.mulf %75, %74 : vector<1x16x16xf32>
      %77 = arith.addf %70, %76 : vector<1x16x16xf32>
      %c6 = arith.constant 6 : index
      %78 = memref.load %arg3[%c6] : memref<50xf32, #tpu.memory_space<smem>>
      %79 = vector.extract_strided_slice %72 {offsets = [0, 2, 0], sizes = [1, 16, 16], strides = [1, 1, 1]} : vector<1x24x16xf32> to vector<1x16x16xf32>
      %80 = vector.broadcast %78 : f32 to vector<1x16x16xf32>
      %81 = arith.mulf %80, %79 : vector<1x16x16xf32>
      %82 = arith.addf %77, %81 : vector<1x16x16xf32>
      %c11 = arith.constant 11 : index
      %83 = memref.load %arg3[%c11] : memref<50xf32, #tpu.memory_space<smem>>
      %84 = vector.extract_strided_slice %72 {offsets = [0, 4, 0], sizes = [1, 16, 16], strides = [1, 1, 1]} : vector<1x24x16xf32> to vector<1x16x16xf32>
      %85 = vector.broadcast %83 : f32 to vector<1x16x16xf32>
      %86 = arith.mulf %85, %84 : vector<1x16x16xf32>
      %87 = arith.addf %82, %86 : vector<1x16x16xf32>
      %c16 = arith.constant 16 : index
      %88 = memref.load %arg3[%c16] : memref<50xf32, #tpu.memory_space<smem>>
      %89 = vector.extract_strided_slice %72 {offsets = [0, 6, 0], sizes = [1, 16, 16], strides = [1, 1, 1]} : vector<1x24x16xf32> to vector<1x16x16xf32>
      %90 = vector.broadcast %88 : f32 to vector<1x16x16xf32>
      %91 = arith.mulf %90, %89 : vector<1x16x16xf32>
      %92 = arith.addf %87, %91 : vector<1x16x16xf32>
      %c21 = arith.constant 21 : index
      %93 = memref.load %arg3[%c21] : memref<50xf32, #tpu.memory_space<smem>>
      %94 = vector.extract_strided_slice %72 {offsets = [0, 8, 0], sizes = [1, 16, 16], strides = [1, 1, 1]} : vector<1x24x16xf32> to vector<1x16x16xf32>
      %95 = vector.broadcast %93 : f32 to vector<1x16x16xf32>
      %96 = arith.mulf %95, %94 : vector<1x16x16xf32>
      %97 = arith.addf %92, %96 : vector<1x16x16xf32>
      %c0_63 = arith.constant 0 : index
      %c0_64 = arith.constant 0 : index
      %c4_65 = arith.constant 4 : index
      %c4_66 = arith.constant 4 : index
      %98 = vector.load %arg8[%c0_63, %c0_64, %c4_65, %c4_66] : memref<2x1x28x24xf32, #tpu.memory_space<vmem>>, vector<1x1x24x16xf32>
      %99 = vector.shape_cast %98 : vector<1x1x24x16xf32> to vector<1x24x16xf32>
      %c2_67 = arith.constant 2 : index
      %100 = memref.load %arg3[%c2_67] : memref<50xf32, #tpu.memory_space<smem>>
      %101 = vector.extract_strided_slice %99 {offsets = [0, 0, 0], sizes = [1, 16, 16], strides = [1, 1, 1]} : vector<1x24x16xf32> to vector<1x16x16xf32>
      %102 = vector.broadcast %100 : f32 to vector<1x16x16xf32>
      %103 = arith.mulf %102, %101 : vector<1x16x16xf32>
      %104 = arith.addf %97, %103 : vector<1x16x16xf32>
      %c7 = arith.constant 7 : index
      %105 = memref.load %arg3[%c7] : memref<50xf32, #tpu.memory_space<smem>>
      %106 = vector.extract_strided_slice %99 {offsets = [0, 2, 0], sizes = [1, 16, 16], strides = [1, 1, 1]} : vector<1x24x16xf32> to vector<1x16x16xf32>
      %107 = vector.broadcast %105 : f32 to vector<1x16x16xf32>
      %108 = arith.mulf %107, %106 : vector<1x16x16xf32>
      %109 = arith.addf %104, %108 : vector<1x16x16xf32>
      %c12 = arith.constant 12 : index
      %110 = memref.load %arg3[%c12] : memref<50xf32, #tpu.memory_space<smem>>
      %111 = vector.extract_strided_slice %99 {offsets = [0, 4, 0], sizes = [1, 16, 16], strides = [1, 1, 1]} : vector<1x24x16xf32> to vector<1x16x16xf32>
      %112 = vector.broadcast %110 : f32 to vector<1x16x16xf32>
      %113 = arith.mulf %112, %111 : vector<1x16x16xf32>
      %114 = arith.addf %109, %113 : vector<1x16x16xf32>
      %c17 = arith.constant 17 : index
      %115 = memref.load %arg3[%c17] : memref<50xf32, #tpu.memory_space<smem>>
      %116 = vector.extract_strided_slice %99 {offsets = [0, 6, 0], sizes = [1, 16, 16], strides = [1, 1, 1]} : vector<1x24x16xf32> to vector<1x16x16xf32>
      %117 = vector.broadcast %115 : f32 to vector<1x16x16xf32>
      %118 = arith.mulf %117, %116 : vector<1x16x16xf32>
      %119 = arith.addf %114, %118 : vector<1x16x16xf32>
      %c22 = arith.constant 22 : index
      %120 = memref.load %arg3[%c22] : memref<50xf32, #tpu.memory_space<smem>>
      %121 = vector.extract_strided_slice %99 {offsets = [0, 8, 0], sizes = [1, 16, 16], strides = [1, 1, 1]} : vector<1x24x16xf32> to vector<1x16x16xf32>
      %122 = vector.broadcast %120 : f32 to vector<1x16x16xf32>
      %123 = arith.mulf %122, %121 : vector<1x16x16xf32>
      %124 = arith.addf %119, %123 : vector<1x16x16xf32>
      %c0_68 = arith.constant 0 : index
      %c0_69 = arith.constant 0 : index
      %c4_70 = arith.constant 4 : index
      %c6_71 = arith.constant 6 : index
      %125 = vector.load %arg8[%c0_68, %c0_69, %c4_70, %c6_71] : memref<2x1x28x24xf32, #tpu.memory_space<vmem>>, vector<1x1x24x16xf32>
      %126 = vector.shape_cast %125 : vector<1x1x24x16xf32> to vector<1x24x16xf32>
      %c3_72 = arith.constant 3 : index
      %127 = memref.load %arg3[%c3_72] : memref<50xf32, #tpu.memory_space<smem>>
      %128 = vector.extract_strided_slice %126 {offsets = [0, 0, 0], sizes = [1, 16, 16], strides = [1, 1, 1]} : vector<1x24x16xf32> to vector<1x16x16xf32>
      %129 = vector.broadcast %127 : f32 to vector<1x16x16xf32>
      %130 = arith.mulf %129, %128 : vector<1x16x16xf32>
      %131 = arith.addf %124, %130 : vector<1x16x16xf32>
      %c8_73 = arith.constant 8 : index
      %132 = memref.load %arg3[%c8_73] : memref<50xf32, #tpu.memory_space<smem>>
      %133 = vector.extract_strided_slice %126 {offsets = [0, 2, 0], sizes = [1, 16, 16], strides = [1, 1, 1]} : vector<1x24x16xf32> to vector<1x16x16xf32>
      %134 = vector.broadcast %132 : f32 to vector<1x16x16xf32>
      %135 = arith.mulf %134, %133 : vector<1x16x16xf32>
      %136 = arith.addf %131, %135 : vector<1x16x16xf32>
      %c13 = arith.constant 13 : index
      %137 = memref.load %arg3[%c13] : memref<50xf32, #tpu.memory_space<smem>>
      %138 = vector.extract_strided_slice %126 {offsets = [0, 4, 0], sizes = [1, 16, 16], strides = [1, 1, 1]} : vector<1x24x16xf32> to vector<1x16x16xf32>
      %139 = vector.broadcast %137 : f32 to vector<1x16x16xf32>
      %140 = arith.mulf %139, %138 : vector<1x16x16xf32>
      %141 = arith.addf %136, %140 : vector<1x16x16xf32>
      %c18 = arith.constant 18 : index
      %142 = memref.load %arg3[%c18] : memref<50xf32, #tpu.memory_space<smem>>
      %143 = vector.extract_strided_slice %126 {offsets = [0, 6, 0], sizes = [1, 16, 16], strides = [1, 1, 1]} : vector<1x24x16xf32> to vector<1x16x16xf32>
      %144 = vector.broadcast %142 : f32 to vector<1x16x16xf32>
      %145 = arith.mulf %144, %143 : vector<1x16x16xf32>
      %146 = arith.addf %141, %145 : vector<1x16x16xf32>
      %c23 = arith.constant 23 : index
      %147 = memref.load %arg3[%c23] : memref<50xf32, #tpu.memory_space<smem>>
      %148 = vector.extract_strided_slice %126 {offsets = [0, 8, 0], sizes = [1, 16, 16], strides = [1, 1, 1]} : vector<1x24x16xf32> to vector<1x16x16xf32>
      %149 = vector.broadcast %147 : f32 to vector<1x16x16xf32>
      %150 = arith.mulf %149, %148 : vector<1x16x16xf32>
      %151 = arith.addf %146, %150 : vector<1x16x16xf32>
      %c0_74 = arith.constant 0 : index
      %c0_75 = arith.constant 0 : index
      %c4_76 = arith.constant 4 : index
      %c8_77 = arith.constant 8 : index
      %152 = vector.load %arg8[%c0_74, %c0_75, %c4_76, %c8_77] : memref<2x1x28x24xf32, #tpu.memory_space<vmem>>, vector<1x1x24x16xf32>
      %153 = vector.shape_cast %152 : vector<1x1x24x16xf32> to vector<1x24x16xf32>
      %c4_78 = arith.constant 4 : index
      %154 = memref.load %arg3[%c4_78] : memref<50xf32, #tpu.memory_space<smem>>
      %155 = vector.extract_strided_slice %153 {offsets = [0, 0, 0], sizes = [1, 16, 16], strides = [1, 1, 1]} : vector<1x24x16xf32> to vector<1x16x16xf32>
      %156 = vector.broadcast %154 : f32 to vector<1x16x16xf32>
      %157 = arith.mulf %156, %155 : vector<1x16x16xf32>
      %158 = arith.addf %151, %157 : vector<1x16x16xf32>
      %c9 = arith.constant 9 : index
      %159 = memref.load %arg3[%c9] : memref<50xf32, #tpu.memory_space<smem>>
      %160 = vector.extract_strided_slice %153 {offsets = [0, 2, 0], sizes = [1, 16, 16], strides = [1, 1, 1]} : vector<1x24x16xf32> to vector<1x16x16xf32>
      %161 = vector.broadcast %159 : f32 to vector<1x16x16xf32>
      %162 = arith.mulf %161, %160 : vector<1x16x16xf32>
      %163 = arith.addf %158, %162 : vector<1x16x16xf32>
      %c14 = arith.constant 14 : index
      %164 = memref.load %arg3[%c14] : memref<50xf32, #tpu.memory_space<smem>>
      %165 = vector.extract_strided_slice %153 {offsets = [0, 4, 0], sizes = [1, 16, 16], strides = [1, 1, 1]} : vector<1x24x16xf32> to vector<1x16x16xf32>
      %166 = vector.broadcast %164 : f32 to vector<1x16x16xf32>
      %167 = arith.mulf %166, %165 : vector<1x16x16xf32>
      %168 = arith.addf %163, %167 : vector<1x16x16xf32>
      %c19 = arith.constant 19 : index
      %169 = memref.load %arg3[%c19] : memref<50xf32, #tpu.memory_space<smem>>
      %170 = vector.extract_strided_slice %153 {offsets = [0, 6, 0], sizes = [1, 16, 16], strides = [1, 1, 1]} : vector<1x24x16xf32> to vector<1x16x16xf32>
      %171 = vector.broadcast %169 : f32 to vector<1x16x16xf32>
      %172 = arith.mulf %171, %170 : vector<1x16x16xf32>
      %173 = arith.addf %168, %172 : vector<1x16x16xf32>
      %c24_79 = arith.constant 24 : index
      %174 = memref.load %arg3[%c24_79] : memref<50xf32, #tpu.memory_space<smem>>
      %175 = vector.extract_strided_slice %153 {offsets = [0, 8, 0], sizes = [1, 16, 16], strides = [1, 1, 1]} : vector<1x24x16xf32> to vector<1x16x16xf32>
      %176 = vector.broadcast %174 : f32 to vector<1x16x16xf32>
      %177 = arith.mulf %176, %175 : vector<1x16x16xf32>
      %178 = arith.addf %173, %177 : vector<1x16x16xf32>
      %c1_80 = arith.constant 1 : index
      %c0_81 = arith.constant 0 : index
      %c4_82 = arith.constant 4 : index
      %c0_83 = arith.constant 0 : index
      %179 = vector.load %arg8[%c1_80, %c0_81, %c4_82, %c0_83] : memref<2x1x28x24xf32, #tpu.memory_space<vmem>>, vector<1x1x24x16xf32>
      %180 = vector.shape_cast %179 : vector<1x1x24x16xf32> to vector<1x24x16xf32>
      %c25 = arith.constant 25 : index
      %181 = memref.load %arg3[%c25] : memref<50xf32, #tpu.memory_space<smem>>
      %182 = vector.extract_strided_slice %180 {offsets = [0, 0, 0], sizes = [1, 16, 16], strides = [1, 1, 1]} : vector<1x24x16xf32> to vector<1x16x16xf32>
      %183 = vector.broadcast %181 : f32 to vector<1x16x16xf32>
      %184 = arith.mulf %183, %182 : vector<1x16x16xf32>
      %185 = arith.addf %178, %184 : vector<1x16x16xf32>
      %c30 = arith.constant 30 : index
      %186 = memref.load %arg3[%c30] : memref<50xf32, #tpu.memory_space<smem>>
      %187 = vector.extract_strided_slice %180 {offsets = [0, 2, 0], sizes = [1, 16, 16], strides = [1, 1, 1]} : vector<1x24x16xf32> to vector<1x16x16xf32>
      %188 = vector.broadcast %186 : f32 to vector<1x16x16xf32>
      %189 = arith.mulf %188, %187 : vector<1x16x16xf32>
      %190 = arith.addf %185, %189 : vector<1x16x16xf32>
      %c35 = arith.constant 35 : index
      %191 = memref.load %arg3[%c35] : memref<50xf32, #tpu.memory_space<smem>>
      %192 = vector.extract_strided_slice %180 {offsets = [0, 4, 0], sizes = [1, 16, 16], strides = [1, 1, 1]} : vector<1x24x16xf32> to vector<1x16x16xf32>
      %193 = vector.broadcast %191 : f32 to vector<1x16x16xf32>
      %194 = arith.mulf %193, %192 : vector<1x16x16xf32>
      %195 = arith.addf %190, %194 : vector<1x16x16xf32>
      %c40 = arith.constant 40 : index
      %196 = memref.load %arg3[%c40] : memref<50xf32, #tpu.memory_space<smem>>
      %197 = vector.extract_strided_slice %180 {offsets = [0, 6, 0], sizes = [1, 16, 16], strides = [1, 1, 1]} : vector<1x24x16xf32> to vector<1x16x16xf32>
      %198 = vector.broadcast %196 : f32 to vector<1x16x16xf32>
      %199 = arith.mulf %198, %197 : vector<1x16x16xf32>
      %200 = arith.addf %195, %199 : vector<1x16x16xf32>
      %c45 = arith.constant 45 : index
      %201 = memref.load %arg3[%c45] : memref<50xf32, #tpu.memory_space<smem>>
      %202 = vector.extract_strided_slice %180 {offsets = [0, 8, 0], sizes = [1, 16, 16], strides = [1, 1, 1]} : vector<1x24x16xf32> to vector<1x16x16xf32>
      %203 = vector.broadcast %201 : f32 to vector<1x16x16xf32>
      %204 = arith.mulf %203, %202 : vector<1x16x16xf32>
      %205 = arith.addf %200, %204 : vector<1x16x16xf32>
      %c1_84 = arith.constant 1 : index
      %c0_85 = arith.constant 0 : index
      %c4_86 = arith.constant 4 : index
      %c2_87 = arith.constant 2 : index
      %206 = vector.load %arg8[%c1_84, %c0_85, %c4_86, %c2_87] : memref<2x1x28x24xf32, #tpu.memory_space<vmem>>, vector<1x1x24x16xf32>
      %207 = vector.shape_cast %206 : vector<1x1x24x16xf32> to vector<1x24x16xf32>
      %c26 = arith.constant 26 : index
      %208 = memref.load %arg3[%c26] : memref<50xf32, #tpu.memory_space<smem>>
      %209 = vector.extract_strided_slice %207 {offsets = [0, 0, 0], sizes = [1, 16, 16], strides = [1, 1, 1]} : vector<1x24x16xf32> to vector<1x16x16xf32>
      %210 = vector.broadcast %208 : f32 to vector<1x16x16xf32>
      %211 = arith.mulf %210, %209 : vector<1x16x16xf32>
      %212 = arith.addf %205, %211 : vector<1x16x16xf32>
      %c31 = arith.constant 31 : index
      %213 = memref.load %arg3[%c31] : memref<50xf32, #tpu.memory_space<smem>>
      %214 = vector.extract_strided_slice %207 {offsets = [0, 2, 0], sizes = [1, 16, 16], strides = [1, 1, 1]} : vector<1x24x16xf32> to vector<1x16x16xf32>
      %215 = vector.broadcast %213 : f32 to vector<1x16x16xf32>
      %216 = arith.mulf %215, %214 : vector<1x16x16xf32>
      %217 = arith.addf %212, %216 : vector<1x16x16xf32>
      %c36 = arith.constant 36 : index
      %218 = memref.load %arg3[%c36] : memref<50xf32, #tpu.memory_space<smem>>
      %219 = vector.extract_strided_slice %207 {offsets = [0, 4, 0], sizes = [1, 16, 16], strides = [1, 1, 1]} : vector<1x24x16xf32> to vector<1x16x16xf32>
      %220 = vector.broadcast %218 : f32 to vector<1x16x16xf32>
      %221 = arith.mulf %220, %219 : vector<1x16x16xf32>
      %222 = arith.addf %217, %221 : vector<1x16x16xf32>
      %c41 = arith.constant 41 : index
      %223 = memref.load %arg3[%c41] : memref<50xf32, #tpu.memory_space<smem>>
      %224 = vector.extract_strided_slice %207 {offsets = [0, 6, 0], sizes = [1, 16, 16], strides = [1, 1, 1]} : vector<1x24x16xf32> to vector<1x16x16xf32>
      %225 = vector.broadcast %223 : f32 to vector<1x16x16xf32>
      %226 = arith.mulf %225, %224 : vector<1x16x16xf32>
      %227 = arith.addf %222, %226 : vector<1x16x16xf32>
      %c46 = arith.constant 46 : index
      %228 = memref.load %arg3[%c46] : memref<50xf32, #tpu.memory_space<smem>>
      %229 = vector.extract_strided_slice %207 {offsets = [0, 8, 0], sizes = [1, 16, 16], strides = [1, 1, 1]} : vector<1x24x16xf32> to vector<1x16x16xf32>
      %230 = vector.broadcast %228 : f32 to vector<1x16x16xf32>
      %231 = arith.mulf %230, %229 : vector<1x16x16xf32>
      %232 = arith.addf %227, %231 : vector<1x16x16xf32>
      %c1_88 = arith.constant 1 : index
      %c0_89 = arith.constant 0 : index
      %c4_90 = arith.constant 4 : index
      %c4_91 = arith.constant 4 : index
      %233 = vector.load %arg8[%c1_88, %c0_89, %c4_90, %c4_91] : memref<2x1x28x24xf32, #tpu.memory_space<vmem>>, vector<1x1x24x16xf32>
      %234 = vector.shape_cast %233 : vector<1x1x24x16xf32> to vector<1x24x16xf32>
      %c27 = arith.constant 27 : index
      %235 = memref.load %arg3[%c27] : memref<50xf32, #tpu.memory_space<smem>>
      %236 = vector.extract_strided_slice %234 {offsets = [0, 0, 0], sizes = [1, 16, 16], strides = [1, 1, 1]} : vector<1x24x16xf32> to vector<1x16x16xf32>
      %237 = vector.broadcast %235 : f32 to vector<1x16x16xf32>
      %238 = arith.mulf %237, %236 : vector<1x16x16xf32>
      %239 = arith.addf %232, %238 : vector<1x16x16xf32>
      %c32 = arith.constant 32 : index
      %240 = memref.load %arg3[%c32] : memref<50xf32, #tpu.memory_space<smem>>
      %241 = vector.extract_strided_slice %234 {offsets = [0, 2, 0], sizes = [1, 16, 16], strides = [1, 1, 1]} : vector<1x24x16xf32> to vector<1x16x16xf32>
      %242 = vector.broadcast %240 : f32 to vector<1x16x16xf32>
      %243 = arith.mulf %242, %241 : vector<1x16x16xf32>
      %244 = arith.addf %239, %243 : vector<1x16x16xf32>
      %c37 = arith.constant 37 : index
      %245 = memref.load %arg3[%c37] : memref<50xf32, #tpu.memory_space<smem>>
      %246 = vector.extract_strided_slice %234 {offsets = [0, 4, 0], sizes = [1, 16, 16], strides = [1, 1, 1]} : vector<1x24x16xf32> to vector<1x16x16xf32>
      %247 = vector.broadcast %245 : f32 to vector<1x16x16xf32>
      %248 = arith.mulf %247, %246 : vector<1x16x16xf32>
      %249 = arith.addf %244, %248 : vector<1x16x16xf32>
      %c42 = arith.constant 42 : index
      %250 = memref.load %arg3[%c42] : memref<50xf32, #tpu.memory_space<smem>>
      %251 = vector.extract_strided_slice %234 {offsets = [0, 6, 0], sizes = [1, 16, 16], strides = [1, 1, 1]} : vector<1x24x16xf32> to vector<1x16x16xf32>
      %252 = vector.broadcast %250 : f32 to vector<1x16x16xf32>
      %253 = arith.mulf %252, %251 : vector<1x16x16xf32>
      %254 = arith.addf %249, %253 : vector<1x16x16xf32>
      %c47 = arith.constant 47 : index
      %255 = memref.load %arg3[%c47] : memref<50xf32, #tpu.memory_space<smem>>
      %256 = vector.extract_strided_slice %234 {offsets = [0, 8, 0], sizes = [1, 16, 16], strides = [1, 1, 1]} : vector<1x24x16xf32> to vector<1x16x16xf32>
      %257 = vector.broadcast %255 : f32 to vector<1x16x16xf32>
      %258 = arith.mulf %257, %256 : vector<1x16x16xf32>
      %259 = arith.addf %254, %258 : vector<1x16x16xf32>
      %c1_92 = arith.constant 1 : index
      %c0_93 = arith.constant 0 : index
      %c4_94 = arith.constant 4 : index
      %c6_95 = arith.constant 6 : index
      %260 = vector.load %arg8[%c1_92, %c0_93, %c4_94, %c6_95] : memref<2x1x28x24xf32, #tpu.memory_space<vmem>>, vector<1x1x24x16xf32>
      %261 = vector.shape_cast %260 : vector<1x1x24x16xf32> to vector<1x24x16xf32>
      %c28 = arith.constant 28 : index
      %262 = memref.load %arg3[%c28] : memref<50xf32, #tpu.memory_space<smem>>
      %263 = vector.extract_strided_slice %261 {offsets = [0, 0, 0], sizes = [1, 16, 16], strides = [1, 1, 1]} : vector<1x24x16xf32> to vector<1x16x16xf32>
      %264 = vector.broadcast %262 : f32 to vector<1x16x16xf32>
      %265 = arith.mulf %264, %263 : vector<1x16x16xf32>
      %266 = arith.addf %259, %265 : vector<1x16x16xf32>
      %c33 = arith.constant 33 : index
      %267 = memref.load %arg3[%c33] : memref<50xf32, #tpu.memory_space<smem>>
      %268 = vector.extract_strided_slice %261 {offsets = [0, 2, 0], sizes = [1, 16, 16], strides = [1, 1, 1]} : vector<1x24x16xf32> to vector<1x16x16xf32>
      %269 = vector.broadcast %267 : f32 to vector<1x16x16xf32>
      %270 = arith.mulf %269, %268 : vector<1x16x16xf32>
      %271 = arith.addf %266, %270 : vector<1x16x16xf32>
      %c38 = arith.constant 38 : index
      %272 = memref.load %arg3[%c38] : memref<50xf32, #tpu.memory_space<smem>>
      %273 = vector.extract_strided_slice %261 {offsets = [0, 4, 0], sizes = [1, 16, 16], strides = [1, 1, 1]} : vector<1x24x16xf32> to vector<1x16x16xf32>
      %274 = vector.broadcast %272 : f32 to vector<1x16x16xf32>
      %275 = arith.mulf %274, %273 : vector<1x16x16xf32>
      %276 = arith.addf %271, %275 : vector<1x16x16xf32>
      %c43 = arith.constant 43 : index
      %277 = memref.load %arg3[%c43] : memref<50xf32, #tpu.memory_space<smem>>
      %278 = vector.extract_strided_slice %261 {offsets = [0, 6, 0], sizes = [1, 16, 16], strides = [1, 1, 1]} : vector<1x24x16xf32> to vector<1x16x16xf32>
      %279 = vector.broadcast %277 : f32 to vector<1x16x16xf32>
      %280 = arith.mulf %279, %278 : vector<1x16x16xf32>
      %281 = arith.addf %276, %280 : vector<1x16x16xf32>
      %c48 = arith.constant 48 : index
      %282 = memref.load %arg3[%c48] : memref<50xf32, #tpu.memory_space<smem>>
      %283 = vector.extract_strided_slice %261 {offsets = [0, 8, 0], sizes = [1, 16, 16], strides = [1, 1, 1]} : vector<1x24x16xf32> to vector<1x16x16xf32>
      %284 = vector.broadcast %282 : f32 to vector<1x16x16xf32>
      %285 = arith.mulf %284, %283 : vector<1x16x16xf32>
      %286 = arith.addf %281, %285 : vector<1x16x16xf32>
      %c1_96 = arith.constant 1 : index
      %c0_97 = arith.constant 0 : index
      %c4_98 = arith.constant 4 : index
      %c8_99 = arith.constant 8 : index
      %287 = vector.load %arg8[%c1_96, %c0_97, %c4_98, %c8_99] : memref<2x1x28x24xf32, #tpu.memory_space<vmem>>, vector<1x1x24x16xf32>
      %288 = vector.shape_cast %287 : vector<1x1x24x16xf32> to vector<1x24x16xf32>
      %c29 = arith.constant 29 : index
      %289 = memref.load %arg3[%c29] : memref<50xf32, #tpu.memory_space<smem>>
      %290 = vector.extract_strided_slice %288 {offsets = [0, 0, 0], sizes = [1, 16, 16], strides = [1, 1, 1]} : vector<1x24x16xf32> to vector<1x16x16xf32>
      %291 = vector.broadcast %289 : f32 to vector<1x16x16xf32>
      %292 = arith.mulf %291, %290 : vector<1x16x16xf32>
      %293 = arith.addf %286, %292 : vector<1x16x16xf32>
      %c34 = arith.constant 34 : index
      %294 = memref.load %arg3[%c34] : memref<50xf32, #tpu.memory_space<smem>>
      %295 = vector.extract_strided_slice %288 {offsets = [0, 2, 0], sizes = [1, 16, 16], strides = [1, 1, 1]} : vector<1x24x16xf32> to vector<1x16x16xf32>
      %296 = vector.broadcast %294 : f32 to vector<1x16x16xf32>
      %297 = arith.mulf %296, %295 : vector<1x16x16xf32>
      %298 = arith.addf %293, %297 : vector<1x16x16xf32>
      %c39 = arith.constant 39 : index
      %299 = memref.load %arg3[%c39] : memref<50xf32, #tpu.memory_space<smem>>
      %300 = vector.extract_strided_slice %288 {offsets = [0, 4, 0], sizes = [1, 16, 16], strides = [1, 1, 1]} : vector<1x24x16xf32> to vector<1x16x16xf32>
      %301 = vector.broadcast %299 : f32 to vector<1x16x16xf32>
      %302 = arith.mulf %301, %300 : vector<1x16x16xf32>
      %303 = arith.addf %298, %302 : vector<1x16x16xf32>
      %c44 = arith.constant 44 : index
      %304 = memref.load %arg3[%c44] : memref<50xf32, #tpu.memory_space<smem>>
      %305 = vector.extract_strided_slice %288 {offsets = [0, 6, 0], sizes = [1, 16, 16], strides = [1, 1, 1]} : vector<1x24x16xf32> to vector<1x16x16xf32>
      %306 = vector.broadcast %304 : f32 to vector<1x16x16xf32>
      %307 = arith.mulf %306, %305 : vector<1x16x16xf32>
      %308 = arith.addf %303, %307 : vector<1x16x16xf32>
      %c49 = arith.constant 49 : index
      %309 = memref.load %arg3[%c49] : memref<50xf32, #tpu.memory_space<smem>>
      %310 = vector.extract_strided_slice %288 {offsets = [0, 8, 0], sizes = [1, 16, 16], strides = [1, 1, 1]} : vector<1x24x16xf32> to vector<1x16x16xf32>
      %311 = vector.broadcast %309 : f32 to vector<1x16x16xf32>
      %312 = arith.mulf %311, %310 : vector<1x16x16xf32>
      %313 = arith.addf %308, %312 : vector<1x16x16xf32>
      %cst_100 = arith.constant 5.000000e-01 : f32
      %314 = vector.broadcast %cst_100 : f32 to vector<1x16x16xf32>
      %315 = arith.mulf %314, %313 : vector<1x16x16xf32>
      %316 = math.tanh %315 : vector<1x16x16xf32>
      %cst_101 = arith.constant 5.000000e-01 : f32
      %317 = vector.broadcast %cst_101 : f32 to vector<1x16x16xf32>
      %318 = arith.mulf %317, %316 : vector<1x16x16xf32>
      %cst_102 = arith.constant 5.000000e-01 : f32
      %319 = vector.broadcast %cst_102 : f32 to vector<1x16x16xf32>
      %320 = arith.addf %318, %319 : vector<1x16x16xf32>
      %c0_103 = arith.constant 0 : index
      %c0_104 = arith.constant 0 : index
      %c0_105 = arith.constant 0 : index
      %321 = vector.load %arg5[%c0_103, %c0_104, %c0_105] : memref<1x16x16xf32, #tpu.memory_space<vmem>>, vector<1x16x16xf32>
      tpu.vector_store %arg5[%c0_103, %c0_104, %c0_105], %320 {strides = array<i32>} : memref<1x16x16xf32, #tpu.memory_space<vmem>>, vector<1x16x16xf32>,
    } else {
    }
    return
  }
  func.func @transform_0(%arg0: i32, %arg1: i32) -> (i32, i32, i32, i32) {
    %c0_i32 = arith.constant 0 : i32
    %c0_i32_0 = arith.constant 0 : i32
    %c0_i32_1 = arith.constant 0 : i32
    return %arg0, %arg1, %c0_i32, %c0_i32_0 : i32, i32, i32, i32
  }
  func.func @transform_1(%arg0: i32, %arg1: i32) -> i32 {
    %c0_i32 = arith.constant 0 : i32
    %c0_i32_0 = arith.constant 0 : i32
    return %c0_i32 : i32
  }
  func.func @transform_2(%arg0: i32, %arg1: i32) -> i32 {
    %c0_i32 = arith.constant 0 : i32
    %c0_i32_0 = arith.constant 0 : i32
    return %c0_i32 : i32
  }
  func.func @transform_3(%arg0: i32, %arg1: i32) -> (i32, i32, i32) {
    %c0_i32 = arith.constant 0 : i32
    %c0_i32_0 = arith.constant 0 : i32
    %c0_i32_1 = arith.constant 0 : i32
    return %arg0, %c0_i32, %c0_i32_0 : i32, i32, i32
  }
}

</mosaic_0001>

<bundles_post_ra>
// kernel: tpu_custom_call.1
= control target key start
LH: loop header
LB: loop body
LE: loop exit
PB: predicated region body
PF: predicated region fallthrough
CT: control target
= control target key end

     0   :  { %s10955_s0 = inlined_call_operand.hbm [shape: f32[2,4,16,16], index: 0, kind: input, shape index: {}]   ;;  %s10956_s1 = inlined_call_operand.vmem [shape: f32[50], index: 1, kind: input, shape index: {}]   ;;  %s10957_s2 = inlined_call_operand.<no memory space> [shape: f32[1], index: 2, kind: input, shape index: {}]   ;;  %s10958_s3 = inlined_call_operand.hbm [shape: f32[2,16,16], index: 3, kind: output, shape index: {}]  }
   0x1   :  { %8 = sst [smem:[#allocation5]] %s10957_s2 }
   0x2   :  { %9 = vsyncpa [#allocation7], 0 }
   0x3   :  { %11 = vsyncpa [#allocation7 + $0x1], 0 }
   0x4   :  { %12 = vsyncpa [#allocation9], 0 }
   0x5   :  { %13 = vsyncpa [#allocation8], 0 }
   0x6   :  { %15 = vsyncpa [#allocation8 + $0x1], 0  ;;  %s5780_s14 = smov 0   ;;  %s5782_s15 = smov 0  }
   0x7   :  { %s5784_s16 = smov 0   ;;  %s5786_s17 = smov 0  }
   0x8   :  { %s5788_s18 = smov 0   ;;  %s5790_s19 = smov 0  }
   0x9 LB: > { %s5318_s2 = sadd.s32 4294967295, %s5738_s19   ;;  %s5319_s20 = sadd.s32 4294967294, %s5738_s19   ;;  %s5738_s19 = sphi %s5790_s19, %s21_s19   ;;  %s5734_s18 = sphi %s5788_s18, %s12293_s18   ;;  %s5730_s17 = sphi %s5786_s17, %s12292_s17   ;;  %s5726_s16 = sphi %s5784_s16, %s12291_s16   ;;  %s5722_s15 = sphi %s5782_s15, %s12290_s15   ;;  %s5718_s14 = sphi %s5780_s14, %s12289_s14  }
   0xa   : > { %s42_s21 = sadd.s32 1, %s5726_s16  ;;  %p49_p0 = scmp.ne.s32.totalorder %s5726_s16, %s5722_s15 }
   0xb   : > { %p50_p1 = scmp.eq.s32.totalorder %s5738_s19, 0  ;;  %p55_p2 = scmp.ne.s32.totalorder %s5722_s15, %s5718_s14 }
   0xc   : > { %p5818_p3 = scmp.eq.s32.totalorder %s5318_s2, 0  ;;  %p121_p4 = scmp.eq.s32.totalorder %s5318_s2, 1 }
   0xd   : > { %p5822_p5 = por %p50_p1, %p49_p0  ;;  %p127_p6 = scmp.eq.s32.totalorder %s5319_s20, 1 }
   0xe   : > { %p5828_p7 = por %p5818_p3, %p55_p2  ;;  %p5832_p8 = por %p121_p4, %p49_p0 }
   0xf   : > { %p5836_p9 = por %p127_p6, %p55_p2  ;;  %p5320_p10 = scmp.ge.s32.totalorder %s5738_s19, 1 }
  0x10   : > { %s10978_s25 = scalar_select %p5832_p8, 1, 0 }
  0x11   : > { %s10979_s26 = scalar_select %p5836_p9, 1, 0 }
  0x12   : > { %p134_p11 = scmp.lt.s32.totalorder %s5738_s19, 3  ;;  %s147_s29 = sshll.u32 %s10956_s1, 4  ;;  %s148_s29 = int_to_ptr.vmem [resolvable:$true] %s147_s29 }
  0x13   : > { %p5413_p0 = scmp.lt.s32.totalorder %s5738_s19, 2  ;;  %s33_s6 = sadd.s32 1, %s5734_s18 }
  0x14   : > { %p5845_p12 = pnand %p5320_p10, %p134_p11  ;;  %p5866_p6 = scmp.ge.s32.totalorder %s33_s6, 2 }
  0x15   : > { %p5855_p2 = pnand %p5413_p0, %p5822_p5  ;;  %s161_s8 = sand.u32 1, %s5726_s16  }
  0x16   : > { %p5400_p1 = pneg %p5845_p12  ;;  %s5611_s9 = scalar_lea.vmem %s148_s29, 16 }
  0x17   : > { %p5612_p10 = scmp.ne.s32.totalorder %s148_s29, %s5611_s9  ;;  %p5619_p13 = scmp.lt.s32.totalorder %s148_s29, %s148_s29 }
  0x18   : > { %p5861_p4 = pnand %p5400_p1, %p5818_p3  ;;  %p5620_p9 = scmp.lt.s32.totalorder %s5611_s9, %s5611_s9 }
  0x1a   : > { %p5613_p11 = pneg %p5861_p4  ;;  %p5621_p8 = por %p5620_p9, %p5619_p13 }
  0x1c   : > { %p5614_p5 = pnand %p5613_p11, %p5612_p10 }
  0x1e   : > { %p5615_p0 = pneg %p5614_p5 }
  0x20   : > { %p5622_p1 = pnand %p5621_p8, %p5615_p0 }
  0x22   : > { %5625 = shalt.err (!%p5622_p1)
}
  0x23   : > { %s5740_s10 = smov [#allocation10]   ;;  %s12295_s6 = smov (%p5866_p6, %s33_s6), 0 }
  0x24   : > { %5403 = dma.vmem_to_smem (!%p5861_p4), %s148_s29, 16, %s5740_s10, [#allocation9]  }
  0x25   : > { %s5323_s11 = sshll.u32 %s161_s8, 6  ;;  %s37_s12 = ssub.s32 %s5734_s18, %s12295_s6 }
  0x26   : > { %p40_p10 = scmp.eq.s32.totalorder %s37_s12, 0  ;;  %s5390_s13 = sshll.u32 %s5734_s18, 10 }
  0x27   : > { %s174_s23 = scalar_lea.hbm %s10955_s0, %s5390_s13  ;;  %s165_s27 = scalar_lea.vmem [#allocation6], %s5323_s11 }
  0x28   : > { %s175_s28 = sshll.u32 %s165_s27, 4  ;;  %s162_s9 = scalar_lea.sflag [#allocation7], %s161_s8  ;;  %s176_s28 = int_to_ptr.vmem [resolvable:$true] %s175_s28 }
  0x29   : > { %s5888_s5 = scalar_select %p40_p10, %s5726_s16, %s42_s21  }
  0x2a   : > { %p5628_p8 = pneg %p5855_p2  ;;  %s5639_s29 = scalar_lea.vmem %s176_s28, 1024 }
  0x2b   : > { %p5640_p9 = scmp.ne.s32.totalorder %s176_s28, %s5639_s29  ;;  %s5741_s7 = smov [#allocation6]  }
  0x2c   : > { %s5644_s10 = sshll.u32 %s5741_s7, 4  ;;  %s5645_s10 = int_to_ptr.vmem [resolvable:$false] %s5644_s10 }
  0x2d   : > { %p5642_p13 = pnand %p5640_p9, %p5628_p8  ;;  %s5646_s12 = scalar_lea.vmem %s5645_s10, 2048 }
  0x2e   : > { %p5647_p6 = scmp.lt.s32.totalorder %s176_s28, %s5645_s10  ;;  %p5648_p11 = scmp.lt.s32.totalorder %s5646_s12, %s5639_s29 }
  0x2f   : > { %p5643_p4 = pneg %p5642_p13 }
  0x30   : > { %p5649_p5 = por %p5648_p11, %p5647_p6 }
  0x32   : > { %p5650_p0 = pnand %p5649_p5, %p5643_p4 }
  0x34   : > { %5653 = shalt.err (!%p5650_p0)
}
  0x35   : > { %s5742_s11 = smov 128   ;;  %s5743_s21 = smov 8  }
  0x36   : > { %5407 = dma.hbm_to_vmem [thread:$0]  (!%p5855_p2), %s174_s23, 1024, %s176_s28, %s162_s9, %s5742_s11, %s5742_s11, %s5743_s21  }
  0x37   : > { %187 = sbr.rel (%p5845_p12) target bundleno = 1709 (0x6ad), region = 32 }
  0x3c   : > { %s5897_s8 = sand.u32 1, %s5722_s15  }
  0x3d   : > { %s5327_s13 = sshll.u32 %s5897_s8, 6  ;;  %s190_s2 = scalar_lea.sflag [#allocation7], %s5897_s8 }
  0x3e   : > { %s5901_s20 = scalar_lea.vmem [#allocation6], %s5327_s13 }
  0x3f   : > { %5705 = dma.done.wait (%p5828_p7), %s190_s2, 1024  }
  0x40   : > { %5707 = vsyncadd (%p5828_p7), %s190_s2, 4294966272 }
  0x41   : > { %5709 = dma.done.wait (%p5818_p3), [#allocation9], 16  }
  0x42   : > { %5711 = vsyncadd (%p5818_p3), [#allocation9], 4294967280 }
  0x43   : > { %202 = sfence }
  0x44   : > { %vm226_vm0 = vcmask 130048   ;;  %v5744_v0 = vmov 0.0   ;;  %v5745_v1 = vmov -inf   ;;  %vm272_vm1 = vcmask 188416   ;;  %v235_v2 = vld [vmem:[%s5901_s20] sm:$0xff]  ;;  %v236_v4 = vld [vmem:[%s5901_s20 + $0x8] sm:$0xff] }
  0x45   : > { %227 = vst.msk [vmem:[#allocation2] sm:$0xff] %vm226_vm0, %v5744_v0  ;;  %229 = vst.msk [vmem:[#allocation3] sm:$0xff] %vm226_vm0, %v5745_v1  ;;  %vm291_vm2 = vcmask 24576   ;;  %vm324_vm3 = vcmask 188576   ;;  %v361_v3 = vlaneseq  ;;  %v5330_v5 = vld [vmem:[%s5901_s20 + $0x10] sm:$0xff]  ;;  %v5331_v8 = vld [vmem:[%s5901_s20 + $0x18] sm:$0xff] }
  0x46   : > { %228 = vst.msk [vmem:[#allocation2 + $0x8] sm:$0xff] %vm226_vm0, %v5744_v0  ;;  %230 = vst.msk [vmem:[#allocation3 + $0x8] sm:$0xff] %vm226_vm0, %v5745_v1  ;;  %v5746_v6 = vmov 1983009808   ;;  %v5747_v14 = vmov 1934713408  }
  0x47   : > { %273 = vst.msk [vmem:[#allocation4] sm:$0x1] %vm272_vm1, %v5744_v0  ;;  %274 = vst.msk [vmem:[#allocation4 + $0x1] sm:$0x1] %vm272_vm1, %v5744_v0  ;;  %v359_v7 = vunpack.c.l.s4 %v5746_v6  ;;  %v374_v15 = vunpack.c.l.s4 %v5747_v14  ;;  %v5332_v18 = vld [vmem:[%s5901_s20 + $0x20] sm:$0xff]  ;;  %v6082_v19 = vshrl.u32 %v361_v3, 7 }
  0x48   : > { %275 = vst.msk [vmem:[#allocation4 + $0x2] sm:$0x1] %vm272_vm1, %v5744_v0  ;;  %276 = vst.msk [vmem:[#allocation4 + $0x3] sm:$0x1] %vm272_vm1, %v5744_v0  ;;  %v5333_v20 = vld [vmem:[%s5901_s20 + $0x28] sm:$0xff]  ;;  %v5334_v26 = vld [vmem:[%s5901_s20 + $0x30] sm:$0xff] }
  0x49   : > { %277 = vst.msk [vmem:[#allocation4 + $0x18] sm:$0x1] %vm272_vm1, %v5744_v0  ;;  %278 = vst.msk [vmem:[#allocation4 + $0x19] sm:$0x1] %vm272_vm1, %v5744_v0  ;;  %v360_v24 = vunpack.c.0.s8 %v359_v7  ;;  %v5335_v27 = vld [vmem:[%s5901_s20 + $0x38] sm:$0xff]  ;;  %v375_v31 = vunpack.c.0.s8 %v374_v15  ;;  %s5748_s22 = smov 4  }
  0x4a   : > { %279 = vst.msk [vmem:[#allocation4 + $0x1a] sm:$0x1] %vm272_vm1, %v5744_v0  ;;  %280 = vst.msk [vmem:[#allocation4 + $0x1b] sm:$0x1] %vm272_vm1, %v5744_v0  ;;  %s5340_s24 = sld [smem:[#allocation10 + $0x1]]  ;;  %s5749_s4 = smov 126  }
  0x4b   : > { %282 = vst.msk [vmem:[#allocation4 + $0x14] sm:$0x1] %vm272_vm1, %v5744_v0  ;;  %283 = vst.msk [vmem:[#allocation4 + $0x15] sm:$0x1] %vm272_vm1, %v5744_v0  ;;  %v6088_v36 = vsub.s32 %v360_v24, %v6082_v19  ;;  %v6094_v40 = vsub.s32 %v375_v31, %v6082_v19  ;;  %s5341_s30 = sld [smem:[#allocation10 + $0x6]]  ;;  %vm519_vm4 = vcmask 155680  }
  0x4c   : > { %284 = vst.msk [vmem:[#allocation4 + $0x16] sm:$0x1] %vm272_vm1, %v5744_v0  ;;  %285 = vst.msk [vmem:[#allocation4 + $0x17] sm:$0x1] %vm272_vm1, %v5744_v0  ;;  %v231_v9 = vld [vmem:[#allocation2] sm:$0xff]  ;;  %v233_v10 = vld [vmem:[#allocation3] sm:$0xff] }
  0x4d   : > { %286 = vst.msk [vmem:[#allocation4 + $0x2c] sm:$0x1] %vm272_vm1, %v5744_v0  ;;  %287 = vst.msk [vmem:[#allocation4 + $0x2d] sm:$0x1] %vm272_vm1, %v5744_v0  ;;  %v232_v11 = vld [vmem:[#allocation2 + $0x8] sm:$0xff]  ;;  %v237_v12 = vadd.f32 %v235_v2, %v231_v9  ;;  %v239_v13 = vmax.f32 %v233_v10, %v235_v2  ;;  %v234_v17 = vld [vmem:[#allocation3 + $0x8] sm:$0xff] }
  0x4e   : > { %288 = vst.msk [vmem:[#allocation4 + $0x2e] sm:$0x1] %vm272_vm1, %v5744_v0  ;;  %289 = vst.msk [vmem:[#allocation4 + $0x2f] sm:$0x1] %vm272_vm1, %v5744_v0  ;;  %v238_v16 = vadd.f32 %v236_v4, %v232_v11  ;;  %v240_v21 = vmax.f32 %v234_v17, %v236_v4  ;;  %v6182_v31 = vld [vmem:[#allocation4] sm:$0x1] }
  0x4f   : > { %292 = vst.msk [vmem:[#allocation4 + $0x4] sm:$0x1] %vm291_vm2, %v5744_v0  ;;  %293 = vst.msk [vmem:[#allocation4 + $0x5] sm:$0x1] %vm291_vm2, %v5744_v0  ;;  %v244_v22 = vadd.f32 %v5330_v5, %v237_v12  ;;  %v246_v23 = vmax.f32 %v239_v13, %v5330_v5  ;;  %s5342_s23 = sld [smem:[#allocation10 + $0xb]]  ;;  %s5750_s29 = smov 124  }
  0x50   : > { %294 = vst.msk [vmem:[#allocation4 + $0x6] sm:$0x1] %vm291_vm2, %v5744_v0  ;;  %295 = vst.msk [vmem:[#allocation4 + $0x7] sm:$0x1] %vm291_vm2, %v5744_v0  ;;  %v245_v25 = vadd.f32 %v5331_v8, %v238_v16  ;;  %v247_v28 = vmax.f32 %v240_v21, %v5331_v8  ;;  %s5343_s27 = sld [smem:[#allocation10 + $0x10]]  ;;  %s5751_s13 = smov 122  }
  0x51   : > { %296 = vst.msk [vmem:[#allocation4 + $0x8] sm:$0x1] %vm291_vm2, %v5744_v0  ;;  %297 = vst.msk [vmem:[#allocation4 + $0x9] sm:$0x1] %vm291_vm2, %v5744_v0  ;;  %v251_v29 = vadd.f32 %v5332_v18, %v244_v22  ;;  %v253_v30 = vmax.f32 %v246_v23, %v5332_v18  ;;  %s5344_s28 = sld [smem:[#allocation10 + $0x15]]  ;;  %p12286_p7 = scmp.ne.s32.totalorder %s10978_s25, 0 }
  0x52   : > { %298 = vst.msk [vmem:[#allocation4 + $0xa] sm:$0x1] %vm291_vm2, %v5744_v0  ;;  %299 = vst.msk [vmem:[#allocation4 + $0xb] sm:$0x1] %vm291_vm2, %v5744_v0  ;;  %v252_v32 = vadd.f32 %v5333_v20, %v245_v25  ;;  %v254_v33 = vmax.f32 %v247_v28, %v5333_v20  ;;  %s5345_s9 = sld [smem:[#allocation10 + $0x2]] }
  0x53   : > { %300 = vst.msk [vmem:[#allocation4 + $0xc] sm:$0x1] %vm291_vm2, %v5744_v0  ;;  %301 = vst.msk [vmem:[#allocation4 + $0xd] sm:$0x1] %vm291_vm2, %v5744_v0  ;;  %v258_v34 = vadd.f32 %v5334_v26, %v251_v29  ;;  %v260_v35 = vmax.f32 %v253_v30, %v5334_v26  ;;  %s5346_s7 = sld [smem:[#allocation10 + $0x7]] }
  0x54   : > { %302 = vst.msk [vmem:[#allocation4 + $0xe] sm:$0x1] %vm291_vm2, %v5744_v0  ;;  %303 = vst.msk [vmem:[#allocation4 + $0xf] sm:$0x1] %vm291_vm2, %v5744_v0  ;;  %v259_v37 = vadd.f32 %v5335_v27, %v252_v32  ;;  %v6090_v38 = vmax.f32 %v254_v33, %v5335_v27  ;;  %v6184_v32 = vstv %s5340_s24  ;;  %s5347_s10 = sld [smem:[#allocation10 + $0xc]] }
  0x55   : > { %304 = vst.msk [vmem:[#allocation4 + $0x10] sm:$0x1] %vm291_vm2, %v5744_v0  ;;  %305 = vst.msk [vmem:[#allocation4 + $0x11] sm:$0x1] %vm291_vm2, %v5744_v0  ;;  %v270_v39 = vmul.f32 0.25, %v258_v34  ;;  %v543_v4 = vrot.slane %v260_v35, %v6088_v36  ;;  %v536_v8 = vcombine.high %v260_v35, %v5744_v0  ;;  %s5348_s12 = sld [smem:[#allocation10 + $0x11]] }
  0x56   : > { %306 = vst.msk [vmem:[#allocation4 + $0x12] sm:$0x1] %vm291_vm2, %v5744_v0  ;;  %307 = vst.msk [vmem:[#allocation4 + $0x13] sm:$0x1] %vm291_vm2, %v5744_v0  ;;  %v271_v41 = vmul.f32 0.25, %v259_v37  ;;  %v592_v17 = vrot.slane %v6090_v38, %v6088_v36  ;;  %v585_v22 = vcombine.high %v6090_v38, %v5744_v0  ;;  %s5349_s11 = sld [smem:[#allocation10 + $0x16]] }
  0x57   : > { %308 = vst.msk [vmem:[#allocation4 + $0x1c] sm:$0x1] %vm291_vm2, %v5744_v0  ;;  %309 = vst.msk [vmem:[#allocation4 + $0x1d] sm:$0x1] %vm291_vm2, %v5744_v0  ;;  %v364_v42 = vrot.slane %v270_v39, %v6088_v36  ;;  %v357_v45 = vcombine.high %v270_v39, %v5744_v0  ;;  %v558_v6 = vrot.slane %v543_v4, %v6094_v40  ;;  %v6203_v39 = vstv %s5341_s30  ;;  %s5350_s21 = sld [smem:[#allocation10 + $0x3]] }
  0x58   : > { %310 = vst.msk [vmem:[#allocation4 + $0x1e] sm:$0x1] %vm291_vm2, %v5744_v0  ;;  %311 = vst.msk [vmem:[#allocation4 + $0x1f] sm:$0x1] %vm291_vm2, %v5744_v0  ;;  %v413_v43 = vrot.slane %v271_v41, %v6088_v36  ;;  %v406_v55 = vcombine.high %v271_v41, %v5744_v0  ;;  %v551_v7 = vcombine.high %v543_v4, %v5744_v0  ;;  %s5351_s2 = sld [smem:[#allocation10 + $0x8]] }
  0x59   : > { %312 = vst.msk [vmem:[#allocation4 + $0x20] sm:$0x1] %vm291_vm2, %v5744_v0  ;;  %313 = vst.msk [vmem:[#allocation4 + $0x21] sm:$0x1] %vm291_vm2, %v5744_v0  ;;  %v379_v44 = vrot.slane %v364_v42, %v6094_v40  ;;  %v372_v46 = vcombine.high %v364_v42, %v5744_v0  ;;  %v371_v50 = vrot.slane %v357_v45, %v6088_v36  ;;  %s5352_s20 = sld [smem:[#allocation10 + $0xd]] }
  0x5a   : > { %314 = vst.msk [vmem:[#allocation4 + $0x22] sm:$0x1] %vm291_vm2, %v5744_v0  ;;  %315 = vst.msk [vmem:[#allocation4 + $0x23] sm:$0x1] %vm291_vm2, %v5744_v0  ;;  %v428_v47 = vrot.slane %v413_v43, %v6094_v40  ;;  %v421_v54 = vcombine.high %v413_v43, %v5744_v0  ;;  %v420_v58 = vrot.slane %v406_v55, %v6088_v36  ;;  %s5354_s24 = sld [smem:[#allocation10 + $0x17]] }
  0x5b   : > { %316 = vst.msk [vmem:[#allocation4 + $0x24] sm:$0x1] %vm291_vm2, %v5744_v0  ;;  %317 = vst.msk [vmem:[#allocation4 + $0x25] sm:$0x1] %vm291_vm2, %v5744_v0  ;;  %471 = vrot.lane.b32.xlu0 %v379_v44, %s5748_s22  ;;  %v386_v48 = vrot.slane %v372_v46, %v6094_v40  ;;  %v402_v51 = vcombine.high %v379_v44, %v5744_v0  ;;  %v394_v53 = vrot.slane %v371_v50, %v6094_v40  ;;  %s5355_s30 = sld [smem:[#allocation10 + $0x4]] }
  0x5c   : > { %318 = vst.msk [vmem:[#allocation4 + $0x26] sm:$0x1] %vm291_vm2, %v5744_v0  ;;  %319 = vst.msk [vmem:[#allocation4 + $0x27] sm:$0x1] %vm291_vm2, %v5744_v0  ;;  %v451_v49 = vcombine.high %v428_v47, %v5744_v0  ;;  %v435_v57 = vrot.slane %v421_v54, %v6094_v40  ;;  %v443_v60 = vrot.slane %v420_v58, %v6094_v40 }
  0x5d   : > { %320 = vst.msk [vmem:[#allocation4 + $0x28] sm:$0x1] %vm291_vm2, %v5744_v0  ;;  %321 = vst.msk [vmem:[#allocation4 + $0x29] sm:$0x1] %vm291_vm2, %v5744_v0  ;;  %475 = vrot.lane.b32.xlu1 %v386_v48, %s5748_s22  ;;  %v403_v52 = vcombine.high %v386_v48, %v5744_v0  ;;  %v404_v56 = vcombine.high %v394_v53, %v5744_v0  ;;  %v387_v61 = vcombine.high %v371_v50, %v5744_v0 }
  0x5e   : > { %322 = vst.msk [vmem:[#allocation4 + $0x2a] sm:$0x1] %vm291_vm2, %v5744_v0  ;;  %323 = vst.msk [vmem:[#allocation4 + $0x2b] sm:$0x1] %vm291_vm2, %v5744_v0  ;;  %v452_v59 = vcombine.high %v435_v57, %v5744_v0  ;;  %v453_v62 = vcombine.high %v443_v60, %v5744_v0  ;;  %v436_v1 = vcombine.high %v420_v58, %v5744_v0 }
  0x5f   : > { %325 = vst.msk [vmem:[#allocation4 + $0x4] sm:$0x1] %vm324_vm3, %v5744_v0  ;;  %327 = vst.msk [vmem:[#allocation4 + $0x6] sm:$0x1] %vm324_vm3, %v5744_v0  ;;  %487 = vrot.lane.b32.xlu0 %v428_v47, %s5748_s22  ;;  %v401_v63 = vrot.slane %v387_v61, %v6094_v40  ;;  %v581_v9 = vcombine.high %v558_v6, %v5744_v0  ;;  %v565_v10 = vrot.slane %v551_v7, %v6094_v40 }
  0x60   : > { %326 = vst.msk [vmem:[#allocation4 + $0x5] sm:$0x1] %vm324_vm3, %v5744_v0  ;;  %328 = vst.msk [vmem:[#allocation4 + $0x7] sm:$0x1] %vm324_vm3, %v5744_v0  ;;  %v450_v3 = vrot.slane %v436_v1, %v6094_v40  ;;  %v550_v11 = vrot.slane %v536_v8, %v6088_v36  ;;  %v607_v20 = vrot.slane %v592_v17, %v6094_v40 }
  0x61   : > { %329 = vst.msk [vmem:[#allocation4 + $0x8] sm:$0x1] %vm324_vm3, %v5744_v0  ;;  %330 = vst.msk [vmem:[#allocation4 + $0x9] sm:$0x1] %vm324_vm3, %v5744_v0  ;;  %489 = vrot.lane.b32.xlu1 %v451_v49, %s5748_s22  ;;  %v405_v2 = vcombine.high %v401_v63, %v5744_v0  ;;  %v582_v12 = vcombine.high %v565_v10, %v5744_v0  ;;  %v600_v21 = vcombine.high %v592_v17, %v5744_v0 }
  0x62   : > { %331 = vst.msk [vmem:[#allocation4 + $0xa] sm:$0x1] %vm324_vm3, %v5744_v0  ;;  %332 = vst.msk [vmem:[#allocation4 + $0xb] sm:$0x1] %vm324_vm3, %v5744_v0  ;;  %v454_v5 = vcombine.high %v450_v3, %v5744_v0  ;;  %v573_v13 = vrot.slane %v550_v11, %v6094_v40  ;;  %v566_v14 = vcombine.high %v550_v11, %v5744_v0 }
  0x63   : > { %333 = vst.msk [vmem:[#allocation4 + $0xc] sm:$0x1] %vm324_vm3, %v5744_v0  ;;  %334 = vst.msk [vmem:[#allocation4 + $0xd] sm:$0x1] %vm324_vm3, %v5744_v0  ;;  %473 = vrot.lane.b32.xlu0 %v402_v51, %s5748_s22  ;;  %v630_v23 = vcombine.high %v607_v20, %v5744_v0  ;;  %v614_v24 = vrot.slane %v600_v21, %v6094_v40  ;;  %v599_v25 = vrot.slane %v585_v22, %v6088_v36  ;;  %v6193_v36 = vld [vmem:[#allocation4 + $0x2] sm:$0x1] }
  0x64   : > { %335 = vst.msk [vmem:[#allocation4 + $0xe] sm:$0x1] %vm324_vm3, %v5744_v0  ;;  %336 = vst.msk [vmem:[#allocation4 + $0xf] sm:$0x1] %vm324_vm3, %v5744_v0  ;;  %v583_v15 = vcombine.high %v573_v13, %v5744_v0  ;;  %v580_v16 = vrot.slane %v566_v14, %v6094_v40  ;;  %v1011_v41 = vmul.f32 %v6203_v39, %v6193_v36 }
  0x65   : > { %337 = vst.msk [vmem:[#allocation4 + $0x10] sm:$0x1] %vm324_vm3, %v5744_v0  ;;  %338 = vst.msk [vmem:[#allocation4 + $0x11] sm:$0x1] %vm324_vm3, %v5744_v0  ;;  %477 = vrot.lane.b32.xlu1 %v403_v52, %s5748_s22  ;;  %v631_v26 = vcombine.high %v614_v24, %v5744_v0  ;;  %v622_v27 = vrot.slane %v599_v25, %v6094_v40  ;;  %v615_v28 = vcombine.high %v599_v25, %v5744_v0 }
  0x66   : > { %339 = vst.msk [vmem:[#allocation4 + $0x12] sm:$0x1] %vm324_vm3, %v5744_v0  ;;  %340 = vst.msk [vmem:[#allocation4 + $0x13] sm:$0x1] %vm324_vm3, %v5744_v0  ;;  %v584_v18 = vcombine.high %v580_v16, %v5744_v0 }
  0x67   : > { %341 = vst.msk [vmem:[#allocation4 + $0x1c] sm:$0x1] %vm324_vm3, %v5744_v0  ;;  %342 = vst.msk [vmem:[#allocation4 + $0x1d] sm:$0x1] %vm324_vm3, %v5744_v0  ;;  %479 = vrot.lane.b32.xlu0 %v394_v53, %s5748_s22  ;;  %v632_v29 = vcombine.high %v622_v27, %v5744_v0  ;;  %v629_v30 = vrot.slane %v615_v28, %v6094_v40 }
  0x68   : > { %343 = vst.msk [vmem:[#allocation4 + $0x1e] sm:$0x1] %vm324_vm3, %v5744_v0  ;;  %344 = vst.msk [vmem:[#allocation4 + $0x1f] sm:$0x1] %vm324_vm3, %v5744_v0 }
  0x69   : > { %345 = vst.msk [vmem:[#allocation4 + $0x20] sm:$0x1] %vm324_vm3, %v5744_v0  ;;  %346 = vst.msk [vmem:[#allocation4 + $0x21] sm:$0x1] %vm324_vm3, %v5744_v0  ;;  %481 = vrot.lane.b32.xlu1 %v404_v56, %s5748_s22  ;;  %v633_v33 = vcombine.high %v629_v30, %v5744_v0 }
  0x6a   : > { %347 = vst.msk [vmem:[#allocation4 + $0x22] sm:$0x1] %vm324_vm3, %v5744_v0  ;;  %348 = vst.msk [vmem:[#allocation4 + $0x23] sm:$0x1] %vm324_vm3, %v5744_v0 }
  0x6b   : > { %349 = vst.msk [vmem:[#allocation4 + $0x24] sm:$0x1] %vm324_vm3, %v5744_v0  ;;  %350 = vst.msk [vmem:[#allocation4 + $0x25] sm:$0x1] %vm324_vm3, %v5744_v0  ;;  %491 = vrot.lane.b32.xlu0 %v435_v57, %s5748_s22 }
  0x6c   : > { %351 = vst.msk [vmem:[#allocation4 + $0x26] sm:$0x1] %vm324_vm3, %v5744_v0  ;;  %352 = vst.msk [vmem:[#allocation4 + $0x27] sm:$0x1] %vm324_vm3, %v5744_v0 }
  0x6d   : > { %353 = vst.msk [vmem:[#allocation4 + $0x28] sm:$0x1] %vm324_vm3, %v5744_v0  ;;  %354 = vst.msk [vmem:[#allocation4 + $0x29] sm:$0x1] %vm324_vm3, %v5744_v0  ;;  %493 = vrot.lane.b32.xlu1 %v452_v59, %s5748_s22 }
  0x6e   : > { %355 = vst.msk [vmem:[#allocation4 + $0x2a] sm:$0x1] %vm324_vm3, %v5744_v0  ;;  %356 = vst.msk [vmem:[#allocation4 + $0x2b] sm:$0x1] %vm324_vm3, %v5744_v0  ;;  %v915_v0 = vmul.f32 %v6184_v32, %v6193_v36 }
  0x6f   : > { %10984 = vst [vmem:[#allocation15_spill] sm:$0xff] %v6082_v19  ;;  %265 = vst.msk [vmem:[#allocation3] sm:$0xff] %vm226_vm0, %v260_v35  ;;  %495 = vrot.lane.b32.xlu0 %v443_v60, %s5748_s22  ;;  %v913_v35 = vmul.f32 %v6184_v32, %v6182_v31  ;;  %v1500_v19 = vstv %s5346_s7  ;;  %s5359_s7 = sld [smem:[#allocation10 + $0x18]] }
  0x70   : > { %263 = vst.msk [vmem:[#allocation2] sm:$0xff] %vm226_vm0, %v258_v34  ;;  %264 = vst.msk [vmem:[#allocation2 + $0x8] sm:$0xff] %vm226_vm0, %v259_v37  ;;  %v6188_v34 = vld [vmem:[#allocation4 + $0x1] sm:$0x1] }
  0x71   : > { %266 = vst.msk [vmem:[#allocation3 + $0x8] sm:$0xff] %vm226_vm0, %v6090_v38  ;;  %497 = vrot.lane.b32.xlu1 %v453_v62, %s5748_s22  ;;  %v914_v37 = vmul.f32 %v6184_v32, %v6188_v34  ;;  %v6198_v38 = vld [vmem:[#allocation4 + $0x3] sm:$0x1] }
  0x72   : > { %v916_v40 = vmul.f32 %v6184_v32, %v6198_v38  ;;  %v1012_v42 = vmul.f32 %v6203_v39, %v6198_v38 }
  0x73   : > { %483 = vrot.lane.b32.xlu0 %v401_v63, %s5748_s22 }
  0x75   : > { %485 = vrot.lane.b32.xlu1 %v405_v2, %s5748_s22  ;;  %v6251_v2 = vstv %s5342_s23  ;;  %s5752_s23 = smov 120  }
  0x77   : > { %499 = vrot.lane.b32.xlu0 %v450_v3, %s5748_s22 }
  0x79   : > { %501 = vrot.lane.b32.xlu1 %v454_v5, %s5748_s22 }
  0x7b   : > { %650 = vrot.lane.b32.xlu0 %v558_v6, %s5748_s22 }
  0x7d   : > { %652 = vrot.lane.b32.xlu1 %v581_v9, %s5748_s22 }
  0x7f   : > { %654 = vrot.lane.b32.xlu0 %v565_v10, %s5748_s22 }
  0x81   : > { %656 = vrot.lane.b32.xlu1 %v582_v12, %s5748_s22 }
  0x83   : > { %658 = vrot.lane.b32.xlu0 %v573_v13, %s5748_s22 }
  0x85   : > { %660 = vrot.lane.b32.xlu1 %v583_v15, %s5748_s22 }
  0x87   : > { %662 = vrot.lane.b32.xlu0 %v580_v16, %s5748_s22 }
  0x89   : > { %664 = vrot.lane.b32.xlu1 %v584_v18, %s5748_s22 }
  0x8b   : > { %666 = vrot.lane.b32.xlu0 %v607_v20, %s5748_s22 }
  0x8d   : > { %668 = vrot.lane.b32.xlu1 %v630_v23, %s5748_s22 }
  0x8f   : > { %670 = vrot.lane.b32.xlu0 %v614_v24, %s5748_s22 }
  0x91   : > { %672 = vrot.lane.b32.xlu1 %v631_v26, %s5748_s22 }
  0x93   : > { %674 = vrot.lane.b32.xlu0 %v622_v27, %s5748_s22 }
  0x95   : > { %676 = vrot.lane.b32.xlu1 %v632_v29, %s5748_s22 }
  0x97   : > { %678 = vrot.lane.b32.xlu0 %v629_v30, %s5748_s22 }
  0x99   : > { %680 = vrot.lane.b32.xlu1 %v633_v33, %s5748_s22  ;;  %s5353_s22 = sld [smem:[#allocation10 + $0x12]] }
  0x9b   : > { %945 = vrot.lane.b32.xlu0 %v913_v35, %s5749_s4 }
  0x9d   : > { %947 = vrot.lane.b32.xlu1 %v914_v37, %s5749_s4 }
  0x9f   : > { %949 = vrot.lane.b32.xlu0 %v915_v0, %s5749_s4 }
  0xa1   : > { %951 = vrot.lane.b32.xlu1 %v916_v40, %s5749_s4 }
  0xa3   : > { %1043 = vrot.lane.b32.xlu0 %v1011_v41, %s5749_s4 }
  0xa5   : > { %1045 = vrot.lane.b32.xlu1 %v1012_v42, %s5749_s4 }
  0xcd   : > { %v472_v43 = vpop.permute.xlu0 %471 }
  0xce   : > { %520 = vst.msk [vmem:[#allocation4 + $0x4] sm:$0x1] %vm519_vm4, %v472_v43 }
  0xcf   : > { %v476_v44 = vpop.permute.xlu1 %475 }
  0xd0   : > { %522 = vst.msk [vmem:[#allocation4 + $0x6] sm:$0x1] %vm519_vm4, %v476_v44 }
  0xd1   : > { %v488_v45 = vpop.permute.xlu0 %487 }
  0xd2   : > { %528 = vst.msk [vmem:[#allocation4 + $0xc] sm:$0x1] %vm519_vm4, %v488_v45 }
  0xd3   : > { %v490_v46 = vpop.permute.xlu1 %489 }
  0xd4   : > { %529 = vst.msk [vmem:[#allocation4 + $0xd] sm:$0x1] %vm519_vm4, %v490_v46 }
  0xd5   : > { %v6220_v47 = vld [vmem:[#allocation4 + $0x4] sm:$0x1]  ;;  %v474_v48 = vpop.permute.xlu0 %473 }
  0xd6   : > { %521 = vst.msk [vmem:[#allocation4 + $0x5] sm:$0x1] %vm519_vm4, %v474_v48  ;;  %v917_v49 = vmul.f32 %v6184_v32, %v6220_v47  ;;  %v1013_v58 = vmul.f32 %v6203_v39, %v6220_v47  ;;  %v1109_v4 = vmul.f32 %v6251_v2, %v6220_v47 }
  0xd7   : > { %v478_v50 = vpop.permute.xlu1 %477  ;;  %v6272_v11 = vld [vmem:[#allocation4 + $0x6] sm:$0x1] }
  0xd8   : > { %523 = vst.msk [vmem:[#allocation4 + $0x7] sm:$0x1] %vm519_vm4, %v478_v50  ;;  %953 = vrot.lane.b32.xlu0 %v917_v49, %s5749_s4  ;;  %v919_v13 = vmul.f32 %v6184_v32, %v6272_v11  ;;  %v1015_v33 = vmul.f32 %v6203_v39, %v6272_v11 }
  0xd9   : > { %v6227_v51 = vld [vmem:[#allocation4 + $0xc] sm:$0x1]  ;;  %v480_v52 = vpop.permute.xlu0 %479 }
  0xda   : > { %524 = vst.msk [vmem:[#allocation4 + $0x8] sm:$0x1] %vm519_vm4, %v480_v52  ;;  %v925_v53 = vmul.f32 %v6184_v32, %v6227_v51  ;;  %v1021_v63 = vmul.f32 %v6203_v39, %v6227_v51  ;;  %v1117_v8 = vmul.f32 %v6251_v2, %v6227_v51 }
  0xdb   : > { %v482_v54 = vpop.permute.xlu1 %481  ;;  %v6234_v55 = vld [vmem:[#allocation4 + $0xd] sm:$0x1] }
  0xdc   : > { %525 = vst.msk [vmem:[#allocation4 + $0x9] sm:$0x1] %vm519_vm4, %v482_v54  ;;  %969 = vrot.lane.b32.xlu0 %v925_v53, %s5749_s4  ;;  %v926_v61 = vmul.f32 %v6184_v32, %v6234_v55  ;;  %v1022_v9 = vmul.f32 %v6203_v39, %v6234_v55  ;;  %v1118_v20 = vmul.f32 %v6251_v2, %v6234_v55 }
  0xdd   : > { %v6236_v56 = vld [vmem:[#allocation4 + $0x5] sm:$0x1]  ;;  %v492_v57 = vpop.permute.xlu0 %491 }
  0xde   : > { %530 = vst.msk [vmem:[#allocation4 + $0xe] sm:$0x1] %vm519_vm4, %v492_v57  ;;  %v918_v59 = vmul.f32 %v6184_v32, %v6236_v56  ;;  %v1014_v5 = vmul.f32 %v6203_v39, %v6236_v56  ;;  %v1110_v14 = vmul.f32 %v6251_v2, %v6236_v56  ;;  %v1111_v57 = vmul.f32 %v6251_v2, %v6272_v11 }
  0xdf   : > { %v494_v60 = vpop.permute.xlu1 %493  ;;  %v6289_v21 = vld [vmem:[#allocation4 + $0x7] sm:$0x1] }
  0xe0   : > { %531 = vst.msk [vmem:[#allocation4 + $0xf] sm:$0x1] %vm519_vm4, %v494_v60  ;;  %1047 = vrot.lane.b32.xlu0 %v1013_v58, %s5749_s4  ;;  %955 = vrot.lane.b32.xlu1 %v918_v59, %s5749_s4  ;;  %v920_v25 = vmul.f32 %v6184_v32, %v6289_v21  ;;  %v1016_v45 = vmul.f32 %v6203_v39, %v6289_v21 }
  0xe1   : > { %v496_v62 = vpop.permute.xlu0 %495  ;;  %v6279_v15 = vld [vmem:[#allocation4 + $0x8] sm:$0x1] }
  0xe2   : > { %532 = vst.msk [vmem:[#allocation4 + $0x10] sm:$0x1] %vm519_vm4, %v496_v62  ;;  %v921_v17 = vmul.f32 %v6184_v32, %v6279_v15  ;;  %v1017_v41 = vmul.f32 %v6203_v39, %v6279_v15  ;;  %v1113_v62 = vmul.f32 %v6251_v2, %v6279_v15 }
  0xe3   : > { %v498_v1 = vpop.permute.xlu1 %497  ;;  %v6301_v27 = vld [vmem:[#allocation4 + $0x9] sm:$0x1] }
  0xe4   : > { %533 = vst.msk [vmem:[#allocation4 + $0x11] sm:$0x1] %vm519_vm4, %v498_v1  ;;  %1063 = vrot.lane.b32.xlu0 %v1021_v63, %s5749_s4  ;;  %971 = vrot.lane.b32.xlu1 %v926_v61, %s5749_s4  ;;  %v922_v29 = vmul.f32 %v6184_v32, %v6301_v27  ;;  %v1018_v52 = vmul.f32 %v6203_v39, %v6301_v27 }
  0xe5   : > { %v484_v3 = vpop.permute.xlu0 %483  ;;  %v6291_v22 = vld [vmem:[#allocation4 + $0xe] sm:$0x1]  ;;  %v1112_v1 = vmul.f32 %v6251_v2, %v6289_v21 }
  0xe6   : > { %526 = vst.msk [vmem:[#allocation4 + $0xa] sm:$0x1] %vm519_vm4, %v484_v3  ;;  %v927_v24 = vmul.f32 %v6184_v32, %v6291_v22  ;;  %v1023_v44 = vmul.f32 %v6203_v39, %v6291_v22  ;;  %v1119_v63 = vmul.f32 %v6251_v2, %v6291_v22 }
  0xe7   : > { %v486_v6 = vpop.permute.xlu1 %485  ;;  %v6311_v35 = vld [vmem:[#allocation4 + $0xf] sm:$0x1] }
  0xe8   : > { %527 = vst.msk [vmem:[#allocation4 + $0xb] sm:$0x1] %vm519_vm4, %v486_v6  ;;  %1141 = vrot.lane.b32.xlu0 %v1109_v4, %s5749_s4  ;;  %1049 = vrot.lane.b32.xlu1 %v1014_v5, %s5749_s4  ;;  %v928_v0 = vmul.f32 %v6184_v32, %v6311_v35  ;;  %v1024_v58 = vmul.f32 %v6203_v39, %v6311_v35 }
  0xe9   : > { %v500_v7 = vpop.permute.xlu0 %499  ;;  %v6329_v46 = vld [vmem:[#allocation4 + $0x10] sm:$0x1]  ;;  %v1114_v4 = vmul.f32 %v6251_v2, %v6301_v27 }
  0xea   : > { %534 = vst.msk [vmem:[#allocation4 + $0x12] sm:$0x1] %vm519_vm4, %v500_v7  ;;  %v1025_v49 = vmul.f32 %v6203_v39, %v6329_v46  ;;  %v1121_v3 = vmul.f32 %v6251_v2, %v6329_v46  ;;  %v1120_v7 = vmul.f32 %v6251_v2, %v6311_v35 }
  0xeb   : > { %v502_v10 = vpop.permute.xlu1 %501  ;;  %v6347_v59 = vld [vmem:[#allocation4 + $0x11] sm:$0x1] }
  0xec   : > { %535 = vst.msk [vmem:[#allocation4 + $0x13] sm:$0x1] %vm519_vm4, %v502_v10  ;;  %1157 = vrot.lane.b32.xlu0 %v1117_v8, %s5749_s4  ;;  %1065 = vrot.lane.b32.xlu1 %v1022_v9, %s5749_s4  ;;  %v1026_v61 = vmul.f32 %v6203_v39, %v6347_v59  ;;  %v1122_v9 = vmul.f32 %v6251_v2, %v6347_v59 }
  0xed   : > { %v651_v12 = vpop.permute.xlu0 %650  ;;  %v6368_v5 = vld [vmem:[#allocation4 + $0xa] sm:$0x1] }
  0xee   : > { %699 = vst.msk [vmem:[#allocation4 + $0x1c] sm:$0x1] %vm519_vm4, %v651_v12  ;;  %v923_v6 = vmul.f32 %v6184_v32, %v6368_v5  ;;  %v1019_v8 = vmul.f32 %v6203_v39, %v6368_v5  ;;  %v1115_v12 = vmul.f32 %v6251_v2, %v6368_v5 }
  0xef   : > { %v653_v16 = vpop.permute.xlu1 %652  ;;  %v6382_v10 = vld [vmem:[#allocation4 + $0xb] sm:$0x1] }
  0xf0   : > { %700 = vst.msk [vmem:[#allocation4 + $0x1d] sm:$0x1] %vm519_vm4, %v653_v16  ;;  %957 = vrot.lane.b32.xlu0 %v919_v13, %s5749_s4  ;;  %1143 = vrot.lane.b32.xlu1 %v1110_v14, %s5749_s4  ;;  %v924_v13 = vmul.f32 %v6184_v32, %v6382_v10 }
  0xf1   : > { %v655_v18 = vpop.permute.xlu0 %654  ;;  %v6390_v14 = vld [vmem:[#allocation4 + $0x12] sm:$0x1] }
  0xf2   : > { %701 = vst.msk [vmem:[#allocation4 + $0x1e] sm:$0x1] %vm519_vm4, %v655_v18  ;;  %v1123_v16 = vmul.f32 %v6251_v2, %v6390_v14  ;;  %v1206_v18 = vstv %s5343_s27  ;;  %s5356_s27 = sld [smem:[#allocation10 + $0x9]] }
  0xf3   : > { %v657_v23 = vpop.permute.xlu1 %656  ;;  %v1207_v32 = vmul.f32 %v1206_v18, %v6272_v11 }
  0xf4   : > { %702 = vst.msk [vmem:[#allocation4 + $0x1f] sm:$0x1] %vm519_vm4, %v657_v23  ;;  %961 = vrot.lane.b32.xlu0 %v921_v17, %s5749_s4  ;;  %1159 = vrot.lane.b32.xlu1 %v1118_v20, %s5749_s4  ;;  %v1020_v17 = vmul.f32 %v6203_v39, %v6382_v10  ;;  %v1116_v20 = vmul.f32 %v6251_v2, %v6382_v10  ;;  %v6405_v23 = vld [vmem:[#allocation4 + $0x13] sm:$0x1] }
  0xf5   : > { %v659_v26 = vpop.permute.xlu0 %658  ;;  %v1124_v39 = vmul.f32 %v6251_v2, %v6405_v23 }
  0xf6   : > { %703 = vst.msk [vmem:[#allocation4 + $0x20] sm:$0x1] %vm519_vm4, %v659_v26  ;;  %v1208_v26 = vmul.f32 %v1206_v18, %v6289_v21 }
  0xf7   : > { %v661_v28 = vpop.permute.xlu1 %660 }
  0xf8   : > { %704 = vst.msk [vmem:[#allocation4 + $0x21] sm:$0x1] %vm519_vm4, %v661_v28  ;;  %973 = vrot.lane.b32.xlu0 %v927_v24, %s5749_s4  ;;  %959 = vrot.lane.b32.xlu1 %v920_v25, %s5749_s4  ;;  %v1209_v24 = vmul.f32 %v1206_v18, %v6279_v15  ;;  %v1211_v25 = vmul.f32 %v1206_v18, %v6368_v5 }
  0xf9   : > { %v663_v30 = vpop.permute.xlu0 %662  ;;  %v1213_v28 = vmul.f32 %v1206_v18, %v6227_v51 }
  0xfa   : > { %705 = vst.msk [vmem:[#allocation4 + $0x22] sm:$0x1] %vm519_vm4, %v663_v30  ;;  %v1215_v30 = vmul.f32 %v1206_v18, %v6291_v22 }
  0xfb   : > { %v665_v37 = vpop.permute.xlu1 %664 }
  0xfc   : > { %706 = vst.msk [vmem:[#allocation4 + $0x23] sm:$0x1] %vm519_vm4, %v665_v37  ;;  %1051 = vrot.lane.b32.xlu0 %v1015_v33, %s5749_s4  ;;  %963 = vrot.lane.b32.xlu1 %v922_v29, %s5749_s4  ;;  %v1210_v29 = vmul.f32 %v1206_v18, %v6301_v27  ;;  %v1212_v33 = vmul.f32 %v1206_v18, %v6382_v10 }
  0xfd   : > { %v667_v40 = vpop.permute.xlu0 %666  ;;  %v1217_v37 = vmul.f32 %v1206_v18, %v6329_v46 }
  0xfe   : > { %707 = vst.msk [vmem:[#allocation4 + $0x24] sm:$0x1] %vm519_vm4, %v667_v40 }
  0xff   : > { %v669_v42 = vpop.permute.xlu1 %668 }
 0x100   : > { %708 = vst.msk [vmem:[#allocation4 + $0x25] sm:$0x1] %vm519_vm4, %v669_v42  ;;  %1055 = vrot.lane.b32.xlu0 %v1017_v41, %s5749_s4  ;;  %975 = vrot.lane.b32.xlu1 %v928_v0, %s5749_s4  ;;  %v1214_v0 = vmul.f32 %v1206_v18, %v6234_v55  ;;  %v1219_v42 = vmul.f32 %v1206_v18, %v6390_v14 }
 0x101   : > { %v671_v43 = vpop.permute.xlu0 %670 }
 0x102   : > { %709 = vst.msk [vmem:[#allocation4 + $0x26] sm:$0x1] %vm519_vm4, %v671_v43  ;;  %v1216_v43 = vmul.f32 %v1206_v18, %v6311_v35 }
 0x103   : > { %v673_v48 = vpop.permute.xlu1 %672 }
 0x104   : > { %710 = vst.msk [vmem:[#allocation4 + $0x27] sm:$0x1] %vm519_vm4, %v673_v48  ;;  %1067 = vrot.lane.b32.xlu0 %v1023_v44, %s5749_s4  ;;  %1053 = vrot.lane.b32.xlu1 %v1016_v45, %s5749_s4  ;;  %v6436_v44 = vld [vmem:[#allocation4 + $0x14] sm:$0x1] }
 0x105   : > { %v675_v50 = vpop.permute.xlu0 %674  ;;  %v1221_v45 = vmul.f32 %v1206_v18, %v6436_v44 }
 0x106   : > { %711 = vst.msk [vmem:[#allocation4 + $0x28] sm:$0x1] %vm519_vm4, %v675_v50 }
 0x107   : > { %v677_v53 = vpop.permute.xlu1 %676 }
 0x108   : > { %712 = vst.msk [vmem:[#allocation4 + $0x29] sm:$0x1] %vm519_vm4, %v677_v53  ;;  %1071 = vrot.lane.b32.xlu0 %v1025_v49, %s5749_s4  ;;  %1057 = vrot.lane.b32.xlu1 %v1018_v52, %s5749_s4  ;;  %v1218_v49 = vmul.f32 %v1206_v18, %v6347_v59  ;;  %v1304_v52 = vstv %s5344_s28  ;;  %s5357_s28 = sld [smem:[#allocation10 + $0xe]] }
 0x109   : > { %v679_v54 = vpop.permute.xlu0 %678 }
 0x10a   : > { %713 = vst.msk [vmem:[#allocation4 + $0x2a] sm:$0x1] %vm519_vm4, %v679_v54  ;;  %v1305_v54 = vmul.f32 %v1304_v52, %v6279_v15 }
 0x10b   : > { %v681_v60 = vpop.permute.xlu1 %680 }
 0x10c   : > { %714 = vst.msk [vmem:[#allocation4 + $0x2b] sm:$0x1] %vm519_vm4, %v681_v60  ;;  %1145 = vrot.lane.b32.xlu0 %v1111_v57, %s5749_s4  ;;  %1069 = vrot.lane.b32.xlu1 %v1024_v58, %s5749_s4  ;;  %v1220_v57 = vmul.f32 %v1206_v18, %v6405_v23  ;;  %v6452_v58 = vld [vmem:[#allocation4 + $0x15] sm:$0x1] }
 0x10d   : > { %v6420_v2 = vpop.permute.xlu0 %945  ;;  %v1222_v60 = vmul.f32 %v1206_v18, %v6452_v58  ;;  %v1310_v18 = vmul.f32 %v1304_v52, %v6234_v55 }
 0x10e   : > { %10985 = vst [vmem:[#allocation16_spill] sm:$0xff] %v6420_v2 }
 0x10f   : > { %v6432_v41 = vpop.permute.xlu1 %947 }
 0x110   : > { %1149 = vrot.lane.b32.xlu0 %v1113_v62, %s5749_s4  ;;  %1073 = vrot.lane.b32.xlu1 %v1026_v61, %s5749_s4  ;;  %10987 = vst [vmem:[#allocation18_spill] sm:$0xff] %v6432_v41 }
 0x111   : > { %v6428_v40 = vpop.permute.xlu0 %949 }
 0x112   : > { %10986 = vst [vmem:[#allocation17_spill] sm:$0xff] %v6428_v40 }
 0x113   : > { %v6444_v50 = vpop.permute.xlu1 %951 }
 0x114   : > { %1161 = vrot.lane.b32.xlu0 %v1119_v63, %s5749_s4  ;;  %1147 = vrot.lane.b32.xlu1 %v1112_v1, %s5749_s4  ;;  %10989 = vst [vmem:[#allocation20_spill] sm:$0xff] %v6444_v50  ;;  %v1307_v63 = vmul.f32 %v1304_v52, %v6368_v5  ;;  %v8644_v50 = vld [vmem:[#allocation4 + $0xb] sm:$0x1] }
 0x115   : > { %v6441_v48 = vpop.permute.xlu0 %1043 }
 0x116   : > { %10988 = vst [vmem:[#allocation19_spill] sm:$0xff] %v6441_v48  ;;  %v8640_v48 = vld [vmem:[#allocation4 + $0x12] sm:$0x1] }
 0x117   : > { %v6457_v61 = vpop.permute.xlu1 %1045 }
 0x118   : > { %1165 = vrot.lane.b32.xlu0 %v1121_v3, %s5749_s4  ;;  %1151 = vrot.lane.b32.xlu1 %v1114_v4, %s5749_s4  ;;  %10991 = vst [vmem:[#allocation22_spill] sm:$0xff] %v6457_v61  ;;  %v1309_v4 = vmul.f32 %v1304_v52, %v6227_v51  ;;  %v8636_v61 = vld [vmem:[#allocation4 + $0xa] sm:$0x1] }
 0x11c   : > { %965 = vrot.lane.b32.xlu0 %v923_v6, %s5749_s4  ;;  %1163 = vrot.lane.b32.xlu1 %v1120_v7, %s5749_s4  ;;  %v1306_v6 = vmul.f32 %v1304_v52, %v6301_v27 }
 0x120   : > { %1059 = vrot.lane.b32.xlu0 %v1019_v8, %s5749_s4  ;;  %1167 = vrot.lane.b32.xlu1 %v1122_v9, %s5749_s4  ;;  %v1311_v9 = vmul.f32 %v1304_v52, %v6291_v22 }
 0x124   : > { %1153 = vrot.lane.b32.xlu0 %v1115_v12, %s5749_s4  ;;  %967 = vrot.lane.b32.xlu1 %v924_v13, %s5749_s4  ;;  %v1308_v12 = vmul.f32 %v1304_v52, %v6382_v10 }
 0x128   : > { %1169 = vrot.lane.b32.xlu0 %v1123_v16, %s5749_s4  ;;  %1061 = vrot.lane.b32.xlu1 %v1020_v17, %s5749_s4  ;;  %v1313_v17 = vmul.f32 %v1304_v52, %v6329_v46 }
 0x12c   : > { %1239 = vrot.lane.b32.xlu0 %v1207_v32, %s5749_s4  ;;  %1155 = vrot.lane.b32.xlu1 %v1116_v20, %s5749_s4 }
 0x130   : > { %1243 = vrot.lane.b32.xlu0 %v1209_v24, %s5749_s4  ;;  %1171 = vrot.lane.b32.xlu1 %v1124_v39, %s5749_s4  ;;  %v1315_v24 = vmul.f32 %v1304_v52, %v6390_v14  ;;  %v1312_v39 = vmul.f32 %v1304_v52, %v6311_v35 }
 0x134   : > { %1247 = vrot.lane.b32.xlu0 %v1211_v25, %s5749_s4  ;;  %1241 = vrot.lane.b32.xlu1 %v1208_v26, %s5749_s4  ;;  %v1317_v25 = vmul.f32 %v1304_v52, %v6436_v44 }
 0x138   : > { %1251 = vrot.lane.b32.xlu0 %v1213_v28, %s5749_s4  ;;  %1245 = vrot.lane.b32.xlu1 %v1210_v29, %s5749_s4  ;;  %v1314_v29 = vmul.f32 %v1304_v52, %v6347_v59 }
 0x13c   : > { %1255 = vrot.lane.b32.xlu0 %v1215_v30, %s5749_s4  ;;  %1249 = vrot.lane.b32.xlu1 %v1212_v33, %s5749_s4  ;;  %v6502_v30 = vld [vmem:[#allocation4 + $0x16] sm:$0x1] }
 0x13d   : > { %v1319_v33 = vmul.f32 %v1304_v52, %v6502_v30 }
 0x140   : > { %1259 = vrot.lane.b32.xlu0 %v1217_v37, %s5749_s4  ;;  %1253 = vrot.lane.b32.xlu1 %v1214_v0, %s5749_s4 }
 0x144   : > { %1263 = vrot.lane.b32.xlu0 %v1219_v42, %s5749_s4  ;;  %1257 = vrot.lane.b32.xlu1 %v1216_v43, %s5749_s4  ;;  %v1316_v42 = vmul.f32 %v1304_v52, %v6405_v23  ;;  %v6512_v43 = vstv %s5345_s9  ;;  %s5358_s9 = sld [smem:[#allocation10 + $0x13]] }
 0x148   : > { %1267 = vrot.lane.b32.xlu0 %v1221_v45, %s5749_s4  ;;  %1261 = vrot.lane.b32.xlu1 %v1218_v49, %s5749_s4  ;;  %v1403_v45 = vmul.f32 %v6512_v43, %v6182_v31  ;;  %v1318_v49 = vmul.f32 %v1304_v52, %v6452_v58 }
 0x14a   : > { %v6448_v53 = vpop.permute.xlu0 %953 }
 0x14b   : > { %10990 = vst [vmem:[#allocation21_spill] sm:$0xff] %v6448_v53 }
 0x14c   : > { %1337 = vrot.lane.b32.xlu0 %v1305_v54, %s5749_s4  ;;  %1265 = vrot.lane.b32.xlu1 %v1220_v57, %s5749_s4 }
 0x14e   : > { %v6459_v62 = vpop.permute.xlu0 %969 }
 0x14f   : > { %10992 = vst [vmem:[#allocation23_spill] sm:$0xff] %v6459_v62 }
 0x150   : > { %1341 = vrot.lane.b32.xlu0 %v1307_v63, %s5749_s4  ;;  %1269 = vrot.lane.b32.xlu1 %v1222_v60, %s5749_s4  ;;  %v6523_v60 = vld [vmem:[#allocation4 + $0x17] sm:$0x1]  ;;  %v1405_v63 = vmul.f32 %v6512_v43, %v6193_v36 }
 0x152   : > { %v6464_v1 = vpop.permute.xlu0 %1047  ;;  %v6466_v3 = vpop.permute.xlu1 %955 }
 0x153   : > { %10993 = vst [vmem:[#allocation24_spill] sm:$0xff] %v6464_v1  ;;  %10994 = vst [vmem:[#allocation25_spill] sm:$0xff] %v6466_v3 }
 0x154   : > { %1345 = vrot.lane.b32.xlu0 %v1309_v4, %s5749_s4  ;;  %1339 = vrot.lane.b32.xlu1 %v1306_v6, %s5749_s4  ;;  %v1320_v4 = vmul.f32 %v1304_v52, %v6523_v60  ;;  %v1406_v52 = vmul.f32 %v6512_v43, %v6198_v38 }
 0x156   : > { %v6472_v7 = vpop.permute.xlu0 %1063  ;;  %v6474_v8 = vpop.permute.xlu1 %971 }
 0x157   : > { %10995 = vst [vmem:[#allocation26_spill] sm:$0xff] %v6472_v7  ;;  %10996 = vst [vmem:[#allocation27_spill] sm:$0xff] %v6474_v8 }
 0x158   : > { %1349 = vrot.lane.b32.xlu0 %v1311_v9, %s5749_s4  ;;  %1343 = vrot.lane.b32.xlu1 %v1308_v12, %s5749_s4  ;;  %v1404_v9 = vmul.f32 %v6512_v43, %v6188_v34  ;;  %v1409_v34 = vmul.f32 %v6512_v43, %v6272_v11 }
 0x15a   : > { %v6480_v13 = vpop.permute.xlu0 %1141  ;;  %v6482_v16 = vpop.permute.xlu1 %1049 }
 0x15b   : > { %10997 = vst [vmem:[#allocation28_spill] sm:$0xff] %v6480_v13  ;;  %10998 = vst [vmem:[#allocation29_spill] sm:$0xff] %v6482_v16  ;;  %v8622_v16 = vld [vmem:[#allocation4 + $0x9] sm:$0x1] }
 0x15c   : > { %1353 = vrot.lane.b32.xlu0 %v1313_v17, %s5749_s4  ;;  %1347 = vrot.lane.b32.xlu1 %v1310_v18, %s5749_s4  ;;  %v1407_v18 = vmul.f32 %v6512_v43, %v6220_v47 }
 0x15e   : > { %v6488_v32 = vpop.permute.xlu0 %1157  ;;  %v6490_v20 = vpop.permute.xlu1 %1065 }
 0x15f   : > { %10999 = vst [vmem:[#allocation30_spill] sm:$0xff] %v6488_v32  ;;  %11000 = vst [vmem:[#allocation31_spill] sm:$0xff] %v6490_v20  ;;  %v1416_v20 = vmul.f32 %v6512_v43, %v6234_v55 }
 0x160   : > { %1357 = vrot.lane.b32.xlu0 %v1315_v24, %s5749_s4  ;;  %1351 = vrot.lane.b32.xlu1 %v1312_v39, %s5749_s4 }
 0x162   : > { %v6497_v26 = vpop.permute.xlu0 %957  ;;  %v6499_v28 = vpop.permute.xlu1 %1143 }
 0x163   : > { %11001 = vst [vmem:[#allocation32_spill] sm:$0xff] %v6497_v26  ;;  %11002 = vst [vmem:[#allocation33_spill] sm:$0xff] %v6499_v28  ;;  %v8576_v28 = vld [vmem:[#allocation4 + $0x7] sm:$0x1] }
 0x164   : > { %1361 = vrot.lane.b32.xlu0 %v1317_v25, %s5749_s4  ;;  %1355 = vrot.lane.b32.xlu1 %v1314_v29, %s5749_s4 }
 0x166   : > { %v6507_v37 = vpop.permute.xlu0 %961  ;;  %v6509_v0 = vpop.permute.xlu1 %1159 }
 0x167   : > { %11003 = vst [vmem:[#allocation34_spill] sm:$0xff] %v6507_v37  ;;  %11004 = vst [vmem:[#allocation35_spill] sm:$0xff] %v6509_v0  ;;  %v1501_v0 = vmul.f32 %v1500_v19, %v6193_v36  ;;  %v1418_v36 = vmul.f32 %v6512_v43, %v6311_v35 }
 0x168   : > { %1365 = vrot.lane.b32.xlu0 %v1319_v33, %s5749_s4  ;;  %1359 = vrot.lane.b32.xlu1 %v1316_v42, %s5749_s4  ;;  %v1411_v33 = vmul.f32 %v6512_v43, %v6279_v15  ;;  %v1408_v42 = vmul.f32 %v6512_v43, %v6236_v56 }
 0x16a   : > { %v6519_v54 = vpop.permute.xlu0 %973  ;;  %v6521_v57 = vpop.permute.xlu1 %959 }
 0x16b   : > { %11005 = vst [vmem:[#allocation36_spill] sm:$0xff] %v6519_v54  ;;  %11006 = vst [vmem:[#allocation37_spill] sm:$0xff] %v6521_v57 }
 0x16c   : > { %1435 = vrot.lane.b32.xlu0 %v1403_v45, %s5750_s29  ;;  %1363 = vrot.lane.b32.xlu1 %v1318_v49, %s5749_s4 }
 0x16e   : > { %v6530_v6 = vpop.permute.xlu0 %1051  ;;  %v6532_v31 = vpop.permute.xlu1 %963 }
 0x16f   : > { %11007 = vst [vmem:[#allocation38_spill] sm:$0xff] %v6530_v6  ;;  %11008 = vst [vmem:[#allocation39_spill] sm:$0xff] %v6532_v31 }
 0x170   : > { %1439 = vrot.lane.b32.xlu0 %v1405_v63, %s5750_s29  ;;  %1367 = vrot.lane.b32.xlu1 %v1320_v4, %s5749_s4  ;;  %v1413_v63 = vmul.f32 %v6512_v43, %v6368_v5  ;;  %v1410_v4 = vmul.f32 %v6512_v43, %v6289_v21 }
 0x172   : > { %v6538_v12 = vpop.permute.xlu0 %1055  ;;  %v6540_v17 = vpop.permute.xlu1 %975 }
 0x173   : > { %11009 = vst [vmem:[#allocation40_spill] sm:$0xff] %v6538_v12  ;;  %11010 = vst [vmem:[#allocation41_spill] sm:$0xff] %v6540_v17 }
 0x174   : > { %1443 = vrot.lane.b32.xlu0 %v1407_v18, %s5750_s29  ;;  %1437 = vrot.lane.b32.xlu1 %v1404_v9, %s5750_s29 }
 0x176   : > { %v6548_v24 = vpop.permute.xlu0 %1067  ;;  %v6550_v39 = vpop.permute.xlu1 %1053 }
 0x177   : > { %11011 = vst [vmem:[#allocation42_spill] sm:$0xff] %v6548_v24  ;;  %11012 = vst [vmem:[#allocation43_spill] sm:$0xff] %v6550_v39  ;;  %v8551_v24 = vld [vmem:[#allocation4 + $0xc] sm:$0x1] }
 0x178   : > { %1447 = vrot.lane.b32.xlu0 %v1409_v34, %s5750_s29  ;;  %1441 = vrot.lane.b32.xlu1 %v1406_v52, %s5750_s29  ;;  %v1415_v52 = vmul.f32 %v6512_v43, %v6227_v51  ;;  %v1412_v34 = vmul.f32 %v6512_v43, %v6301_v27 }
 0x17a   : > { %v6556_v25 = vpop.permute.xlu0 %1071  ;;  %v6558_v29 = vpop.permute.xlu1 %1057 }
 0x17b   : > { %11013 = vst [vmem:[#allocation44_spill] sm:$0xff] %v6556_v25  ;;  %11014 = vst [vmem:[#allocation45_spill] sm:$0xff] %v6558_v29  ;;  %v8519_v29 = vld [vmem:[#allocation4 + $0x6] sm:$0x1]  ;;  %v5556_v25 = vld [vmem:[#allocation4 + $0x14] sm:$0x1] }
 0x17c   : > { %1451 = vrot.lane.b32.xlu0 %v1411_v33, %s5750_s29  ;;  %1445 = vrot.lane.b32.xlu1 %v1408_v42, %s5750_s29 }
 0x17e   : > { %v6566_v45 = vpop.permute.xlu0 %1145  ;;  %v6568_v49 = vpop.permute.xlu1 %1069 }
 0x17f   : > { %11015 = vst [vmem:[#allocation46_spill] sm:$0xff] %v6566_v45  ;;  %11016 = vst [vmem:[#allocation47_spill] sm:$0xff] %v6568_v49 }
 0x180   : > { %1455 = vrot.lane.b32.xlu0 %v1413_v63, %s5750_s29  ;;  %1449 = vrot.lane.b32.xlu1 %v1410_v4, %s5750_s29  ;;  %v1417_v63 = vmul.f32 %v6512_v43, %v6291_v22  ;;  %v1414_v4 = vmul.f32 %v6512_v43, %v6382_v10  ;;  %v1507_v43 = vmul.f32 %v1500_v19, %v6279_v15 }
 0x182   : > { %v6576_v9 = vpop.permute.xlu0 %1149  ;;  %v6578_v18 = vpop.permute.xlu1 %1073 }
 0x183   : > { %11017 = vst [vmem:[#allocation48_spill] sm:$0xff] %v6576_v9  ;;  %11018 = vst [vmem:[#allocation49_spill] sm:$0xff] %v6578_v18 }
 0x184   : > { %1459 = vrot.lane.b32.xlu0 %v1415_v52, %s5750_s29  ;;  %1453 = vrot.lane.b32.xlu1 %v1412_v34, %s5750_s29 }
 0x186   : > { %v6586_v33 = vpop.permute.xlu0 %1161  ;;  %v6588_v42 = vpop.permute.xlu1 %1147 }
 0x187   : > { %11019 = vst [vmem:[#allocation50_spill] sm:$0xff] %v6586_v33  ;;  %11020 = vst [vmem:[#allocation51_spill] sm:$0xff] %v6588_v42  ;;  %v1598_v42 = vstv %s5347_s10  ;;  %s5365_s10 = sld [smem:[#allocation10 + $0x1a]] }
 0x188   : > { %1463 = vrot.lane.b32.xlu0 %v1417_v63, %s5750_s29  ;;  %1457 = vrot.lane.b32.xlu1 %v1414_v4, %s5750_s29  ;;  %v1503_v63 = vmul.f32 %v1500_v19, %v6220_v47  ;;  %v1502_v4 = vmul.f32 %v1500_v19, %v6198_v38 }
 0x18a   : > { %v6597_v52 = vpop.permute.xlu0 %1165  ;;  %v6599_v34 = vpop.permute.xlu1 %1151 }
 0x18b   : > { %11021 = vst [vmem:[#allocation52_spill] sm:$0xff] %v6597_v52  ;;  %11022 = vst [vmem:[#allocation53_spill] sm:$0xff] %v6599_v34 }
 0x18c   : > { %1533 = vrot.lane.b32.xlu0 %v1501_v0, %s5750_s29  ;;  %1461 = vrot.lane.b32.xlu1 %v1416_v20, %s5750_s29  ;;  %v1505_v20 = vmul.f32 %v1500_v19, %v6272_v11 }
 0x18e   : > { %v6605_v32 = vpop.permute.xlu0 %965  ;;  %v6607_v33 = vpop.permute.xlu1 %1163 }
 0x18f   : > { %11023 = vst [vmem:[#allocation54_spill] sm:$0xff] %v6605_v32  ;;  %11024 = vst [vmem:[#allocation55_spill] sm:$0xff] %v6607_v33  ;;  %v5561_v32 = vld [vmem:[#allocation4 + $0x17] sm:$0x1] }
 0x190   : > { %1537 = vrot.lane.b32.xlu0 %v1503_v63, %s5750_s29  ;;  %1465 = vrot.lane.b32.xlu1 %v1418_v36, %s5750_s29  ;;  %v1504_v63 = vmul.f32 %v1500_v19, %v6236_v56 }
 0x192   : > { %v6615_v34 = vpop.permute.xlu0 %1059  ;;  %v6617_v0 = vpop.permute.xlu1 %1167 }
 0x193   : > { %11025 = vst [vmem:[#allocation56_spill] sm:$0xff] %v6615_v34  ;;  %11026 = vst [vmem:[#allocation57_spill] sm:$0xff] %v6617_v0 }
 0x194   : > { %1541 = vrot.lane.b32.xlu0 %v1505_v20, %s5750_s29  ;;  %1535 = vrot.lane.b32.xlu1 %v1502_v4, %s5750_s29  ;;  %v1509_v20 = vmul.f32 %v1500_v19, %v6368_v5  ;;  %v1506_v4 = vmul.f32 %v1500_v19, %v6289_v21 }
 0x196   : > { %v6622_v33 = vpop.permute.xlu0 %1153  ;;  %v6624_v52 = vpop.permute.xlu1 %967 }
 0x197   : > { %11027 = vst [vmem:[#allocation58_spill] sm:$0xff] %v6622_v33  ;;  %11028 = vst [vmem:[#allocation59_spill] sm:$0xff] %v6624_v52 }
 0x198   : > { %1545 = vrot.lane.b32.xlu0 %v1507_v43, %s5750_s29  ;;  %1539 = vrot.lane.b32.xlu1 %v1504_v63, %s5750_s29  ;;  %v1511_v43 = vmul.f32 %v1500_v19, %v6227_v51  ;;  %v1508_v63 = vmul.f32 %v1500_v19, %v6301_v27 }
 0x19a   : > { %v6630_v38 = vpop.permute.xlu0 %1169  ;;  %v6632_v36 = vpop.permute.xlu1 %1061 }
 0x19b   : > { %11029 = vst [vmem:[#allocation60_spill] sm:$0xff] %v6630_v38  ;;  %11030 = vst [vmem:[#allocation61_spill] sm:$0xff] %v6632_v36 }
 0x19c   : > { %1549 = vrot.lane.b32.xlu0 %v1509_v20, %s5750_s29  ;;  %1543 = vrot.lane.b32.xlu1 %v1506_v4, %s5750_s29  ;;  %v1513_v20 = vmul.f32 %v1500_v19, %v6291_v22  ;;  %v1510_v4 = vmul.f32 %v1500_v19, %v6382_v10 }
 0x19e   : > { %v6638_v33 = vpop.permute.xlu0 %1239  ;;  %v6640_v0 = vpop.permute.xlu1 %1155 }
 0x19f   : > { %11031 = vst [vmem:[#allocation62_spill] sm:$0xff] %v6638_v33  ;;  %11032 = vst [vmem:[#allocation63_spill] sm:$0xff] %v6640_v0 }
 0x1a0   : > { %1553 = vrot.lane.b32.xlu0 %v1511_v43, %s5750_s29  ;;  %1547 = vrot.lane.b32.xlu1 %v1508_v63, %s5750_s29  ;;  %v1515_v43 = vmul.f32 %v1500_v19, %v6329_v46  ;;  %v1512_v63 = vmul.f32 %v1500_v19, %v6234_v55 }
 0x1a2   : > { %v6646_v38 = vpop.permute.xlu0 %1243  ;;  %v6648_v36 = vpop.permute.xlu1 %1171 }
 0x1a3   : > { %11033 = vst [vmem:[#allocation64_spill] sm:$0xff] %v6646_v38  ;;  %11034 = vst [vmem:[#allocation65_spill] sm:$0xff] %v6648_v36 }
 0x1a4   : > { %1557 = vrot.lane.b32.xlu0 %v1513_v20, %s5750_s29  ;;  %1551 = vrot.lane.b32.xlu1 %v1510_v4, %s5750_s29  ;;  %v1599_v20 = vmul.f32 %v1598_v42, %v6220_v47  ;;  %v1514_v4 = vmul.f32 %v1500_v19, %v6311_v35 }
 0x1a6   : > { %v6654_v0 = vpop.permute.xlu0 %1247  ;;  %v6656_v33 = vpop.permute.xlu1 %1241 }
 0x1a7   : > { %11035 = vst [vmem:[#allocation66_spill] sm:$0xff] %v6654_v0  ;;  %11036 = vst [vmem:[#allocation67_spill] sm:$0xff] %v6656_v33 }
 0x1a8   : > { %1561 = vrot.lane.b32.xlu0 %v1515_v43, %s5750_s29  ;;  %1555 = vrot.lane.b32.xlu1 %v1512_v63, %s5750_s29  ;;  %v1601_v43 = vmul.f32 %v1598_v42, %v6272_v11  ;;  %v1516_v63 = vmul.f32 %v1500_v19, %v6347_v59  ;;  %v1605_v19 = vmul.f32 %v1598_v42, %v6368_v5 }
 0x1aa   : > { %v6662_v36 = vpop.permute.xlu0 %1251  ;;  %v6664_v38 = vpop.permute.xlu1 %1245 }
 0x1ab   : > { %11037 = vst [vmem:[#allocation68_spill] sm:$0xff] %v6662_v36  ;;  %11038 = vst [vmem:[#allocation69_spill] sm:$0xff] %v6664_v38  ;;  %v6886_v36 = vld [vmem:[#allocation4 + $0x4] sm:$0x1] }
 0x1ac   : > { %1631 = vrot.lane.b32.xlu0 %v1599_v20, %s5750_s29  ;;  %1559 = vrot.lane.b32.xlu1 %v1514_v4, %s5750_s29  ;;  %v1603_v20 = vmul.f32 %v1598_v42, %v6279_v15  ;;  %v1600_v4 = vmul.f32 %v1598_v42, %v6236_v56 }
 0x1ae   : > { %v6670_v33 = vpop.permute.xlu0 %1255  ;;  %v6672_v0 = vpop.permute.xlu1 %1249 }
 0x1af   : > { %11039 = vst [vmem:[#allocation70_spill] sm:$0xff] %v6670_v33  ;;  %11040 = vst [vmem:[#allocation71_spill] sm:$0xff] %v6672_v0 }
 0x1b0   : > { %1635 = vrot.lane.b32.xlu0 %v1601_v43, %s5750_s29  ;;  %1563 = vrot.lane.b32.xlu1 %v1516_v63, %s5750_s29  ;;  %v1602_v43 = vmul.f32 %v1598_v42, %v6289_v21 }
 0x1b2   : > { %v6678_v38 = vpop.permute.xlu0 %1259  ;;  %v6680_v47 = vpop.permute.xlu1 %1253 }
 0x1b3   : > { %11041 = vst [vmem:[#allocation72_spill] sm:$0xff] %v6678_v38  ;;  %11042 = vst [vmem:[#allocation73_spill] sm:$0xff] %v6680_v47 }
 0x1b4   : > { %1639 = vrot.lane.b32.xlu0 %v1603_v20, %s5750_s29  ;;  %1633 = vrot.lane.b32.xlu1 %v1600_v4, %s5750_s29  ;;  %v1607_v20 = vmul.f32 %v1598_v42, %v6227_v51  ;;  %v1604_v4 = vmul.f32 %v1598_v42, %v6301_v27 }
 0x1b6   : > { %v6686_v0 = vpop.permute.xlu0 %1263  ;;  %v6688_v33 = vpop.permute.xlu1 %1257 }
 0x1b7   : > { %11043 = vst [vmem:[#allocation74_spill] sm:$0xff] %v6686_v0  ;;  %11044 = vst [vmem:[#allocation75_spill] sm:$0xff] %v6688_v33 }
 0x1b8   : > { %1643 = vrot.lane.b32.xlu0 %v1605_v19, %s5750_s29  ;;  %1637 = vrot.lane.b32.xlu1 %v1602_v43, %s5750_s29  ;;  %v1609_v19 = vmul.f32 %v1598_v42, %v6291_v22  ;;  %v1606_v43 = vmul.f32 %v1598_v42, %v6382_v10 }
 0x1ba   : > { %v6694_v63 = vpop.permute.xlu0 %1267  ;;  %v6696_v47 = vpop.permute.xlu1 %1261 }
 0x1bb   : > { %11045 = vst [vmem:[#allocation76_spill] sm:$0xff] %v6694_v63  ;;  %11046 = vst [vmem:[#allocation77_spill] sm:$0xff] %v6696_v47 }
 0x1bc   : > { %1647 = vrot.lane.b32.xlu0 %v1607_v20, %s5750_s29  ;;  %1641 = vrot.lane.b32.xlu1 %v1604_v4, %s5750_s29  ;;  %v1611_v20 = vmul.f32 %v1598_v42, %v6329_v46  ;;  %v1608_v4 = vmul.f32 %v1598_v42, %v6234_v55 }
 0x1be   : > { %v6702_v33 = vpop.permute.xlu0 %1337  ;;  %v6704_v0 = vpop.permute.xlu1 %1265 }
 0x1bf   : > { %11047 = vst [vmem:[#allocation78_spill] sm:$0xff] %v6702_v33  ;;  %11048 = vst [vmem:[#allocation79_spill] sm:$0xff] %v6704_v0 }
 0x1c0   : > { %1651 = vrot.lane.b32.xlu0 %v1609_v19, %s5750_s29  ;;  %1645 = vrot.lane.b32.xlu1 %v1606_v43, %s5750_s29  ;;  %v1613_v19 = vmul.f32 %v1598_v42, %v6390_v14  ;;  %v1610_v43 = vmul.f32 %v1598_v42, %v6311_v35 }
 0x1c2   : > { %v6710_v47 = vpop.permute.xlu0 %1341  ;;  %v6712_v63 = vpop.permute.xlu1 %1269 }
 0x1c3   : > { %11049 = vst [vmem:[#allocation80_spill] sm:$0xff] %v6710_v47  ;;  %11050 = vst [vmem:[#allocation81_spill] sm:$0xff] %v6712_v63  ;;  %v1696_v63 = vstv %s5348_s12  ;;  %s5366_s12 = sld [smem:[#allocation10 + $0x1f]] }
 0x1c4   : > { %1655 = vrot.lane.b32.xlu0 %v1611_v20, %s5750_s29  ;;  %1649 = vrot.lane.b32.xlu1 %v1608_v4, %s5750_s29  ;;  %v1697_v20 = vmul.f32 %v1696_v63, %v6272_v11  ;;  %v1612_v4 = vmul.f32 %v1598_v42, %v6347_v59 }
 0x1c6   : > { %v6718_v0 = vpop.permute.xlu0 %1345  ;;  %v6720_v33 = vpop.permute.xlu1 %1339 }
 0x1c7   : > { %11051 = vst [vmem:[#allocation82_spill] sm:$0xff] %v6718_v0  ;;  %11052 = vst [vmem:[#allocation83_spill] sm:$0xff] %v6720_v33 }
 0x1c8   : > { %1659 = vrot.lane.b32.xlu0 %v1613_v19, %s5750_s29  ;;  %1653 = vrot.lane.b32.xlu1 %v1610_v43, %s5750_s29  ;;  %v1699_v19 = vmul.f32 %v1696_v63, %v6279_v15  ;;  %v1614_v43 = vmul.f32 %v1598_v42, %v6405_v23  ;;  %v1703_v42 = vmul.f32 %v1696_v63, %v6227_v51 }
 0x1ca   : > { %v6726_v47 = vpop.permute.xlu0 %1349  ;;  %v6728_v38 = vpop.permute.xlu1 %1343 }
 0x1cb   : > { %11053 = vst [vmem:[#allocation84_spill] sm:$0xff] %v6726_v47  ;;  %11054 = vst [vmem:[#allocation85_spill] sm:$0xff] %v6728_v38 }
 0x1cc   : > { %1729 = vrot.lane.b32.xlu0 %v1697_v20, %s5750_s29  ;;  %1657 = vrot.lane.b32.xlu1 %v1612_v4, %s5750_s29  ;;  %v1701_v20 = vmul.f32 %v1696_v63, %v6368_v5  ;;  %v1698_v4 = vmul.f32 %v1696_v63, %v6289_v21 }
 0x1ce   : > { %v6734_v33 = vpop.permute.xlu0 %1353  ;;  %v6736_v0 = vpop.permute.xlu1 %1347 }
 0x1cf   : > { %11055 = vst [vmem:[#allocation86_spill] sm:$0xff] %v6734_v33  ;;  %11056 = vst [vmem:[#allocation87_spill] sm:$0xff] %v6736_v0 }
 0x1d0   : > { %1733 = vrot.lane.b32.xlu0 %v1699_v19, %s5750_s29  ;;  %1661 = vrot.lane.b32.xlu1 %v1614_v43, %s5750_s29  ;;  %v1700_v19 = vmul.f32 %v1696_v63, %v6301_v27 }
 0x1d2   : > { %v6742_v38 = vpop.permute.xlu0 %1357  ;;  %v6744_v47 = vpop.permute.xlu1 %1351 }
 0x1d3   : > { %11057 = vst [vmem:[#allocation88_spill] sm:$0xff] %v6742_v38  ;;  %11058 = vst [vmem:[#allocation89_spill] sm:$0xff] %v6744_v47 }
 0x1d4   : > { %1737 = vrot.lane.b32.xlu0 %v1701_v20, %s5750_s29  ;;  %1731 = vrot.lane.b32.xlu1 %v1698_v4, %s5750_s29  ;;  %v1705_v20 = vmul.f32 %v1696_v63, %v6291_v22  ;;  %v1702_v4 = vmul.f32 %v1696_v63, %v6382_v10 }
 0x1d6   : > { %v6750_v0 = vpop.permute.xlu0 %1361  ;;  %v6752_v33 = vpop.permute.xlu1 %1355 }
 0x1d7   : > { %11059 = vst [vmem:[#allocation90_spill] sm:$0xff] %v6750_v0  ;;  %11060 = vst [vmem:[#allocation91_spill] sm:$0xff] %v6752_v33 }
 0x1d8   : > { %1741 = vrot.lane.b32.xlu0 %v1703_v42, %s5750_s29  ;;  %1735 = vrot.lane.b32.xlu1 %v1700_v19, %s5750_s29  ;;  %v1707_v42 = vmul.f32 %v1696_v63, %v6329_v46  ;;  %v1704_v19 = vmul.f32 %v1696_v63, %v6234_v55 }
 0x1da   : > { %v6758_v43 = vpop.permute.xlu0 %1365  ;;  %v6760_v47 = vpop.permute.xlu1 %1359 }
 0x1db   : > { %11061 = vst [vmem:[#allocation92_spill] sm:$0xff] %v6758_v43  ;;  %11062 = vst [vmem:[#allocation93_spill] sm:$0xff] %v6760_v47 }
 0x1dc   : > { %1745 = vrot.lane.b32.xlu0 %v1705_v20, %s5750_s29  ;;  %1739 = vrot.lane.b32.xlu1 %v1702_v4, %s5750_s29  ;;  %v1709_v20 = vmul.f32 %v1696_v63, %v6390_v14  ;;  %v1706_v4 = vmul.f32 %v1696_v63, %v6311_v35 }
 0x1de   : > { %v6766_v33 = vpop.permute.xlu0 %1435  ;;  %v6768_v0 = vpop.permute.xlu1 %1363 }
 0x1df   : > { %11063 = vst [vmem:[#allocation94_spill] sm:$0xff] %v6766_v33  ;;  %11064 = vst [vmem:[#allocation95_spill] sm:$0xff] %v6768_v0  ;;  %v1711_v0 = vmul.f32 %v1696_v63, %v6436_v44 }
 0x1e0   : > { %1749 = vrot.lane.b32.xlu0 %v1707_v42, %s5750_s29  ;;  %1743 = vrot.lane.b32.xlu1 %v1704_v19, %s5750_s29  ;;  %v1708_v19 = vmul.f32 %v1696_v63, %v6347_v59 }
 0x1e2   : > { %v6774_v47 = vpop.permute.xlu0 %1439  ;;  %v6776_v43 = vpop.permute.xlu1 %1367 }
 0x1e3   : > { %11065 = vst [vmem:[#allocation96_spill] sm:$0xff] %v6774_v47  ;;  %11066 = vst [vmem:[#allocation97_spill] sm:$0xff] %v6776_v43  ;;  %v1794_v43 = vstv %s5349_s11  ;;  %s5367_s11 = sld [smem:[#allocation10 + $0x24]] }
 0x1e4   : > { %1753 = vrot.lane.b32.xlu0 %v1709_v20, %s5750_s29  ;;  %1747 = vrot.lane.b32.xlu1 %v1706_v4, %s5750_s29  ;;  %v1795_v20 = vmul.f32 %v1794_v43, %v6279_v15  ;;  %v1710_v4 = vmul.f32 %v1696_v63, %v6405_v23 }
 0x1e6   : > { %v6783_v33 = vpop.permute.xlu0 %1443  ;;  %v6785_v42 = vpop.permute.xlu1 %1437 }
 0x1e7   : > { %11067 = vst [vmem:[#allocation98_spill] sm:$0xff] %v6783_v33  ;;  %11068 = vst [vmem:[#allocation99_spill] sm:$0xff] %v6785_v42  ;;  %v1712_v42 = vmul.f32 %v1696_v63, %v6452_v58 }
 0x1e8   : > { %1757 = vrot.lane.b32.xlu0 %v1711_v0, %s5750_s29  ;;  %1751 = vrot.lane.b32.xlu1 %v1708_v19, %s5750_s29  ;;  %v1797_v19 = vmul.f32 %v1794_v43, %v6368_v5 }
 0x1ea   : > { %v6790_v47 = vpop.permute.xlu0 %1447  ;;  %v6792_v38 = vpop.permute.xlu1 %1441 }
 0x1eb   : > { %11069 = vst [vmem:[#allocation100_spill] sm:$0xff] %v6790_v47  ;;  %11070 = vst [vmem:[#allocation101_spill] sm:$0xff] %v6792_v38 }
 0x1ec   : > { %1827 = vrot.lane.b32.xlu0 %v1795_v20, %s5750_s29  ;;  %1755 = vrot.lane.b32.xlu1 %v1710_v4, %s5750_s29  ;;  %v1799_v20 = vmul.f32 %v1794_v43, %v6227_v51  ;;  %v1796_v4 = vmul.f32 %v1794_v43, %v6301_v27 }
 0x1ee   : > { %v6799_v33 = vpop.permute.xlu0 %1451  ;;  %v6801_v0 = vpop.permute.xlu1 %1445 }
 0x1ef   : > { %11071 = vst [vmem:[#allocation102_spill] sm:$0xff] %v6799_v33  ;;  %11072 = vst [vmem:[#allocation103_spill] sm:$0xff] %v6801_v0 }
 0x1f0   : > { %1831 = vrot.lane.b32.xlu0 %v1797_v19, %s5750_s29  ;;  %1759 = vrot.lane.b32.xlu1 %v1712_v42, %s5750_s29  ;;  %v1801_v19 = vmul.f32 %v1794_v43, %v6291_v22  ;;  %v1798_v42 = vmul.f32 %v1794_v43, %v6382_v10 }
 0x1f2   : > { %v6806_v38 = vpop.permute.xlu0 %1455  ;;  %v6808_v47 = vpop.permute.xlu1 %1449 }
 0x1f3   : > { %11073 = vst [vmem:[#allocation104_spill] sm:$0xff] %v6806_v38  ;;  %11074 = vst [vmem:[#allocation105_spill] sm:$0xff] %v6808_v47 }
 0x1f4   : > { %1835 = vrot.lane.b32.xlu0 %v1799_v20, %s5750_s29  ;;  %1829 = vrot.lane.b32.xlu1 %v1796_v4, %s5750_s29  ;;  %v1803_v20 = vmul.f32 %v1794_v43, %v6329_v46  ;;  %v1800_v4 = vmul.f32 %v1794_v43, %v6234_v55 }
 0x1f6   : > { %v6814_v63 = vpop.permute.xlu0 %1459  ;;  %v6816_v0 = vpop.permute.xlu1 %1453 }
 0x1f7   : > { %11075 = vst [vmem:[#allocation106_spill] sm:$0xff] %v6814_v63  ;;  %11076 = vst [vmem:[#allocation107_spill] sm:$0xff] %v6816_v0 }
 0x1f8   : > { %1839 = vrot.lane.b32.xlu0 %v1801_v19, %s5750_s29  ;;  %1833 = vrot.lane.b32.xlu1 %v1798_v42, %s5750_s29  ;;  %v1805_v19 = vmul.f32 %v1794_v43, %v6390_v14  ;;  %v1802_v42 = vmul.f32 %v1794_v43, %v6311_v35 }
 0x1fa   : > { %v6822_v47 = vpop.permute.xlu0 %1463  ;;  %v6824_v51 = vpop.permute.xlu1 %1457 }
 0x1fb   : > { %11077 = vst [vmem:[#allocation108_spill] sm:$0xff] %v6822_v47  ;;  %11078 = vst [vmem:[#allocation109_spill] sm:$0xff] %v6824_v51  ;;  %v1807_v51 = vmul.f32 %v1794_v43, %v6436_v44 }
 0x1fc   : > { %1843 = vrot.lane.b32.xlu0 %v1803_v20, %s5750_s29  ;;  %1837 = vrot.lane.b32.xlu1 %v1800_v4, %s5750_s29  ;;  %v1804_v4 = vmul.f32 %v1794_v43, %v6347_v59 }
 0x1fe   : > { %v6830_v0 = vpop.permute.xlu0 %1533  ;;  %v6832_v63 = vpop.permute.xlu1 %1461 }
 0x1ff   : > { %11079 = vst [vmem:[#allocation110_spill] sm:$0xff] %v6830_v0  ;;  %11080 = vst [vmem:[#allocation111_spill] sm:$0xff] %v6832_v63  ;;  %v1809_v63 = vmul.f32 %v1794_v43, %v6502_v30 }
 0x200   : > { %1847 = vrot.lane.b32.xlu0 %v1805_v19, %s5750_s29  ;;  %1841 = vrot.lane.b32.xlu1 %v1802_v42, %s5750_s29  ;;  %v1806_v19 = vmul.f32 %v1794_v43, %v6405_v23  ;;  %v6852_v42 = vstv %s5350_s21  ;;  %s5368_s21 = sld [smem:[#allocation10 + $0x29]] }
 0x201   : > { %v1898_v18 = vmul.f32 %v6852_v42, %v6236_v56 }
 0x202   : > { %v6839_v55 = vpop.permute.xlu0 %1537  ;;  %v6841_v20 = vpop.permute.xlu1 %1465 }
 0x203   : > { %11081 = vst [vmem:[#allocation112_spill] sm:$0xff] %v6839_v55  ;;  %11082 = vst [vmem:[#allocation113_spill] sm:$0xff] %v6841_v20  ;;  %v6856_v20 = vld [vmem:[#allocation4] sm:$0x1] }
 0x204   : > { %1851 = vrot.lane.b32.xlu0 %v1807_v51, %s5750_s29  ;;  %1845 = vrot.lane.b32.xlu1 %v1804_v4, %s5750_s29  ;;  %v1893_v51 = vmul.f32 %v6856_v20, %v6852_v42  ;;  %v1808_v4 = vmul.f32 %v1794_v43, %v6452_v58 }
 0x206   : > { %v6847_v0 = vpop.permute.xlu0 %1541  ;;  %v6849_v47 = vpop.permute.xlu1 %1535 }
 0x207   : > { %11083 = vst [vmem:[#allocation114_spill] sm:$0xff] %v6847_v0  ;;  %11084 = vst [vmem:[#allocation115_spill] sm:$0xff] %v6849_v47  ;;  %v6867_v47 = vld [vmem:[#allocation4 + $0x2] sm:$0x1] }
 0x208   : > { %1855 = vrot.lane.b32.xlu0 %v1809_v63, %s5750_s29  ;;  %1849 = vrot.lane.b32.xlu1 %v1806_v19, %s5750_s29  ;;  %v1895_v63 = vmul.f32 %v6867_v47, %v6852_v42  ;;  %v1810_v19 = vmul.f32 %v1794_v43, %v6523_v60  ;;  %v1897_v43 = vmul.f32 %v6886_v36, %v6852_v42 }
 0x20a   : > { %v6861_v55 = vpop.permute.xlu0 %1545  ;;  %v6863_v0 = vpop.permute.xlu1 %1539 }
 0x20b   : > { %11085 = vst [vmem:[#allocation116_spill] sm:$0xff] %v6861_v55  ;;  %11086 = vst [vmem:[#allocation117_spill] sm:$0xff] %v6863_v0  ;;  %v6878_v0 = vld [vmem:[#allocation4 + $0x1] sm:$0x1] }
 0x20c   : > { %1925 = vrot.lane.b32.xlu0 %v1893_v51, %s5751_s13  ;;  %1853 = vrot.lane.b32.xlu1 %v1808_v4, %s5750_s29  ;;  %v1894_v51 = vmul.f32 %v6878_v0, %v6852_v42 }
 0x20e   : > { %v6872_v38 = vpop.permute.xlu0 %1549  ;;  %v6874_v33 = vpop.permute.xlu1 %1543 }
 0x20f   : > { %11087 = vst [vmem:[#allocation118_spill] sm:$0xff] %v6872_v38  ;;  %11088 = vst [vmem:[#allocation119_spill] sm:$0xff] %v6874_v33 }
 0x210   : > { %1929 = vrot.lane.b32.xlu0 %v1895_v63, %s5751_s13  ;;  %1857 = vrot.lane.b32.xlu1 %v1810_v19, %s5750_s29  ;;  %v6892_v63 = vld [vmem:[#allocation4 + $0x3] sm:$0x1] }
 0x211   : > { %v1896_v19 = vmul.f32 %v6892_v63, %v6852_v42 }
 0x212   : > { %v6882_v4 = vpop.permute.xlu0 %1553  ;;  %v6884_v55 = vpop.permute.xlu1 %1547 }
 0x213   : > { %11089 = vst [vmem:[#allocation120_spill] sm:$0xff] %v6882_v4  ;;  %11090 = vst [vmem:[#allocation121_spill] sm:$0xff] %v6884_v55  ;;  %v1899_v55 = vmul.f32 %v6852_v42, %v6272_v11 }
 0x214   : > { %1933 = vrot.lane.b32.xlu0 %v1897_v43, %s5751_s13  ;;  %1927 = vrot.lane.b32.xlu1 %v1894_v51, %s5751_s13  ;;  %v1901_v51 = vmul.f32 %v6852_v42, %v6279_v15 }
 0x216   : > { %v6896_v33 = vpop.permute.xlu0 %1557  ;;  %v6898_v38 = vpop.permute.xlu1 %1551 }
 0x217   : > { %11091 = vst [vmem:[#allocation122_spill] sm:$0xff] %v6896_v33  ;;  %11092 = vst [vmem:[#allocation123_spill] sm:$0xff] %v6898_v38 }
 0x218   : > { %1937 = vrot.lane.b32.xlu0 %v1899_v55, %s5751_s13  ;;  %1931 = vrot.lane.b32.xlu1 %v1896_v19, %s5751_s13  ;;  %v1903_v55 = vmul.f32 %v6852_v42, %v6368_v5  ;;  %v1900_v19 = vmul.f32 %v6852_v42, %v6289_v21 }
 0x21a   : > { %v6904_v4 = vpop.permute.xlu0 %1561  ;;  %v6906_v43 = vpop.permute.xlu1 %1555 }
 0x21b   : > { %11093 = vst [vmem:[#allocation124_spill] sm:$0xff] %v6904_v4  ;;  %11094 = vst [vmem:[#allocation125_spill] sm:$0xff] %v6906_v43 }
 0x21c   : > { %1941 = vrot.lane.b32.xlu0 %v1901_v51, %s5751_s13  ;;  %1935 = vrot.lane.b32.xlu1 %v1898_v18, %s5751_s13  ;;  %v6928_v18 = vld [vmem:[#allocation4 + $0xc] sm:$0x1] }
 0x21d   : > { %v1905_v51 = vmul.f32 %v6928_v18, %v6852_v42 }
 0x21e   : > { %v6914_v38 = vpop.permute.xlu0 %1631  ;;  %v6916_v11 = vpop.permute.xlu1 %1559 }
 0x21f   : > { %11095 = vst [vmem:[#allocation126_spill] sm:$0xff] %v6914_v38  ;;  %11096 = vst [vmem:[#allocation127_spill] sm:$0xff] %v6916_v11  ;;  %v1902_v11 = vmul.f32 %v6852_v42, %v6301_v27 }
 0x220   : > { %1945 = vrot.lane.b32.xlu0 %v1903_v55, %s5751_s13  ;;  %1939 = vrot.lane.b32.xlu1 %v1900_v19, %s5751_s13  ;;  %v1907_v19 = vmul.f32 %v6852_v42, %v6291_v22 }
 0x222   : > { %v6924_v56 = vpop.permute.xlu0 %1635  ;;  %v6926_v15 = vpop.permute.xlu1 %1563 }
 0x223   : > { %11097 = vst [vmem:[#allocation128_spill] sm:$0xff] %v6924_v56  ;;  %11098 = vst [vmem:[#allocation129_spill] sm:$0xff] %v6926_v15  ;;  %v1904_v15 = vmul.f32 %v6852_v42, %v6382_v10  ;;  %v6944_v56 = vstv %s5351_s2  ;;  %s5369_s2 = sld [smem:[#allocation10 + $0x2e]] }
 0x224   : > { %1949 = vrot.lane.b32.xlu0 %v1905_v51, %s5751_s13  ;;  %1943 = vrot.lane.b32.xlu1 %v1902_v11, %s5751_s13  ;;  %v1991_v51 = vmul.f32 %v6867_v47, %v6944_v56 }
 0x226   : > { %v6936_v21 = vpop.permute.xlu0 %1639  ;;  %v6938_v55 = vpop.permute.xlu1 %1633 }
 0x227   : > { %11099 = vst [vmem:[#allocation130_spill] sm:$0xff] %v6936_v21  ;;  %11100 = vst [vmem:[#allocation131_spill] sm:$0xff] %v6938_v55  ;;  %v6954_v55 = vld [vmem:[#allocation4 + $0xd] sm:$0x1] }
 0x228   : > { %1953 = vrot.lane.b32.xlu0 %v1907_v19, %s5751_s13  ;;  %1947 = vrot.lane.b32.xlu1 %v1904_v15, %s5751_s13  ;;  %v1906_v22 = vmul.f32 %v6954_v55, %v6852_v42  ;;  %v1993_v15 = vmul.f32 %v6886_v36, %v6944_v56 }
 0x22a   : > { %v6950_v11 = vpop.permute.xlu0 %1643  ;;  %v6952_v21 = vpop.permute.xlu1 %1637 }
 0x22b   : > { %11101 = vst [vmem:[#allocation132_spill] sm:$0xff] %v6950_v11  ;;  %11102 = vst [vmem:[#allocation133_spill] sm:$0xff] %v6952_v21  ;;  %v1908_v11 = vmul.f32 %v6852_v42, %v6311_v35  ;;  %v1992_v21 = vmul.f32 %v6892_v63, %v6944_v56 }
 0x22c   : > { %2023 = vrot.lane.b32.xlu0 %v1991_v51, %s5751_s13  ;;  %1951 = vrot.lane.b32.xlu1 %v1906_v22, %s5751_s13 }
 0x22e   : > { %v6960_v38 = vpop.permute.xlu0 %1647  ;;  %v6962_v19 = vpop.permute.xlu1 %1641 }
 0x22f   : > { %11103 = vst [vmem:[#allocation134_spill] sm:$0xff] %v6960_v38  ;;  %11104 = vst [vmem:[#allocation135_spill] sm:$0xff] %v6962_v19  ;;  %v6976_v38 = vld [vmem:[#allocation4 + $0x6] sm:$0x1] }
 0x230   : > { %2027 = vrot.lane.b32.xlu0 %v1993_v15, %s5751_s13  ;;  %1955 = vrot.lane.b32.xlu1 %v1908_v11, %s5751_s13  ;;  %v1995_v19 = vmul.f32 %v6976_v38, %v6944_v56  ;;  %v6986_v11 = vld [vmem:[#allocation4 + $0x8] sm:$0x1] }
 0x231   : > { %v1997_v15 = vmul.f32 %v6986_v11, %v6944_v56 }
 0x232   : > { %v6972_v51 = vpop.permute.xlu0 %1651  ;;  %v6974_v22 = vpop.permute.xlu1 %1645 }
 0x233   : > { %11105 = vst [vmem:[#allocation136_spill] sm:$0xff] %v6972_v51  ;;  %11106 = vst [vmem:[#allocation137_spill] sm:$0xff] %v6974_v22  ;;  %v6990_v51 = vld [vmem:[#allocation4 + $0x5] sm:$0x1] }
 0x234   : > { %2031 = vrot.lane.b32.xlu0 %v1995_v19, %s5751_s13  ;;  %2025 = vrot.lane.b32.xlu1 %v1992_v21, %s5751_s13  ;;  %v1994_v22 = vmul.f32 %v6990_v51, %v6944_v56 }
 0x236   : > { %v6982_v35 = vpop.permute.xlu0 %1655  ;;  %v6984_v42 = vpop.permute.xlu1 %1649 }
 0x237   : > { %11107 = vst [vmem:[#allocation138_spill] sm:$0xff] %v6982_v35  ;;  %11108 = vst [vmem:[#allocation139_spill] sm:$0xff] %v6984_v42  ;;  %v1999_v42 = vmul.f32 %v6944_v56, %v6368_v5  ;;  %v7002_v35 = vld [vmem:[#allocation4 + $0x7] sm:$0x1] }
 0x238   : > { %2035 = vrot.lane.b32.xlu0 %v1997_v15, %s5751_s13  ;;  %2029 = vrot.lane.b32.xlu1 %v1994_v22, %s5751_s13  ;;  %v1996_v43 = vmul.f32 %v7002_v35, %v6944_v56  ;;  %v2001_v22 = vmul.f32 %v6928_v18, %v6944_v56 }
 0x23a   : > { %v6996_v19 = vpop.permute.xlu0 %1659  ;;  %v6998_v21 = vpop.permute.xlu1 %1653 }
 0x23b   : > { %11109 = vst [vmem:[#allocation140_spill] sm:$0xff] %v6996_v19  ;;  %11110 = vst [vmem:[#allocation141_spill] sm:$0xff] %v6998_v21  ;;  %v1998_v21 = vmul.f32 %v6944_v56, %v6301_v27 }
 0x23c   : > { %2039 = vrot.lane.b32.xlu0 %v1999_v42, %s5751_s13  ;;  %2033 = vrot.lane.b32.xlu1 %v1996_v43, %s5751_s13  ;;  %v7022_v43 = vld [vmem:[#allocation4 + $0xe] sm:$0x1] }
 0x23e   : > { %v7008_v4 = vpop.permute.xlu0 %1729  ;;  %v7010_v15 = vpop.permute.xlu1 %1657 }
 0x23f   : > { %11111 = vst [vmem:[#allocation142_spill] sm:$0xff] %v7008_v4  ;;  %11112 = vst [vmem:[#allocation143_spill] sm:$0xff] %v7010_v15  ;;  %v2003_v15 = vmul.f32 %v7022_v43, %v6944_v56  ;;  %v2000_v4 = vmul.f32 %v6944_v56, %v6382_v10 }
 0x240   : > { %2043 = vrot.lane.b32.xlu0 %v2001_v22, %s5751_s13  ;;  %2037 = vrot.lane.b32.xlu1 %v1998_v21, %s5751_s13  ;;  %v2005_v21 = vmul.f32 %v6944_v56, %v6329_v46 }
 0x242   : > { %v7018_v19 = vpop.permute.xlu0 %1733  ;;  %v7020_v42 = vpop.permute.xlu1 %1661 }
 0x243   : > { %11113 = vst [vmem:[#allocation144_spill] sm:$0xff] %v7018_v19  ;;  %11114 = vst [vmem:[#allocation145_spill] sm:$0xff] %v7020_v42  ;;  %v2002_v42 = vmul.f32 %v6954_v55, %v6944_v56  ;;  %v7038_v19 = vstv %s5352_s20  ;;  %s5370_s20 = sld [smem:[#allocation10 + $0x1b]] }
 0x244   : > { %2047 = vrot.lane.b32.xlu0 %v2003_v15, %s5751_s13  ;;  %2041 = vrot.lane.b32.xlu1 %v2000_v4, %s5751_s13  ;;  %v2089_v4 = vmul.f32 %v6886_v36, %v7038_v19 }
 0x246   : > { %v7030_v27 = vpop.permute.xlu0 %1737  ;;  %v7032_v22 = vpop.permute.xlu1 %1731 }
 0x247   : > { %11115 = vst [vmem:[#allocation146_spill] sm:$0xff] %v7030_v27  ;;  %11116 = vst [vmem:[#allocation147_spill] sm:$0xff] %v7032_v22  ;;  %v7048_v22 = vld [vmem:[#allocation4 + $0xf] sm:$0x1] }
 0x248   : > { %2051 = vrot.lane.b32.xlu0 %v2005_v21, %s5751_s13  ;;  %2045 = vrot.lane.b32.xlu1 %v2002_v42, %s5751_s13  ;;  %v2004_v46 = vmul.f32 %v7048_v22, %v6944_v56  ;;  %v2091_v42 = vmul.f32 %v6976_v38, %v7038_v19 }
 0x24a   : > { %v7042_v33 = vpop.permute.xlu0 %1741  ;;  %v7044_v15 = vpop.permute.xlu1 %1735 }
 0x24b   : > { %11117 = vst [vmem:[#allocation148_spill] sm:$0xff] %v7042_v33  ;;  %11118 = vst [vmem:[#allocation149_spill] sm:$0xff] %v7044_v15  ;;  %v2006_v15 = vmul.f32 %v6944_v56, %v6347_v59  ;;  %v2095_v56 = vmul.f32 %v7038_v19, %v6368_v5 }
 0x24c   : > { %2121 = vrot.lane.b32.xlu0 %v2089_v4, %s5751_s13  ;;  %2049 = vrot.lane.b32.xlu1 %v2004_v46, %s5751_s13  ;;  %v2093_v4 = vmul.f32 %v6986_v11, %v7038_v19  ;;  %v2090_v46 = vmul.f32 %v6990_v51, %v7038_v19 }
 0x24e   : > { %v7054_v27 = vpop.permute.xlu0 %1745  ;;  %v7056_v21 = vpop.permute.xlu1 %1739 }
 0x24f   : > { %11119 = vst [vmem:[#allocation150_spill] sm:$0xff] %v7054_v27  ;;  %11120 = vst [vmem:[#allocation151_spill] sm:$0xff] %v7056_v21 }
 0x250   : > { %2125 = vrot.lane.b32.xlu0 %v2091_v42, %s5751_s13  ;;  %2053 = vrot.lane.b32.xlu1 %v2006_v15, %s5751_s13  ;;  %v2092_v15 = vmul.f32 %v7002_v35, %v7038_v19 }
 0x252   : > { %v7064_v33 = vpop.permute.xlu0 %1749  ;;  %v7066_v9 = vpop.permute.xlu1 %1743 }
 0x253   : > { %11121 = vst [vmem:[#allocation152_spill] sm:$0xff] %v7064_v33  ;;  %11122 = vst [vmem:[#allocation153_spill] sm:$0xff] %v7066_v9 }
 0x254   : > { %2129 = vrot.lane.b32.xlu0 %v2093_v4, %s5751_s13  ;;  %2123 = vrot.lane.b32.xlu1 %v2090_v46, %s5751_s13  ;;  %v2097_v4 = vmul.f32 %v6928_v18, %v7038_v19  ;;  %v7090_v46 = vld [vmem:[#allocation4 + $0x9] sm:$0x1] }
 0x256   : > { %v7074_v21 = vpop.permute.xlu0 %1753  ;;  %v7076_v59 = vpop.permute.xlu1 %1747 }
 0x257   : > { %11123 = vst [vmem:[#allocation154_spill] sm:$0xff] %v7074_v21  ;;  %11124 = vst [vmem:[#allocation155_spill] sm:$0xff] %v7076_v59  ;;  %v2094_v59 = vmul.f32 %v7090_v46, %v7038_v19 }
 0x258   : > { %2133 = vrot.lane.b32.xlu0 %v2095_v56, %s5751_s13  ;;  %2127 = vrot.lane.b32.xlu1 %v2092_v15, %s5751_s13  ;;  %v2099_v15 = vmul.f32 %v7022_v43, %v7038_v19 }
 0x25a   : > { %v7084_v42 = vpop.permute.xlu0 %1757  ;;  %v7086_v9 = vpop.permute.xlu1 %1751 }
 0x25b   : > { %11125 = vst [vmem:[#allocation156_spill] sm:$0xff] %v7084_v42  ;;  %11126 = vst [vmem:[#allocation157_spill] sm:$0xff] %v7086_v9  ;;  %v2096_v9 = vmul.f32 %v7038_v19, %v6382_v10 }
 0x25c   : > { %2137 = vrot.lane.b32.xlu0 %v2097_v4, %s5751_s13  ;;  %2131 = vrot.lane.b32.xlu1 %v2094_v59, %s5751_s13  ;;  %v7110_v59 = vld [vmem:[#allocation4 + $0x10] sm:$0x1] }
 0x25e   : > { %v7096_v5 = vpop.permute.xlu0 %1827  ;;  %v7098_v56 = vpop.permute.xlu1 %1755 }
 0x25f   : > { %11127 = vst [vmem:[#allocation158_spill] sm:$0xff] %v7096_v5  ;;  %11128 = vst [vmem:[#allocation159_spill] sm:$0xff] %v7098_v56  ;;  %v2101_v56 = vmul.f32 %v7110_v59, %v7038_v19  ;;  %v2098_v5 = vmul.f32 %v6954_v55, %v7038_v19 }
 0x260   : > { %2141 = vrot.lane.b32.xlu0 %v2099_v15, %s5751_s13  ;;  %2135 = vrot.lane.b32.xlu1 %v2096_v9, %s5751_s13  ;;  %v2103_v15 = vmul.f32 %v7038_v19, %v6390_v14 }
 0x262   : > { %v7106_v42 = vpop.permute.xlu0 %1831  ;;  %v7108_v4 = vpop.permute.xlu1 %1759 }
 0x263   : > { %11129 = vst [vmem:[#allocation160_spill] sm:$0xff] %v7106_v42  ;;  %11130 = vst [vmem:[#allocation161_spill] sm:$0xff] %v7108_v4  ;;  %v2100_v4 = vmul.f32 %v7048_v22, %v7038_v19  ;;  %v2186_v42 = vstv %s5353_s22  ;;  %s5372_s22 = sld [smem:[#allocation10 + $0x25]] }
 0x264   : > { %2145 = vrot.lane.b32.xlu0 %v2101_v56, %s5751_s13  ;;  %2139 = vrot.lane.b32.xlu1 %v2098_v5, %s5751_s13  ;;  %v2187_v5 = vmul.f32 %v6976_v38, %v2186_v42 }
 0x266   : > { %v7118_v10 = vpop.permute.xlu0 %1835  ;;  %v7120_v9 = vpop.permute.xlu1 %1829 }
 0x267   : > { %11131 = vst [vmem:[#allocation162_spill] sm:$0xff] %v7118_v10  ;;  %11132 = vst [vmem:[#allocation163_spill] sm:$0xff] %v7120_v9  ;;  %v7133_v10 = vld [vmem:[#allocation4 + $0x11] sm:$0x1] }
 0x268   : > { %2149 = vrot.lane.b32.xlu0 %v2103_v15, %s5751_s13  ;;  %2143 = vrot.lane.b32.xlu1 %v2100_v4, %s5751_s13  ;;  %v2102_v9 = vmul.f32 %v7133_v10, %v7038_v19  ;;  %v2189_v4 = vmul.f32 %v6986_v11, %v2186_v42 }
 0x26a   : > { %v7128_v21 = vpop.permute.xlu0 %1839  ;;  %v7130_v56 = vpop.permute.xlu1 %1833 }
 0x26b   : > { %11133 = vst [vmem:[#allocation164_spill] sm:$0xff] %v7128_v21  ;;  %11134 = vst [vmem:[#allocation165_spill] sm:$0xff] %v7130_v56  ;;  %v2104_v56 = vmul.f32 %v7038_v19, %v6405_v23  ;;  %v2193_v19 = vmul.f32 %v6928_v18, %v2186_v42 }
 0x26c   : > { %2219 = vrot.lane.b32.xlu0 %v2187_v5, %s5751_s13  ;;  %2147 = vrot.lane.b32.xlu1 %v2102_v9, %s5751_s13  ;;  %v7152_v5 = vld [vmem:[#allocation4 + $0xa] sm:$0x1] }
 0x26d   : > { %v2191_v9 = vmul.f32 %v7152_v5, %v2186_v42 }
 0x26e   : > { %v7139_v14 = vpop.permute.xlu0 %1843  ;;  %v7141_v15 = vpop.permute.xlu1 %1837 }
 0x26f   : > { %11135 = vst [vmem:[#allocation166_spill] sm:$0xff] %v7139_v14  ;;  %11136 = vst [vmem:[#allocation167_spill] sm:$0xff] %v7141_v15  ;;  %v2188_v14 = vmul.f32 %v7002_v35, %v2186_v42 }
 0x270   : > { %2223 = vrot.lane.b32.xlu0 %v2189_v4, %s5751_s13  ;;  %2151 = vrot.lane.b32.xlu1 %v2104_v56, %s5751_s13  ;;  %v2190_v56 = vmul.f32 %v7090_v46, %v2186_v42 }
 0x272   : > { %v7148_v21 = vpop.permute.xlu0 %1847  ;;  %v7150_v33 = vpop.permute.xlu1 %1841 }
 0x273   : > { %11137 = vst [vmem:[#allocation168_spill] sm:$0xff] %v7148_v21  ;;  %11138 = vst [vmem:[#allocation169_spill] sm:$0xff] %v7150_v33  ;;  %v7171_v21 = vld [vmem:[#allocation4 + $0xb] sm:$0x1] }
 0x274   : > { %2227 = vrot.lane.b32.xlu0 %v2191_v9, %s5751_s13  ;;  %2221 = vrot.lane.b32.xlu1 %v2188_v14, %s5751_s13  ;;  %v2195_v9 = vmul.f32 %v7022_v43, %v2186_v42  ;;  %v2192_v14 = vmul.f32 %v7171_v21, %v2186_v42 }
 0x276   : > { %v7158_v15 = vpop.permute.xlu0 %1851  ;;  %v7160_v23 = vpop.permute.xlu1 %1845 }
 0x277   : > { %11139 = vst [vmem:[#allocation170_spill] sm:$0xff] %v7158_v15  ;;  %11140 = vst [vmem:[#allocation171_spill] sm:$0xff] %v7160_v23 }
 0x278   : > { %2231 = vrot.lane.b32.xlu0 %v2193_v19, %s5751_s13  ;;  %2225 = vrot.lane.b32.xlu1 %v2190_v56, %s5751_s13  ;;  %v2197_v19 = vmul.f32 %v7110_v59, %v2186_v42  ;;  %v2194_v56 = vmul.f32 %v6954_v55, %v2186_v42 }
 0x27a   : > { %v7166_v4 = vpop.permute.xlu0 %1855  ;;  %v7168_v33 = vpop.permute.xlu1 %1849 }
 0x27b   : > { %11141 = vst [vmem:[#allocation172_spill] sm:$0xff] %v7166_v4  ;;  %11142 = vst [vmem:[#allocation173_spill] sm:$0xff] %v7168_v33 }
 0x27c   : > { %2235 = vrot.lane.b32.xlu0 %v2195_v9, %s5751_s13  ;;  %2229 = vrot.lane.b32.xlu1 %v2192_v14, %s5751_s13  ;;  %v7188_v9 = vld [vmem:[#allocation4 + $0x12] sm:$0x1] }
 0x27d   : > { %v2199_v14 = vmul.f32 %v7188_v9, %v2186_v42 }
 0x27e   : > { %v7176_v23 = vpop.permute.xlu0 %1925  ;;  %v7178_v15 = vpop.permute.xlu1 %1853 }
 0x27f   : > { %11143 = vst [vmem:[#allocation174_spill] sm:$0xff] %v7176_v23  ;;  %11144 = vst [vmem:[#allocation175_spill] sm:$0xff] %v7178_v15  ;;  %v2196_v23 = vmul.f32 %v7048_v22, %v2186_v42  ;;  %v2201_v15 = vmul.f32 %v2186_v42, %v6436_v44 }
 0x280   : > { %2239 = vrot.lane.b32.xlu0 %v2197_v19, %s5751_s13  ;;  %2233 = vrot.lane.b32.xlu1 %v2194_v56, %s5751_s13 }
 0x282   : > { %v7184_v33 = vpop.permute.xlu0 %1929  ;;  %v7186_v4 = vpop.permute.xlu1 %1857 }
 0x283   : > { %11145 = vst [vmem:[#allocation176_spill] sm:$0xff] %v7184_v33  ;;  %11146 = vst [vmem:[#allocation177_spill] sm:$0xff] %v7186_v4  ;;  %v2198_v33 = vmul.f32 %v7133_v10, %v2186_v42  ;;  %v2284_v4 = vstv %s5354_s24  ;;  %s5373_s24 = sld [smem:[#allocation10 + $0x2a]] }
 0x284   : > { %2243 = vrot.lane.b32.xlu0 %v2199_v14, %s5751_s13  ;;  %2237 = vrot.lane.b32.xlu1 %v2196_v23, %s5751_s13  ;;  %v2285_v14 = vmul.f32 %v6986_v11, %v2284_v4  ;;  %v7207_v23 = vld [vmem:[#allocation4 + $0x13] sm:$0x1] }
 0x285   : > { %v2200_v44 = vmul.f32 %v7207_v23, %v2186_v42 }
 0x286   : > { %v7195_v19 = vpop.permute.xlu0 %1933  ;;  %v7197_v56 = vpop.permute.xlu1 %1927 }
 0x287   : > { %11147 = vst [vmem:[#allocation178_spill] sm:$0xff] %v7195_v19  ;;  %11148 = vst [vmem:[#allocation179_spill] sm:$0xff] %v7197_v56  ;;  %v2202_v56 = vmul.f32 %v2186_v42, %v6452_v58 }
 0x288   : > { %2247 = vrot.lane.b32.xlu0 %v2201_v15, %s5751_s13  ;;  %2241 = vrot.lane.b32.xlu1 %v2198_v33, %s5751_s13 }
 0x28a   : > { %v7202_v27 = vpop.permute.xlu0 %1937  ;;  %v7204_v49 = vpop.permute.xlu1 %1931 }
 0x28b   : > { %11149 = vst [vmem:[#allocation180_spill] sm:$0xff] %v7202_v27  ;;  %11150 = vst [vmem:[#allocation181_spill] sm:$0xff] %v7204_v49  ;;  %v2287_v27 = vmul.f32 %v7152_v5, %v2284_v4 }
 0x28c   : > { %2317 = vrot.lane.b32.xlu0 %v2285_v14, %s5751_s13  ;;  %2245 = vrot.lane.b32.xlu1 %v2200_v44, %s5751_s13  ;;  %v2289_v14 = vmul.f32 %v6928_v18, %v2284_v4  ;;  %v2286_v44 = vmul.f32 %v7090_v46, %v2284_v4 }
 0x28e   : > { %v7213_v15 = vpop.permute.xlu0 %1941  ;;  %v7215_v33 = vpop.permute.xlu1 %1935 }
 0x28f   : > { %11151 = vst [vmem:[#allocation182_spill] sm:$0xff] %v7213_v15  ;;  %11152 = vst [vmem:[#allocation183_spill] sm:$0xff] %v7215_v33  ;;  %v7268_v15 = vstv %s5355_s30  ;;  %s5374_s30 = sld [smem:[#allocation10 + $0x2f]] }
 0x290   : > { %2321 = vrot.lane.b32.xlu0 %v2287_v27, %s5751_s13  ;;  %2249 = vrot.lane.b32.xlu1 %v2202_v56, %s5751_s13  ;;  %v2291_v27 = vmul.f32 %v7022_v43, %v2284_v4  ;;  %v2288_v56 = vmul.f32 %v7171_v21, %v2284_v4 }
 0x292   : > { %v7220_v49 = vpop.permute.xlu0 %1945  ;;  %v7222_v19 = vpop.permute.xlu1 %1939 }
 0x293   : > { %11153 = vst [vmem:[#allocation184_spill] sm:$0xff] %v7220_v49  ;;  %11154 = vst [vmem:[#allocation185_spill] sm:$0xff] %v7222_v19 }
 0x294   : > { %2325 = vrot.lane.b32.xlu0 %v2289_v14, %s5751_s13  ;;  %2319 = vrot.lane.b32.xlu1 %v2286_v44, %s5751_s13  ;;  %v2293_v14 = vmul.f32 %v7110_v59, %v2284_v4  ;;  %v2290_v44 = vmul.f32 %v6954_v55, %v2284_v4 }
 0x296   : > { %v7228_v58 = vpop.permute.xlu0 %1949  ;;  %v7230_v42 = vpop.permute.xlu1 %1943 }
 0x297   : > { %11155 = vst [vmem:[#allocation186_spill] sm:$0xff] %v7228_v58  ;;  %11156 = vst [vmem:[#allocation187_spill] sm:$0xff] %v7230_v42 }
 0x298   : > { %2329 = vrot.lane.b32.xlu0 %v2291_v27, %s5751_s13  ;;  %2323 = vrot.lane.b32.xlu1 %v2288_v56, %s5751_s13  ;;  %v2295_v27 = vmul.f32 %v7188_v9, %v2284_v4  ;;  %v2292_v56 = vmul.f32 %v7048_v22, %v2284_v4 }
 0x29a   : > { %v7236_v19 = vpop.permute.xlu0 %1953  ;;  %v7238_v49 = vpop.permute.xlu1 %1947 }
 0x29b   : > { %11157 = vst [vmem:[#allocation188_spill] sm:$0xff] %v7236_v19  ;;  %11158 = vst [vmem:[#allocation189_spill] sm:$0xff] %v7238_v49  ;;  %v7252_v49 = vld [vmem:[#allocation4 + $0x14] sm:$0x1] }
 0x29c   : > { %2333 = vrot.lane.b32.xlu0 %v2293_v14, %s5751_s13  ;;  %2327 = vrot.lane.b32.xlu1 %v2290_v44, %s5751_s13  ;;  %v2297_v19 = vmul.f32 %v7252_v49, %v2284_v4 }
 0x29e   : > { %v7244_v42 = vpop.permute.xlu0 %2023  ;;  %v7246_v58 = vpop.permute.xlu1 %1951 }
 0x29f   : > { %11159 = vst [vmem:[#allocation190_spill] sm:$0xff] %v7244_v42  ;;  %11160 = vst [vmem:[#allocation191_spill] sm:$0xff] %v7246_v58  ;;  %v2294_v42 = vmul.f32 %v7133_v10, %v2284_v4  ;;  %v2299_v58 = vmul.f32 %v2284_v4, %v6502_v30 }
 0x2a0   : > { %2337 = vrot.lane.b32.xlu0 %v2295_v27, %s5751_s13  ;;  %2331 = vrot.lane.b32.xlu1 %v2292_v56, %s5751_s13  ;;  %v2296_v56 = vmul.f32 %v7207_v23, %v2284_v4 }
 0x2a2   : > { %v7255_v14 = vpop.permute.xlu0 %2027  ;;  %v7257_v44 = vpop.permute.xlu1 %1955 }
 0x2a3   : > { %11161 = vst [vmem:[#allocation192_spill] sm:$0xff] %v7255_v14  ;;  %11162 = vst [vmem:[#allocation193_spill] sm:$0xff] %v7257_v44  ;;  %v2383_v44 = vmul.f32 %v6856_v20, %v7268_v15 }
 0x2a4   : > { %2341 = vrot.lane.b32.xlu0 %v2297_v19, %s5751_s13  ;;  %2335 = vrot.lane.b32.xlu1 %v2294_v42, %s5751_s13  ;;  %v7274_v19 = vld [vmem:[#allocation4 + $0x15] sm:$0x1] }
 0x2a5   : > { %v2298_v42 = vmul.f32 %v7274_v19, %v2284_v4 }
 0x2a6   : > { %v7263_v33 = vpop.permute.xlu0 %2031  ;;  %v7265_v27 = vpop.permute.xlu1 %2025 }
 0x2a7   : > { %11163 = vst [vmem:[#allocation194_spill] sm:$0xff] %v7263_v33  ;;  %11164 = vst [vmem:[#allocation195_spill] sm:$0xff] %v7265_v27 }
 0x2a8   : > { %2345 = vrot.lane.b32.xlu0 %v2299_v58, %s5751_s13  ;;  %2339 = vrot.lane.b32.xlu1 %v2296_v56, %s5751_s13  ;;  %v2385_v58 = vmul.f32 %v6867_v47, %v7268_v15  ;;  %v2300_v56 = vmul.f32 %v2284_v4, %v6523_v60  ;;  %v2386_v60 = vmul.f32 %v6892_v63, %v7268_v15 }
 0x2aa   : > { %v7277_v30 = vpop.permute.xlu0 %2035  ;;  %v7279_v33 = vpop.permute.xlu1 %2029 }
 0x2ab   : > { %11165 = vst [vmem:[#allocation196_spill] sm:$0xff] %v7277_v30  ;;  %11166 = vst [vmem:[#allocation197_spill] sm:$0xff] %v7279_v33  ;;  %v2384_v33 = vmul.f32 %v6878_v0, %v7268_v15  ;;  %v2389_v0 = vmul.f32 %v6976_v38, %v7268_v15 }
 0x2ac   : > { %2415 = vrot.lane.b32.xlu0 %v2383_v44, %s5752_s23  ;;  %2343 = vrot.lane.b32.xlu1 %v2298_v42, %s5751_s13  ;;  %v2387_v42 = vmul.f32 %v6886_v36, %v7268_v15 }
 0x2ae   : > { %v7286_v27 = vpop.permute.xlu0 %2039  ;;  %v7288_v20 = vpop.permute.xlu1 %2033 }
 0x2af   : > { %11167 = vst [vmem:[#allocation198_spill] sm:$0xff] %v7286_v27  ;;  %11168 = vst [vmem:[#allocation199_spill] sm:$0xff] %v7288_v20 }
 0x2b0   : > { %2419 = vrot.lane.b32.xlu0 %v2385_v58, %s5752_s23  ;;  %2347 = vrot.lane.b32.xlu1 %v2300_v56, %s5751_s13 }
 0x2b2   : > { %v7294_v30 = vpop.permute.xlu0 %2043  ;;  %v7296_v44 = vpop.permute.xlu1 %2037 }
 0x2b3   : > { %11169 = vst [vmem:[#allocation200_spill] sm:$0xff] %v7294_v30  ;;  %11170 = vst [vmem:[#allocation201_spill] sm:$0xff] %v7296_v44 }
 0x2b4   : > { %2423 = vrot.lane.b32.xlu0 %v2387_v42, %s5752_s23  ;;  %2417 = vrot.lane.b32.xlu1 %v2384_v33, %s5752_s23  ;;  %v2391_v33 = vmul.f32 %v6986_v11, %v7268_v15  ;;  %v2388_v42 = vmul.f32 %v6990_v51, %v7268_v15 }
 0x2b6   : > { %v7304_v4 = vpop.permute.xlu0 %2047  ;;  %v7306_v58 = vpop.permute.xlu1 %2041 }
 0x2b7   : > { %11171 = vst [vmem:[#allocation202_spill] sm:$0xff] %v7304_v4  ;;  %11172 = vst [vmem:[#allocation203_spill] sm:$0xff] %v7306_v58 }
 0x2b8   : > { %2427 = vrot.lane.b32.xlu0 %v2389_v0, %s5752_s23  ;;  %2421 = vrot.lane.b32.xlu1 %v2386_v60, %s5752_s23  ;;  %v2393_v60 = vmul.f32 %v7152_v5, %v7268_v15  ;;  %v2390_v0 = vmul.f32 %v7002_v35, %v7268_v15 }
 0x2ba   : > { %v7312_v56 = vpop.permute.xlu0 %2051  ;;  %v7314_v44 = vpop.permute.xlu1 %2045 }
 0x2bb   : > { %11173 = vst [vmem:[#allocation204_spill] sm:$0xff] %v7312_v56  ;;  %11174 = vst [vmem:[#allocation205_spill] sm:$0xff] %v7314_v44 }
 0x2bc   : > { %2431 = vrot.lane.b32.xlu0 %v2391_v33, %s5752_s23  ;;  %2425 = vrot.lane.b32.xlu1 %v2388_v42, %s5752_s23  ;;  %v2395_v42 = vmul.f32 %v6928_v18, %v7268_v15 }
 0x2be   : > { %v7322_v58 = vpop.permute.xlu0 %2121  ;;  %v7324_v4 = vpop.permute.xlu1 %2049 }
 0x2bf   : > { %11175 = vst [vmem:[#allocation206_spill] sm:$0xff] %v7322_v58  ;;  %11176 = vst [vmem:[#allocation207_spill] sm:$0xff] %v7324_v4  ;;  %v2392_v4 = vmul.f32 %v7090_v46, %v7268_v15 }
 0x2c0   : > { %2435 = vrot.lane.b32.xlu0 %v2393_v60, %s5752_s23  ;;  %2429 = vrot.lane.b32.xlu1 %v2390_v0, %s5752_s23  ;;  %v2397_v60 = vmul.f32 %v7022_v43, %v7268_v15  ;;  %v2394_v0 = vmul.f32 %v7171_v21, %v7268_v15 }
 0x2c2   : > { %v7332_v44 = vpop.permute.xlu0 %2125  ;;  %v7334_v33 = vpop.permute.xlu1 %2053 }
 0x2c3   : > { %11177 = vst [vmem:[#allocation208_spill] sm:$0xff] %v7332_v44  ;;  %11178 = vst [vmem:[#allocation209_spill] sm:$0xff] %v7334_v33  ;;  %v2480_v33 = vstv %s5356_s27  ;;  %s5375_s27 = sld [smem:[#allocation10 + $0x1c]] }
 0x2c4   : > { %2439 = vrot.lane.b32.xlu0 %v2395_v42, %s5752_s23  ;;  %2433 = vrot.lane.b32.xlu1 %v2392_v4, %s5752_s23  ;;  %v2481_v44 = vmul.f32 %v6867_v47, %v2480_v33  ;;  %v2398_v47 = vmul.f32 %v7048_v22, %v7268_v15 }
 0x2c6   : > { %v7342_v58 = vpop.permute.xlu0 %2129  ;;  %v7344_v56 = vpop.permute.xlu1 %2123 }
 0x2c7   : > { %11179 = vst [vmem:[#allocation210_spill] sm:$0xff] %v7342_v58  ;;  %11180 = vst [vmem:[#allocation211_spill] sm:$0xff] %v7344_v56  ;;  %v2396_v56 = vmul.f32 %v6954_v55, %v7268_v15  ;;  %v2487_v15 = vmul.f32 %v6986_v11, %v2480_v33 }
 0x2c8   : > { %2443 = vrot.lane.b32.xlu0 %v2397_v60, %s5752_s23  ;;  %2437 = vrot.lane.b32.xlu1 %v2394_v0, %s5752_s23  ;;  %v2483_v60 = vmul.f32 %v6886_v36, %v2480_v33  ;;  %v2482_v0 = vmul.f32 %v6892_v63, %v2480_v33 }
 0x2ca   : > { %v7353_v42 = vpop.permute.xlu0 %2133  ;;  %v7355_v4 = vpop.permute.xlu1 %2127 }
 0x2cb   : > { %11181 = vst [vmem:[#allocation212_spill] sm:$0xff] %v7353_v42  ;;  %11182 = vst [vmem:[#allocation213_spill] sm:$0xff] %v7355_v4 }
 0x2cc   : > { %2513 = vrot.lane.b32.xlu0 %v2481_v44, %s5752_s23  ;;  %2441 = vrot.lane.b32.xlu1 %v2396_v56, %s5752_s23  ;;  %v2485_v56 = vmul.f32 %v6976_v38, %v2480_v33 }
 0x2ce   : > { %v7361_v58 = vpop.permute.xlu0 %2137  ;;  %v7363_v30 = vpop.permute.xlu1 %2131 }
 0x2cf   : > { %11183 = vst [vmem:[#allocation214_spill] sm:$0xff] %v7361_v58  ;;  %11184 = vst [vmem:[#allocation215_spill] sm:$0xff] %v7363_v30 }
 0x2d0   : > { %2517 = vrot.lane.b32.xlu0 %v2483_v60, %s5752_s23  ;;  %2445 = vrot.lane.b32.xlu1 %v2398_v47, %s5752_s23  ;;  %v2484_v60 = vmul.f32 %v6990_v51, %v2480_v33 }
 0x2d2   : > { %v7371_v4 = vpop.permute.xlu0 %2141  ;;  %v7373_v44 = vpop.permute.xlu1 %2135 }
 0x2d3   : > { %11185 = vst [vmem:[#allocation216_spill] sm:$0xff] %v7371_v4  ;;  %11186 = vst [vmem:[#allocation217_spill] sm:$0xff] %v7373_v44  ;;  %v2578_v44 = vstv %s5357_s28  ;;  %s741_s28 = sld [smem:[#allocation10]] }
 0x2d4   : > { %2521 = vrot.lane.b32.xlu0 %v2485_v56, %s5752_s23  ;;  %2515 = vrot.lane.b32.xlu1 %v2482_v0, %s5752_s23  ;;  %v2489_v56 = vmul.f32 %v7152_v5, %v2480_v33  ;;  %v2486_v0 = vmul.f32 %v7002_v35, %v2480_v33 }
 0x2d6   : > { %v7378_v30 = vpop.permute.xlu0 %2145  ;;  %v7380_v58 = vpop.permute.xlu1 %2139 }
 0x2d7   : > { %11187 = vst [vmem:[#allocation218_spill] sm:$0xff] %v7378_v30  ;;  %11188 = vst [vmem:[#allocation219_spill] sm:$0xff] %v7380_v58 }
 0x2d8   : > { %2525 = vrot.lane.b32.xlu0 %v2487_v15, %s5752_s23  ;;  %2519 = vrot.lane.b32.xlu1 %v2484_v60, %s5752_s23  ;;  %v2491_v15 = vmul.f32 %v6928_v18, %v2480_v33  ;;  %v2488_v60 = vmul.f32 %v7090_v46, %v2480_v33 }
 0x2da   : > { %v7386_v63 = vpop.permute.xlu0 %2149  ;;  %v7388_v47 = vpop.permute.xlu1 %2143 }
 0x2db   : > { %11189 = vst [vmem:[#allocation220_spill] sm:$0xff] %v7386_v63  ;;  %11190 = vst [vmem:[#allocation221_spill] sm:$0xff] %v7388_v47 }
 0x2dc   : > { %2529 = vrot.lane.b32.xlu0 %v2489_v56, %s5752_s23  ;;  %2523 = vrot.lane.b32.xlu1 %v2486_v0, %s5752_s23  ;;  %v2493_v56 = vmul.f32 %v7022_v43, %v2480_v33  ;;  %v2490_v0 = vmul.f32 %v7171_v21, %v2480_v33 }
 0x2de   : > { %v7394_v58 = vpop.permute.xlu0 %2219  ;;  %v7396_v30 = vpop.permute.xlu1 %2147 }
 0x2df   : > { %11191 = vst [vmem:[#allocation222_spill] sm:$0xff] %v7394_v58  ;;  %11192 = vst [vmem:[#allocation223_spill] sm:$0xff] %v7396_v30 }
 0x2e0   : > { %2533 = vrot.lane.b32.xlu0 %v2491_v15, %s5752_s23  ;;  %2527 = vrot.lane.b32.xlu1 %v2488_v60, %s5752_s23  ;;  %v2495_v15 = vmul.f32 %v7110_v59, %v2480_v33  ;;  %v2492_v60 = vmul.f32 %v6954_v55, %v2480_v33 }
 0x2e2   : > { %v7402_v47 = vpop.permute.xlu0 %2223  ;;  %v7404_v63 = vpop.permute.xlu1 %2151 }
 0x2e3   : > { %11193 = vst [vmem:[#allocation224_spill] sm:$0xff] %v7402_v47  ;;  %11194 = vst [vmem:[#allocation225_spill] sm:$0xff] %v7404_v63 }
 0x2e4   : > { %2537 = vrot.lane.b32.xlu0 %v2493_v56, %s5752_s23  ;;  %2531 = vrot.lane.b32.xlu1 %v2490_v0, %s5752_s23  ;;  %v2579_v56 = vmul.f32 %v6886_v36, %v2578_v44  ;;  %v2494_v0 = vmul.f32 %v7048_v22, %v2480_v33 }
 0x2e6   : > { %v7410_v30 = vpop.permute.xlu0 %2227  ;;  %v7412_v58 = vpop.permute.xlu1 %2221 }
 0x2e7   : > { %11195 = vst [vmem:[#allocation226_spill] sm:$0xff] %v7410_v30  ;;  %11196 = vst [vmem:[#allocation227_spill] sm:$0xff] %v7412_v58 }
 0x2e8   : > { %2541 = vrot.lane.b32.xlu0 %v2495_v15, %s5752_s23  ;;  %2535 = vrot.lane.b32.xlu1 %v2492_v60, %s5752_s23  ;;  %v2581_v15 = vmul.f32 %v6976_v38, %v2578_v44  ;;  %v2496_v60 = vmul.f32 %v7133_v10, %v2480_v33  ;;  %v2585_v33 = vmul.f32 %v7152_v5, %v2578_v44 }
 0x2ea   : > { %v7418_v63 = vpop.permute.xlu0 %2231  ;;  %v7420_v47 = vpop.permute.xlu1 %2225 }
 0x2eb   : > { %11197 = vst [vmem:[#allocation228_spill] sm:$0xff] %v7418_v63  ;;  %11198 = vst [vmem:[#allocation229_spill] sm:$0xff] %v7420_v47 }
 0x2ec   : > { %2611 = vrot.lane.b32.xlu0 %v2579_v56, %s5752_s23  ;;  %2539 = vrot.lane.b32.xlu1 %v2494_v0, %s5752_s23  ;;  %v2583_v56 = vmul.f32 %v6986_v11, %v2578_v44  ;;  %v2580_v0 = vmul.f32 %v6990_v51, %v2578_v44  ;;  %v2587_v51 = vmul.f32 %v6928_v18, %v2578_v44 }
 0x2ee   : > { %v7426_v58 = vpop.permute.xlu0 %2235  ;;  %v7428_v30 = vpop.permute.xlu1 %2229 }
 0x2ef   : > { %11199 = vst [vmem:[#allocation230_spill] sm:$0xff] %v7426_v58  ;;  %11200 = vst [vmem:[#allocation231_spill] sm:$0xff] %v7428_v30 }
 0x2f0   : > { %2615 = vrot.lane.b32.xlu0 %v2581_v15, %s5752_s23  ;;  %2543 = vrot.lane.b32.xlu1 %v2496_v60, %s5752_s23  ;;  %v2582_v15 = vmul.f32 %v7002_v35, %v2578_v44 }
 0x2f2   : > { %v7434_v47 = vpop.permute.xlu0 %2239  ;;  %v7436_v36 = vpop.permute.xlu1 %2233 }
 0x2f3   : > { %11201 = vst [vmem:[#allocation232_spill] sm:$0xff] %v7434_v47  ;;  %11202 = vst [vmem:[#allocation233_spill] sm:$0xff] %v7436_v36 }
 0x2f4   : > { %2619 = vrot.lane.b32.xlu0 %v2583_v56, %s5752_s23  ;;  %2613 = vrot.lane.b32.xlu1 %v2580_v0, %s5752_s23  ;;  %v2584_v56 = vmul.f32 %v7090_v46, %v2578_v44 }
 0x2f6   : > { %v7442_v30 = vpop.permute.xlu0 %2243  ;;  %v7444_v58 = vpop.permute.xlu1 %2237 }
 0x2f7   : > { %11203 = vst [vmem:[#allocation234_spill] sm:$0xff] %v7442_v30  ;;  %11204 = vst [vmem:[#allocation235_spill] sm:$0xff] %v7444_v58 }
 0x2f8   : > { %2623 = vrot.lane.b32.xlu0 %v2585_v33, %s5752_s23  ;;  %2617 = vrot.lane.b32.xlu1 %v2582_v15, %s5752_s23  ;;  %v2589_v33 = vmul.f32 %v7022_v43, %v2578_v44  ;;  %v2586_v15 = vmul.f32 %v7171_v21, %v2578_v44 }
 0x2fa   : > { %v7450_v60 = vpop.permute.xlu0 %2247  ;;  %v7452_v36 = vpop.permute.xlu1 %2241 }
 0x2fb   : > { %11205 = vst [vmem:[#allocation236_spill] sm:$0xff] %v7450_v60  ;;  %11206 = vst [vmem:[#allocation237_spill] sm:$0xff] %v7452_v36 }
 0x2fc   : > { %2627 = vrot.lane.b32.xlu0 %v2587_v51, %s5752_s23  ;;  %2621 = vrot.lane.b32.xlu1 %v2584_v56, %s5752_s23  ;;  %v2591_v51 = vmul.f32 %v7110_v59, %v2578_v44  ;;  %v2588_v56 = vmul.f32 %v6954_v55, %v2578_v44 }
 0x2fe   : > { %v7458_v0 = vpop.permute.xlu0 %2317  ;;  %v7460_v58 = vpop.permute.xlu1 %2245 }
 0x2ff   : > { %11207 = vst [vmem:[#allocation238_spill] sm:$0xff] %v7458_v0  ;;  %11208 = vst [vmem:[#allocation239_spill] sm:$0xff] %v7460_v58 }
 0x300   : > { %2631 = vrot.lane.b32.xlu0 %v2589_v33, %s5752_s23  ;;  %2625 = vrot.lane.b32.xlu1 %v2586_v15, %s5752_s23  ;;  %v2593_v33 = vmul.f32 %v7188_v9, %v2578_v44  ;;  %v2590_v15 = vmul.f32 %v7048_v22, %v2578_v44 }
 0x302   : > { %v7466_v36 = vpop.permute.xlu0 %2321  ;;  %v7468_v60 = vpop.permute.xlu1 %2249 }
 0x303   : > { %11209 = vst [vmem:[#allocation240_spill] sm:$0xff] %v7466_v36  ;;  %11210 = vst [vmem:[#allocation241_spill] sm:$0xff] %v7468_v60  ;;  %v2676_v60 = vstv %s5358_s9  ;;  %s715_s9 = sld [smem:[#allocation5]] }
 0x304   : > { %2635 = vrot.lane.b32.xlu0 %v2591_v51, %s5752_s23  ;;  %2629 = vrot.lane.b32.xlu1 %v2588_v56, %s5752_s23  ;;  %v2677_v51 = vmul.f32 %v6976_v38, %v2676_v60  ;;  %v2592_v56 = vmul.f32 %v7133_v10, %v2578_v44 }
 0x306   : > { %v7474_v58 = vpop.permute.xlu0 %2325  ;;  %v7476_v0 = vpop.permute.xlu1 %2319 }
 0x307   : > { %11211 = vst [vmem:[#allocation242_spill] sm:$0xff] %v7474_v58  ;;  %11212 = vst [vmem:[#allocation243_spill] sm:$0xff] %v7476_v0 }
 0x308   : > { %2639 = vrot.lane.b32.xlu0 %v2593_v33, %s5752_s23  ;;  %2633 = vrot.lane.b32.xlu1 %v2590_v15, %s5752_s23  ;;  %v2679_v33 = vmul.f32 %v6986_v11, %v2676_v60  ;;  %v2594_v15 = vmul.f32 %v7207_v23, %v2578_v44  ;;  %v2683_v44 = vmul.f32 %v6928_v18, %v2676_v60 }
 0x30a   : > { %v7482_v36 = vpop.permute.xlu0 %2329  ;;  %v7484_v30 = vpop.permute.xlu1 %2323 }
 0x30b   : > { %11213 = vst [vmem:[#allocation244_spill] sm:$0xff] %v7482_v36  ;;  %11214 = vst [vmem:[#allocation245_spill] sm:$0xff] %v7484_v30 }
 0x30c   : > { %2709 = vrot.lane.b32.xlu0 %v2677_v51, %s5752_s23  ;;  %2637 = vrot.lane.b32.xlu1 %v2592_v56, %s5752_s23  ;;  %v2681_v51 = vmul.f32 %v7152_v5, %v2676_v60  ;;  %v2678_v56 = vmul.f32 %v7002_v35, %v2676_v60  ;;  %v2685_v35 = vmul.f32 %v7022_v43, %v2676_v60 }
 0x30e   : > { %v7490_v0 = vpop.permute.xlu0 %2333  ;;  %v7492_v58 = vpop.permute.xlu1 %2327 }
 0x30f   : > { %11215 = vst [vmem:[#allocation246_spill] sm:$0xff] %v7490_v0  ;;  %11216 = vst [vmem:[#allocation247_spill] sm:$0xff] %v7492_v58 }
 0x310   : > { %2713 = vrot.lane.b32.xlu0 %v2679_v33, %s5752_s23  ;;  %2641 = vrot.lane.b32.xlu1 %v2594_v15, %s5752_s23  ;;  %v2680_v33 = vmul.f32 %v7090_v46, %v2676_v60 }
 0x312   : > { %v7498_v30 = vpop.permute.xlu0 %2337  ;;  %v7500_v38 = vpop.permute.xlu1 %2331 }
 0x313   : > { %11217 = vst [vmem:[#allocation248_spill] sm:$0xff] %v7498_v30  ;;  %11218 = vst [vmem:[#allocation249_spill] sm:$0xff] %v7500_v38 }
 0x314   : > { %2717 = vrot.lane.b32.xlu0 %v2681_v51, %s5752_s23  ;;  %2711 = vrot.lane.b32.xlu1 %v2678_v56, %s5752_s23  ;;  %v2682_v51 = vmul.f32 %v7171_v21, %v2676_v60 }
 0x316   : > { %v7506_v58 = vpop.permute.xlu0 %2341  ;;  %v7508_v0 = vpop.permute.xlu1 %2335 }
 0x317   : > { %11219 = vst [vmem:[#allocation250_spill] sm:$0xff] %v7506_v58  ;;  %11220 = vst [vmem:[#allocation251_spill] sm:$0xff] %v7508_v0 }
 0x318   : > { %2721 = vrot.lane.b32.xlu0 %v2683_v44, %s5752_s23  ;;  %2715 = vrot.lane.b32.xlu1 %v2680_v33, %s5752_s23  ;;  %v2687_v44 = vmul.f32 %v7110_v59, %v2676_v60  ;;  %v2684_v33 = vmul.f32 %v6954_v55, %v2676_v60 }
 0x31a   : > { %v7514_v15 = vpop.permute.xlu0 %2345  ;;  %v7516_v38 = vpop.permute.xlu1 %2339 }
 0x31b   : > { %11221 = vst [vmem:[#allocation252_spill] sm:$0xff] %v7514_v15  ;;  %11222 = vst [vmem:[#allocation253_spill] sm:$0xff] %v7516_v38 }
 0x31c   : > { %2725 = vrot.lane.b32.xlu0 %v2685_v35, %s5752_s23  ;;  %2719 = vrot.lane.b32.xlu1 %v2682_v51, %s5752_s23  ;;  %v2689_v35 = vmul.f32 %v7188_v9, %v2676_v60  ;;  %v2686_v51 = vmul.f32 %v7048_v22, %v2676_v60 }
 0x31e   : > { %v7522_v56 = vpop.permute.xlu0 %2415  ;;  %v7524_v0 = vpop.permute.xlu1 %2343 }
 0x31f   : > { %11223 = vst [vmem:[#allocation254_spill] sm:$0xff] %v7522_v56  ;;  %11224 = vst [vmem:[#allocation255_spill] sm:$0xff] %v7524_v0  ;;  %v2691_v0 = vmul.f32 %v7252_v49, %v2676_v60 }
 0x320   : > { %2729 = vrot.lane.b32.xlu0 %v2687_v44, %s5752_s23  ;;  %2723 = vrot.lane.b32.xlu1 %v2684_v33, %s5752_s23  ;;  %v2688_v33 = vmul.f32 %v7133_v10, %v2676_v60 }
 0x322   : > { %v7530_v38 = vpop.permute.xlu0 %2419  ;;  %v7532_v15 = vpop.permute.xlu1 %2347 }
 0x323   : > { %11225 = vst [vmem:[#allocation256_spill] sm:$0xff] %v7530_v38  ;;  %11226 = vst [vmem:[#allocation257_spill] sm:$0xff] %v7532_v15  ;;  %v2774_v15 = vstv %s5359_s7  ;;  %s5337_s7 = sld [smem:[#allocation10 + $0xa]] }
 0x324   : > { %2733 = vrot.lane.b32.xlu0 %v2689_v35, %s5752_s23  ;;  %2727 = vrot.lane.b32.xlu1 %v2686_v51, %s5752_s23  ;;  %v2775_v35 = vmul.f32 %v6986_v11, %v2774_v15  ;;  %v2690_v51 = vmul.f32 %v7207_v23, %v2676_v60 }
 0x326   : > { %v7539_v56 = vpop.permute.xlu0 %2423  ;;  %v7541_v44 = vpop.permute.xlu1 %2417 }
 0x327   : > { %11227 = vst [vmem:[#allocation258_spill] sm:$0xff] %v7539_v56  ;;  %11228 = vst [vmem:[#allocation259_spill] sm:$0xff] %v7541_v44  ;;  %v2692_v44 = vmul.f32 %v7274_v19, %v2676_v60 }
 0x328   : > { %2737 = vrot.lane.b32.xlu0 %v2691_v0, %s5752_s23  ;;  %2731 = vrot.lane.b32.xlu1 %v2688_v33, %s5752_s23  ;;  %v2777_v33 = vmul.f32 %v7152_v5, %v2774_v15  ;;  %v2781_v5 = vmul.f32 %v7022_v43, %v2774_v15 }
 0x32a   : > { %v7546_v38 = vpop.permute.xlu0 %2427  ;;  %v7548_v58 = vpop.permute.xlu1 %2421 }
 0x32b   : > { %11229 = vst [vmem:[#allocation260_spill] sm:$0xff] %v7546_v38  ;;  %11230 = vst [vmem:[#allocation261_spill] sm:$0xff] %v7548_v58  ;;  %v7728_v38 = vld [vmem:[#allocation4 + $0x27] sm:$0x1] }
 0x32c   : > { %2807 = vrot.lane.b32.xlu0 %v2775_v35, %s5752_s23  ;;  %2735 = vrot.lane.b32.xlu1 %v2690_v51, %s5752_s23  ;;  %v2779_v35 = vmul.f32 %v6928_v18, %v2774_v15  ;;  %v2776_v51 = vmul.f32 %v7090_v46, %v2774_v15  ;;  %v2783_v46 = vmul.f32 %v7110_v59, %v2774_v15 }
 0x32d   : > { %v2787_v59 = vmul.f32 %v7252_v49, %v2774_v15  ;;  %v2786_v49 = vmul.f32 %v7207_v23, %v2774_v15 }
 0x32e   : > { %v7555_v56 = vpop.permute.xlu0 %2431  ;;  %v7557_v0 = vpop.permute.xlu1 %2425 }
 0x32f   : > { %11231 = vst [vmem:[#allocation262_spill] sm:$0xff] %v7555_v56  ;;  %11232 = vst [vmem:[#allocation263_spill] sm:$0xff] %v7557_v0  ;;  %v7716_v56 = vstv %s5366_s12  ;;  %s8468_s12 = sld [smem:[#allocation10 + $0x21]] }
 0x330   : > { %2811 = vrot.lane.b32.xlu0 %v2777_v33, %s5752_s23  ;;  %2739 = vrot.lane.b32.xlu1 %v2692_v44, %s5752_s23  ;;  %v2778_v44 = vmul.f32 %v7171_v21, %v2774_v15  ;;  %v2785_v21 = vmul.f32 %v7188_v9, %v2774_v15  ;;  %v5533_v9 = vld [vmem:[#allocation4 + $0x16] sm:$0x1] }
 0x332   : > { %v7562_v58 = vpop.permute.xlu0 %2435  ;;  %v7564_v11 = vpop.permute.xlu1 %2429 }
 0x333   : > { %11233 = vst [vmem:[#allocation264_spill] sm:$0xff] %v7562_v58  ;;  %11234 = vst [vmem:[#allocation265_spill] sm:$0xff] %v7564_v11  ;;  %v7700_v11 = vld [vmem:[#allocation4 + $0x23] sm:$0x1]  ;;  %v7702_v58 = vld [vmem:[#allocation4 + $0x26] sm:$0x1] }
 0x334   : > { %2815 = vrot.lane.b32.xlu0 %v2779_v35, %s5752_s23  ;;  %2809 = vrot.lane.b32.xlu1 %v2776_v51, %s5752_s23  ;;  %v2780_v35 = vmul.f32 %v6954_v55, %v2774_v15 }
 0x335   : > { %v8517_v45 = vstv %s8468_s12  ;;  %s5391_s12 = sshll.u32 %s5730_s17, 8  ;;  %s5754_s17 = smov [#allocation11]  }
 0x336   : > { %v7570_v60 = vpop.permute.xlu0 %2439  ;;  %v7572_v0 = vpop.permute.xlu1 %2433 }
 0x337   : > { %11235 = vst [vmem:[#allocation266_spill] sm:$0xff] %v7570_v60  ;;  %11236 = vst [vmem:[#allocation267_spill] sm:$0xff] %v7572_v0  ;;  %v7686_v0 = vld [vmem:[#allocation4 + $0x21] sm:$0x1]  ;;  %v7688_v60 = vld [vmem:[#allocation4 + $0x24] sm:$0x1] }
 0x338   : > { %2819 = vrot.lane.b32.xlu0 %v2781_v5, %s5752_s23  ;;  %2813 = vrot.lane.b32.xlu1 %v2778_v44, %s5752_s23  ;;  %v2782_v5 = vmul.f32 %v7048_v22, %v2774_v15  ;;  %v7602_v22 = vld [vmem:[#allocation4 + $0x18] sm:$0x1] }
 0x33a   : > { %v7578_v33 = vpop.permute.xlu0 %2443  ;;  %v7580_v18 = vpop.permute.xlu1 %2437 }
 0x33b   : > { %11237 = vst [vmem:[#allocation268_spill] sm:$0xff] %v7578_v33  ;;  %11238 = vst [vmem:[#allocation269_spill] sm:$0xff] %v7580_v18  ;;  %v7672_v18 = vld [vmem:[#allocation4 + $0x1f] sm:$0x1]  ;;  %v7674_v33 = vld [vmem:[#allocation4 + $0x22] sm:$0x1] }
 0x33c   : > { %2823 = vrot.lane.b32.xlu0 %v2783_v46, %s5752_s23  ;;  %2817 = vrot.lane.b32.xlu1 %v2780_v35, %s5752_s23  ;;  %v2784_v46 = vmul.f32 %v7133_v10, %v2774_v15  ;;  %v2789_v35 = vmul.f32 %v5533_v9, %v2774_v15 }
 0x33e   : > { %v7586_v51 = vpop.permute.xlu0 %2513  ;;  %v7588_v43 = vpop.permute.xlu1 %2441 }
 0x33f   : > { %11239 = vst [vmem:[#allocation270_spill] sm:$0xff] %v7586_v51  ;;  %11240 = vst [vmem:[#allocation271_spill] sm:$0xff] %v7588_v43  ;;  %v7714_v51 = vld [vmem:[#allocation4 + $0x25] sm:$0x1] }
 0x340   : > { %2827 = vrot.lane.b32.xlu0 %v2785_v21, %s5752_s23  ;;  %2821 = vrot.lane.b32.xlu1 %v2782_v5, %s5752_s23  ;;  %v7609_v5 = vstv %s5365_s10  ;;  %s8453_s10 = sld [smem:[#allocation10 + $0xf]] }
 0x341   : > { %v3068_v10 = vmul.f32 %v7609_v5, %v7602_v22 }
 0x342   : > { %v7595_v55 = vpop.permute.xlu0 %2517  ;;  %v7597_v44 = vpop.permute.xlu1 %2445 }
 0x343   : > { %11241 = vst [vmem:[#allocation272_spill] sm:$0xff] %v7595_v55  ;;  %11242 = vst [vmem:[#allocation273_spill] sm:$0xff] %v7597_v44  ;;  %v7632_v55 = vld [vmem:[#allocation4 + $0x1c] sm:$0x1] }
 0x344   : > { %2831 = vrot.lane.b32.xlu0 %v2787_v59, %s5752_s23  ;;  %2825 = vrot.lane.b32.xlu1 %v2784_v46, %s5752_s23  ;;  %v2788_v59 = vmul.f32 %v7274_v19, %v2774_v15  ;;  %v7616_v46 = vld [vmem:[#allocation4 + $0x1a] sm:$0x1] }
 0x345   : > { %v3070_v23 = vmul.f32 %v7609_v5, %v7616_v46 }
 0x346   : > { %v7604_v43 = vpop.permute.xlu0 %2521  ;;  %v7606_v21 = vpop.permute.xlu1 %2515 }
 0x347   : > { %11243 = vst [vmem:[#allocation274_spill] sm:$0xff] %v7604_v43  ;;  %11244 = vst [vmem:[#allocation275_spill] sm:$0xff] %v7606_v21  ;;  %v7626_v21 = vld [vmem:[#allocation4 + $0x19] sm:$0x1] }
 0x348   : > { %2835 = vrot.lane.b32.xlu0 %v2789_v35, %s5752_s23  ;;  %2829 = vrot.lane.b32.xlu1 %v2786_v49, %s5752_s23  ;;  %v5534_v35 = vld [vmem:[#allocation4 + $0x17] sm:$0x1] }
 0x349   : > { %v2790_v49 = vmul.f32 %v5534_v35, %v2774_v15  ;;  %v3072_v35 = vmul.f32 %v7609_v5, %v7632_v55 }
 0x34a   : > { %v7618_v9 = vpop.permute.xlu0 %2525  ;;  %v7620_v43 = vpop.permute.xlu1 %2519 }
 0x34b   : > { %11245 = vst [vmem:[#allocation276_spill] sm:$0xff] %v7618_v9  ;;  %11246 = vst [vmem:[#allocation277_spill] sm:$0xff] %v7620_v43  ;;  %v7660_v9 = vld [vmem:[#allocation4 + $0x20] sm:$0x1] }
 0x34c   : > { %3100 = vrot.lane.b32.xlu0 %v3068_v10, %s5749_s4  ;;  %2833 = vrot.lane.b32.xlu1 %v2788_v59, %s5752_s23  ;;  %v3069_v10 = vmul.f32 %v7609_v5, %v7626_v21  ;;  %v7638_v59 = vld [vmem:[#allocation4 + $0x1b] sm:$0x1] }
 0x34e   : > { %v7628_v44 = vpop.permute.xlu0 %2529  ;;  %v7630_v19 = vpop.permute.xlu1 %2523 }
 0x34f   : > { %11247 = vst [vmem:[#allocation278_spill] sm:$0xff] %v7628_v44  ;;  %11248 = vst [vmem:[#allocation279_spill] sm:$0xff] %v7630_v19  ;;  %v7646_v44 = vld [vmem:[#allocation4 + $0x1e] sm:$0x1] }
 0x350   : > { %3104 = vrot.lane.b32.xlu0 %v3070_v23, %s5749_s4  ;;  %2837 = vrot.lane.b32.xlu1 %v2790_v49, %s5752_s23  ;;  %v3071_v23 = vmul.f32 %v7609_v5, %v7638_v59 }
 0x352   : > { %v7640_v43 = vpop.permute.xlu0 %2533  ;;  %v7642_v15 = vpop.permute.xlu1 %2527 }
 0x353   : > { %11249 = vst [vmem:[#allocation280_spill] sm:$0xff] %v7640_v43  ;;  %11250 = vst [vmem:[#allocation281_spill] sm:$0xff] %v7642_v15  ;;  %v3074_v43 = vmul.f32 %v7609_v5, %v7646_v44  ;;  %v7658_v15 = vld [vmem:[#allocation4 + $0x1d] sm:$0x1] }
 0x354   : > { %3108 = vrot.lane.b32.xlu0 %v3072_v35, %s5749_s4  ;;  %3102 = vrot.lane.b32.xlu1 %v3069_v10, %s5749_s4 }
 0x356   : > { %v7652_v49 = vpop.permute.xlu0 %2537  ;;  %v7654_v19 = vpop.permute.xlu1 %2531 }
 0x357   : > { %11251 = vst [vmem:[#allocation282_spill] sm:$0xff] %v7652_v49  ;;  %11252 = vst [vmem:[#allocation283_spill] sm:$0xff] %v7654_v19  ;;  %v3076_v49 = vmul.f32 %v7609_v5, %v7660_v9  ;;  %v3073_v19 = vmul.f32 %v7609_v5, %v7658_v15 }
 0x358   : > { %3112 = vrot.lane.b32.xlu0 %v3074_v43, %s5749_s4  ;;  %3106 = vrot.lane.b32.xlu1 %v3071_v23, %s5749_s4 }
 0x35a   : > { %v7664_v35 = vpop.permute.xlu0 %2541  ;;  %v7666_v10 = vpop.permute.xlu1 %2535 }
 0x35b   : > { %11253 = vst [vmem:[#allocation284_spill] sm:$0xff] %v7664_v35  ;;  %11254 = vst [vmem:[#allocation285_spill] sm:$0xff] %v7666_v10  ;;  %v3078_v10 = vmul.f32 %v7609_v5, %v7674_v33  ;;  %v3075_v35 = vmul.f32 %v7609_v5, %v7672_v18 }
 0x35c   : > { %3116 = vrot.lane.b32.xlu0 %v3076_v49, %s5749_s4  ;;  %3110 = vrot.lane.b32.xlu1 %v3073_v19, %s5749_s4 }
 0x35e   : > { %v7678_v43 = vpop.permute.xlu0 %2611  ;;  %v7680_v23 = vpop.permute.xlu1 %2539 }
 0x35f   : > { %11255 = vst [vmem:[#allocation286_spill] sm:$0xff] %v7678_v43  ;;  %11256 = vst [vmem:[#allocation287_spill] sm:$0xff] %v7680_v23  ;;  %v3080_v23 = vmul.f32 %v7609_v5, %v7688_v60  ;;  %v3077_v43 = vmul.f32 %v7609_v5, %v7686_v0 }
 0x360   : > { %3120 = vrot.lane.b32.xlu0 %v3078_v10, %s5749_s4  ;;  %3114 = vrot.lane.b32.xlu1 %v3075_v35, %s5749_s4 }
 0x362   : > { %v7692_v19 = vpop.permute.xlu0 %2615  ;;  %v7694_v49 = vpop.permute.xlu1 %2543 }
 0x363   : > { %11257 = vst [vmem:[#allocation288_spill] sm:$0xff] %v7692_v19  ;;  %11258 = vst [vmem:[#allocation289_spill] sm:$0xff] %v7694_v49  ;;  %v3082_v49 = vmul.f32 %v7609_v5, %v7702_v58  ;;  %v3079_v19 = vmul.f32 %v7609_v5, %v7700_v11 }
 0x364   : > { %3124 = vrot.lane.b32.xlu0 %v3080_v23, %s5749_s4  ;;  %3118 = vrot.lane.b32.xlu1 %v3077_v43, %s5749_s4  ;;  %v3166_v43 = vmul.f32 %v7716_v56, %v7616_v46 }
 0x366   : > { %v7706_v10 = vpop.permute.xlu0 %2619  ;;  %v7708_v35 = vpop.permute.xlu1 %2613 }
 0x367   : > { %11259 = vst [vmem:[#allocation290_spill] sm:$0xff] %v7706_v10  ;;  %11260 = vst [vmem:[#allocation291_spill] sm:$0xff] %v7708_v35  ;;  %v3081_v10 = vmul.f32 %v7609_v5, %v7714_v51 }
 0x368   : > { %3128 = vrot.lane.b32.xlu0 %v3082_v49, %s5749_s4  ;;  %3122 = vrot.lane.b32.xlu1 %v3079_v19, %s5749_s4  ;;  %v3168_v19 = vmul.f32 %v7716_v56, %v7632_v55 }
 0x36a   : > { %v7722_v23 = vpop.permute.xlu0 %2623  ;;  %v7724_v35 = vpop.permute.xlu1 %2617 }
 0x36b   : > { %11261 = vst [vmem:[#allocation292_spill] sm:$0xff] %v7722_v23  ;;  %11262 = vst [vmem:[#allocation293_spill] sm:$0xff] %v7724_v35  ;;  %v3083_v23 = vmul.f32 %v7609_v5, %v7728_v38  ;;  %v3167_v35 = vmul.f32 %v7716_v56, %v7638_v59 }
 0x36c   : > { %3198 = vrot.lane.b32.xlu0 %v3166_v43, %s5749_s4  ;;  %3126 = vrot.lane.b32.xlu1 %v3081_v10, %s5749_s4 }
 0x36e   : > { %v7732_v30 = vpop.permute.xlu0 %2627  ;;  %v7734_v49 = vpop.permute.xlu1 %2621 }
 0x36f   : > { %11263 = vst [vmem:[#allocation294_spill] sm:$0xff] %v7732_v30  ;;  %11264 = vst [vmem:[#allocation295_spill] sm:$0xff] %v7734_v49  ;;  %v3170_v49 = vmul.f32 %v7716_v56, %v7646_v44 }
 0x370   : > { %3202 = vrot.lane.b32.xlu0 %v3168_v19, %s5749_s4  ;;  %3130 = vrot.lane.b32.xlu1 %v3083_v23, %s5749_s4  ;;  %v3172_v23 = vmul.f32 %v7716_v56, %v7660_v9  ;;  %v3169_v19 = vmul.f32 %v7716_v56, %v7658_v15 }
 0x372   : > { %v7744_v43 = vpop.permute.xlu0 %2631  ;;  %v7746_v10 = vpop.permute.xlu1 %2625 }
 0x373   : > { %11265 = vst [vmem:[#allocation296_spill] sm:$0xff] %v7744_v43  ;;  %11266 = vst [vmem:[#allocation297_spill] sm:$0xff] %v7746_v10 }
 0x374   : > { %3206 = vrot.lane.b32.xlu0 %v3170_v49, %s5749_s4  ;;  %3200 = vrot.lane.b32.xlu1 %v3167_v35, %s5749_s4  ;;  %v3174_v35 = vmul.f32 %v7716_v56, %v7674_v33  ;;  %v3171_v49 = vmul.f32 %v7716_v56, %v7672_v18 }
 0x376   : > { %v7752_v30 = vpop.permute.xlu0 %2635  ;;  %v7754_v5 = vpop.permute.xlu1 %2629 }
 0x377   : > { %11267 = vst [vmem:[#allocation298_spill] sm:$0xff] %v7752_v30  ;;  %11268 = vst [vmem:[#allocation299_spill] sm:$0xff] %v7754_v5 }
 0x378   : > { %3210 = vrot.lane.b32.xlu0 %v3172_v23, %s5749_s4  ;;  %3204 = vrot.lane.b32.xlu1 %v3169_v19, %s5749_s4  ;;  %v3176_v23 = vmul.f32 %v7716_v56, %v7688_v60  ;;  %v3173_v19 = vmul.f32 %v7716_v56, %v7686_v0 }
 0x37a   : > { %v7762_v10 = vpop.permute.xlu0 %2639  ;;  %v7764_v43 = vpop.permute.xlu1 %2633 }
 0x37b   : > { %11269 = vst [vmem:[#allocation300_spill] sm:$0xff] %v7762_v10  ;;  %11270 = vst [vmem:[#allocation301_spill] sm:$0xff] %v7764_v43  ;;  %v7790_v10 = vld [vmem:[#allocation4 + $0x28] sm:$0x1] }
 0x37c   : > { %3214 = vrot.lane.b32.xlu0 %v3174_v35, %s5749_s4  ;;  %3208 = vrot.lane.b32.xlu1 %v3171_v49, %s5749_s4  ;;  %v3178_v49 = vmul.f32 %v7716_v56, %v7702_v58 }
 0x37e   : > { %v7772_v5 = vpop.permute.xlu0 %2709  ;;  %v7774_v30 = vpop.permute.xlu1 %2637 }
 0x37f   : > { %11271 = vst [vmem:[#allocation302_spill] sm:$0xff] %v7772_v5  ;;  %11272 = vst [vmem:[#allocation303_spill] sm:$0xff] %v7774_v30  ;;  %v3175_v30 = vmul.f32 %v7716_v56, %v7700_v11 }
 0x380   : > { %3218 = vrot.lane.b32.xlu0 %v3176_v23, %s5749_s4  ;;  %3212 = vrot.lane.b32.xlu1 %v3173_v19, %s5749_s4  ;;  %v3180_v19 = vmul.f32 %v7716_v56, %v7790_v10 }
 0x382   : > { %v7782_v43 = vpop.permute.xlu0 %2713  ;;  %v7784_v35 = vpop.permute.xlu1 %2641 }
 0x383   : > { %11273 = vst [vmem:[#allocation304_spill] sm:$0xff] %v7782_v43  ;;  %11274 = vst [vmem:[#allocation305_spill] sm:$0xff] %v7784_v35  ;;  %v3177_v35 = vmul.f32 %v7716_v56, %v7714_v51  ;;  %v7802_v43 = vstv %s5367_s11  ;;  %s8472_s11 = sld [smem:[#allocation10 + $0x14]] }
 0x384   : > { %3222 = vrot.lane.b32.xlu0 %v3178_v49, %s5749_s4  ;;  %3216 = vrot.lane.b32.xlu1 %v3175_v30, %s5749_s4  ;;  %v3264_v30 = vmul.f32 %v7802_v43, %v7632_v55 }
 0x386   : > { %v7794_v5 = vpop.permute.xlu0 %2717  ;;  %v7796_v23 = vpop.permute.xlu1 %2711 }
 0x387   : > { %11275 = vst [vmem:[#allocation306_spill] sm:$0xff] %v7794_v5  ;;  %11276 = vst [vmem:[#allocation307_spill] sm:$0xff] %v7796_v23  ;;  %v3179_v23 = vmul.f32 %v7716_v56, %v7728_v38  ;;  %v7814_v5 = vld [vmem:[#allocation4 + $0x29] sm:$0x1] }
 0x388   : > { %3226 = vrot.lane.b32.xlu0 %v3180_v19, %s5749_s4  ;;  %3220 = vrot.lane.b32.xlu1 %v3177_v35, %s5749_s4  ;;  %v3266_v35 = vmul.f32 %v7802_v43, %v7646_v44 }
 0x38a   : > { %v7806_v36 = vpop.permute.xlu0 %2721  ;;  %v7808_v49 = vpop.permute.xlu1 %2715 }
 0x38b   : > { %11277 = vst [vmem:[#allocation308_spill] sm:$0xff] %v7806_v36  ;;  %11278 = vst [vmem:[#allocation309_spill] sm:$0xff] %v7808_v49  ;;  %v3181_v49 = vmul.f32 %v7716_v56, %v7814_v5 }
 0x38c   : > { %3296 = vrot.lane.b32.xlu0 %v3264_v30, %s5749_s4  ;;  %3224 = vrot.lane.b32.xlu1 %v3179_v23, %s5749_s4  ;;  %v3268_v23 = vmul.f32 %v7802_v43, %v7660_v9  ;;  %v3265_v30 = vmul.f32 %v7802_v43, %v7658_v15 }
 0x38e   : > { %v7818_v47 = vpop.permute.xlu0 %2725  ;;  %v7820_v19 = vpop.permute.xlu1 %2719 }
 0x38f   : > { %11279 = vst [vmem:[#allocation310_spill] sm:$0xff] %v7818_v47  ;;  %11280 = vst [vmem:[#allocation311_spill] sm:$0xff] %v7820_v19 }
 0x390   : > { %3300 = vrot.lane.b32.xlu0 %v3266_v35, %s5749_s4  ;;  %3228 = vrot.lane.b32.xlu1 %v3181_v49, %s5749_s4  ;;  %v3270_v49 = vmul.f32 %v7802_v43, %v7674_v33  ;;  %v3267_v35 = vmul.f32 %v7802_v43, %v7672_v18 }
 0x392   : > { %v7828_v36 = vpop.permute.xlu0 %2729  ;;  %v7830_v63 = vpop.permute.xlu1 %2723 }
 0x393   : > { %11281 = vst [vmem:[#allocation312_spill] sm:$0xff] %v7828_v36  ;;  %11282 = vst [vmem:[#allocation313_spill] sm:$0xff] %v7830_v63 }
 0x394   : > { %3304 = vrot.lane.b32.xlu0 %v3268_v23, %s5749_s4  ;;  %3298 = vrot.lane.b32.xlu1 %v3265_v30, %s5749_s4  ;;  %v3272_v23 = vmul.f32 %v7802_v43, %v7688_v60  ;;  %v3269_v30 = vmul.f32 %v7802_v43, %v7686_v0 }
 0x396   : > { %v7838_v19 = vpop.permute.xlu0 %2733  ;;  %v7840_v56 = vpop.permute.xlu1 %2727 }
 0x397   : > { %11283 = vst [vmem:[#allocation314_spill] sm:$0xff] %v7838_v19  ;;  %11284 = vst [vmem:[#allocation315_spill] sm:$0xff] %v7840_v56 }
 0x398   : > { %3308 = vrot.lane.b32.xlu0 %v3270_v49, %s5749_s4  ;;  %3302 = vrot.lane.b32.xlu1 %v3267_v35, %s5749_s4  ;;  %v3274_v49 = vmul.f32 %v7802_v43, %v7702_v58  ;;  %v3271_v35 = vmul.f32 %v7802_v43, %v7700_v11 }
 0x39a   : > { %v7848_v63 = vpop.permute.xlu0 %2737  ;;  %v7850_v36 = vpop.permute.xlu1 %2731 }
 0x39b   : > { %11285 = vst [vmem:[#allocation316_spill] sm:$0xff] %v7848_v63  ;;  %11286 = vst [vmem:[#allocation317_spill] sm:$0xff] %v7850_v36  ;;  %v7876_v63 = vld [vmem:[#allocation4 + $0x2a] sm:$0x1] }
 0x39c   : > { %3312 = vrot.lane.b32.xlu0 %v3272_v23, %s5749_s4  ;;  %3306 = vrot.lane.b32.xlu1 %v3269_v30, %s5749_s4  ;;  %v3276_v30 = vmul.f32 %v7802_v43, %v7790_v10 }
 0x39e   : > { %v7858_v56 = vpop.permute.xlu0 %2807  ;;  %v7860_v19 = vpop.permute.xlu1 %2735 }
 0x39f   : > { %11287 = vst [vmem:[#allocation318_spill] sm:$0xff] %v7858_v56  ;;  %11288 = vst [vmem:[#allocation319_spill] sm:$0xff] %v7860_v19  ;;  %v3273_v19 = vmul.f32 %v7802_v43, %v7714_v51 }
 0x3a0   : > { %3316 = vrot.lane.b32.xlu0 %v3274_v49, %s5749_s4  ;;  %3310 = vrot.lane.b32.xlu1 %v3271_v35, %s5749_s4  ;;  %v3278_v35 = vmul.f32 %v7802_v43, %v7876_v63 }
 0x3a2   : > { %v7868_v36 = vpop.permute.xlu0 %2811  ;;  %v7870_v23 = vpop.permute.xlu1 %2739 }
 0x3a3   : > { %11289 = vst [vmem:[#allocation320_spill] sm:$0xff] %v7868_v36  ;;  %11290 = vst [vmem:[#allocation321_spill] sm:$0xff] %v7870_v23  ;;  %v3275_v23 = vmul.f32 %v7802_v43, %v7728_v38  ;;  %v3361_v36 = vstv %s5368_s21  ;;  %s8740_s21 = sld [smem:[#allocation10 + $0x26]] }
 0x3a4   : > { %3320 = vrot.lane.b32.xlu0 %v3276_v30, %s5749_s4  ;;  %3314 = vrot.lane.b32.xlu1 %v3273_v19, %s5749_s4  ;;  %v3362_v19 = vmul.f32 %v3361_v36, %v7646_v44 }
 0x3a6   : > { %v7880_v47 = vpop.permute.xlu0 %2815  ;;  %v7882_v49 = vpop.permute.xlu1 %2809 }
 0x3a7   : > { %11291 = vst [vmem:[#allocation322_spill] sm:$0xff] %v7880_v47  ;;  %11292 = vst [vmem:[#allocation323_spill] sm:$0xff] %v7882_v49  ;;  %v3277_v49 = vmul.f32 %v7802_v43, %v7814_v5  ;;  %v7897_v47 = vld [vmem:[#allocation4 + $0x2b] sm:$0x1] }
 0x3a8   : > { %3324 = vrot.lane.b32.xlu0 %v3278_v35, %s5749_s4  ;;  %3318 = vrot.lane.b32.xlu1 %v3275_v23, %s5749_s4  ;;  %v3364_v23 = vmul.f32 %v3361_v36, %v7660_v9 }
 0x3aa   : > { %v7890_v56 = vpop.permute.xlu0 %2819  ;;  %v7892_v30 = vpop.permute.xlu1 %2813 }
 0x3ab   : > { %11293 = vst [vmem:[#allocation324_spill] sm:$0xff] %v7890_v56  ;;  %11294 = vst [vmem:[#allocation325_spill] sm:$0xff] %v7892_v30  ;;  %v3279_v30 = vmul.f32 %v7802_v43, %v7897_v47  ;;  %v3368_v43 = vmul.f32 %v3361_v36, %v7688_v60 }
 0x3ac   : > { %3394 = vrot.lane.b32.xlu0 %v3362_v19, %s5749_s4  ;;  %3322 = vrot.lane.b32.xlu1 %v3277_v49, %s5749_s4  ;;  %v3366_v19 = vmul.f32 %v3361_v36, %v7674_v33  ;;  %v3363_v49 = vmul.f32 %v3361_v36, %v7672_v18 }
 0x3ae   : > { %v7901_v4 = vpop.permute.xlu0 %2823  ;;  %v7903_v35 = vpop.permute.xlu1 %2817 }
 0x3af   : > { %11295 = vst [vmem:[#allocation326_spill] sm:$0xff] %v7901_v4  ;;  %11296 = vst [vmem:[#allocation327_spill] sm:$0xff] %v7903_v35 }
 0x3b0   : > { %3398 = vrot.lane.b32.xlu0 %v3364_v23, %s5749_s4  ;;  %3326 = vrot.lane.b32.xlu1 %v3279_v30, %s5749_s4  ;;  %v3365_v30 = vmul.f32 %v3361_v36, %v7686_v0 }
 0x3b2   : > { %v7910_v56 = vpop.permute.xlu0 %2827  ;;  %v7912_v42 = vpop.permute.xlu1 %2821 }
 0x3b3   : > { %11297 = vst [vmem:[#allocation328_spill] sm:$0xff] %v7910_v56  ;;  %11298 = vst [vmem:[#allocation329_spill] sm:$0xff] %v7912_v42 }
 0x3b4   : > { %3402 = vrot.lane.b32.xlu0 %v3366_v19, %s5749_s4  ;;  %3396 = vrot.lane.b32.xlu1 %v3363_v49, %s5749_s4  ;;  %v3370_v19 = vmul.f32 %v3361_v36, %v7702_v58  ;;  %v3367_v49 = vmul.f32 %v3361_v36, %v7700_v11 }
 0x3b6   : > { %v7918_v35 = vpop.permute.xlu0 %2831  ;;  %v7920_v4 = vpop.permute.xlu1 %2825 }
 0x3b7   : > { %11299 = vst [vmem:[#allocation330_spill] sm:$0xff] %v7918_v35  ;;  %11300 = vst [vmem:[#allocation331_spill] sm:$0xff] %v7920_v4 }
 0x3b8   : > { %3406 = vrot.lane.b32.xlu0 %v3368_v43, %s5749_s4  ;;  %3400 = vrot.lane.b32.xlu1 %v3365_v30, %s5749_s4  ;;  %v3372_v43 = vmul.f32 %v3361_v36, %v7790_v10  ;;  %v3369_v30 = vmul.f32 %v3361_v36, %v7714_v51 }
 0x3ba   : > { %v7926_v23 = vpop.permute.xlu0 %2835  ;;  %v7928_v42 = vpop.permute.xlu1 %2829 }
 0x3bb   : > { %11301 = vst [vmem:[#allocation332_spill] sm:$0xff] %v7926_v23  ;;  %11302 = vst [vmem:[#allocation333_spill] sm:$0xff] %v7928_v42 }
 0x3bc   : > { %3410 = vrot.lane.b32.xlu0 %v3370_v19, %s5749_s4  ;;  %3404 = vrot.lane.b32.xlu1 %v3367_v49, %s5749_s4  ;;  %v3374_v19 = vmul.f32 %v3361_v36, %v7876_v63  ;;  %v3371_v49 = vmul.f32 %v3361_v36, %v7728_v38 }
 0x3be   : > { %v7934_v4 = vpop.permute.xlu0 %3100  ;;  %v7936_v35 = vpop.permute.xlu1 %2833 }
 0x3bf   : > { %11303 = vst [vmem:[#allocation334_spill] sm:$0xff] %v7934_v4  ;;  %11304 = vst [vmem:[#allocation335_spill] sm:$0xff] %v7936_v35  ;;  %v7948_v4 = vld [vmem:[#allocation4 + $0x2c] sm:$0x1] }
 0x3c0   : > { %3414 = vrot.lane.b32.xlu0 %v3372_v43, %s5749_s4  ;;  %3408 = vrot.lane.b32.xlu1 %v3369_v30, %s5749_s4  ;;  %v3376_v35 = vmul.f32 %v3361_v36, %v7948_v4  ;;  %v3373_v30 = vmul.f32 %v3361_v36, %v7814_v5 }
 0x3c2   : > { %v7942_v42 = vpop.permute.xlu0 %3104  ;;  %v7944_v23 = vpop.permute.xlu1 %2837 }
 0x3c3   : > { %11305 = vst [vmem:[#allocation336_spill] sm:$0xff] %v7942_v42  ;;  %11306 = vst [vmem:[#allocation337_spill] sm:$0xff] %v7944_v23  ;;  %v7958_v42 = vstv %s5369_s2  ;;  %s8830_s2 = sld [smem:[#allocation10 + $0x1e]] }
 0x3c4   : > { %3418 = vrot.lane.b32.xlu0 %v3374_v19, %s5749_s4  ;;  %3412 = vrot.lane.b32.xlu1 %v3371_v49, %s5749_s4  ;;  %v3460_v19 = vmul.f32 %v7958_v42, %v7660_v9  ;;  %v3375_v49 = vmul.f32 %v3361_v36, %v7897_v47 }
 0x3c6   : > { %v7953_v56 = vpop.permute.xlu0 %3108  ;;  %v7955_v43 = vpop.permute.xlu1 %3102 }
 0x3c7   : > { %11307 = vst [vmem:[#allocation338_spill] sm:$0xff] %v7953_v56  ;;  %11308 = vst [vmem:[#allocation339_spill] sm:$0xff] %v7955_v43  ;;  %v7969_v56 = vld [vmem:[#allocation4 + $0x2d] sm:$0x1] }
 0x3c8   : > { %3422 = vrot.lane.b32.xlu0 %v3376_v35, %s5749_s4  ;;  %3416 = vrot.lane.b32.xlu1 %v3373_v30, %s5749_s4  ;;  %v3377_v43 = vmul.f32 %v3361_v36, %v7969_v56  ;;  %v3461_v36 = vmul.f32 %v7958_v42, %v7686_v0 }
 0x3ca   : > { %v7962_v23 = vpop.permute.xlu0 %3112  ;;  %v7964_v20 = vpop.permute.xlu1 %3106 }
 0x3cb   : > { %11309 = vst [vmem:[#allocation340_spill] sm:$0xff] %v7962_v23  ;;  %11310 = vst [vmem:[#allocation341_spill] sm:$0xff] %v7964_v20  ;;  %v3462_v20 = vmul.f32 %v7958_v42, %v7674_v33 }
 0x3cc   : > { %3492 = vrot.lane.b32.xlu0 %v3460_v19, %s5749_s4  ;;  %3420 = vrot.lane.b32.xlu1 %v3375_v49, %s5749_s4  ;;  %v3464_v19 = vmul.f32 %v7958_v42, %v7688_v60 }
 0x3ce   : > { %v7974_v35 = vpop.permute.xlu0 %3116  ;;  %v7976_v30 = vpop.permute.xlu1 %3110 }
 0x3cf   : > { %11311 = vst [vmem:[#allocation342_spill] sm:$0xff] %v7974_v35  ;;  %11312 = vst [vmem:[#allocation343_spill] sm:$0xff] %v7976_v30 }
 0x3d0   : > { %3496 = vrot.lane.b32.xlu0 %v3462_v20, %s5749_s4  ;;  %3424 = vrot.lane.b32.xlu1 %v3377_v43, %s5749_s4  ;;  %v3466_v20 = vmul.f32 %v7958_v42, %v7702_v58  ;;  %v3463_v43 = vmul.f32 %v7958_v42, %v7700_v11 }
 0x3d2   : > { %v7982_v23 = vpop.permute.xlu0 %3120  ;;  %v7984_v27 = vpop.permute.xlu1 %3114 }
 0x3d3   : > { %11313 = vst [vmem:[#allocation344_spill] sm:$0xff] %v7982_v23  ;;  %11314 = vst [vmem:[#allocation345_spill] sm:$0xff] %v7984_v27 }
 0x3d4   : > { %3500 = vrot.lane.b32.xlu0 %v3464_v19, %s5749_s4  ;;  %3494 = vrot.lane.b32.xlu1 %v3461_v36, %s5749_s4  ;;  %v3468_v19 = vmul.f32 %v7958_v42, %v7790_v10  ;;  %v3465_v36 = vmul.f32 %v7958_v42, %v7714_v51 }
 0x3d6   : > { %v7992_v49 = vpop.permute.xlu0 %3124  ;;  %v7994_v30 = vpop.permute.xlu1 %3118 }
 0x3d7   : > { %11315 = vst [vmem:[#allocation346_spill] sm:$0xff] %v7992_v49  ;;  %11316 = vst [vmem:[#allocation347_spill] sm:$0xff] %v7994_v30 }
 0x3d8   : > { %3504 = vrot.lane.b32.xlu0 %v3466_v20, %s5749_s4  ;;  %3498 = vrot.lane.b32.xlu1 %v3463_v43, %s5749_s4  ;;  %v3470_v20 = vmul.f32 %v7958_v42, %v7876_v63  ;;  %v3467_v43 = vmul.f32 %v7958_v42, %v7728_v38 }
 0x3da   : > { %v8002_v27 = vpop.permute.xlu0 %3128  ;;  %v8004_v23 = vpop.permute.xlu1 %3122 }
 0x3db   : > { %11317 = vst [vmem:[#allocation348_spill] sm:$0xff] %v8002_v27  ;;  %11318 = vst [vmem:[#allocation349_spill] sm:$0xff] %v8004_v23 }
 0x3dc   : > { %3508 = vrot.lane.b32.xlu0 %v3468_v19, %s5749_s4  ;;  %3502 = vrot.lane.b32.xlu1 %v3465_v36, %s5749_s4  ;;  %v3472_v19 = vmul.f32 %v7958_v42, %v7948_v4 }
 0x3de   : > { %v8012_v30 = vpop.permute.xlu0 %3198  ;;  %v8014_v49 = vpop.permute.xlu1 %3126 }
 0x3df   : > { %11319 = vst [vmem:[#allocation350_spill] sm:$0xff] %v8012_v30  ;;  %11320 = vst [vmem:[#allocation351_spill] sm:$0xff] %v8014_v49  ;;  %v3469_v49 = vmul.f32 %v7958_v42, %v7814_v5  ;;  %v8030_v30 = vld [vmem:[#allocation4 + $0x2e] sm:$0x1] }
 0x3e0   : > { %3512 = vrot.lane.b32.xlu0 %v3470_v20, %s5749_s4  ;;  %3506 = vrot.lane.b32.xlu1 %v3467_v43, %s5749_s4  ;;  %v3474_v20 = vmul.f32 %v7958_v42, %v8030_v30 }
 0x3e2   : > { %v8024_v23 = vpop.permute.xlu0 %3202  ;;  %v8026_v36 = vpop.permute.xlu1 %3130 }
 0x3e3   : > { %11321 = vst [vmem:[#allocation352_spill] sm:$0xff] %v8024_v23  ;;  %11322 = vst [vmem:[#allocation353_spill] sm:$0xff] %v8026_v36  ;;  %v3471_v23 = vmul.f32 %v7958_v42, %v7897_v47  ;;  %v8042_v36 = vstv %s5370_s20  ;;  %s8834_s20 = sld [smem:[#allocation10 + $0x19]] }
 0x3e4   : > { %3516 = vrot.lane.b32.xlu0 %v3472_v19, %s5749_s4  ;;  %3510 = vrot.lane.b32.xlu1 %v3469_v49, %s5749_s4  ;;  %v3558_v19 = vmul.f32 %v8042_v36, %v7602_v22  ;;  %v3473_v49 = vmul.f32 %v7958_v42, %v7969_v56 }
 0x3e6   : > { %v8036_v43 = vpop.permute.xlu0 %3206  ;;  %v8038_v27 = vpop.permute.xlu1 %3200 }
 0x3e7   : > { %11323 = vst [vmem:[#allocation354_spill] sm:$0xff] %v8036_v43  ;;  %11324 = vst [vmem:[#allocation355_spill] sm:$0xff] %v8038_v27  ;;  %v8054_v27 = vld [vmem:[#allocation4 + $0x2f] sm:$0x1] }
 0x3e8   : > { %3520 = vrot.lane.b32.xlu0 %v3474_v20, %s5749_s4  ;;  %3514 = vrot.lane.b32.xlu1 %v3471_v23, %s5749_s4  ;;  %v3560_v20 = vmul.f32 %v8042_v36, %v7616_v46  ;;  %v3475_v23 = vmul.f32 %v7958_v42, %v8054_v27  ;;  %v3561_v42 = vmul.f32 %v8042_v36, %v7638_v59 }
 0x3ea   : > { %v8050_v35 = vpop.permute.xlu0 %3210  ;;  %v8052_v43 = vpop.permute.xlu1 %3204 }
 0x3eb   : > { %11325 = vst [vmem:[#allocation356_spill] sm:$0xff] %v8050_v35  ;;  %11326 = vst [vmem:[#allocation357_spill] sm:$0xff] %v8052_v43  ;;  %v3559_v43 = vmul.f32 %v8042_v36, %v7626_v21  ;;  %v3562_v35 = vmul.f32 %v8042_v36, %v7632_v55  ;;  %v3564_v21 = vmul.f32 %v8042_v36, %v7646_v44 }
 0x3ec   : > { %3590 = vrot.lane.b32.xlu0 %v3558_v19, %s5750_s29  ;;  %3518 = vrot.lane.b32.xlu1 %v3473_v49, %s5749_s4 }
 0x3ee   : > { %v8062_v22 = vpop.permute.xlu0 %3214  ;;  %v8064_v14 = vpop.permute.xlu1 %3208 }
 0x3ef   : > { %11327 = vst [vmem:[#allocation358_spill] sm:$0xff] %v8062_v22  ;;  %11328 = vst [vmem:[#allocation359_spill] sm:$0xff] %v8064_v14 }
 0x3f0   : > { %3594 = vrot.lane.b32.xlu0 %v3560_v20, %s5750_s29  ;;  %3522 = vrot.lane.b32.xlu1 %v3475_v23, %s5749_s4  ;;  %s5371_s4 = sld [smem:[#allocation10 + $0x20]] }
 0x3f2   : > { %v8070_v19 = vpop.permute.xlu0 %3218  ;;  %v8072_v49 = vpop.permute.xlu1 %3212 }
 0x3f3   : > { %11329 = vst [vmem:[#allocation360_spill] sm:$0xff] %v8070_v19  ;;  %11330 = vst [vmem:[#allocation361_spill] sm:$0xff] %v8072_v49 }
 0x3f4   : > { %3598 = vrot.lane.b32.xlu0 %v3562_v35, %s5750_s29  ;;  %3592 = vrot.lane.b32.xlu1 %v3559_v43, %s5750_s29  ;;  %v3566_v35 = vmul.f32 %v8042_v36, %v7660_v9  ;;  %v3563_v43 = vmul.f32 %v8042_v36, %v7658_v15 }
 0x3f6   : > { %v8080_v20 = vpop.permute.xlu0 %3222  ;;  %v8082_v23 = vpop.permute.xlu1 %3216 }
 0x3f7   : > { %11331 = vst [vmem:[#allocation362_spill] sm:$0xff] %v8080_v20  ;;  %11332 = vst [vmem:[#allocation363_spill] sm:$0xff] %v8082_v23 }
 0x3f8   : > { %3602 = vrot.lane.b32.xlu0 %v3564_v21, %s5750_s29  ;;  %3596 = vrot.lane.b32.xlu1 %v3561_v42, %s5750_s29  ;;  %v3568_v42 = vmul.f32 %v8042_v36, %v7674_v33  ;;  %v3565_v21 = vmul.f32 %v8042_v36, %v7672_v18 }
 0x3fa   : > { %v8088_v49 = vpop.permute.xlu0 %3226  ;;  %v8090_v19 = vpop.permute.xlu1 %3220 }
 0x3fb   : > { %11333 = vst [vmem:[#allocation364_spill] sm:$0xff] %v8088_v49  ;;  %11334 = vst [vmem:[#allocation365_spill] sm:$0xff] %v8090_v19 }
 0x3fc   : > { %3606 = vrot.lane.b32.xlu0 %v3566_v35, %s5750_s29  ;;  %3600 = vrot.lane.b32.xlu1 %v3563_v43, %s5750_s29  ;;  %v3570_v43 = vmul.f32 %v8042_v36, %v7688_v60 }
 0x3fe   : > { %v8098_v23 = vpop.permute.xlu0 %3296  ;;  %v8100_v20 = vpop.permute.xlu1 %3224 }
 0x3ff   : > { %11335 = vst [vmem:[#allocation366_spill] sm:$0xff] %v8098_v23  ;;  %11336 = vst [vmem:[#allocation367_spill] sm:$0xff] %v8100_v20  ;;  %v3567_v20 = vmul.f32 %v8042_v36, %v7686_v0 }
 0x400   : > { %3610 = vrot.lane.b32.xlu0 %v3568_v42, %s5750_s29  ;;  %3604 = vrot.lane.b32.xlu1 %v3565_v21, %s5750_s29  ;;  %v3572_v42 = vmul.f32 %v8042_v36, %v7702_v58  ;;  %v3569_v21 = vmul.f32 %v8042_v36, %v7700_v11 }
 0x402   : > { %v8108_v19 = vpop.permute.xlu0 %3300  ;;  %v8110_v35 = vpop.permute.xlu1 %3228 }
 0x403   : > { %11337 = vst [vmem:[#allocation368_spill] sm:$0xff] %v8108_v19  ;;  %11338 = vst [vmem:[#allocation369_spill] sm:$0xff] %v8110_v35  ;;  %v3655_v35 = vstv %s5371_s4  ;;  %s8850_s4 = sld [smem:[#allocation10 + $0x23]] }
 0x404   : > { %3614 = vrot.lane.b32.xlu0 %v3570_v43, %s5750_s29  ;;  %3608 = vrot.lane.b32.xlu1 %v3567_v20, %s5750_s29  ;;  %v3656_v19 = vmul.f32 %v3655_v35, %v7616_v46  ;;  %v3573_v46 = vmul.f32 %v8042_v36, %v7728_v38 }
 0x406   : > { %v8118_v23 = vpop.permute.xlu0 %3304  ;;  %v8120_v49 = vpop.permute.xlu1 %3298 }
 0x407   : > { %11339 = vst [vmem:[#allocation370_spill] sm:$0xff] %v8118_v23  ;;  %11340 = vst [vmem:[#allocation371_spill] sm:$0xff] %v8120_v49  ;;  %v3571_v49 = vmul.f32 %v8042_v36, %v7714_v51  ;;  %v3662_v36 = vmul.f32 %v3655_v35, %v7660_v9 }
 0x408   : > { %3618 = vrot.lane.b32.xlu0 %v3572_v42, %s5750_s29  ;;  %3612 = vrot.lane.b32.xlu1 %v3569_v21, %s5750_s29  ;;  %v3658_v42 = vmul.f32 %v3655_v35, %v7632_v55  ;;  %v3657_v21 = vmul.f32 %v3655_v35, %v7638_v59 }
 0x40a   : > { %v8129_v43 = vpop.permute.xlu0 %3308  ;;  %v8131_v20 = vpop.permute.xlu1 %3302 }
 0x40b   : > { %11341 = vst [vmem:[#allocation372_spill] sm:$0xff] %v8129_v43  ;;  %11342 = vst [vmem:[#allocation373_spill] sm:$0xff] %v8131_v20 }
 0x40c   : > { %3688 = vrot.lane.b32.xlu0 %v3656_v19, %s5750_s29  ;;  %3616 = vrot.lane.b32.xlu1 %v3571_v49, %s5750_s29  ;;  %v3660_v49 = vmul.f32 %v3655_v35, %v7646_v44 }
 0x40e   : > { %v8137_v23 = vpop.permute.xlu0 %3312  ;;  %v8139_v14 = vpop.permute.xlu1 %3306 }
 0x40f   : > { %11343 = vst [vmem:[#allocation374_spill] sm:$0xff] %v8137_v23  ;;  %11344 = vst [vmem:[#allocation375_spill] sm:$0xff] %v8139_v14 }
 0x410   : > { %3692 = vrot.lane.b32.xlu0 %v3658_v42, %s5750_s29  ;;  %3620 = vrot.lane.b32.xlu1 %v3573_v46, %s5750_s29  ;;  %v3659_v42 = vmul.f32 %v3655_v35, %v7658_v15 }
 0x412   : > { %v8147_v20 = vpop.permute.xlu0 %3316  ;;  %v8149_v19 = vpop.permute.xlu1 %3310 }
 0x413   : > { %11345 = vst [vmem:[#allocation376_spill] sm:$0xff] %v8147_v20  ;;  %11346 = vst [vmem:[#allocation377_spill] sm:$0xff] %v8149_v19  ;;  %v3753_v19 = vstv %s5372_s22  ;;  %s8855_s22 = sld [smem:[#allocation10 + $0x28]] }
 0x414   : > { %3696 = vrot.lane.b32.xlu0 %v3660_v49, %s5750_s29  ;;  %3690 = vrot.lane.b32.xlu1 %v3657_v21, %s5750_s29  ;;  %v3664_v49 = vmul.f32 %v3655_v35, %v7674_v33  ;;  %v3661_v21 = vmul.f32 %v3655_v35, %v7672_v18 }
 0x416   : > { %v8154_v14 = vpop.permute.xlu0 %3320  ;;  %v8156_v23 = vpop.permute.xlu1 %3314 }
 0x417   : > { %11347 = vst [vmem:[#allocation378_spill] sm:$0xff] %v8154_v14  ;;  %11348 = vst [vmem:[#allocation379_spill] sm:$0xff] %v8156_v23 }
 0x418   : > { %3700 = vrot.lane.b32.xlu0 %v3662_v36, %s5750_s29  ;;  %3694 = vrot.lane.b32.xlu1 %v3659_v42, %s5750_s29  ;;  %v3666_v36 = vmul.f32 %v3655_v35, %v7688_v60  ;;  %v3663_v42 = vmul.f32 %v3655_v35, %v7686_v0 }
 0x41a   : > { %v8162_v59 = vpop.permute.xlu0 %3324  ;;  %v8164_v46 = vpop.permute.xlu1 %3318 }
 0x41b   : > { %11349 = vst [vmem:[#allocation380_spill] sm:$0xff] %v8162_v59  ;;  %11350 = vst [vmem:[#allocation381_spill] sm:$0xff] %v8164_v46 }
 0x41c   : > { %3704 = vrot.lane.b32.xlu0 %v3664_v49, %s5750_s29  ;;  %3698 = vrot.lane.b32.xlu1 %v3661_v21, %s5750_s29  ;;  %v3668_v49 = vmul.f32 %v3655_v35, %v7702_v58  ;;  %v3665_v21 = vmul.f32 %v3655_v35, %v7700_v11 }
 0x41e   : > { %v8170_v23 = vpop.permute.xlu0 %3394  ;;  %v8172_v14 = vpop.permute.xlu1 %3322 }
 0x41f   : > { %11351 = vst [vmem:[#allocation382_spill] sm:$0xff] %v8170_v23  ;;  %11352 = vst [vmem:[#allocation383_spill] sm:$0xff] %v8172_v14 }
 0x420   : > { %3708 = vrot.lane.b32.xlu0 %v3666_v36, %s5750_s29  ;;  %3702 = vrot.lane.b32.xlu1 %v3663_v42, %s5750_s29  ;;  %v3670_v36 = vmul.f32 %v3655_v35, %v7790_v10  ;;  %v3667_v42 = vmul.f32 %v3655_v35, %v7714_v51 }
 0x422   : > { %v8178_v46 = vpop.permute.xlu0 %3398  ;;  %v8180_v59 = vpop.permute.xlu1 %3326 }
 0x423   : > { %11353 = vst [vmem:[#allocation384_spill] sm:$0xff] %v8178_v46  ;;  %11354 = vst [vmem:[#allocation385_spill] sm:$0xff] %v8180_v59 }
 0x424   : > { %3712 = vrot.lane.b32.xlu0 %v3668_v49, %s5750_s29  ;;  %3706 = vrot.lane.b32.xlu1 %v3665_v21, %s5750_s29  ;;  %v3754_v49 = vmul.f32 %v3753_v19, %v7632_v55  ;;  %v3669_v21 = vmul.f32 %v3655_v35, %v7728_v38 }
 0x426   : > { %v8186_v14 = vpop.permute.xlu0 %3402  ;;  %v8188_v23 = vpop.permute.xlu1 %3396 }
 0x427   : > { %11355 = vst [vmem:[#allocation386_spill] sm:$0xff] %v8186_v14  ;;  %11356 = vst [vmem:[#allocation387_spill] sm:$0xff] %v8188_v23 }
 0x428   : > { %3716 = vrot.lane.b32.xlu0 %v3670_v36, %s5750_s29  ;;  %3710 = vrot.lane.b32.xlu1 %v3667_v42, %s5750_s29  ;;  %v3756_v36 = vmul.f32 %v3753_v19, %v7646_v44  ;;  %v3671_v42 = vmul.f32 %v3655_v35, %v7814_v5  ;;  %v3760_v35 = vmul.f32 %v3753_v19, %v7674_v33 }
 0x42a   : > { %v8194_v59 = vpop.permute.xlu0 %3406  ;;  %v8196_v46 = vpop.permute.xlu1 %3400 }
 0x42b   : > { %11357 = vst [vmem:[#allocation388_spill] sm:$0xff] %v8194_v59  ;;  %11358 = vst [vmem:[#allocation389_spill] sm:$0xff] %v8196_v46 }
 0x42c   : > { %3786 = vrot.lane.b32.xlu0 %v3754_v49, %s5750_s29  ;;  %3714 = vrot.lane.b32.xlu1 %v3669_v21, %s5750_s29  ;;  %v3758_v49 = vmul.f32 %v3753_v19, %v7660_v9  ;;  %v3755_v21 = vmul.f32 %v3753_v19, %v7658_v15  ;;  %v3762_v15 = vmul.f32 %v3753_v19, %v7688_v60 }
 0x42e   : > { %v8202_v23 = vpop.permute.xlu0 %3410  ;;  %v8204_v14 = vpop.permute.xlu1 %3404 }
 0x42f   : > { %11359 = vst [vmem:[#allocation390_spill] sm:$0xff] %v8202_v23  ;;  %11360 = vst [vmem:[#allocation391_spill] sm:$0xff] %v8204_v14 }
 0x430   : > { %3790 = vrot.lane.b32.xlu0 %v3756_v36, %s5750_s29  ;;  %3718 = vrot.lane.b32.xlu1 %v3671_v42, %s5750_s29  ;;  %v3757_v36 = vmul.f32 %v3753_v19, %v7672_v18 }
 0x432   : > { %v8210_v46 = vpop.permute.xlu0 %3414  ;;  %v8212_v55 = vpop.permute.xlu1 %3408 }
 0x433   : > { %11361 = vst [vmem:[#allocation392_spill] sm:$0xff] %v8210_v46  ;;  %11362 = vst [vmem:[#allocation393_spill] sm:$0xff] %v8212_v55  ;;  %v8498_v46 = vstv %s8453_s10  ;;  %s9597_s10 = sld [smem:[#allocation10 + $0x31]] }
 0x434   : > { %3794 = vrot.lane.b32.xlu0 %v3758_v49, %s5750_s29  ;;  %3788 = vrot.lane.b32.xlu1 %v3755_v21, %s5750_s29  ;;  %v3759_v49 = vmul.f32 %v3753_v19, %v7686_v0  ;;  %v8556_v12 = vmul.f32 %v5556_v25, %v8498_v46  ;;  %v848_v53 = vmul.f32 %v8622_v16, %v8498_v46 }
 0x435   : > { %v850_v40 = vmul.f32 %v8644_v50, %v8498_v46 }
 0x436   : > { %v8218_v14 = vpop.permute.xlu0 %3418  ;;  %v8220_v23 = vpop.permute.xlu1 %3412 }
 0x437   : > { %11363 = vst [vmem:[#allocation394_spill] sm:$0xff] %v8218_v14  ;;  %11364 = vst [vmem:[#allocation395_spill] sm:$0xff] %v8220_v23  ;;  %v3851_v14 = vstv %s5373_s24  ;;  %s8892_s24 = sld [smem:[#allocation10 + $0x2d]] }
 0x438   : > { %3798 = vrot.lane.b32.xlu0 %v3760_v35, %s5750_s29  ;;  %3792 = vrot.lane.b32.xlu1 %v3757_v36, %s5750_s29  ;;  %v3764_v35 = vmul.f32 %v3753_v19, %v7702_v58  ;;  %v3761_v36 = vmul.f32 %v3753_v19, %v7700_v11 }
 0x43a   : > { %v8226_v42 = vpop.permute.xlu0 %3422  ;;  %v8228_v55 = vpop.permute.xlu1 %3416 }
 0x43b   : > { %11365 = vst [vmem:[#allocation396_spill] sm:$0xff] %v8226_v42  ;;  %11366 = vst [vmem:[#allocation397_spill] sm:$0xff] %v8228_v55 }
 0x43c   : > { %3802 = vrot.lane.b32.xlu0 %v3762_v15, %s5750_s29  ;;  %3796 = vrot.lane.b32.xlu1 %v3759_v49, %s5750_s29  ;;  %v3766_v15 = vmul.f32 %v3753_v19, %v7790_v10  ;;  %v3763_v49 = vmul.f32 %v3753_v19, %v7714_v51 }
 0x43e   : > { %v8234_v21 = vpop.permute.xlu0 %3492  ;;  %v8236_v23 = vpop.permute.xlu1 %3420 }
 0x43f   : > { %11367 = vst [vmem:[#allocation398_spill] sm:$0xff] %v8234_v21  ;;  %11368 = vst [vmem:[#allocation399_spill] sm:$0xff] %v8236_v23 }
 0x440   : > { %3806 = vrot.lane.b32.xlu0 %v3764_v35, %s5750_s29  ;;  %3800 = vrot.lane.b32.xlu1 %v3761_v36, %s5750_s29  ;;  %v3768_v35 = vmul.f32 %v3753_v19, %v7876_v63  ;;  %v3765_v36 = vmul.f32 %v3753_v19, %v7728_v38 }
 0x442   : > { %v8242_v55 = vpop.permute.xlu0 %3496  ;;  %v8244_v42 = vpop.permute.xlu1 %3424 }
 0x443   : > { %11369 = vst [vmem:[#allocation400_spill] sm:$0xff] %v8242_v55  ;;  %11370 = vst [vmem:[#allocation401_spill] sm:$0xff] %v8244_v42 }
 0x444   : > { %3810 = vrot.lane.b32.xlu0 %v3766_v15, %s5750_s29  ;;  %3804 = vrot.lane.b32.xlu1 %v3763_v49, %s5750_s29  ;;  %v3852_v15 = vmul.f32 %v3851_v14, %v7646_v44  ;;  %v3767_v49 = vmul.f32 %v3753_v19, %v7814_v5 }
 0x446   : > { %v8250_v23 = vpop.permute.xlu0 %3500  ;;  %v8252_v21 = vpop.permute.xlu1 %3494 }
 0x447   : > { %11371 = vst [vmem:[#allocation402_spill] sm:$0xff] %v8250_v23  ;;  %11372 = vst [vmem:[#allocation403_spill] sm:$0xff] %v8252_v21 }
 0x448   : > { %3814 = vrot.lane.b32.xlu0 %v3768_v35, %s5750_s29  ;;  %3808 = vrot.lane.b32.xlu1 %v3765_v36, %s5750_s29  ;;  %v3854_v35 = vmul.f32 %v3851_v14, %v7660_v9  ;;  %v3769_v36 = vmul.f32 %v3753_v19, %v7897_v47  ;;  %v3858_v19 = vmul.f32 %v3851_v14, %v7688_v60 }
 0x44a   : > { %v8258_v42 = vpop.permute.xlu0 %3504  ;;  %v8260_v55 = vpop.permute.xlu1 %3498 }
 0x44b   : > { %11373 = vst [vmem:[#allocation404_spill] sm:$0xff] %v8258_v42  ;;  %11374 = vst [vmem:[#allocation405_spill] sm:$0xff] %v8260_v55  ;;  %v5551_v42 = vld [vmem:[#allocation4 + $0x4] sm:$0x1] }
 0x44c   : > { %3884 = vrot.lane.b32.xlu0 %v3852_v15, %s5750_s29  ;;  %3812 = vrot.lane.b32.xlu1 %v3767_v49, %s5750_s29  ;;  %v3856_v15 = vmul.f32 %v3851_v14, %v7674_v33  ;;  %v3853_v49 = vmul.f32 %v3851_v14, %v7672_v18  ;;  %v3860_v18 = vmul.f32 %v3851_v14, %v7702_v58 }
 0x44e   : > { %v8266_v21 = vpop.permute.xlu0 %3508  ;;  %v8268_v23 = vpop.permute.xlu1 %3502 }
 0x44f   : > { %11375 = vst [vmem:[#allocation406_spill] sm:$0xff] %v8266_v21  ;;  %11376 = vst [vmem:[#allocation407_spill] sm:$0xff] %v8268_v23 }
 0x450   : > { %3888 = vrot.lane.b32.xlu0 %v3854_v35, %s5750_s29  ;;  %3816 = vrot.lane.b32.xlu1 %v3769_v36, %s5750_s29  ;;  %v3855_v35 = vmul.f32 %v3851_v14, %v7686_v0 }
 0x452   : > { %v8274_v55 = vpop.permute.xlu0 %3512  ;;  %v8276_v44 = vpop.permute.xlu1 %3506 }
 0x453   : > { %11377 = vst [vmem:[#allocation408_spill] sm:$0xff] %v8274_v55  ;;  %11378 = vst [vmem:[#allocation409_spill] sm:$0xff] %v8276_v44 }
 0x454   : > { %3892 = vrot.lane.b32.xlu0 %v3856_v15, %s5750_s29  ;;  %3886 = vrot.lane.b32.xlu1 %v3853_v49, %s5750_s29  ;;  %v3857_v15 = vmul.f32 %v3851_v14, %v7700_v11 }
 0x456   : > { %v8282_v23 = vpop.permute.xlu0 %3516  ;;  %v8284_v21 = vpop.permute.xlu1 %3510 }
 0x457   : > { %11379 = vst [vmem:[#allocation410_spill] sm:$0xff] %v8282_v23  ;;  %11380 = vst [vmem:[#allocation411_spill] sm:$0xff] %v8284_v21 }
 0x458   : > { %3896 = vrot.lane.b32.xlu0 %v3858_v19, %s5750_s29  ;;  %3890 = vrot.lane.b32.xlu1 %v3855_v35, %s5750_s29  ;;  %v3862_v19 = vmul.f32 %v3851_v14, %v7790_v10  ;;  %v3859_v35 = vmul.f32 %v3851_v14, %v7714_v51 }
 0x45a   : > { %v8290_v36 = vpop.permute.xlu0 %3520  ;;  %v8292_v44 = vpop.permute.xlu1 %3514 }
 0x45b   : > { %11381 = vst [vmem:[#allocation412_spill] sm:$0xff] %v8290_v36  ;;  %11382 = vst [vmem:[#allocation413_spill] sm:$0xff] %v8292_v44 }
 0x45c   : > { %3900 = vrot.lane.b32.xlu0 %v3860_v18, %s5750_s29  ;;  %3894 = vrot.lane.b32.xlu1 %v3857_v15, %s5750_s29  ;;  %v3864_v18 = vmul.f32 %v3851_v14, %v7876_v63  ;;  %v3861_v15 = vmul.f32 %v3851_v14, %v7728_v38 }
 0x45e   : > { %v8298_v49 = vpop.permute.xlu0 %3590  ;;  %v8300_v21 = vpop.permute.xlu1 %3518 }
 0x45f   : > { %11383 = vst [vmem:[#allocation414_spill] sm:$0xff] %v8298_v49  ;;  %11384 = vst [vmem:[#allocation415_spill] sm:$0xff] %v8300_v21  ;;  %v3866_v21 = vmul.f32 %v3851_v14, %v7948_v4 }
 0x460   : > { %3904 = vrot.lane.b32.xlu0 %v3862_v19, %s5750_s29  ;;  %3898 = vrot.lane.b32.xlu1 %v3859_v35, %s5750_s29  ;;  %v3863_v19 = vmul.f32 %v3851_v14, %v7814_v5  ;;  %v3949_v35 = vstv %s5374_s30  ;;  %s9055_s30 = sld [smem:[#allocation10 + $0x2b]] }
 0x462   : > { %v8306_v44 = vpop.permute.xlu0 %3594  ;;  %v8308_v36 = vpop.permute.xlu1 %3522 }
 0x463   : > { %11385 = vst [vmem:[#allocation416_spill] sm:$0xff] %v8306_v44  ;;  %11386 = vst [vmem:[#allocation417_spill] sm:$0xff] %v8308_v36 }
 0x464   : > { %3908 = vrot.lane.b32.xlu0 %v3864_v18, %s5750_s29  ;;  %3902 = vrot.lane.b32.xlu1 %v3861_v15, %s5750_s29  ;;  %v3950_v18 = vmul.f32 %v3949_v35, %v7660_v9  ;;  %v3865_v15 = vmul.f32 %v3851_v14, %v7897_v47 }
 0x466   : > { %v8315_v49 = vpop.permute.xlu0 %3598  ;;  %v8317_v23 = vpop.permute.xlu1 %3592 }
 0x467   : > { %11387 = vst [vmem:[#allocation418_spill] sm:$0xff] %v8315_v49  ;;  %11388 = vst [vmem:[#allocation419_spill] sm:$0xff] %v8317_v23  ;;  %v3867_v23 = vmul.f32 %v3851_v14, %v7969_v56 }
 0x468   : > { %3912 = vrot.lane.b32.xlu0 %v3866_v21, %s5750_s29  ;;  %3906 = vrot.lane.b32.xlu1 %v3863_v19, %s5750_s29  ;;  %v3952_v21 = vmul.f32 %v3949_v35, %v7674_v33  ;;  %v3956_v33 = vmul.f32 %v3949_v35, %v7702_v58 }
 0x46a   : > { %v8322_v36 = vpop.permute.xlu0 %3602  ;;  %v8324_v44 = vpop.permute.xlu1 %3596 }
 0x46b   : > { %11389 = vst [vmem:[#allocation420_spill] sm:$0xff] %v8322_v36  ;;  %11390 = vst [vmem:[#allocation421_spill] sm:$0xff] %v8324_v44  ;;  %v5550_v44 = vld [vmem:[#allocation4 + $0x3] sm:$0x1] }
 0x46c   : > { %3982 = vrot.lane.b32.xlu0 %v3950_v18, %s5750_s29  ;;  %3910 = vrot.lane.b32.xlu1 %v3865_v15, %s5750_s29  ;;  %v3954_v18 = vmul.f32 %v3949_v35, %v7688_v60  ;;  %v3951_v15 = vmul.f32 %v3949_v35, %v7686_v0  ;;  %v3958_v0 = vmul.f32 %v3949_v35, %v7790_v10 }
 0x46d   : > { %v3962_v10 = vmul.f32 %v3949_v35, %v7948_v4  ;;  %v5535_v4 = vld [vmem:[#allocation4 + $0x18] sm:$0x1] }
 0x46e   : > { %v8331_v49 = vpop.permute.xlu0 %3606  ;;  %v8333_v55 = vpop.permute.xlu1 %3600 }
 0x46f   : > { %11391 = vst [vmem:[#allocation422_spill] sm:$0xff] %v8331_v49  ;;  %11392 = vst [vmem:[#allocation423_spill] sm:$0xff] %v8333_v55  ;;  %v8483_v49 = vld [vmem:[#allocation4 + $0x24] sm:$0x1] }
 0x470   : > { %3986 = vrot.lane.b32.xlu0 %v3952_v21, %s5750_s29  ;;  %3914 = vrot.lane.b32.xlu1 %v3867_v23, %s5750_s29  ;;  %v3953_v23 = vmul.f32 %v3949_v35, %v7700_v11  ;;  %v3960_v11 = vmul.f32 %v3949_v35, %v7876_v63  ;;  %v3964_v63 = vmul.f32 %v3949_v35, %v8030_v30 }
 0x472   : > { %v8338_v19 = vpop.permute.xlu0 %3610  ;;  %v8340_v9 = vpop.permute.xlu1 %3604 }
 0x473   : > { %11393 = vst [vmem:[#allocation424_spill] sm:$0xff] %v8338_v19  ;;  %11394 = vst [vmem:[#allocation425_spill] sm:$0xff] %v8340_v9 }
 0x474   : > { %3990 = vrot.lane.b32.xlu0 %v3954_v18, %s5750_s29  ;;  %3984 = vrot.lane.b32.xlu1 %v3951_v15, %s5750_s29  ;;  %v3955_v18 = vmul.f32 %v3949_v35, %v7714_v51 }
 0x476   : > { %v8346_v14 = vpop.permute.xlu0 %3614  ;;  %v8348_v55 = vpop.permute.xlu1 %3608 }
 0x477   : > { %11395 = vst [vmem:[#allocation426_spill] sm:$0xff] %v8346_v14  ;;  %11396 = vst [vmem:[#allocation427_spill] sm:$0xff] %v8348_v55  ;;  %v8476_v14 = vstv %s5337_s7  ;;  %s9529_s7 = sld [smem:[#allocation10 + $0x2c]] }
 0x478   : > { %3994 = vrot.lane.b32.xlu0 %v3956_v33, %s5750_s29  ;;  %3988 = vrot.lane.b32.xlu1 %v3953_v23, %s5750_s29  ;;  %v3957_v33 = vmul.f32 %v3949_v35, %v7728_v38  ;;  %v816_v13 = vmul.f32 %v8622_v16, %v8476_v14 }
 0x47a   : > { %v8354_v21 = vpop.permute.xlu0 %3618  ;;  %v8356_v60 = vpop.permute.xlu1 %3612 }
 0x47b   : > { %11397 = vst [vmem:[#allocation428_spill] sm:$0xff] %v8354_v21  ;;  %11398 = vst [vmem:[#allocation429_spill] sm:$0xff] %v8356_v60  ;;  %v8487_v21 = vld [vmem:[#allocation4 + $0x21] sm:$0x1] }
 0x47c   : > { %3998 = vrot.lane.b32.xlu0 %v3958_v0, %s5750_s29  ;;  %3992 = vrot.lane.b32.xlu1 %v3955_v18, %s5750_s29  ;;  %v3959_v0 = vmul.f32 %v3949_v35, %v7814_v5 }
 0x47e   : > { %v8362_v15 = vpop.permute.xlu0 %3688  ;;  %v8364_v58 = vpop.permute.xlu1 %3616 }
 0x47f   : > { %11399 = vst [vmem:[#allocation430_spill] sm:$0xff] %v8362_v15  ;;  %11400 = vst [vmem:[#allocation431_spill] sm:$0xff] %v8364_v58  ;;  %v8459_v15 = vld [vmem:[#allocation4 + $0x22] sm:$0x1] }
 0x480   : > { %4002 = vrot.lane.b32.xlu0 %v3960_v11, %s5750_s29  ;;  %3996 = vrot.lane.b32.xlu1 %v3957_v33, %s5750_s29  ;;  %v3961_v11 = vmul.f32 %v3949_v35, %v7897_v47  ;;  %v8384_v33 = vstv %s5375_s27  ;;  %v8396_v47 = vld [vmem:[#allocation4 + $0x1a] sm:$0x1]  ;;  %s9254_s27 = sld [smem:[#allocation10 + $0x30]] }
 0x481   : > { %v4048_v5 = vmul.f32 %v5535_v4, %v8384_v33  ;;  %v4146_v52 = vmul.f32 %v8396_v47, %v8517_v45 }
 0x482   : > { %v8371_v51 = vpop.permute.xlu0 %3692  ;;  %v8373_v23 = vpop.permute.xlu1 %3620 }
 0x483   : > { %11401 = vst [vmem:[#allocation432_spill] sm:$0xff] %v8371_v51  ;;  %11402 = vst [vmem:[#allocation433_spill] sm:$0xff] %v8373_v23  ;;  %v8449_v23 = vstv %s715_s9  ;;  %s9352_s9 = sld [smem:[#allocation10 + $0x22]] }
 0x484   : > { %4006 = vrot.lane.b32.xlu0 %v3962_v10, %s5750_s29  ;;  %4000 = vrot.lane.b32.xlu1 %v3959_v0, %s5750_s29  ;;  %v3963_v10 = vmul.f32 %v3949_v35, %v7969_v56  ;;  %v5537_v56 = vld [vmem:[#allocation4 + $0x19] sm:$0x1] }
 0x486   : > { %v8379_v38 = vpop.permute.xlu0 %3696  ;;  %v8381_v18 = vpop.permute.xlu1 %3690 }
 0x487   : > { %11403 = vst [vmem:[#allocation434_spill] sm:$0xff] %v8379_v38  ;;  %11404 = vst [vmem:[#allocation435_spill] sm:$0xff] %v8381_v18 }
 0x488   : > { %4010 = vrot.lane.b32.xlu0 %v3964_v63, %s5750_s29  ;;  %4004 = vrot.lane.b32.xlu1 %v3961_v11, %s5750_s29  ;;  %v4050_v63 = vmul.f32 %v8396_v47, %v8384_v33  ;;  %v3965_v11 = vmul.f32 %v3949_v35, %v8054_v27  ;;  %v8418_v35 = vld [vmem:[#allocation4 + $0x1b] sm:$0x1] }
 0x48a   : > { %v8390_v0 = vpop.permute.xlu0 %3700  ;;  %v8392_v30 = vpop.permute.xlu1 %3694 }
 0x48b   : > { %11405 = vst [vmem:[#allocation436_spill] sm:$0xff] %v8390_v0  ;;  %11406 = vst [vmem:[#allocation437_spill] sm:$0xff] %v8392_v30  ;;  %v8412_v0 = vld [vmem:[#allocation4 + $0x1c] sm:$0x1] }
 0x48c   : > { %4080 = vrot.lane.b32.xlu0 %v4048_v5, %s5751_s13  ;;  %4008 = vrot.lane.b32.xlu1 %v3963_v10, %s5750_s29  ;;  %v4049_v5 = vmul.f32 %v5537_v56, %v8384_v33  ;;  %v4052_v27 = vmul.f32 %v8412_v0, %v8384_v33 }
 0x48e   : > { %v8401_v18 = vpop.permute.xlu0 %3704  ;;  %v8403_v4 = vpop.permute.xlu1 %3698 }
 0x48f   : > { %11407 = vst [vmem:[#allocation438_spill] sm:$0xff] %v8401_v18  ;;  %11408 = vst [vmem:[#allocation439_spill] sm:$0xff] %v8403_v4  ;;  %v8438_v18 = vld [vmem:[#allocation4 + $0x20] sm:$0x1] }
 0x490   : > { %4084 = vrot.lane.b32.xlu0 %v4050_v63, %s5751_s13  ;;  %4012 = vrot.lane.b32.xlu1 %v3965_v11, %s5750_s29  ;;  %v4051_v63 = vmul.f32 %v8418_v35, %v8384_v33  ;;  %s5336_s29 = sld [smem:[#allocation10 + $0x5]] }
 0x492   : > { %v8408_v10 = vpop.permute.xlu0 %3708  ;;  %v8410_v30 = vpop.permute.xlu1 %3702 }
 0x493   : > { %11409 = vst [vmem:[#allocation440_spill] sm:$0xff] %v8408_v10  ;;  %11410 = vst [vmem:[#allocation441_spill] sm:$0xff] %v8410_v30  ;;  %v8426_v30 = vld [vmem:[#allocation4 + $0x1e] sm:$0x1] }
 0x494   : > { %4088 = vrot.lane.b32.xlu0 %v4052_v27, %s5751_s13  ;;  %4082 = vrot.lane.b32.xlu1 %v4049_v5, %s5751_s13  ;;  %v4054_v10 = vmul.f32 %v8426_v30, %v8384_v33  ;;  %v8432_v5 = vstv %s741_s28  ;;  %v4150_v1 = vmul.f32 %v8426_v30, %v8517_v45  ;;  %s9312_s28 = sld [smem:[#allocation10 + $0x1d]] }
 0x495   : > { %v746_v36 = vmul.f32 %v5550_v44, %v8432_v5  ;;  %v747_v20 = vmul.f32 %v5551_v42, %v8432_v5  ;;  %v755_v17 = vmul.f32 %v8551_v24, %v8432_v5 }
 0x496   : > { %v8422_v11 = vpop.permute.xlu0 %3712  ;;  %v8424_v56 = vpop.permute.xlu1 %3706 }
 0x497   : > { %11411 = vst [vmem:[#allocation442_spill] sm:$0xff] %v8422_v11  ;;  %11412 = vst [vmem:[#allocation443_spill] sm:$0xff] %v8424_v56  ;;  %v4056_v56 = vmul.f32 %v8438_v18, %v8384_v33  ;;  %v8442_v11 = vld [vmem:[#allocation4 + $0x1d] sm:$0x1] }
 0x498   : > { %4092 = vrot.lane.b32.xlu0 %v4054_v10, %s5751_s13  ;;  %4086 = vrot.lane.b32.xlu1 %v4051_v63, %s5751_s13  ;;  %v4053_v38 = vmul.f32 %v8442_v11, %v8384_v33  ;;  %v5543_v10 = vld [vmem:[#allocation4] sm:$0x1] }
 0x499   : > { %v743_v63 = vmul.f32 %v5543_v10, %v8432_v5  ;;  %v8463_v10 = vld [vmem:[#allocation4 + $0x1f] sm:$0x1] }
 0x49a   : > { %v8434_v27 = vpop.permute.xlu0 %3716  ;;  %v8436_v4 = vpop.permute.xlu1 %3710 }
 0x49b   : > { %11413 = vst [vmem:[#allocation444_spill] sm:$0xff] %v8434_v27  ;;  %11414 = vst [vmem:[#allocation445_spill] sm:$0xff] %v8436_v4  ;;  %v8451_v4 = vstv %s5336_s29  ;;  %v4058_v27 = vmul.f32 %v8459_v15, %v8384_v33  ;;  %v759_v55 = vadd.f32 %v743_v63, %v8449_v23  ;;  %v4060_v63 = vmul.f32 %v8483_v49, %v8384_v33  ;;  %s9402_s29 = sld [smem:[#allocation10 + $0x27]] }
 0x49c   : > { %4096 = vrot.lane.b32.xlu0 %v4056_v56, %s5751_s13  ;;  %4090 = vrot.lane.b32.xlu1 %v4053_v38, %s5751_s13  ;;  %v4055_v38 = vmul.f32 %v8463_v10, %v8384_v33  ;;  %v5546_v56 = vld [vmem:[#allocation4 + $0x1] sm:$0x1] }
 0x49d   : > { %v744_v60 = vmul.f32 %v5546_v56, %v8432_v5 }
 0x49e   : > { %v8455_v51 = vpop.permute.xlu0 %3786  ;;  %v8457_v58 = vpop.permute.xlu1 %3714 }
 0x49f   : > { %11415 = vst [vmem:[#allocation446_spill] sm:$0xff] %v8455_v51  ;;  %11416 = vst [vmem:[#allocation447_spill] sm:$0xff] %v8457_v58  ;;  %v5547_v51 = vld [vmem:[#allocation4 + $0x2] sm:$0x1] }
 0x4a0   : > { %v777_v58 = vmul.f32 %v5547_v51, %v8451_v4  ;;  %4100 = vrot.lane.b32.xlu0 %v4058_v27, %s5751_s13  ;;  %4094 = vrot.lane.b32.xlu1 %v4055_v38, %s5751_s13  ;;  %v745_v9 = vmul.f32 %v5547_v51, %v8432_v5  ;;  %v4057_v27 = vmul.f32 %v8487_v21, %v8384_v33 }
 0x4a1   : > { %v760_v38 = vadd.f32 %v744_v60, %v8449_v23  ;;  %v778_v51 = vmul.f32 %v5550_v44, %v8451_v4  ;;  %v779_v60 = vmul.f32 %v5551_v42, %v8451_v4  ;;  %v8507_v44 = vld [vmem:[#allocation4 + $0x26] sm:$0x1] }
 0x4a2   : > { %v8479_v19 = vpop.permute.xlu0 %3790  ;;  %v8481_v56 = vpop.permute.xlu1 %3718  ;;  %v761_v59 = vadd.f32 %v745_v9, %v8449_v23  ;;  %v762_v9 = vadd.f32 %v746_v36, %v8449_v23  ;;  %v813_v36 = vmul.f32 %v8519_v29, %v8476_v14 }
 0x4a3   : > { %11417 = vst [vmem:[#allocation448_spill] sm:$0xff] %v8479_v19  ;;  %11418 = vst [vmem:[#allocation449_spill] sm:$0xff] %v8481_v56  ;;  %v793_v19 = vadd.f32 %v777_v58, %v759_v55  ;;  %v811_v56 = vmul.f32 %v5551_v42, %v8476_v14  ;;  %v4062_v58 = vmul.f32 %v8507_v44, %v8384_v33 }
 0x4a4   : > { %4104 = vrot.lane.b32.xlu0 %v4060_v63, %s5751_s13  ;;  %4098 = vrot.lane.b32.xlu1 %v4057_v27, %s5751_s13  ;;  %v8511_v63 = vld [vmem:[#allocation4 + $0x23] sm:$0x1]  ;;  %v794_v22 = vadd.f32 %v778_v51, %v760_v38  ;;  %v795_v38 = vadd.f32 %v779_v60, %v761_v59  ;;  %v5555_v51 = vld [vmem:[#allocation4 + $0x5] sm:$0x1] }
 0x4a5   : > { %11421 = vst [vmem:[#allocation452_spill] sm:$0xff] %v8511_v63  ;;  %v4059_v27 = vmul.f32 %v8511_v63, %v8384_v33  ;;  %v827_v42 = vadd.f32 %v811_v56, %v793_v19  ;;  %v763_v19 = vadd.f32 %v747_v20, %v8449_v23  ;;  %v781_v56 = vmul.f32 %v8519_v29, %v8451_v4  ;;  %v8546_v60 = vld [vmem:[#allocation4 + $0x25] sm:$0x1] }
 0x4a6   : > { %v8503_v43 = vpop.permute.xlu0 %3794  ;;  %v8505_v55 = vpop.permute.xlu1 %3788  ;;  %v780_v34 = vmul.f32 %v5555_v51, %v8451_v4  ;;  %v4061_v20 = vmul.f32 %v8546_v60, %v8384_v33  ;;  %v812_v7 = vmul.f32 %v5555_v51, %v8476_v14 }
 0x4a7   : > { %11419 = vst [vmem:[#allocation450_spill] sm:$0xff] %v8503_v43  ;;  %11420 = vst [vmem:[#allocation451_spill] sm:$0xff] %v8505_v55  ;;  %v845_v55 = vmul.f32 %v8519_v29, %v8498_v46  ;;  %v8524_v43 = vstv %s8472_s11  ;;  %v797_v37 = vadd.f32 %v781_v56, %v763_v19  ;;  %v8595_v19 = vld [vmem:[#allocation4 + $0xd] sm:$0x1] }
 0x4a8   : > { %4108 = vrot.lane.b32.xlu0 %v4062_v58, %s5751_s13  ;;  %4102 = vrot.lane.b32.xlu1 %v4059_v27, %s5751_s13  ;;  %v8537_v58 = vmul.f32 %v5556_v25, %v8524_v43  ;;  %v5557_v27 = vld [vmem:[#allocation4 + $0x15] sm:$0x1]  ;;  %v8566_v57 = vmul.f32 %v5561_v32, %v8524_v43  ;;  %v829_v25 = vadd.f32 %v813_v36, %v795_v38 }
 0x4a9   : > { %v8540_v39 = vmul.f32 %v5557_v27, %v8524_v43  ;;  %v8559_v31 = vmul.f32 %v5557_v27, %v8498_v46  ;;  %v8570_v54 = vadd.f32 %v845_v55, %v827_v42  ;;  %v8574_v27 = vmul.f32 %v8551_v24, %v8524_v43  ;;  %v8586_v55 = vld [vmem:[#allocation4 + $0x27] sm:$0x1] }
 0x4aa   : > { %v8542_v59 = vpop.permute.xlu0 %3798  ;;  %v8544_v47 = vpop.permute.xlu1 %3792  ;;  %11427 = vst [vmem:[#allocation458_spill] sm:$0xff] %v8566_v57  ;;  %v4063_v42 = vmul.f32 %v8586_v55, %v8384_v33  ;;  %v828_v38 = vadd.f32 %v812_v7, %v794_v22  ;;  %v8599_v56 = vmul.f32 %v8595_v19, %v8524_v43  ;;  %v4147_v7 = vmul.f32 %v8418_v35, %v8517_v45 }
 0x4ab   : > { %11422 = vst [vmem:[#allocation453_spill] sm:$0xff] %v8540_v39  ;;  %11423 = vst [vmem:[#allocation454_spill] sm:$0xff] %v8542_v59  ;;  %v5560_v59 = vld [vmem:[#allocation4 + $0x16] sm:$0x1]  ;;  %v846_v33 = vmul.f32 %v8576_v28, %v8498_v46  ;;  %v880_v62 = vmul.f32 %v8622_v16, %v8524_v43  ;;  %v881_v57 = vmul.f32 %v8636_v61, %v8524_v43 }
 0x4ac   : > { %11424 = vst [vmem:[#allocation455_spill] sm:$0xff] %v8544_v47  ;;  %11425 = vst [vmem:[#allocation456_spill] sm:$0xff] %v8559_v31  ;;  %v748_v47 = vmul.f32 %v5555_v51, %v8432_v5  ;;  %v8563_v6 = vmul.f32 %v5560_v59, %v8524_v43  ;;  %4178 = vrot.lane.b32.xlu0 %v4146_v52, %s5751_s13  ;;  %4106 = vrot.lane.b32.xlu1 %v4061_v20, %s5751_s13 }
 0x4ad   : > { %v796_v51 = vadd.f32 %v780_v34, %v762_v9  ;;  %v814_v59 = vmul.f32 %v8576_v28, %v8476_v14  ;;  %v4148_v52 = vmul.f32 %v8412_v0, %v8517_v45  ;;  %v771_v34 = vadd.f32 %v755_v17, %v8449_v23  ;;  %v8591_v9 = vld [vmem:[#allocation4 + $0xe] sm:$0x1]  ;;  %v8608_v17 = vld [vmem:[#allocation4 + $0x8] sm:$0x1] }
 0x4ae   : > { %11426 = vst [vmem:[#allocation457_spill] sm:$0xff] %v8563_v6  ;;  %v8580_v32 = vpop.permute.xlu0 %3802  ;;  %v8582_v26 = vpop.permute.xlu1 %3796  ;;  %v789_v36 = vmul.f32 %v8591_v9, %v8451_v4  ;;  %v764_v20 = vadd.f32 %v748_v47, %v8449_v23  ;;  %v879_v22 = vmul.f32 %v8608_v17, %v8524_v43  ;;  %v815_v47 = vmul.f32 %v8608_v17, %v8476_v14 }
 0x4af   : > { %11428 = vst [vmem:[#allocation459_spill] sm:$0xff] %v8580_v32  ;;  %11429 = vst [vmem:[#allocation460_spill] sm:$0xff] %v8582_v26  ;;  %v782_v26 = vmul.f32 %v8576_v28, %v8451_v4  ;;  %v8616_v32 = vld [vmem:[#allocation4 + $0x10] sm:$0x1]  ;;  %v830_v35 = vadd.f32 %v814_v59, %v796_v51  ;;  %v849_v51 = vmul.f32 %v8636_v61, %v8498_v46 }
 0x4b0   : > { %4182 = vrot.lane.b32.xlu0 %v4148_v52, %s5751_s13  ;;  %4110 = vrot.lane.b32.xlu1 %v4063_v42, %s5751_s13  ;;  %v823_v52 = vmul.f32 %v8616_v32, %v8476_v14  ;;  %v847_v42 = vmul.f32 %v8608_v17, %v8498_v46  ;;  %v805_v59 = vadd.f32 %v789_v36, %v771_v34 }
 0x4b1   : > { %v831_v41 = vadd.f32 %v815_v47, %v797_v37  ;;  %v756_v36 = vmul.f32 %v8595_v19, %v8432_v5  ;;  %v862_v39 = vadd.f32 %v846_v33, %v828_v38  ;;  %v864_v31 = vadd.f32 %v848_v53, %v830_v35 }
 0x4b2   : > { %v8626_v8 = vpop.permute.xlu0 %3806  ;;  %v8628_v3 = vpop.permute.xlu1 %3800  ;;  %v839_v34 = vadd.f32 %v823_v52, %v805_v59  ;;  %v863_v37 = vadd.f32 %v847_v42, %v829_v25  ;;  %v8664_v52 = vld [vmem:[#allocation4 + $0xf] sm:$0x1]  ;;  %v8695_v42 = vld [vmem:[#allocation4 + $0x13] sm:$0x1] }
 0x4b3   : > { %11430 = vst [vmem:[#allocation461_spill] sm:$0xff] %v8626_v8  ;;  %11431 = vst [vmem:[#allocation462_spill] sm:$0xff] %v8628_v3  ;;  %v857_v3 = vmul.f32 %v8640_v48, %v8498_v46  ;;  %v798_v8 = vadd.f32 %v782_v26, %v764_v20  ;;  %v882_v26 = vmul.f32 %v8644_v50, %v8524_v43 }
 0x4b4   : > { %4186 = vrot.lane.b32.xlu0 %v4150_v1, %s5751_s13  ;;  %4180 = vrot.lane.b32.xlu1 %v4147_v7, %s5751_s13  ;;  %v4152_v1 = vmul.f32 %v8438_v18, %v8517_v45  ;;  %v4149_v7 = vmul.f32 %v8442_v11, %v8517_v45  ;;  %v865_v47 = vadd.f32 %v849_v51, %v831_v41  ;;  %v8676_v41 = vld [vmem:[#allocation4 + $0x11] sm:$0x1] }
 0x4b5   : > { %v832_v20 = vadd.f32 %v816_v13, %v798_v8  ;;  %v790_v59 = vmul.f32 %v8664_v52, %v8451_v4  ;;  %v873_v8 = vadd.f32 %v857_v3, %v839_v34  ;;  %v772_v25 = vadd.f32 %v756_v36, %v8449_v23 }
 0x4b6   : > { %v8656_v2 = vpop.permute.xlu0 %3810  ;;  %v8658_v6 = vpop.permute.xlu1 %3804  ;;  %v824_v38 = vmul.f32 %v8676_v41, %v8476_v14  ;;  %v8680_v33 = vadd.f32 %v881_v57, %v863_v37  ;;  %v8682_v53 = vadd.f32 %v882_v26, %v864_v31  ;;  %v858_v57 = vmul.f32 %v8695_v42, %v8498_v46 }
 0x4b7   : > { %11432 = vst [vmem:[#allocation463_spill] sm:$0xff] %v8656_v2  ;;  %11433 = vst [vmem:[#allocation464_spill] sm:$0xff] %v8658_v6  ;;  %v866_v13 = vadd.f32 %v850_v40, %v832_v20  ;;  %v8671_v6 = vadd.f32 %v879_v22, %v8570_v54  ;;  %v8673_v2 = vadd.f32 %v880_v62, %v862_v39 }
 0x4b8   : > { %4190 = vrot.lane.b32.xlu0 %v4152_v1, %s5751_s13  ;;  %4184 = vrot.lane.b32.xlu1 %v4149_v7, %s5751_s13  ;;  %v4154_v54 = vmul.f32 %v8459_v15, %v8517_v45  ;;  %v4151_v62 = vmul.f32 %v8463_v10, %v8517_v45  ;;  %v8693_v39 = vadd.f32 %v8574_v27, %v865_v47 }
 0x4b9   : > { %v806_v22 = vadd.f32 %v790_v59, %v772_v25  ;;  %v749_v31 = vmul.f32 %v8519_v29, %v8432_v5  ;;  %v8702_v35 = vadd.f32 %v8537_v58, %v873_v8  ;;  %v8705_v51 = vadd.f32 %v8599_v56, %v866_v13 }
 0x4ba   : > { %v8684_v40 = vpop.permute.xlu0 %3814  ;;  %v8686_v3 = vpop.permute.xlu1 %3808  ;;  %v783_v34 = vmul.f32 %v8608_v17, %v8451_v4  ;;  %v817_v36 = vmul.f32 %v8636_v61, %v8476_v14  ;;  %v751_v29 = vmul.f32 %v8608_v17, %v8432_v5  ;;  %v757_v58 = vmul.f32 %v8591_v9, %v8432_v5 }
 0x4bb   : > { %11434 = vst [vmem:[#allocation465_spill] sm:$0xff] %v8684_v40  ;;  %11435 = vst [vmem:[#allocation466_spill] sm:$0xff] %v8686_v3  ;;  %v840_v27 = vadd.f32 %v824_v38, %v806_v22  ;;  %v8719_v56 = vmul.f32 %v8551_v24, %v8498_v46  ;;  %v8723_v26 = vmul.f32 %v8591_v9, %v8524_v43 }
 0x4bc   : > { %4194 = vrot.lane.b32.xlu0 %v4154_v54, %s5751_s13  ;;  %4188 = vrot.lane.b32.xlu1 %v4151_v62, %s5751_s13  ;;  %v4156_v7 = vmul.f32 %v8483_v49, %v8517_v45  ;;  %v4153_v17 = vmul.f32 %v8487_v21, %v8517_v45  ;;  %v765_v47 = vadd.f32 %v749_v31, %v8449_v23 }
 0x4bd   : > { %v8733_v37 = vadd.f32 %v858_v57, %v840_v27  ;;  %v750_v59 = vmul.f32 %v8576_v28, %v8432_v5  ;;  %v752_v8 = vmul.f32 %v8622_v16, %v8432_v5  ;;  %v785_v13 = vmul.f32 %v8636_v61, %v8451_v4 }
 0x4be   : > { %v8725_v20 = vpop.permute.xlu0 %3884  ;;  %v8727_v1 = vpop.permute.xlu1 %3812  ;;  %v819_v25 = vmul.f32 %v8551_v24, %v8476_v14  ;;  %v758_v38 = vmul.f32 %v8664_v52, %v8432_v5  ;;  %v799_v54 = vadd.f32 %v783_v34, %v765_v47  ;;  %v767_v28 = vadd.f32 %v751_v29, %v8449_v23 }
 0x4bf   : > { %11436 = vst [vmem:[#allocation467_spill] sm:$0xff] %v8725_v20  ;;  %11437 = vst [vmem:[#allocation468_spill] sm:$0xff] %v8727_v1  ;;  %v773_v62 = vadd.f32 %v757_v58, %v8449_v23  ;;  %v791_v22 = vmul.f32 %v8616_v32, %v8451_v4  ;;  %v784_v57 = vmul.f32 %v8622_v16, %v8451_v4 }
 0x4c0   : > { %4198 = vrot.lane.b32.xlu0 %v4156_v7, %s5751_s13  ;;  %4192 = vrot.lane.b32.xlu1 %v4153_v17, %s5751_s13  ;;  %v753_v31 = vmul.f32 %v8636_v61, %v8432_v5  ;;  %v4158_v34 = vmul.f32 %v8507_v44, %v8517_v45  ;;  %v4155_v29 = vmul.f32 %v8511_v63, %v8517_v45  ;;  %v8788_v63 = vld [vmem:[#allocation4 + $0x28] sm:$0x1] }
 0x4c1   : > { %v766_v58 = vadd.f32 %v750_v59, %v8449_v23  ;;  %v768_v7 = vadd.f32 %v752_v8, %v8449_v23  ;;  %v786_v16 = vmul.f32 %v8644_v50, %v8451_v4  ;;  %v754_v61 = vmul.f32 %v8644_v50, %v8432_v5 }
 0x4c2   : > { %v8758_v27 = vpop.permute.xlu0 %3888  ;;  %v8760_v1 = vpop.permute.xlu1 %3816  ;;  %v853_v17 = vmul.f32 %v8591_v9, %v8498_v46  ;;  %v774_v47 = vadd.f32 %v758_v38, %v8449_v23  ;;  %v792_v3 = vmul.f32 %v8676_v41, %v8451_v4  ;;  %v833_v59 = vadd.f32 %v817_v36, %v799_v54 }
 0x4c3   : > { %11438 = vst [vmem:[#allocation469_spill] sm:$0xff] %v8758_v27  ;;  %11439 = vst [vmem:[#allocation470_spill] sm:$0xff] %v8760_v1  ;;  %v801_v8 = vadd.f32 %v785_v13, %v767_v28  ;;  %v807_v1 = vadd.f32 %v791_v22, %v773_v62  ;;  %v825_v27 = vmul.f32 %v8640_v48, %v8476_v14  ;;  %v8796_v62 = vstv %s8740_s21 }
 0x4c4   : > { %4202 = vrot.lane.b32.xlu0 %v4158_v34, %s5751_s13  ;;  %4196 = vrot.lane.b32.xlu1 %v4155_v29, %s5751_s13  ;;  %v818_v5 = vmul.f32 %v8644_v50, %v8476_v14  ;;  %v769_v20 = vadd.f32 %v753_v31, %v8449_v23  ;;  %v4160_v34 = vmul.f32 %v8788_v63, %v8517_v45 }
 0x4c5   : > { %v4157_v36 = vmul.f32 %v8546_v60, %v8517_v45  ;;  %v800_v13 = vadd.f32 %v784_v57, %v766_v58  ;;  %v802_v54 = vadd.f32 %v786_v16, %v768_v7  ;;  %v770_v28 = vadd.f32 %v754_v61, %v8449_v23 }
 0x4c6   : > { %v8784_v38 = vpop.permute.xlu0 %3892  ;;  %v8786_v40 = vpop.permute.xlu1 %3886  ;;  %v808_v50 = vadd.f32 %v792_v3, %v774_v47  ;;  %v826_v22 = vmul.f32 %v8695_v42, %v8476_v14  ;;  %v787_v31 = vmul.f32 %v8551_v24, %v8451_v4  ;;  %v835_v29 = vadd.f32 %v819_v25, %v801_v8 }
 0x4c7   : > { %11440 = vst [vmem:[#allocation471_spill] sm:$0xff] %v8784_v38  ;;  %11441 = vst [vmem:[#allocation472_spill] sm:$0xff] %v8786_v40  ;;  %v841_v40 = vadd.f32 %v825_v27, %v807_v1  ;;  %v820_v57 = vmul.f32 %v8595_v19, %v8476_v14  ;;  %v788_v23 = vmul.f32 %v8595_v19, %v8451_v4 }
 0x4c8   : > { %4206 = vrot.lane.b32.xlu0 %v4160_v34, %s5751_s13  ;;  %4200 = vrot.lane.b32.xlu1 %v4157_v36, %s5751_s13  ;;  %v803_v58 = vadd.f32 %v787_v31, %v769_v20  ;;  %v821_v3 = vmul.f32 %v8591_v9, %v8476_v14  ;;  %v4244_v24 = vmul.f32 %v8412_v0, %v8796_v62  ;;  %v11446_v31 = vld [vmem:[#allocation456_spill] sm:$0xff] }
 0x4c9   : > { %v4159_v1 = vmul.f32 %v8586_v55, %v8517_v45  ;;  %v887_v25 = vmul.f32 %v8616_v32, %v8524_v43  ;;  %v834_v27 = vadd.f32 %v818_v5, %v800_v13  ;;  %v804_v61 = vadd.f32 %v788_v23, %v770_v28  ;;  %v11448_v23 = vld [vmem:[#allocation457_spill] sm:$0xff] }
 0x4ca   : > { %v8810_v7 = vpop.permute.xlu0 %3896  ;;  %v8812_v16 = vpop.permute.xlu1 %3890  ;;  %v822_v4 = vmul.f32 %v8664_v52, %v8476_v14  ;;  %v836_v20 = vadd.f32 %v820_v57, %v802_v54  ;;  %v854_v9 = vmul.f32 %v8664_v52, %v8498_v46  ;;  %v842_v47 = vadd.f32 %v826_v22, %v808_v50 }
 0x4cb   : > { %11442 = vst [vmem:[#allocation473_spill] sm:$0xff] %v8810_v7  ;;  %11443 = vst [vmem:[#allocation474_spill] sm:$0xff] %v8812_v16  ;;  %v867_v8 = vadd.f32 %v8719_v56, %v833_v59  ;;  %v869_v34 = vadd.f32 %v853_v17, %v835_v29  ;;  %v875_v36 = vadd.f32 %v8556_v12, %v841_v40  ;;  %v8842_v17 = vld [vmem:[#allocation4 + $0x29] sm:$0x1]  ;;  %v11493_v16 = vld [vmem:[#allocation29_spill] sm:$0xff] }
 0x4cc   : > { %4276 = vrot.lane.b32.xlu0 %v4244_v24, %s5751_s13  ;;  %4204 = vrot.lane.b32.xlu1 %v4159_v1, %s5751_s13  ;;  %v852_v5 = vmul.f32 %v8595_v19, %v8498_v46  ;;  %v837_v14 = vadd.f32 %v821_v3, %v803_v58  ;;  %v855_v13 = vmul.f32 %v8616_v32, %v8498_v46 }
 0x4cd   : > { %v4246_v56 = vmul.f32 %v8426_v30, %v8796_v62  ;;  %v4161_v12 = vmul.f32 %v8842_v17, %v8517_v45  ;;  %v886_v40 = vmul.f32 %v8664_v52, %v8524_v43  ;;  %v838_v59 = vadd.f32 %v822_v4, %v804_v61  ;;  %v11447_v45 = vld [vmem:[#allocation453_spill] sm:$0xff] }
 0x4ce   : > { %v8836_v54 = vpop.permute.xlu0 %3900  ;;  %v8838_v28 = vpop.permute.xlu1 %3894  ;;  %v868_v19 = vadd.f32 %v852_v5, %v834_v27  ;;  %v856_v32 = vmul.f32 %v8676_v41, %v8498_v46  ;;  %v870_v50 = vadd.f32 %v854_v9, %v836_v20  ;;  %v888_v22 = vmul.f32 %v8676_v41, %v8524_v43  ;;  %v11452_v20 = vld [vmem:[#allocation18_spill] sm:$0xff]  ;;  %v11456_v5 = vld [vmem:[#allocation19_spill] sm:$0xff] }
 0x4cf   : > { %11444 = vst [vmem:[#allocation475_spill] sm:$0xff] %v8836_v54  ;;  %11445 = vst [vmem:[#allocation476_spill] sm:$0xff] %v8838_v28  ;;  %v876_v29 = vadd.f32 %v11446_v31, %v842_v47  ;;  %v908_v52 = vadd.f32 %v11447_v45, %v8733_v37  ;;  %v8862_v57 = vadd.f32 %v8723_v26, %v867_v8  ;;  %v11453_v8 = vld [vmem:[#allocation458_spill] sm:$0xff]  ;;  %v8927_v31 = vstv %s8850_s4  ;;  %v11492_v28 = vld [vmem:[#allocation28_spill] sm:$0xff]  ;;  %s5209_s4 = scalar_lea.sflag [#allocation8], %s5897_s8 }
 0x4d0   : > { %4280 = vrot.lane.b32.xlu0 %v4246_v56, %s5751_s13  ;;  %4208 = vrot.lane.b32.xlu1 %v4161_v12, %s5751_s13  ;;  %v8864_v46 = vadd.f32 %v887_v25, %v869_v34  ;;  %v8867_v58 = vadd.f32 %v11448_v23, %v875_v36  ;;  %v871_v41 = vadd.f32 %v855_v13, %v837_v14  ;;  %v11451_v25 = vld [vmem:[#allocation16_spill] sm:$0xff]  ;;  %v8902_v14 = vstv %s8830_s2 }
 0x4d1   : > { %v889_v3 = vmul.f32 %v8640_v48, %v8524_v43  ;;  %v4248_v37 = vmul.f32 %v8438_v18, %v8796_v62  ;;  %v4245_v26 = vmul.f32 %v8442_v11, %v8796_v62  ;;  %v993_v27 = vadd.f32 %v11451_v25, %v8671_v6  ;;  %v11454_v6 = vld [vmem:[#allocation17_spill] sm:$0xff]  ;;  %11457 = vst [vmem:[#allocation457_spill] sm:$0xff] %v8902_v14  ;;  %v11464_v23 = vld [vmem:[#allocation24_spill] sm:$0xff] }
 0x4d2   : > { %v8871_v24 = vpop.permute.xlu0 %3904  ;;  %v8873_v1 = vpop.permute.xlu1 %3898  ;;  %v8881_v61 = vadd.f32 %v886_v40, %v868_v19  ;;  %v872_v4 = vadd.f32 %v856_v32, %v838_v59  ;;  %v890_v48 = vmul.f32 %v8695_v42, %v8524_v43  ;;  %v994_v9 = vadd.f32 %v11452_v20, %v8673_v2  ;;  %v11455_v43 = vld [vmem:[#allocation20_spill] sm:$0xff]  ;;  %v11462_v32 = vld [vmem:[#allocation21_spill] sm:$0xff] }
 0x4d3   : > { %11449 = vst [vmem:[#allocation456_spill] sm:$0xff] %v8871_v24  ;;  %11450 = vst [vmem:[#allocation453_spill] sm:$0xff] %v8873_v1  ;;  %v8887_v47 = vadd.f32 %v888_v22, %v870_v50  ;;  %v8890_v34 = vadd.f32 %v11453_v8, %v876_v29  ;;  %v995_v36 = vadd.f32 %v11454_v6, %v8680_v33  ;;  %v8907_v56 = vstv %s8834_s20  ;;  %v11463_v29 = vld [vmem:[#allocation23_spill] sm:$0xff]  ;;  %s10904_s20 = scalar_lea.hbm %s10958_s3, %s5391_s12 }
 0x4d4   : > { %4284 = vrot.lane.b32.xlu0 %v4248_v37, %s5751_s13  ;;  %4278 = vrot.lane.b32.xlu1 %v4245_v26, %s5751_s13  ;;  %v996_v42 = vadd.f32 %v11455_v43, %v8682_v53  ;;  %v1091_v2 = vadd.f32 %v11456_v5, %v993_v27  ;;  %v8904_v13 = vadd.f32 %v889_v3, %v871_v41  ;;  %v11461_v53 = vld [vmem:[#allocation22_spill] sm:$0xff]  ;;  %v8941_v37 = vstv %s8855_s22 }
 0x4d5   : > { %11458 = vst [vmem:[#allocation16_spill] sm:$0xff] %v8907_v56  ;;  %v4250_v40 = vmul.f32 %v8459_v15, %v8796_v62  ;;  %v4247_v33 = vmul.f32 %v8463_v10, %v8796_v62  ;;  %v8918_v59 = vadd.f32 %v11461_v53, %v994_v9  ;;  %v8922_v50 = vadd.f32 %v11462_v32, %v8693_v39  ;;  %v11467_v39 = vld [vmem:[#allocation25_spill] sm:$0xff] }
 0x4d6   : > { %v8909_v12 = vpop.permute.xlu0 %3908  ;;  %v8911_v19 = vpop.permute.xlu1 %3902  ;;  %v8924_v22 = vadd.f32 %v890_v48, %v872_v4  ;;  %v8931_v45 = vadd.f32 %v11463_v29, %v8702_v35  ;;  %v8934_v41 = vadd.f32 %v11464_v23, %v995_v36  ;;  %v8938_v3 = vmul.f32 %v8412_v0, %v8902_v14  ;;  %11466 = vst [vmem:[#allocation20_spill] sm:$0xff] %v8941_v37 }
 0x4d7   : > { %11459 = vst [vmem:[#allocation18_spill] sm:$0xff] %v8909_v12  ;;  %11460 = vst [vmem:[#allocation458_spill] sm:$0xff] %v8911_v19  ;;  %v8947_v26 = vadd.f32 %v11467_v39, %v8705_v51  ;;  %v8951_v35 = vmul.f32 %v8412_v0, %v8907_v56  ;;  %v8955_v25 = vmul.f32 %v8426_v30, %v8902_v14  ;;  %v9005_v29 = vstv %s8892_s24  ;;  %s5658_s24 = sshll.u32 %s5754_s17, 4  ;;  %s5659_s24 = int_to_ptr.vmem [resolvable:$false] %s5658_s24 }
 0x4d8   : > { %11465 = vst [vmem:[#allocation17_spill] sm:$0xff] %v8938_v3  ;;  %4288 = vrot.lane.b32.xlu0 %v4250_v40, %s5751_s13  ;;  %4282 = vrot.lane.b32.xlu1 %v4247_v33, %s5751_s13  ;;  %v8959_v27 = vmul.f32 %v8426_v30, %v8907_v56  ;;  %v8963_v4 = vmul.f32 %v8438_v18, %v8902_v14  ;;  %v11479_v40 = vld [vmem:[#allocation27_spill] sm:$0xff]  ;;  %11482 = vst [vmem:[#allocation483_spill] sm:$0xff] %v9005_v29 }
 0x4d9   : > { %11468 = vst [vmem:[#allocation19_spill] sm:$0xff] %v8951_v35  ;;  %11469 = vst [vmem:[#allocation22_spill] sm:$0xff] %v8955_v25  ;;  %v8967_v51 = vmul.f32 %v8442_v11, %v8902_v14  ;;  %v4252_v9 = vmul.f32 %v8483_v49, %v8796_v62  ;;  %v4249_v8 = vmul.f32 %v8487_v21, %v8796_v62  ;;  %v11572_v25 = vld [vmem:[#allocation47_spill] sm:$0xff] }
 0x4da   : > { %11470 = vst [vmem:[#allocation21_spill] sm:$0xff] %v8959_v27  ;;  %11471 = vst [vmem:[#allocation23_spill] sm:$0xff] %v8963_v4  ;;  %v8969_v48 = vpop.permute.xlu0 %3912  ;;  %v8971_v20 = vpop.permute.xlu1 %3906  ;;  %v8979_v6 = vmul.f32 %v8438_v18, %v8907_v56  ;;  %v8983_v36 = vmul.f32 %v8459_v15, %v8902_v14  ;;  %v8987_v43 = vmul.f32 %v8442_v11, %v8907_v56  ;;  %v11563_v4 = vld [vmem:[#allocation26_spill] sm:$0xff] }
 0x4db   : > { %11472 = vst [vmem:[#allocation24_spill] sm:$0xff] %v8967_v51  ;;  %11473 = vst [vmem:[#allocation25_spill] sm:$0xff] %v8969_v48  ;;  %v8991_v5 = vmul.f32 %v8463_v10, %v8902_v14  ;;  %v8994_v33 = vadd.f32 %v11479_v40, %v908_v52  ;;  %v8998_v53 = vmul.f32 %v8459_v15, %v8907_v56 }
 0x4dc   : > { %11474 = vst [vmem:[#allocation477_spill] sm:$0xff] %v8971_v20  ;;  %11475 = vst [vmem:[#allocation478_spill] sm:$0xff] %v8979_v6  ;;  %v9002_v32 = vmul.f32 %v8483_v49, %v8902_v14  ;;  %4292 = vrot.lane.b32.xlu0 %v4252_v9, %s5751_s13  ;;  %4286 = vrot.lane.b32.xlu1 %v4249_v8, %s5751_s13  ;;  %v9011_v23 = vmul.f32 %v8463_v10, %v8907_v56  ;;  %v11488_v8 = vld [vmem:[#allocation452_spill] sm:$0xff] }
 0x4dd   : > { %11476 = vst [vmem:[#allocation479_spill] sm:$0xff] %v8983_v36  ;;  %11477 = vst [vmem:[#allocation480_spill] sm:$0xff] %v8987_v43  ;;  %v9015_v52 = vmul.f32 %v8487_v21, %v8902_v14  ;;  %v9019_v39 = vmul.f32 %v8483_v49, %v8907_v56  ;;  %v9023_v40 = vmul.f32 %v8507_v44, %v8902_v14  ;;  %v11590_v43 = vld [vmem:[#allocation35_spill] sm:$0xff] }
 0x4de   : > { %11478 = vst [vmem:[#allocation481_spill] sm:$0xff] %v8991_v5  ;;  %11480 = vst [vmem:[#allocation27_spill] sm:$0xff] %v8998_v53  ;;  %v9027_v9 = vmul.f32 %v8487_v21, %v8907_v56  ;;  %v9031_v20 = vmul.f32 %v11488_v8, %v8902_v14  ;;  %v9033_v19 = vpop.permute.xlu0 %3982  ;;  %v9035_v12 = vpop.permute.xlu1 %3910  ;;  %v4254_v1 = vmul.f32 %v8507_v44, %v8796_v62  ;;  %v9460_v53 = vstv %s9352_s9 }
 0x4df   : > { %11481 = vst [vmem:[#allocation482_spill] sm:$0xff] %v9002_v32  ;;  %11483 = vst [vmem:[#allocation484_spill] sm:$0xff] %v9011_v23  ;;  %v4251_v24 = vmul.f32 %v11488_v8, %v8796_v62  ;;  %v9042_v54 = vadd.f32 %v11492_v28, %v1091_v2  ;;  %v9045_v7 = vadd.f32 %v11493_v16, %v996_v42 }
 0x4e0   : > { %11484 = vst [vmem:[#allocation485_spill] sm:$0xff] %v9015_v52  ;;  %11485 = vst [vmem:[#allocation486_spill] sm:$0xff] %v9019_v39  ;;  %v9049_v38 = vmul.f32 %v8507_v44, %v8907_v56  ;;  %v9063_v28 = vmul.f32 %v8546_v60, %v8902_v14  ;;  %v9067_v16 = vmul.f32 %v8412_v0, %v8927_v31  ;;  %4296 = vrot.lane.b32.xlu0 %v4254_v1, %s5751_s13  ;;  %v11589_v39 = vld [vmem:[#allocation60_spill] sm:$0xff] }
 0x4e1   : > { %11486 = vst [vmem:[#allocation487_spill] sm:$0xff] %v9023_v40  ;;  %11487 = vst [vmem:[#allocation488_spill] sm:$0xff] %v9027_v9  ;;  %4290 = vrot.lane.b32.xlu1 %v4251_v24, %s5751_s13  ;;  %v9073_v42 = vmul.f32 %v8426_v30, %v8941_v37  ;;  %v9077_v2 = vmul.f32 %v8438_v18, %v9005_v29  ;;  %v9081_v48 = vmul.f32 %v8546_v60, %v8907_v56 }
 0x4e2   : > { %11489 = vst [vmem:[#allocation452_spill] sm:$0xff] %v9031_v20  ;;  %11490 = vst [vmem:[#allocation489_spill] sm:$0xff] %v9033_v19  ;;  %v9053_v19 = vmul.f32 %v8788_v63, %v8902_v14  ;;  %v9089_v1 = vmul.f32 %v8426_v30, %v8927_v31  ;;  %v9093_v24 = vmul.f32 %v8438_v18, %v8941_v37  ;;  %v9097_v20 = vpop.permute.xlu1 %3914 }
 0x4e3   : > { %11491 = vst [vmem:[#allocation490_spill] sm:$0xff] %v9035_v12  ;;  %11494 = vst [vmem:[#allocation28_spill] sm:$0xff] %v9049_v38  ;;  %v9059_v12 = vmul.f32 %v11488_v8, %v8907_v56  ;;  %v4256_v40 = vmul.f32 %v8788_v63, %v8796_v62  ;;  %v4253_v52 = vmul.f32 %v8546_v60, %v8796_v62 }
 0x4e4   : > { %11495 = vst [vmem:[#allocation29_spill] sm:$0xff] %v9053_v19  ;;  %11497 = vst [vmem:[#allocation492_spill] sm:$0xff] %v9063_v28  ;;  %v9085_v28 = vmul.f32 %v8586_v55, %v8902_v14  ;;  %v9095_v19 = vpop.permute.xlu0 %3986  ;;  %v9125_v32 = vmul.f32 %v8483_v49, %v9005_v29  ;;  %v9186_v5 = vmul.f32 %v8483_v49, %v8927_v31 }
 0x4e5   : > { %11496 = vst [vmem:[#allocation491_spill] sm:$0xff] %v9059_v12  ;;  %11498 = vst [vmem:[#allocation493_spill] sm:$0xff] %v9067_v16  ;;  %4300 = vrot.lane.b32.xlu0 %v4256_v40, %s5751_s13  ;;  %4294 = vrot.lane.b32.xlu1 %v4253_v52, %s5751_s13  ;;  %v11518_v40 = vld [vmem:[#allocation33_spill] sm:$0xff]  ;;  %v9153_v52 = vmul.f32 %v8483_v49, %v8941_v37  ;;  %v9262_v36 = vmul.f32 %v8546_v60, %v8927_v31 }
 0x4e6   : > { %11499 = vst [vmem:[#allocation494_spill] sm:$0xff] %v9073_v42  ;;  %11500 = vst [vmem:[#allocation495_spill] sm:$0xff] %v9077_v2  ;;  %v1104_v2 = vadd.f32 %v11572_v25, %v8994_v33  ;;  %v11577_v33 = vld [vmem:[#allocation53_spill] sm:$0xff] }
 0x4e7   : > { %11501 = vst [vmem:[#allocation496_spill] sm:$0xff] %v9081_v48  ;;  %11502 = vst [vmem:[#allocation497_spill] sm:$0xff] %v9085_v28  ;;  %v9105_v28 = vmul.f32 %v8459_v15, %v9005_v29 }
 0x4e8   : > { %11503 = vst [vmem:[#allocation498_spill] sm:$0xff] %v9089_v1  ;;  %11504 = vst [vmem:[#allocation499_spill] sm:$0xff] %v9093_v24  ;;  %v9109_v1 = vmul.f32 %v8586_v55, %v8907_v56  ;;  %v9113_v24 = vmul.f32 %v8842_v17, %v8902_v14 }
 0x4e9   : > { %11505 = vst [vmem:[#allocation500_spill] sm:$0xff] %v9095_v19  ;;  %11506 = vst [vmem:[#allocation501_spill] sm:$0xff] %v9097_v20  ;;  %v9117_v20 = vmul.f32 %v8438_v18, %v8927_v31  ;;  %v9121_v19 = vmul.f32 %v8459_v15, %v8941_v37 }
 0x4ea   : > { %11507 = vst [vmem:[#allocation502_spill] sm:$0xff] %v9105_v28  ;;  %11508 = vst [vmem:[#allocation503_spill] sm:$0xff] %v9109_v1  ;;  %v9129_v28 = vmul.f32 %v8442_v11, %v8927_v31  ;;  %v9137_v1 = vmul.f32 %v8463_v10, %v8941_v37 }
 0x4eb   : > { %11509 = vst [vmem:[#allocation504_spill] sm:$0xff] %v9113_v24  ;;  %11510 = vst [vmem:[#allocation505_spill] sm:$0xff] %v9117_v20  ;;  %v11514_v24 = vld [vmem:[#allocation32_spill] sm:$0xff] }
 0x4ec   : > { %11511 = vst [vmem:[#allocation506_spill] sm:$0xff] %v9121_v19  ;;  %11512 = vst [vmem:[#allocation507_spill] sm:$0xff] %v9125_v32  ;;  %v999_v20 = vadd.f32 %v11514_v24, %v8862_v57  ;;  %v9141_v19 = vmul.f32 %v8487_v21, %v9005_v29  ;;  %v9145_v32 = vmul.f32 %v8459_v15, %v8927_v31  ;;  %v9155_v57 = vpop.permute.xlu0 %3990  ;;  %v9157_v24 = vpop.permute.xlu1 %3984 }
 0x4ed   : > { %11513 = vst [vmem:[#allocation508_spill] sm:$0xff] %v9129_v28  ;;  %11515 = vst [vmem:[#allocation32_spill] sm:$0xff] %v9137_v1  ;;  %v9149_v28 = vadd.f32 %v11518_v40, %v8918_v59  ;;  %v9159_v1 = vld [vmem:[#allocation4 + $0x2a] sm:$0x1]  ;;  %v9167_v59 = vmul.f32 %v8507_v44, %v9005_v29  ;;  %v9171_v40 = vmul.f32 %v8463_v10, %v8927_v31 }
 0x4ee   : > { %11516 = vst [vmem:[#allocation509_spill] sm:$0xff] %v9141_v19  ;;  %11517 = vst [vmem:[#allocation510_spill] sm:$0xff] %v9145_v32  ;;  %v4258_v19 = vmul.f32 %v9159_v1, %v8796_v62  ;;  %v4255_v32 = vmul.f32 %v8586_v55, %v8796_v62 }
 0x4ef   : > { %11519 = vst [vmem:[#allocation33_spill] sm:$0xff] %v9153_v52  ;;  %11520 = vst [vmem:[#allocation511_spill] sm:$0xff] %v9155_v57  ;;  %v9175_v57 = vmul.f32 %v8487_v21, %v8941_v37  ;;  %v9182_v52 = vmul.f32 %v11488_v8, %v9005_v29 }
 0x4f0   : > { %11521 = vst [vmem:[#allocation512_spill] sm:$0xff] %v9157_v24  ;;  %11522 = vst [vmem:[#allocation513_spill] sm:$0xff] %v9167_v59  ;;  %v9178_v24 = vstv %s9055_s30  ;;  %v9190_v59 = vmul.f32 %v8507_v44, %v8941_v37  ;;  %4304 = vrot.lane.b32.xlu0 %v4258_v19, %s5751_s13  ;;  %4298 = vrot.lane.b32.xlu1 %v4255_v32, %s5751_s13  ;;  %v11532_v19 = vld [vmem:[#allocation34_spill] sm:$0xff]  ;;  %v9214_v32 = vmul.f32 %v8507_v44, %v8927_v31  ;;  %v9218_v48 = vpop.permute.xlu1 %3988  ;;  %s5660_s30 = scalar_lea.vmem %s5659_s24, 512 }
 0x4f1   : > { %11523 = vst [vmem:[#allocation514_spill] sm:$0xff] %v9171_v40  ;;  %11524 = vst [vmem:[#allocation515_spill] sm:$0xff] %v9175_v57  ;;  %v9196_v57 = vmul.f32 %v8788_v63, %v9005_v29  ;;  %v9200_v40 = vmul.f32 %v8487_v21, %v8927_v31 }
 0x4f2   : > { %11525 = vst [vmem:[#allocation516_spill] sm:$0xff] %v9182_v52  ;;  %11526 = vst [vmem:[#allocation517_spill] sm:$0xff] %v9186_v5  ;;  %v9204_v52 = vmul.f32 %v11488_v8, %v8941_v37  ;;  %v9208_v5 = vmul.f32 %v8546_v60, %v9005_v29 }
 0x4f3   : > { %11527 = vst [vmem:[#allocation518_spill] sm:$0xff] %v9190_v59  ;;  %11528 = vst [vmem:[#allocation519_spill] sm:$0xff] %v9196_v57  ;;  %v1001_v59 = vadd.f32 %v11532_v19, %v8864_v46  ;;  %v9216_v57 = vpop.permute.xlu0 %3994  ;;  %v9230_v46 = vmul.f32 %v9159_v1, %v9005_v29  ;;  %v9234_v19 = vmul.f32 %v11488_v8, %v8927_v31 }
 0x4f4   : > { %11529 = vst [vmem:[#allocation520_spill] sm:$0xff] %v9200_v40  ;;  %11530 = vst [vmem:[#allocation521_spill] sm:$0xff] %v9204_v52  ;;  %v4342_v40 = vmul.f32 %v8426_v30, %v9178_v24  ;;  %v4257_v52 = vmul.f32 %v8842_v17, %v8796_v62 }
 0x4f5   : > { %11531 = vst [vmem:[#allocation522_spill] sm:$0xff] %v9208_v5  ;;  %11533 = vst [vmem:[#allocation34_spill] sm:$0xff] %v9214_v32  ;;  %v9226_v5 = vmul.f32 %v8788_v63, %v8941_v37  ;;  %v9246_v32 = vmul.f32 %v8788_v63, %v8927_v31 }
 0x4f6   : > { %11534 = vst [vmem:[#allocation523_spill] sm:$0xff] %v9216_v57  ;;  %11535 = vst [vmem:[#allocation524_spill] sm:$0xff] %v9218_v48  ;;  %v9238_v48 = vmul.f32 %v8546_v60, %v8941_v37  ;;  %v9242_v57 = vmul.f32 %v8586_v55, %v9005_v29  ;;  %4374 = vrot.lane.b32.xlu0 %v4342_v40, %s5751_s13  ;;  %4302 = vrot.lane.b32.xlu1 %v4257_v52, %s5751_s13  ;;  %v11547_v40 = vld [vmem:[#allocation54_spill] sm:$0xff] }
 0x4f7   : > { %11536 = vst [vmem:[#allocation525_spill] sm:$0xff] %v9226_v5  ;;  %11537 = vst [vmem:[#allocation526_spill] sm:$0xff] %v9230_v46  ;;  %v9250_v5 = vmul.f32 %v9159_v1, %v8941_v37  ;;  %v11543_v46 = vld [vmem:[#allocation36_spill] sm:$0xff]  ;;  %v9272_v52 = vmul.f32 %v8842_v17, %v9005_v29  ;;  %v9274_v51 = vpop.permute.xlu0 %3998 }
 0x4f8   : > { %11538 = vst [vmem:[#allocation527_spill] sm:$0xff] %v9234_v19  ;;  %11539 = vst [vmem:[#allocation528_spill] sm:$0xff] %v9238_v48  ;;  %v1007_v48 = vadd.f32 %v11543_v46, %v8867_v58  ;;  %v11544_v19 = vld [vmem:[#allocation37_spill] sm:$0xff]  ;;  %v9276_v58 = vpop.permute.xlu1 %3992  ;;  %v9280_v46 = vld [vmem:[#allocation4 + $0x2b] sm:$0x1] }
 0x4f9   : > { %11540 = vst [vmem:[#allocation529_spill] sm:$0xff] %v9242_v57  ;;  %11541 = vst [vmem:[#allocation530_spill] sm:$0xff] %v9246_v32  ;;  %v1000_v57 = vadd.f32 %v11544_v19, %v8881_v61  ;;  %v9266_v32 = vmul.f32 %v8586_v55, %v8941_v37  ;;  %v4344_v61 = vmul.f32 %v8438_v18, %v9178_v24 }
 0x4fa   : > { %11542 = vst [vmem:[#allocation531_spill] sm:$0xff] %v9250_v5  ;;  %11545 = vst [vmem:[#allocation36_spill] sm:$0xff] %v9262_v36  ;;  %v1003_v5 = vadd.f32 %v11547_v40, %v8904_v13  ;;  %v4259_v19 = vmul.f32 %v9280_v46, %v8796_v62  ;;  %v9290_v13 = vmul.f32 %v8586_v55, %v8927_v31 }
 0x4fb   : > { %11546 = vst [vmem:[#allocation37_spill] sm:$0xff] %v9266_v32  ;;  %11548 = vst [vmem:[#allocation54_spill] sm:$0xff] %v9272_v52  ;;  %v9286_v32 = vmul.f32 %v9159_v1, %v8927_v31  ;;  %v9294_v40 = vmul.f32 %v8842_v17, %v8941_v37  ;;  %v9304_v62 = vmul.f32 %v8842_v17, %v8927_v31  ;;  %4378 = vrot.lane.b32.xlu0 %v4344_v61, %s5751_s13  ;;  %v9326_v12 = vpop.permute.xlu0 %4002 }
 0x4fc   : > { %11549 = vst [vmem:[#allocation532_spill] sm:$0xff] %v9274_v51  ;;  %11550 = vst [vmem:[#allocation533_spill] sm:$0xff] %v9276_v58  ;;  %v9298_v58 = vmul.f32 %v9280_v46, %v9005_v29  ;;  %v11555_v51 = vld [vmem:[#allocation38_spill] sm:$0xff]  ;;  %4306 = vrot.lane.b32.xlu1 %v4259_v19, %s5751_s13  ;;  %v1101_v19 = vadd.f32 %v11563_v4, %v1003_v5  ;;  %v9328_v38 = vpop.permute.xlu1 %3996  ;;  %v11570_v5 = vld [vmem:[#allocation45_spill] sm:$0xff] }
 0x4fd   : > { %11551 = vst [vmem:[#allocation534_spill] sm:$0xff] %v9286_v32  ;;  %11552 = vst [vmem:[#allocation535_spill] sm:$0xff] %v9290_v13  ;;  %v1095_v52 = vadd.f32 %v11555_v51, %v8922_v50  ;;  %v9308_v32 = vmul.f32 %v9280_v46, %v8941_v37  ;;  %v11559_v13 = vld [vmem:[#allocation40_spill] sm:$0xff]  ;;  %v11560_v50 = vld [vmem:[#allocation41_spill] sm:$0xff] }
 0x4fe   : > { %11553 = vst [vmem:[#allocation536_spill] sm:$0xff] %v9294_v40  ;;  %11554 = vst [vmem:[#allocation537_spill] sm:$0xff] %v9298_v58  ;;  %v11558_v40 = vld [vmem:[#allocation39_spill] sm:$0xff]  ;;  %v1097_v36 = vadd.f32 %v11559_v13, %v999_v20  ;;  %v1008_v51 = vadd.f32 %v11560_v50, %v8890_v34  ;;  %v4343_v34 = vmul.f32 %v8463_v10, %v9178_v24  ;;  %v11567_v13 = vld [vmem:[#allocation44_spill] sm:$0xff] }
 0x4ff   : > { %11556 = vst [vmem:[#allocation38_spill] sm:$0xff] %v9304_v62  ;;  %11557 = vst [vmem:[#allocation538_spill] sm:$0xff] %v9308_v32  ;;  %v1002_v58 = vadd.f32 %v11558_v40, %v8887_v47  ;;  %v9321_v62 = vmul.f32 %v9280_v46, %v8927_v31  ;;  %v11562_v32 = vld [vmem:[#allocation42_spill] sm:$0xff]  ;;  %v4346_v47 = vmul.f32 %v8459_v15, %v9178_v24  ;;  %v11566_v20 = vld [vmem:[#allocation43_spill] sm:$0xff] }
 0x500   : > { %v1103_v61 = vadd.f32 %v11562_v32, %v8931_v45  ;;  %11564 = vst [vmem:[#allocation40_spill] sm:$0xff] %v9326_v12  ;;  %11565 = vst [vmem:[#allocation41_spill] sm:$0xff] %v9328_v38  ;;  %v1096_v31 = vadd.f32 %v11566_v20, %v8947_v26  ;;  %v1105_v40 = vadd.f32 %v11567_v13, %v1007_v48  ;;  %v11568_v50 = vld [vmem:[#allocation56_spill] sm:$0xff]  ;;  %v11569_v45 = vld [vmem:[#allocation59_spill] sm:$0xff]  ;;  %4376 = vrot.lane.b32.xlu1 %v4343_v34, %s5751_s13 }
 0x501   : > { %11561 = vst [vmem:[#allocation39_spill] sm:$0xff] %v9321_v62  ;;  %v1099_v62 = vadd.f32 %v11568_v50, %v1001_v59  ;;  %v1004_v4 = vadd.f32 %v11569_v45, %v8924_v22  ;;  %v1098_v32 = vadd.f32 %v11570_v5, %v1000_v57  ;;  %v11571_v38 = vld [vmem:[#allocation46_spill] sm:$0xff]  ;;  %4382 = vrot.lane.b32.xlu0 %v4346_v47, %s5751_s13  ;;  %v9350_v26 = vstv %s9254_s27  ;;  %v11573_v48 = vld [vmem:[#allocation48_spill] sm:$0xff]  ;;  %v11574_v22 = vld [vmem:[#allocation49_spill] sm:$0xff]  ;;  %v9373_v50 = vpop.permute.xlu0 %4006 }
 0x502   : > { %v9343_v12 = vadd.f32 %v11571_v38, %v8934_v41  ;;  %v9355_v59 = vadd.f32 %v11573_v48, %v1095_v52  ;;  %v9358_v57 = vadd.f32 %v11574_v22, %v1008_v51  ;;  %v11575_v38 = vld [vmem:[#allocation51_spill] sm:$0xff]  ;;  %v11576_v20 = vld [vmem:[#allocation52_spill] sm:$0xff]  ;;  %v9368_v47 = vadd.f32 %v11577_v33, %v1096_v31  ;;  %v11578_v34 = vld [vmem:[#allocation50_spill] sm:$0xff]  ;;  %11579 = vst [vmem:[#allocation42_spill] sm:$0xff] %v9373_v50  ;;  %v9375_v52 = vpop.permute.xlu1 %4000 }
 0x503   : > { %v9362_v41 = vadd.f32 %v11575_v38, %v9045_v7  ;;  %v9365_v25 = vadd.f32 %v11576_v20, %v1103_v61  ;;  %v9371_v13 = vadd.f32 %v11578_v34, %v1101_v19  ;;  %11580 = vst [vmem:[#allocation26_spill] sm:$0xff] %v9375_v52  ;;  %v4348_v51 = vmul.f32 %v8483_v49, %v9178_v24  ;;  %v11581_v45 = vld [vmem:[#allocation30_spill] sm:$0xff]  ;;  %v11582_v5 = vld [vmem:[#allocation57_spill] sm:$0xff]  ;;  %v11583_v31 = vld [vmem:[#allocation31_spill] sm:$0xff] }
 0x504   : > { %v4345_v7 = vmul.f32 %v8487_v21, %v9178_v24  ;;  %v9382_v61 = vadd.f32 %v11581_v45, %v1099_v62  ;;  %v9385_v48 = vadd.f32 %v11582_v5, %v1104_v2  ;;  %v1102_v22 = vadd.f32 %v11583_v31, %v1004_v4  ;;  %v11584_v38 = vld [vmem:[#allocation58_spill] sm:$0xff]  ;;  %v11585_v4 = vld [vmem:[#allocation61_spill] sm:$0xff]  ;;  %v11588_v52 = vld [vmem:[#allocation55_spill] sm:$0xff] }
 0x505   : > { %v4350_v19 = vmul.f32 %v8507_v44, %v9178_v24  ;;  %v9391_v20 = vadd.f32 %v11584_v38, %v1097_v36  ;;  %4386 = vrot.lane.b32.xlu0 %v4348_v51, %s5751_s13  ;;  %v4347_v33 = vmul.f32 %v11488_v8, %v9178_v24  ;;  %v4352_v62 = vmul.f32 %v8788_v63, %v9178_v24  ;;  %v9411_v45 = vpop.permute.xlu0 %4010 }
 0x506   : > { %4380 = vrot.lane.b32.xlu1 %v4345_v7, %s5751_s13  ;;  %v9400_v2 = vstv %s9312_s28  ;;  %v1100_v34 = vadd.f32 %v11585_v4, %v1002_v58  ;;  %v4349_v36 = vmul.f32 %v8546_v60, %v9178_v24  ;;  %v4354_v51 = vmul.f32 %v9159_v1, %v9178_v24  ;;  %11586 = vst [vmem:[#allocation43_spill] sm:$0xff] %v9411_v45  ;;  %v9413_v5 = vpop.permute.xlu1 %4004 }
 0x507   : > { %v4351_v7 = vmul.f32 %v8586_v55, %v9178_v24  ;;  %11587 = vst [vmem:[#allocation44_spill] sm:$0xff] %v9413_v5  ;;  %v9417_v31 = vmul.f32 %v8842_v17, %v9178_v24  ;;  %v9421_v58 = vmul.f32 %v8438_v18, %v9350_v26  ;;  %v9425_v38 = vmul.f32 %v9280_v46, %v9178_v24 }
 0x508   : > { %v9429_v4 = vmul.f32 %v8459_v15, %v9350_v26  ;;  %v9432_v50 = vadd.f32 %v11588_v52, %v1102_v22  ;;  %v9436_v5 = vmul.f32 %v8483_v49, %v9350_v26  ;;  %v9440_v45 = vmul.f32 %v8487_v21, %v9350_v26 }
 0x509   : > { %v9444_v9 = vmul.f32 %v8507_v44, %v9350_v26  ;;  %v9447_v23 = vadd.f32 %v11589_v39, %v1105_v40  ;;  %4390 = vrot.lane.b32.xlu0 %v4350_v19, %s5751_s13  ;;  %v9453_v52 = vmul.f32 %v11488_v8, %v9350_v26  ;;  %v9457_v22 = vmul.f32 %v8788_v63, %v9350_v26 }
 0x50a   : > { %4384 = vrot.lane.b32.xlu1 %v4347_v33, %s5751_s13  ;;  %v9463_v6 = vadd.f32 %v11590_v43, %v1100_v34  ;;  %v9467_v39 = vmul.f32 %v8546_v60, %v9350_v26  ;;  %v9471_v40 = vmul.f32 %v9159_v1, %v9350_v26  ;;  %v9475_v19 = vmul.f32 %v8586_v55, %v9350_v26  ;;  %v9477_v33 = vpop.permute.xlu0 %4080  ;;  %v9479_v27 = vpop.permute.xlu1 %4008 }
 0x50b   : > { %11591 = vst [vmem:[#allocation56_spill] sm:$0xff] %v9477_v33  ;;  %11592 = vst [vmem:[#allocation59_spill] sm:$0xff] %v9479_v27  ;;  %v9483_v43 = vmul.f32 %v8842_v17, %v9350_v26  ;;  %v9487_v34 = vmul.f32 %v9280_v46, %v9350_v26  ;;  %v9491_v35 = vmul.f32 %v8412_v0, %v9400_v2  ;;  %v11593_v33 = vld [vmem:[#allocation62_spill] sm:$0xff]  ;;  %v11594_v27 = vld [vmem:[#allocation63_spill] sm:$0xff] }
 0x50c   : > { %v9495_v42 = vmul.f32 %v8426_v30, %v9400_v2  ;;  %v9499_v3 = vadd.f32 %v11593_v33, %v9042_v54  ;;  %v9502_v16 = vadd.f32 %v11594_v27, %v1098_v32  ;;  %v9506_v37 = vmul.f32 %v8438_v18, %v9400_v2 }
 0x50d   : > { %v9510_v29 = vmul.f32 %v8442_v11, %v9400_v2  ;;  %4394 = vrot.lane.b32.xlu0 %v4352_v62, %s5751_s13  ;;  %v9516_v14 = vmul.f32 %v8459_v15, %v9400_v2  ;;  %v9520_v54 = vmul.f32 %v8463_v10, %v9400_v2  ;;  %v9524_v27 = vmul.f32 %v8483_v49, %v9400_v2 }
 0x50e   : > { %4388 = vrot.lane.b32.xlu1 %v4349_v36, %s5751_s13  ;;  %v9527_v32 = vstv %s9402_s29  ;;  %v9533_v62 = vmul.f32 %v8487_v21, %v9400_v2  ;;  %v9537_v36 = vmul.f32 %v8507_v44, %v9400_v2  ;;  %v9541_v33 = vmul.f32 %v11488_v8, %v9400_v2 }
 0x50f   : > { %11595 = vst [vmem:[#allocation45_spill] sm:$0xff] %v9516_v14  ;;  %11596 = vst [vmem:[#allocation46_spill] sm:$0xff] %v9520_v54  ;;  %v9545_v56 = vmul.f32 %v8546_v60, %v9400_v2  ;;  %v9549_v54 = vpop.permute.xlu1 %4012  ;;  %v9553_v14 = vmul.f32 %v8412_v0, %v9460_v53 }
 0x510   : > { %11597 = vst [vmem:[#allocation47_spill] sm:$0xff] %v9524_v27  ;;  %11598 = vst [vmem:[#allocation48_spill] sm:$0xff] %v9533_v62  ;;  %v9547_v27 = vpop.permute.xlu0 %4084  ;;  %v9557_v62 = vmul.f32 %v8586_v55, %v9400_v2 }
 0x511   : > { %11599 = vst [vmem:[#allocation49_spill] sm:$0xff] %v9537_v36  ;;  %11600 = vst [vmem:[#allocation51_spill] sm:$0xff] %v9541_v33  ;;  %v9561_v36 = vmul.f32 %v8426_v30, %v9460_v53  ;;  %v9565_v33 = vmul.f32 %v8438_v18, %v9460_v53  ;;  %v9581_v30 = vmul.f32 %v8459_v15, %v9460_v53  ;;  %4398 = vrot.lane.b32.xlu0 %v4354_v51, %s5751_s13  ;;  %v9585_v18 = vld [vmem:[#allocation4 + $0x2c] sm:$0x1] }
 0x512   : > { %11601 = vst [vmem:[#allocation52_spill] sm:$0xff] %v9545_v56  ;;  %11602 = vst [vmem:[#allocation53_spill] sm:$0xff] %v9547_v27  ;;  %v11606_v27 = vld [vmem:[#allocation64_spill] sm:$0xff]  ;;  %4392 = vrot.lane.b32.xlu1 %v4351_v7, %s5751_s13  ;;  %v9601_v15 = vmul.f32 %v8487_v21, %v9460_v53  ;;  %v9605_v51 = vmul.f32 %v8507_v44, %v9460_v53  ;;  %v9609_v7 = vmul.f32 %v11488_v8, %v9460_v53 }
 0x513   : > { %11603 = vst [vmem:[#allocation50_spill] sm:$0xff] %v9549_v54  ;;  %11604 = vst [vmem:[#allocation30_spill] sm:$0xff] %v9553_v14  ;;  %v9569_v56 = vadd.f32 %v11606_v27, %v9343_v12  ;;  %v11607_v54 = vld [vmem:[#allocation65_spill] sm:$0xff]  ;;  %v9577_v14 = vmul.f32 %v8442_v11, %v9460_v53  ;;  %v4356_v12 = vmul.f32 %v9585_v18, %v9178_v24  ;;  %v9617_v27 = vpop.permute.xlu1 %4082 }
 0x514   : > { %11605 = vst [vmem:[#allocation57_spill] sm:$0xff] %v9565_v33  ;;  %v9573_v0 = vadd.f32 %v11607_v54, %v9358_v57  ;;  %11609 = vst [vmem:[#allocation58_spill] sm:$0xff] %v9581_v30  ;;  %v9591_v57 = vmul.f32 %v8463_v10, %v9460_v53  ;;  %v9595_v11 = vmul.f32 %v8483_v49, %v9460_v53  ;;  %v9615_v54 = vpop.permute.xlu0 %4088  ;;  %v5582_v30 = vld [vmem:[#allocation4 + $0x20] sm:$0x1] }
 0x515   : > { %11608 = vst [vmem:[#allocation31_spill] sm:$0xff] %v9577_v14  ;;  %11612 = vst [vmem:[#allocation60_spill] sm:$0xff] %v9601_v15  ;;  %v9613_v10 = vmul.f32 %v8788_v63, %v9460_v53  ;;  %v5580_v15 = vld [vmem:[#allocation4 + $0x1c] sm:$0x1]  ;;  %v11625_v14 = vld [vmem:[#allocation67_spill] sm:$0xff]  ;;  %4402 = vrot.lane.b32.xlu0 %v4356_v12, %s5751_s13 }
 0x516   : > { %11610 = vst [vmem:[#allocation61_spill] sm:$0xff] %v9591_v57  ;;  %11611 = vst [vmem:[#allocation55_spill] sm:$0xff] %v9595_v11  ;;  %v9621_v11 = vmul.f32 %v8546_v60, %v9460_v53  ;;  %v9624_v57 = vmul.f32 %v5580_v15, %v9527_v32  ;;  %v9642_v15 = vmul.f32 %v5582_v30, %v9527_v32  ;;  %4396 = vrot.lane.b32.xlu1 %v9417_v31, %s5751_s13 }
 0x517   : > { %11613 = vst [vmem:[#allocation35_spill] sm:$0xff] %v9605_v51  ;;  %11614 = vst [vmem:[#allocation62_spill] sm:$0xff] %v9609_v7  ;;  %v9628_v51 = vmul.f32 %v8586_v55, %v9460_v53  ;;  %v5581_v7 = vld [vmem:[#allocation4 + $0x1e] sm:$0x1]  ;;  %v9649_v33 = vadd.f32 %v11625_v14, %v9149_v28  ;;  %v9669_v14 = vmul.f32 %v8487_v21, %v9527_v32 }
 0x518   : > { %11615 = vst [vmem:[#allocation63_spill] sm:$0xff] %v9613_v10  ;;  %11616 = vst [vmem:[#allocation64_spill] sm:$0xff] %v9615_v54  ;;  %v9631_v10 = vmul.f32 %v5581_v7, %v9527_v32  ;;  %v11622_v54 = vld [vmem:[#allocation66_spill] sm:$0xff]  ;;  %v9673_v28 = vmul.f32 %v8507_v44, %v9527_v32  ;;  %v9677_v31 = vmul.f32 %v11488_v8, %v9527_v32  ;;  %v9679_v12 = vpop.permute.xlu0 %4092 }
 0x519   : > { %11617 = vst [vmem:[#allocation65_spill] sm:$0xff] %v9617_v27  ;;  %11618 = vst [vmem:[#allocation539_spill] sm:$0xff] %v9621_v11  ;;  %v9635_v27 = vadd.f32 %v11622_v54, %v9355_v59  ;;  %v9639_v11 = vmul.f32 %v8842_v17, %v9460_v53  ;;  %v5584_v59 = vld [vmem:[#allocation4 + $0x22] sm:$0x1]  ;;  %v9689_v21 = vmul.f32 %v8546_v60, %v9527_v32  ;;  %4472 = vrot.lane.b32.xlu0 %v9421_v58, %s5751_s13  ;;  %v5587_v58 = vld [vmem:[#allocation4 + $0x24] sm:$0x1] }
 0x51a   : > { %11619 = vst [vmem:[#allocation540_spill] sm:$0xff] %v9624_v57  ;;  %11620 = vst [vmem:[#allocation541_spill] sm:$0xff] %v9628_v51  ;;  %v5583_v57 = vld [vmem:[#allocation4 + $0x1d] sm:$0x1]  ;;  %v9655_v54 = vmul.f32 %v5584_v59, %v9527_v32  ;;  %v9693_v44 = vmul.f32 %v9159_v1, %v9527_v32  ;;  %v9697_v8 = vmul.f32 %v8586_v55, %v9527_v32  ;;  %4400 = vrot.lane.b32.xlu1 %v9425_v38, %s5751_s13 }
 0x51b   : > { %11621 = vst [vmem:[#allocation542_spill] sm:$0xff] %v9631_v10  ;;  %11623 = vst [vmem:[#allocation66_spill] sm:$0xff] %v9639_v11  ;;  %v9645_v51 = vmul.f32 %v5583_v57, %v9527_v32  ;;  %v5585_v11 = vld [vmem:[#allocation4 + $0x1f] sm:$0x1]  ;;  %v9661_v10 = vstv %s9529_s7  ;;  %v9665_v57 = vmul.f32 %v8483_v49, %v9527_v32  ;;  %v9685_v49 = vmul.f32 %v8788_v63, %v9527_v32 }
 0x51c   : > { %11624 = vst [vmem:[#allocation543_spill] sm:$0xff] %v9642_v15  ;;  %v9658_v15 = vmul.f32 %v5585_v11, %v9527_v32  ;;  %11627 = vst [vmem:[#allocation544_spill] sm:$0xff] %v9661_v10  ;;  %v9735_v38 = vmul.f32 %v5587_v58, %v9661_v10  ;;  %v9752_v58 = vmul.f32 %v8788_v63, %v9661_v10  ;;  %v11653_v63 = vld [vmem:[#allocation71_spill] sm:$0xff] }
 0x51d   : > { %11628 = vst [vmem:[#allocation545_spill] sm:$0xff] %v9673_v28  ;;  %11629 = vst [vmem:[#allocation546_spill] sm:$0xff] %v9677_v31  ;;  %v11640_v28 = vld [vmem:[#allocation69_spill] sm:$0xff]  ;;  %4476 = vrot.lane.b32.xlu0 %v9429_v4, %s5751_s13 }
 0x51e   : > { %11626 = vst [vmem:[#allocation67_spill] sm:$0xff] %v9658_v15  ;;  %11630 = vst [vmem:[#allocation547_spill] sm:$0xff] %v9679_v12  ;;  %v9681_v15 = vpop.permute.xlu1 %4086  ;;  %v11636_v12 = vld [vmem:[#allocation68_spill] sm:$0xff] }
 0x51f   : > { %11631 = vst [vmem:[#allocation548_spill] sm:$0xff] %v9681_v15  ;;  %11632 = vst [vmem:[#allocation549_spill] sm:$0xff] %v9685_v49  ;;  %v1293_v31 = vadd.f32 %v11636_v12, %v9391_v20  ;;  %v9702_v15 = vmul.f32 %v5581_v7, %v9661_v10  ;;  %v9706_v49 = vmul.f32 %v8842_v17, %v9527_v32  ;;  %v9717_v20 = vld [vmem:[#allocation4 + $0x2d] sm:$0x1] }
 0x520   : > { %11633 = vst [vmem:[#allocation550_spill] sm:$0xff] %v9689_v21  ;;  %11634 = vst [vmem:[#allocation551_spill] sm:$0xff] %v9693_v44  ;;  %v9709_v21 = vmul.f32 %v5582_v30, %v9661_v10  ;;  %v1290_v44 = vadd.f32 %v11640_v28, %v9362_v41  ;;  %v4357_v7 = vmul.f32 %v9717_v20, %v9178_v24  ;;  %v5588_v28 = vld [vmem:[#allocation4 + $0x21] sm:$0x1]  ;;  %v9740_v24 = vpop.permute.xlu0 %4096 }
 0x521   : > { %11635 = vst [vmem:[#allocation552_spill] sm:$0xff] %v9697_v8  ;;  %11637 = vst [vmem:[#allocation68_spill] sm:$0xff] %v9702_v15  ;;  %v9723_v12 = vmul.f32 %v9280_v46, %v9527_v32  ;;  %v9732_v41 = vmul.f32 %v5585_v11, %v9661_v10  ;;  %v9738_v15 = vmul.f32 %v5588_v28, %v9661_v10  ;;  %4480 = vrot.lane.b32.xlu0 %v9436_v5, %s5751_s13 }
 0x522   : > { %11638 = vst [vmem:[#allocation553_spill] sm:$0xff] %v9706_v49  ;;  %11639 = vst [vmem:[#allocation554_spill] sm:$0xff] %v9709_v21  ;;  %v9726_v49 = vstv %s9597_s10  ;;  %v9729_v21 = vmul.f32 %v5584_v59, %v9661_v10  ;;  %v9742_v32 = vpop.permute.xlu1 %4090  ;;  %v9756_v28 = vmul.f32 %v8546_v60, %v9661_v10  ;;  %4404 = vrot.lane.b32.xlu1 %v4357_v7, %s5751_s13  ;;  %v11660_v7 = vld [vmem:[#allocation75_spill] sm:$0xff] }
 0x523   : > { %11641 = vst [vmem:[#allocation69_spill] sm:$0xff] %v9723_v12  ;;  %11642 = vst [vmem:[#allocation555_spill] sm:$0xff] %v9726_v49  ;;  %v5589_v12 = vld [vmem:[#allocation4 + $0x26] sm:$0x1]  ;;  %v9778_v60 = vmul.f32 %v5582_v30, %v9726_v49  ;;  %v9791_v4 = vmul.f32 %v5584_v59, %v9726_v49  ;;  %v1296_v30 = vadd.f32 %v11660_v7, %v9463_v6 }
 0x524   : > { %11643 = vst [vmem:[#allocation556_spill] sm:$0xff] %v9729_v21  ;;  %11644 = vst [vmem:[#allocation557_spill] sm:$0xff] %v9738_v15  ;;  %v9745_v8 = vmul.f32 %v5589_v12, %v9661_v10  ;;  %v5590_v21 = vld [vmem:[#allocation4 + $0x23] sm:$0x1]  ;;  %v9766_v12 = vmul.f32 %v8586_v55, %v9661_v10  ;;  %v11656_v55 = vld [vmem:[#allocation72_spill] sm:$0xff] }
 0x525   : > { %11645 = vst [vmem:[#allocation558_spill] sm:$0xff] %v9740_v24  ;;  %11646 = vst [vmem:[#allocation559_spill] sm:$0xff] %v9742_v32  ;;  %v9748_v11 = vmul.f32 %v5590_v21, %v9661_v10  ;;  %v11649_v24 = vld [vmem:[#allocation70_spill] sm:$0xff]  ;;  %v9762_v32 = vmul.f32 %v9159_v1, %v9661_v10  ;;  %v9770_v21 = vmul.f32 %v8842_v17, %v9661_v10  ;;  %v11657_v17 = vld [vmem:[#allocation73_spill] sm:$0xff]  ;;  %4484 = vrot.lane.b32.xlu0 %v9444_v9, %s5751_s13 }
 0x526   : > { %11647 = vst [vmem:[#allocation560_spill] sm:$0xff] %v9752_v58  ;;  %11648 = vst [vmem:[#allocation561_spill] sm:$0xff] %v9756_v28  ;;  %v1295_v15 = vadd.f32 %v11649_v24, %v9382_v61  ;;  %v1292_v58 = vadd.f32 %v11653_v63, %v9368_v47  ;;  %v9782_v1 = vmul.f32 %v9280_v46, %v9661_v10  ;;  %v11658_v47 = vld [vmem:[#allocation74_spill] sm:$0xff]  ;;  %v11662_v46 = vld [vmem:[#allocation77_spill] sm:$0xff]  ;;  %v9801_v10 = vpop.permute.xlu0 %4100  ;;  %4474 = vrot.lane.b32.xlu1 %v9440_v45, %s5751_s13 }
 0x527   : > { %11650 = vst [vmem:[#allocation70_spill] sm:$0xff] %v9762_v32  ;;  %11651 = vst [vmem:[#allocation562_spill] sm:$0xff] %v9766_v12  ;;  %v1297_v61 = vadd.f32 %v11656_v55, %v9371_v13  ;;  %v1294_v24 = vadd.f32 %v11657_v17, %v9502_v16  ;;  %v1299_v63 = vadd.f32 %v11658_v47, %v9365_v25  ;;  %v11663_v13 = vld [vmem:[#allocation78_spill] sm:$0xff]  ;;  %v9803_v16 = vpop.permute.xlu1 %4094  ;;  %v11666_v25 = vld [vmem:[#allocation79_spill] sm:$0xff] }
 0x528   : > { %11652 = vst [vmem:[#allocation563_spill] sm:$0xff] %v9770_v21  ;;  %11654 = vst [vmem:[#allocation71_spill] sm:$0xff] %v9778_v60  ;;  %v11661_v60 = vld [vmem:[#allocation76_spill] sm:$0xff]  ;;  %v1385_v55 = vadd.f32 %v11663_v13, %v9499_v3  ;;  %v1300_v59 = vadd.f32 %v11666_v25, %v9385_v48  ;;  %v11668_v6 = vld [vmem:[#allocation81_spill] sm:$0xff] }
 0x529   : > { %11655 = vst [vmem:[#allocation564_spill] sm:$0xff] %v9782_v1  ;;  %11659 = vst [vmem:[#allocation72_spill] sm:$0xff] %v9791_v4  ;;  %v1301_v21 = vadd.f32 %v11661_v60, %v9447_v23  ;;  %v1298_v1 = vadd.f32 %v11662_v46, %v9432_v50  ;;  %v11667_v17 = vld [vmem:[#allocation80_spill] sm:$0xff]  ;;  %v1302_v7 = vadd.f32 %v11668_v6, %v9573_v0  ;;  %v11669_v23 = vld [vmem:[#allocation82_spill] sm:$0xff]  ;;  %4488 = vrot.lane.b32.xlu0 %v9457_v22, %s5751_s13 }
 0x52a   : > { %11664 = vst [vmem:[#allocation73_spill] sm:$0xff] %v9801_v10  ;;  %11665 = vst [vmem:[#allocation74_spill] sm:$0xff] %v9803_v16  ;;  %v1387_v47 = vadd.f32 %v11667_v17, %v9569_v56  ;;  %v1389_v60 = vadd.f32 %v11669_v23, %v9635_v27  ;;  %v11670_v50 = vld [vmem:[#allocation83_spill] sm:$0xff]  ;;  %v11671_v3 = vld [vmem:[#allocation84_spill] sm:$0xff]  ;;  %v9829_v5 = vpop.permute.xlu0 %4104  ;;  %4478 = vrot.lane.b32.xlu1 %v9453_v52, %s5751_s13 }
 0x52b   : > { %v1386_v46 = vadd.f32 %v11670_v50, %v9649_v33  ;;  %v1391_v13 = vadd.f32 %v11671_v3, %v1293_v31  ;;  %v11672_v49 = vld [vmem:[#allocation85_spill] sm:$0xff]  ;;  %v11673_v56 = vld [vmem:[#allocation86_spill] sm:$0xff]  ;;  %v11674_v25 = vld [vmem:[#allocation87_spill] sm:$0xff]  ;;  %11681 = vst [vmem:[#allocation75_spill] sm:$0xff] %v9829_v5  ;;  %v9831_v12 = vpop.permute.xlu1 %4098 }
 0x52c   : > { %v1388_v4 = vadd.f32 %v11672_v49, %v1290_v44  ;;  %v1393_v48 = vadd.f32 %v11673_v56, %v1295_v15  ;;  %v1390_v0 = vadd.f32 %v11674_v25, %v1292_v58  ;;  %v11675_v17 = vld [vmem:[#allocation88_spill] sm:$0xff]  ;;  %v11676_v27 = vld [vmem:[#allocation89_spill] sm:$0xff]  ;;  %v11677_v16 = vld [vmem:[#allocation90_spill] sm:$0xff]  ;;  %11682 = vst [vmem:[#allocation76_spill] sm:$0xff] %v9831_v12 }
 0x52d   : > { %v1395_v6 = vadd.f32 %v11675_v17, %v1297_v61  ;;  %v1392_v23 = vadd.f32 %v11676_v27, %v1294_v24  ;;  %v1397_v33 = vadd.f32 %v11677_v16, %v1299_v63  ;;  %v11678_v50 = vld [vmem:[#allocation91_spill] sm:$0xff]  ;;  %v11679_v3 = vld [vmem:[#allocation92_spill] sm:$0xff]  ;;  %v11680_v44 = vld [vmem:[#allocation93_spill] sm:$0xff]  ;;  %4492 = vrot.lane.b32.xlu0 %v9471_v40, %s5751_s13 }
 0x52e   : > { %v1394_v31 = vadd.f32 %v11678_v50, %v1296_v30  ;;  %v1399_v49 = vadd.f32 %v11679_v3, %v1301_v21  ;;  %v1396_v10 = vadd.f32 %v11680_v44, %v1298_v1  ;;  %v11683_v45 = vld [vmem:[#allocation94_spill] sm:$0xff]  ;;  %v11684_v56 = vld [vmem:[#allocation95_spill] sm:$0xff]  ;;  %v11685_v25 = vld [vmem:[#allocation96_spill] sm:$0xff]  ;;  %v9852_v9 = vpop.permute.xlu0 %4108  ;;  %4482 = vrot.lane.b32.xlu1 %v9467_v39, %s5751_s13 }
 0x52f   : > { %v1483_v15 = vadd.f32 %v11683_v45, %v1385_v55  ;;  %v1398_v58 = vadd.f32 %v11684_v56, %v1300_v59  ;;  %v1485_v61 = vadd.f32 %v11685_v25, %v1387_v47  ;;  %v11686_v17 = vld [vmem:[#allocation97_spill] sm:$0xff]  ;;  %v11687_v27 = vld [vmem:[#allocation98_spill] sm:$0xff]  ;;  %v11688_v16 = vld [vmem:[#allocation99_spill] sm:$0xff] }
 0x530   : > { %v1400_v24 = vadd.f32 %v11686_v17, %v1302_v7  ;;  %v1487_v63 = vadd.f32 %v11687_v27, %v1389_v60  ;;  %v1484_v30 = vadd.f32 %v11688_v16, %v1386_v46  ;;  %v11689_v50 = vld [vmem:[#allocation100_spill] sm:$0xff]  ;;  %v11690_v1 = vld [vmem:[#allocation101_spill] sm:$0xff]  ;;  %v11691_v3 = vld [vmem:[#allocation102_spill] sm:$0xff] }
 0x531   : > { %v1489_v21 = vadd.f32 %v11689_v50, %v1391_v13  ;;  %v1486_v55 = vadd.f32 %v11690_v1, %v1388_v4  ;;  %v1491_v59 = vadd.f32 %v11691_v3, %v1393_v48  ;;  %v11692_v44 = vld [vmem:[#allocation103_spill] sm:$0xff]  ;;  %v11693_v45 = vld [vmem:[#allocation104_spill] sm:$0xff]  ;;  %v11694_v56 = vld [vmem:[#allocation105_spill] sm:$0xff]  ;;  %v9854_v50 = vpop.permute.xlu1 %4102 }
 0x532   : > { %v1488_v47 = vadd.f32 %v11692_v44, %v1390_v0  ;;  %v1493_v7 = vadd.f32 %v11693_v45, %v1395_v6  ;;  %v1490_v60 = vadd.f32 %v11694_v56, %v1392_v23  ;;  %v11695_v25 = vld [vmem:[#allocation106_spill] sm:$0xff]  ;;  %v11696_v17 = vld [vmem:[#allocation107_spill] sm:$0xff]  ;;  %v11697_v27 = vld [vmem:[#allocation108_spill] sm:$0xff]  ;;  %11698 = vst [vmem:[#allocation77_spill] sm:$0xff] %v9854_v50  ;;  %v9875_v22 = vpop.permute.xlu0 %4178  ;;  %4486 = vrot.lane.b32.xlu1 %v9475_v19, %s5751_s13 }
 0x533   : > { %v1495_v46 = vadd.f32 %v11695_v25, %v1397_v33  ;;  %v1492_v13 = vadd.f32 %v11696_v17, %v1394_v31  ;;  %v1497_v16 = vadd.f32 %v11697_v27, %v1399_v49  ;;  %v11699_v52 = vld [vmem:[#allocation109_spill] sm:$0xff]  ;;  %v11700_v1 = vld [vmem:[#allocation110_spill] sm:$0xff]  ;;  %v11701_v3 = vld [vmem:[#allocation111_spill] sm:$0xff] }
 0x534   : > { %v1494_v4 = vadd.f32 %v11699_v52, %v1396_v10  ;;  %v1581_v48 = vadd.f32 %v11700_v1, %v1483_v15  ;;  %v1496_v0 = vadd.f32 %v11701_v3, %v1398_v58  ;;  %v11702_v44 = vld [vmem:[#allocation112_spill] sm:$0xff]  ;;  %v11703_v45 = vld [vmem:[#allocation113_spill] sm:$0xff]  ;;  %v11704_v56 = vld [vmem:[#allocation114_spill] sm:$0xff] }
 0x535   : > { %v1583_v6 = vadd.f32 %v11702_v44, %v1485_v61  ;;  %v1498_v23 = vadd.f32 %v11703_v45, %v1400_v24  ;;  %v1585_v33 = vadd.f32 %v11704_v56, %v1487_v63  ;;  %v11705_v25 = vld [vmem:[#allocation115_spill] sm:$0xff]  ;;  %v11706_v49 = vld [vmem:[#allocation116_spill] sm:$0xff]  ;;  %v11707_v17 = vld [vmem:[#allocation117_spill] sm:$0xff] }
 0x536   : > { %v1582_v31 = vadd.f32 %v11705_v25, %v1484_v30  ;;  %v1587_v10 = vadd.f32 %v11706_v49, %v1489_v21  ;;  %v1584_v15 = vadd.f32 %v11707_v17, %v1486_v55  ;;  %v11708_v27 = vld [vmem:[#allocation118_spill] sm:$0xff]  ;;  %v11709_v52 = vld [vmem:[#allocation119_spill] sm:$0xff]  ;;  %v11710_v1 = vld [vmem:[#allocation120_spill] sm:$0xff]  ;;  %v9877_v25 = vpop.permute.xlu1 %4106  ;;  %v9899_v19 = vpop.permute.xlu0 %4182  ;;  %4490 = vrot.lane.b32.xlu1 %v9483_v43, %s5751_s13 }
 0x537   : > { %v1589_v58 = vadd.f32 %v11708_v27, %v1491_v59  ;;  %v1586_v61 = vadd.f32 %v11709_v52, %v1488_v47  ;;  %v1591_v24 = vadd.f32 %v11710_v1, %v1493_v7  ;;  %v11711_v3 = vld [vmem:[#allocation121_spill] sm:$0xff]  ;;  %v11712_v44 = vld [vmem:[#allocation122_spill] sm:$0xff]  ;;  %v11713_v45 = vld [vmem:[#allocation123_spill] sm:$0xff]  ;;  %11714 = vst [vmem:[#allocation78_spill] sm:$0xff] %v9877_v25 }
 0x538   : > { %v1588_v63 = vadd.f32 %v11711_v3, %v1490_v60  ;;  %v1593_v30 = vadd.f32 %v11712_v44, %v1495_v46  ;;  %v1590_v56 = vadd.f32 %v11713_v45, %v1492_v13  ;;  %v11715_v39 = vld [vmem:[#allocation124_spill] sm:$0xff]  ;;  %v11716_v49 = vld [vmem:[#allocation125_spill] sm:$0xff]  ;;  %v11717_v17 = vld [vmem:[#allocation126_spill] sm:$0xff]  ;;  %v4452_v46 = vmul.f32 %v9585_v18, %v9350_v26 }
 0x539   : > { %v1595_v21 = vadd.f32 %v11715_v39, %v1497_v16  ;;  %v1592_v55 = vadd.f32 %v11716_v49, %v1494_v4  ;;  %v1679_v59 = vadd.f32 %v11717_v17, %v1581_v48  ;;  %v11718_v27 = vld [vmem:[#allocation127_spill] sm:$0xff]  ;;  %v11719_v52 = vld [vmem:[#allocation128_spill] sm:$0xff]  ;;  %v11720_v1 = vld [vmem:[#allocation129_spill] sm:$0xff] }
 0x53a   : > { %v1594_v47 = vadd.f32 %v11718_v27, %v1496_v0  ;;  %v1681_v7 = vadd.f32 %v11719_v52, %v1583_v6  ;;  %v1596_v60 = vadd.f32 %v11720_v1, %v1498_v23  ;;  %v11721_v13 = vld [vmem:[#allocation130_spill] sm:$0xff]  ;;  %v11722_v4 = vld [vmem:[#allocation131_spill] sm:$0xff]  ;;  %v11723_v48 = vld [vmem:[#allocation132_spill] sm:$0xff]  ;;  %v9901_v1 = vpop.permute.xlu1 %4110  ;;  %4496 = vrot.lane.b32.xlu0 %v4452_v46, %s5751_s13  ;;  %4494 = vrot.lane.b32.xlu1 %v9487_v34, %s5751_s13 }
 0x53b   : > { %v1683_v16 = vadd.f32 %v11721_v13, %v1585_v33  ;;  %v1680_v3 = vadd.f32 %v11722_v4, %v1582_v31  ;;  %v1685_v44 = vadd.f32 %v11723_v48, %v1587_v10  ;;  %v11724_v0 = vld [vmem:[#allocation133_spill] sm:$0xff]  ;;  %v11725_v6 = vld [vmem:[#allocation134_spill] sm:$0xff]  ;;  %v11726_v23 = vld [vmem:[#allocation135_spill] sm:$0xff] }
 0x53c   : > { %v1682_v45 = vadd.f32 %v11724_v0, %v1584_v15  ;;  %v1687_v39 = vadd.f32 %v11725_v6, %v1589_v58  ;;  %v1684_v49 = vadd.f32 %v11726_v23, %v1586_v61  ;;  %v11727_v17 = vld [vmem:[#allocation136_spill] sm:$0xff]  ;;  %v11728_v27 = vld [vmem:[#allocation137_spill] sm:$0xff]  ;;  %v11729_v25 = vld [vmem:[#allocation138_spill] sm:$0xff] }
 0x53d   : > { %v1689_v40 = vadd.f32 %v11727_v17, %v1591_v24  ;;  %v1686_v52 = vadd.f32 %v11728_v27, %v1588_v63  ;;  %v1691_v33 = vadd.f32 %v11729_v25, %v1593_v30  ;;  %v11730_v13 = vld [vmem:[#allocation139_spill] sm:$0xff]  ;;  %v11731_v4 = vld [vmem:[#allocation140_spill] sm:$0xff]  ;;  %v11732_v48 = vld [vmem:[#allocation141_spill] sm:$0xff] }
 0x53e   : > { %v1688_v31 = vadd.f32 %v11730_v13, %v1590_v56  ;;  %v1693_v10 = vadd.f32 %v11731_v4, %v1595_v21  ;;  %v1690_v15 = vadd.f32 %v11732_v48, %v1592_v55  ;;  %v11733_v0 = vld [vmem:[#allocation142_spill] sm:$0xff]  ;;  %v11734_v6 = vld [vmem:[#allocation143_spill] sm:$0xff]  ;;  %v11735_v30 = vld [vmem:[#allocation144_spill] sm:$0xff]  ;;  %v9926_v50 = vpop.permute.xlu1 %4180 }
 0x53f   : > { %v1777_v58 = vadd.f32 %v11733_v0, %v1679_v59  ;;  %v1692_v61 = vadd.f32 %v11734_v6, %v1594_v47  ;;  %v9912_v24 = vld [vmem:[#allocation4 + $0x2e] sm:$0x1]  ;;  %v1779_v56 = vadd.f32 %v11735_v30, %v1681_v7  ;;  %v11736_v25 = vld [vmem:[#allocation145_spill] sm:$0xff]  ;;  %v11738_v17 = vld [vmem:[#allocation147_spill] sm:$0xff]  ;;  %v9924_v6 = vpop.permute.xlu0 %4186  ;;  %11744 = vst [vmem:[#allocation80_spill] sm:$0xff] %v9926_v50 }
 0x540   : > { %v4454_v63 = vmul.f32 %v9912_v24, %v9350_v26  ;;  %v1694_v21 = vadd.f32 %v11736_v25, %v1596_v60  ;;  %v11737_v23 = vld [vmem:[#allocation146_spill] sm:$0xff]  ;;  %v1778_v59 = vadd.f32 %v11738_v17, %v1680_v3  ;;  %v11739_v27 = vld [vmem:[#allocation148_spill] sm:$0xff]  ;;  %v11740_v13 = vld [vmem:[#allocation149_spill] sm:$0xff]  ;;  %11743 = vst [vmem:[#allocation79_spill] sm:$0xff] %v9924_v6 }
 0x541   : > { %v1781_v55 = vadd.f32 %v11737_v23, %v1683_v16  ;;  %v1783_v47 = vadd.f32 %v11739_v27, %v1685_v44  ;;  %v1780_v46 = vadd.f32 %v11740_v13, %v1682_v45  ;;  %v11741_v4 = vld [vmem:[#allocation150_spill] sm:$0xff]  ;;  %v11742_v43 = vld [vmem:[#allocation151_spill] sm:$0xff]  ;;  %v11745_v12 = vld [vmem:[#allocation152_spill] sm:$0xff] }
 0x542   : > { %v1785_v48 = vadd.f32 %v11741_v4, %v1687_v39  ;;  %v1782_v0 = vadd.f32 %v11742_v43, %v1684_v49  ;;  %v1787_v7 = vadd.f32 %v11745_v12, %v1689_v40  ;;  %v11746_v30 = vld [vmem:[#allocation153_spill] sm:$0xff]  ;;  %v11747_v25 = vld [vmem:[#allocation154_spill] sm:$0xff]  ;;  %v11748_v23 = vld [vmem:[#allocation155_spill] sm:$0xff]  ;;  %4500 = vrot.lane.b32.xlu0 %v4454_v63, %s5751_s13  ;;  %v4453_v12 = vmul.f32 %v9717_v20, %v9350_v26  ;;  %v9952_v32 = vpop.permute.xlu1 %4184 }
 0x543   : > { %v1784_v60 = vadd.f32 %v11746_v30, %v1686_v52  ;;  %v1789_v16 = vadd.f32 %v11747_v25, %v1691_v33  ;;  %v1786_v3 = vadd.f32 %v11748_v23, %v1688_v31  ;;  %v11749_v17 = vld [vmem:[#allocation156_spill] sm:$0xff]  ;;  %v11750_v49 = vld [vmem:[#allocation157_spill] sm:$0xff]  ;;  %v11751_v52 = vld [vmem:[#allocation158_spill] sm:$0xff]  ;;  %v9950_v5 = vpop.permute.xlu0 %4190  ;;  %11759 = vst [vmem:[#allocation82_spill] sm:$0xff] %v9952_v32 }
 0x544   : > { %v1791_v44 = vadd.f32 %v11749_v17, %v1693_v10  ;;  %v9936_v45 = vld [vmem:[#allocation4 + $0x18] sm:$0x1]  ;;  %v1788_v40 = vadd.f32 %v11750_v49, %v1690_v15  ;;  %v1875_v33 = vadd.f32 %v11751_v52, %v1777_v58  ;;  %v11752_v31 = vld [vmem:[#allocation159_spill] sm:$0xff]  ;;  %v11754_v63 = vld [vmem:[#allocation161_spill] sm:$0xff]  ;;  %11758 = vst [vmem:[#allocation81_spill] sm:$0xff] %v9950_v5  ;;  %4498 = vrot.lane.b32.xlu1 %v4453_v12, %s5751_s13 }
 0x545   : > { %v4538_v39 = vmul.f32 %v9936_v45, %v9400_v2  ;;  %v1790_v27 = vadd.f32 %v11752_v31, %v1692_v61  ;;  %v11753_v10 = vld [vmem:[#allocation160_spill] sm:$0xff]  ;;  %v1792_v4 = vadd.f32 %v11754_v63, %v1694_v21  ;;  %v11755_v43 = vld [vmem:[#allocation162_spill] sm:$0xff]  ;;  %v11756_v30 = vld [vmem:[#allocation163_spill] sm:$0xff] }
 0x546   : > { %v1877_v13 = vadd.f32 %v11753_v10, %v1779_v56  ;;  %v1879_v34 = vadd.f32 %v11755_v43, %v1781_v55  ;;  %v1876_v25 = vadd.f32 %v11756_v30, %v1778_v59  ;;  %v11757_v23 = vld [vmem:[#allocation164_spill] sm:$0xff]  ;;  %v11760_v28 = vld [vmem:[#allocation165_spill] sm:$0xff]  ;;  %v11761_v49 = vld [vmem:[#allocation166_spill] sm:$0xff]  ;;  %v9979_v50 = vpop.permute.xlu1 %4188 }
 0x547   : > { %v1881_v17 = vadd.f32 %v11757_v23, %v1783_v47  ;;  %v1878_v15 = vadd.f32 %v11760_v28, %v1780_v46  ;;  %v1883_v58 = vadd.f32 %v11761_v49, %v1785_v48  ;;  %v11762_v52 = vld [vmem:[#allocation167_spill] sm:$0xff]  ;;  %v11763_v31 = vld [vmem:[#allocation168_spill] sm:$0xff]  ;;  %v11764_v10 = vld [vmem:[#allocation169_spill] sm:$0xff]  ;;  %4570 = vrot.lane.b32.xlu0 %v4538_v39, %s5752_s23  ;;  %v9977_v5 = vpop.permute.xlu0 %4194  ;;  %11774 = vst [vmem:[#allocation84_spill] sm:$0xff] %v9979_v50 }
 0x548   : > { %v1880_v61 = vadd.f32 %v11762_v52, %v1782_v0  ;;  %v1885_v56 = vadd.f32 %v11763_v31, %v1787_v7  ;;  %v1882_v21 = vadd.f32 %v11764_v10, %v1784_v60  ;;  %v9961_v55 = vld [vmem:[#allocation4 + $0x1a] sm:$0x1]  ;;  %v9965_v47 = vld [vmem:[#allocation4 + $0x2f] sm:$0x1]  ;;  %v11766_v0 = vld [vmem:[#allocation171_spill] sm:$0xff]  ;;  %11773 = vst [vmem:[#allocation83_spill] sm:$0xff] %v9977_v5 }
 0x549   : > { %v4540_v59 = vmul.f32 %v9961_v55, %v9400_v2  ;;  %v4455_v28 = vmul.f32 %v9965_v47, %v9350_v26  ;;  %v11765_v46 = vld [vmem:[#allocation170_spill] sm:$0xff]  ;;  %v1884_v7 = vadd.f32 %v11766_v0, %v1786_v3  ;;  %v11767_v63 = vld [vmem:[#allocation172_spill] sm:$0xff]  ;;  %v11768_v43 = vld [vmem:[#allocation173_spill] sm:$0xff] }
 0x54a   : > { %v1887_v48 = vadd.f32 %v11765_v46, %v1789_v16  ;;  %v1889_v60 = vadd.f32 %v11767_v63, %v1791_v44  ;;  %v1886_v39 = vadd.f32 %v11768_v43, %v1788_v40  ;;  %v11769_v30 = vld [vmem:[#allocation174_spill] sm:$0xff]  ;;  %v11770_v23 = vld [vmem:[#allocation175_spill] sm:$0xff]  ;;  %v11771_v52 = vld [vmem:[#allocation176_spill] sm:$0xff]  ;;  %v10003_v50 = vpop.permute.xlu1 %4192 }
 0x54b   : > { %v1973_v12 = vadd.f32 %v11769_v30, %v1875_v33  ;;  %v1888_v49 = vadd.f32 %v11770_v23, %v1790_v27  ;;  %v1975_v31 = vadd.f32 %v11771_v52, %v1877_v13  ;;  %v11772_v10 = vld [vmem:[#allocation177_spill] sm:$0xff]  ;;  %v11775_v26 = vld [vmem:[#allocation178_spill] sm:$0xff]  ;;  %v11776_v46 = vld [vmem:[#allocation179_spill] sm:$0xff]  ;;  %4574 = vrot.lane.b32.xlu0 %v4540_v59, %s5752_s23  ;;  %4502 = vrot.lane.b32.xlu1 %v4455_v28, %s5751_s13  ;;  %s5329_s13 = sshll.u32 %s5897_s8, 4 }
 0x54c   : > { %v1890_v32 = vadd.f32 %v11772_v10, %v1792_v4  ;;  %v1977_v16 = vadd.f32 %v11775_v26, %v1879_v34  ;;  %v1974_v3 = vadd.f32 %v11776_v46, %v1876_v25  ;;  %v11777_v0 = vld [vmem:[#allocation180_spill] sm:$0xff]  ;;  %v11778_v63 = vld [vmem:[#allocation181_spill] sm:$0xff]  ;;  %v11779_v43 = vld [vmem:[#allocation182_spill] sm:$0xff]  ;;  %11790 = vst [vmem:[#allocation86_spill] sm:$0xff] %v10003_v50 }
 0x54d   : > { %v1979_v44 = vadd.f32 %v11777_v0, %v1881_v17  ;;  %v1976_v40 = vadd.f32 %v11778_v63, %v1878_v15  ;;  %v1981_v33 = vadd.f32 %v11779_v43, %v1883_v58  ;;  %v11780_v30 = vld [vmem:[#allocation183_spill] sm:$0xff]  ;;  %v9989_v13 = vld [vmem:[#allocation4 + $0x19] sm:$0x1]  ;;  %v11782_v25 = vld [vmem:[#allocation185_spill] sm:$0xff] }
 0x54e   : > { %v1978_v27 = vadd.f32 %v11780_v30, %v1880_v61  ;;  %v4539_v4 = vmul.f32 %v9989_v13, %v9400_v2  ;;  %v11781_v34 = vld [vmem:[#allocation184_spill] sm:$0xff]  ;;  %v1980_v52 = vadd.f32 %v11782_v25, %v1882_v21  ;;  %v11783_v17 = vld [vmem:[#allocation186_spill] sm:$0xff]  ;;  %v11784_v15 = vld [vmem:[#allocation187_spill] sm:$0xff]  ;;  %v10001_v30 = vpop.permute.xlu0 %4198  ;;  %v10028_v50 = vpop.permute.xlu1 %4196 }
 0x54f   : > { %v1983_v23 = vadd.f32 %v11781_v34, %v1885_v56  ;;  %v1985_v10 = vadd.f32 %v11783_v17, %v1887_v48  ;;  %v1982_v26 = vadd.f32 %v11784_v15, %v1884_v7  ;;  %v11785_v58 = vld [vmem:[#allocation188_spill] sm:$0xff]  ;;  %v11786_v61 = vld [vmem:[#allocation189_spill] sm:$0xff]  ;;  %v11787_v59 = vld [vmem:[#allocation190_spill] sm:$0xff]  ;;  %11789 = vst [vmem:[#allocation85_spill] sm:$0xff] %v10001_v30  ;;  %4578 = vrot.lane.b32.xlu0 %v9491_v35, %s5752_s23 }
 0x550   : > { %v1987_v46 = vadd.f32 %v11785_v58, %v1889_v60  ;;  %v1984_v0 = vadd.f32 %v11786_v61, %v1886_v39  ;;  %v2071_v63 = vadd.f32 %v11787_v59, %v1973_v12  ;;  %v11788_v28 = vld [vmem:[#allocation191_spill] sm:$0xff]  ;;  %v11791_v5 = vld [vmem:[#allocation192_spill] sm:$0xff]  ;;  %v11792_v34 = vld [vmem:[#allocation193_spill] sm:$0xff]  ;;  %4572 = vrot.lane.b32.xlu1 %v4539_v4, %s5752_s23  ;;  %11806 = vst [vmem:[#allocation88_spill] sm:$0xff] %v10028_v50 }
 0x551   : > { %v1986_v43 = vadd.f32 %v11788_v28, %v1888_v49  ;;  %v2073_v56 = vadd.f32 %v11791_v5, %v1975_v31  ;;  %v1988_v21 = vadd.f32 %v11792_v34, %v1890_v32  ;;  %v11793_v25 = vld [vmem:[#allocation194_spill] sm:$0xff]  ;;  %v11794_v17 = vld [vmem:[#allocation195_spill] sm:$0xff]  ;;  %v11795_v15 = vld [vmem:[#allocation196_spill] sm:$0xff] }
 0x552   : > { %v2075_v48 = vadd.f32 %v11793_v25, %v1977_v16  ;;  %v2072_v7 = vadd.f32 %v11794_v17, %v1974_v3  ;;  %v2077_v60 = vadd.f32 %v11795_v15, %v1979_v44  ;;  %v11796_v58 = vld [vmem:[#allocation197_spill] sm:$0xff]  ;;  %v10014_v12 = vld [vmem:[#allocation4 + $0x1b] sm:$0x1]  ;;  %v11797_v49 = vld [vmem:[#allocation198_spill] sm:$0xff] }
 0x553   : > { %v2074_v39 = vadd.f32 %v11796_v58, %v1976_v40  ;;  %v4541_v5 = vmul.f32 %v10014_v12, %v9400_v2  ;;  %v2079_v32 = vadd.f32 %v11797_v49, %v1981_v33  ;;  %v11798_v31 = vld [vmem:[#allocation199_spill] sm:$0xff]  ;;  %v11799_v61 = vld [vmem:[#allocation200_spill] sm:$0xff]  ;;  %v11800_v59 = vld [vmem:[#allocation201_spill] sm:$0xff]  ;;  %v10026_v58 = vpop.permute.xlu0 %4202  ;;  %4582 = vrot.lane.b32.xlu0 %v9495_v42, %s5752_s23  ;;  %v10050_v42 = vpop.permute.xlu1 %4200 }
 0x554   : > { %v2076_v16 = vadd.f32 %v11798_v31, %v1978_v27  ;;  %v2081_v3 = vadd.f32 %v11799_v61, %v1983_v23  ;;  %v2078_v44 = vadd.f32 %v11800_v59, %v1980_v52  ;;  %v11801_v28 = vld [vmem:[#allocation202_spill] sm:$0xff]  ;;  %v11802_v34 = vld [vmem:[#allocation203_spill] sm:$0xff]  ;;  %v11803_v35 = vld [vmem:[#allocation204_spill] sm:$0xff]  ;;  %11805 = vst [vmem:[#allocation87_spill] sm:$0xff] %v10026_v58 }
 0x555   : > { %v2083_v40 = vadd.f32 %v11801_v28, %v1985_v10  ;;  %v2080_v25 = vadd.f32 %v11802_v34, %v1982_v26  ;;  %v2085_v17 = vadd.f32 %v11803_v35, %v1987_v46  ;;  %v11804_v4 = vld [vmem:[#allocation205_spill] sm:$0xff]  ;;  %v11807_v2 = vld [vmem:[#allocation206_spill] sm:$0xff]  ;;  %v11808_v49 = vld [vmem:[#allocation207_spill] sm:$0xff]  ;;  %4576 = vrot.lane.b32.xlu1 %v4541_v5, %s5752_s23  ;;  %11822 = vst [vmem:[#allocation89_spill] sm:$0xff] %v10050_v42 }
 0x556   : > { %v2082_v15 = vadd.f32 %v11804_v4, %v1984_v0  ;;  %v2169_v33 = vadd.f32 %v11807_v2, %v2071_v63  ;;  %v2084_v27 = vadd.f32 %v11808_v49, %v1986_v43  ;;  %v11809_v31 = vld [vmem:[#allocation208_spill] sm:$0xff]  ;;  %v11810_v61 = vld [vmem:[#allocation209_spill] sm:$0xff]  ;;  %v11811_v59 = vld [vmem:[#allocation210_spill] sm:$0xff] }
 0x557   : > { %v2171_v23 = vadd.f32 %v11809_v31, %v2073_v56  ;;  %v2086_v52 = vadd.f32 %v11810_v61, %v1988_v21  ;;  %v2173_v10 = vadd.f32 %v11811_v59, %v2075_v48  ;;  %v11812_v28 = vld [vmem:[#allocation211_spill] sm:$0xff]  ;;  %v11813_v34 = vld [vmem:[#allocation212_spill] sm:$0xff]  ;;  %v11814_v0 = vld [vmem:[#allocation213_spill] sm:$0xff]  ;;  %4586 = vrot.lane.b32.xlu0 %v9506_v37, %s5752_s23 }
 0x558   : > { %v2170_v26 = vadd.f32 %v11812_v28, %v2072_v7  ;;  %v2175_v46 = vadd.f32 %v11813_v34, %v2077_v60  ;;  %v2172_v35 = vadd.f32 %v11814_v0, %v2074_v39  ;;  %v11815_v63 = vld [vmem:[#allocation214_spill] sm:$0xff]  ;;  %v11816_v43 = vld [vmem:[#allocation215_spill] sm:$0xff]  ;;  %v11817_v56 = vld [vmem:[#allocation216_spill] sm:$0xff]  ;;  %v10048_v34 = vpop.permute.xlu0 %4206 }
 0x559   : > { %v2177_v4 = vadd.f32 %v11815_v63, %v2079_v32  ;;  %v2174_v2 = vadd.f32 %v11816_v43, %v2076_v16  ;;  %v2179_v49 = vadd.f32 %v11817_v56, %v2081_v3  ;;  %v11818_v21 = vld [vmem:[#allocation217_spill] sm:$0xff]  ;;  %v11819_v48 = vld [vmem:[#allocation218_spill] sm:$0xff]  ;;  %v11820_v7 = vld [vmem:[#allocation219_spill] sm:$0xff]  ;;  %4580 = vrot.lane.b32.xlu1 %v9510_v29, %s5752_s23 }
 0x55a   : > { %v2176_v31 = vadd.f32 %v11818_v21, %v2078_v44  ;;  %v2181_v61 = vadd.f32 %v11819_v48, %v2083_v40  ;;  %v2178_v59 = vadd.f32 %v11820_v7, %v2080_v25  ;;  %v11821_v60 = vld [vmem:[#allocation220_spill] sm:$0xff]  ;;  %v11823_v5 = vld [vmem:[#allocation221_spill] sm:$0xff]  ;;  %v11824_v0 = vld [vmem:[#allocation222_spill] sm:$0xff] }
 0x55b   : > { %v2183_v28 = vadd.f32 %v11821_v60, %v2085_v17  ;;  %v2180_v39 = vadd.f32 %v11823_v5, %v2082_v15  ;;  %v2267_v32 = vadd.f32 %v11824_v0, %v2169_v33  ;;  %v11825_v63 = vld [vmem:[#allocation223_spill] sm:$0xff]  ;;  %v11826_v43 = vld [vmem:[#allocation224_spill] sm:$0xff]  ;;  %v11827_v56 = vld [vmem:[#allocation225_spill] sm:$0xff] }
 0x55c   : > { %v2182_v16 = vadd.f32 %v11825_v63, %v2084_v27  ;;  %v2269_v3 = vadd.f32 %v11826_v43, %v2171_v23  ;;  %v2184_v44 = vadd.f32 %v11827_v56, %v2086_v52  ;;  %v11828_v21 = vld [vmem:[#allocation226_spill] sm:$0xff]  ;;  %v11829_v48 = vld [vmem:[#allocation227_spill] sm:$0xff]  ;;  %v11830_v17 = vld [vmem:[#allocation228_spill] sm:$0xff]  ;;  %v10071_v37 = vpop.permute.xlu0 %4276 }
 0x55d   : > { %v2271_v40 = vadd.f32 %v11828_v21, %v2173_v10  ;;  %v2268_v25 = vadd.f32 %v11829_v48, %v2170_v26  ;;  %v2273_v15 = vadd.f32 %v11830_v17, %v2175_v46  ;;  %v11831_v7 = vld [vmem:[#allocation229_spill] sm:$0xff]  ;;  %v11832_v60 = vld [vmem:[#allocation230_spill] sm:$0xff]  ;;  %v11833_v5 = vld [vmem:[#allocation231_spill] sm:$0xff]  ;;  %v10073_v48 = vpop.permute.xlu1 %4204 }
 0x55e   : > { %v2270_v33 = vadd.f32 %v11831_v7, %v2172_v35  ;;  %v2275_v27 = vadd.f32 %v11832_v60, %v2177_v4  ;;  %v2272_v23 = vadd.f32 %v11833_v5, %v2174_v2  ;;  %v11834_v0 = vld [vmem:[#allocation232_spill] sm:$0xff]  ;;  %v11835_v63 = vld [vmem:[#allocation233_spill] sm:$0xff]  ;;  %v11836_v43 = vld [vmem:[#allocation234_spill] sm:$0xff]  ;;  %11838 = vst [vmem:[#allocation90_spill] sm:$0xff] %v10073_v48 }
 0x55f   : > { %v2277_v52 = vadd.f32 %v11834_v0, %v2179_v49  ;;  %v2274_v10 = vadd.f32 %v11835_v63, %v2176_v31  ;;  %v2279_v26 = vadd.f32 %v11836_v43, %v2181_v61  ;;  %v11837_v56 = vld [vmem:[#allocation235_spill] sm:$0xff]  ;;  %v11839_v29 = vld [vmem:[#allocation236_spill] sm:$0xff]  ;;  %v11840_v17 = vld [vmem:[#allocation237_spill] sm:$0xff] }
 0x560   : > { %v2276_v21 = vadd.f32 %v11837_v56, %v2178_v59  ;;  %v2281_v46 = vadd.f32 %v11839_v29, %v2183_v28  ;;  %v2278_v35 = vadd.f32 %v11840_v17, %v2180_v39  ;;  %v11841_v7 = vld [vmem:[#allocation238_spill] sm:$0xff]  ;;  %v11842_v60 = vld [vmem:[#allocation239_spill] sm:$0xff]  ;;  %v11843_v5 = vld [vmem:[#allocation240_spill] sm:$0xff] }
 0x561   : > { %v2365_v4 = vadd.f32 %v11841_v7, %v2267_v32  ;;  %v2280_v2 = vadd.f32 %v11842_v60, %v2182_v16  ;;  %v2367_v49 = vadd.f32 %v11843_v5, %v2269_v3  ;;  %v11844_v0 = vld [vmem:[#allocation241_spill] sm:$0xff]  ;;  %v11845_v63 = vld [vmem:[#allocation242_spill] sm:$0xff]  ;;  %v11848_v56 = vld [vmem:[#allocation243_spill] sm:$0xff]  ;;  %v10096_v42 = vpop.permute.xlu1 %4208 }
 0x562   : > { %v2282_v31 = vadd.f32 %v11844_v0, %v2184_v44  ;;  %v2369_v61 = vadd.f32 %v11845_v63, %v2271_v40  ;;  %v11846_v59 = vld [vmem:[#allocation45_spill] sm:$0xff]  ;;  %v11847_v43 = vld [vmem:[#allocation46_spill] sm:$0xff]  ;;  %v2366_v28 = vadd.f32 %v11848_v56, %v2268_v25  ;;  %v11849_v29 = vld [vmem:[#allocation244_spill] sm:$0xff]  ;;  %11857 = vst [vmem:[#allocation92_spill] sm:$0xff] %v10096_v42 }
 0x563   : > { %4590 = vrot.lane.b32.xlu0 %v11846_v59, %s5752_s23  ;;  %4584 = vrot.lane.b32.xlu1 %v11847_v43, %s5752_s23  ;;  %v2371_v39 = vadd.f32 %v11849_v29, %v2273_v15  ;;  %v11850_v17 = vld [vmem:[#allocation245_spill] sm:$0xff]  ;;  %v11851_v7 = vld [vmem:[#allocation246_spill] sm:$0xff]  ;;  %v11852_v60 = vld [vmem:[#allocation247_spill] sm:$0xff]  ;;  %v10094_v59 = vpop.permute.xlu0 %4280 }
 0x564   : > { %v2368_v32 = vadd.f32 %v11850_v17, %v2270_v33  ;;  %v2373_v16 = vadd.f32 %v11851_v7, %v2275_v27  ;;  %v2370_v3 = vadd.f32 %v11852_v60, %v2272_v23  ;;  %v11853_v5 = vld [vmem:[#allocation248_spill] sm:$0xff]  ;;  %v11854_v0 = vld [vmem:[#allocation249_spill] sm:$0xff]  ;;  %v11855_v63 = vld [vmem:[#allocation250_spill] sm:$0xff]  ;;  %11856 = vst [vmem:[#allocation91_spill] sm:$0xff] %v10094_v59 }
 0x565   : > { %v2375_v44 = vadd.f32 %v11853_v5, %v2277_v52  ;;  %v2372_v40 = vadd.f32 %v11854_v0, %v2274_v10  ;;  %v2377_v48 = vadd.f32 %v11855_v63, %v2279_v26  ;;  %v11858_v43 = vld [vmem:[#allocation251_spill] sm:$0xff]  ;;  %v11859_v56 = vld [vmem:[#allocation252_spill] sm:$0xff]  ;;  %v11860_v29 = vld [vmem:[#allocation253_spill] sm:$0xff] }
 0x566   : > { %v2374_v25 = vadd.f32 %v11858_v43, %v2276_v21  ;;  %v2379_v15 = vadd.f32 %v11859_v56, %v2281_v46  ;;  %v2376_v33 = vadd.f32 %v11860_v29, %v2278_v35  ;;  %v11861_v17 = vld [vmem:[#allocation16_spill] sm:$0xff]  ;;  %v11862_v23 = vld [vmem:[#allocation254_spill] sm:$0xff]  ;;  %v11863_v7 = vld [vmem:[#allocation255_spill] sm:$0xff] }
 0x567   : > { %v10103_v27 = vmul.f32 %v9936_v45, %v11861_v17  ;;  %v2463_v52 = vadd.f32 %v11862_v23, %v2365_v4  ;;  %v2378_v10 = vadd.f32 %v11863_v7, %v2280_v2  ;;  %v11864_v60 = vld [vmem:[#allocation457_spill] sm:$0xff]  ;;  %v11865_v5 = vld [vmem:[#allocation47_spill] sm:$0xff]  ;;  %v11866_v21 = vld [vmem:[#allocation48_spill] sm:$0xff]  ;;  %v10120_v4 = vmul.f32 %v9961_v55, %v11861_v17 }
 0x568   : > { %v10109_v26 = vmul.f32 %v9961_v55, %v11864_v60  ;;  %4594 = vrot.lane.b32.xlu0 %v11865_v5, %s5752_s23  ;;  %4588 = vrot.lane.b32.xlu1 %v11866_v21, %s5752_s23  ;;  %v11867_v46 = vld [vmem:[#allocation256_spill] sm:$0xff]  ;;  %v11868_v0 = vld [vmem:[#allocation257_spill] sm:$0xff]  ;;  %v11869_v45 = vld [vmem:[#allocation258_spill] sm:$0xff]  ;;  %v10127_v5 = vmul.f32 %v9989_v13, %v11861_v17  ;;  %v10129_v21 = vpop.permute.xlu0 %4284  ;;  %v10143_v13 = vmul.f32 %v10014_v12, %v11861_v17 }
 0x569   : > { %v2465_v35 = vadd.f32 %v11867_v46, %v2367_v49  ;;  %v2380_v63 = vadd.f32 %v11868_v0, %v2282_v31  ;;  %v2467_v43 = vadd.f32 %v11869_v45, %v2369_v61  ;;  %v11870_v2 = vld [vmem:[#allocation259_spill] sm:$0xff]  ;;  %v11871_v29 = vld [vmem:[#allocation260_spill] sm:$0xff]  ;;  %v11872_v7 = vld [vmem:[#allocation261_spill] sm:$0xff]  ;;  %11873 = vst [vmem:[#allocation93_spill] sm:$0xff] %v10129_v21  ;;  %v10131_v49 = vpop.permute.xlu1 %4278 }
 0x56a   : > { %v2464_v56 = vadd.f32 %v11870_v2, %v2366_v28  ;;  %v2469_v23 = vadd.f32 %v11871_v29, %v2371_v39  ;;  %v2466_v50 = vadd.f32 %v11872_v7, %v2368_v32  ;;  %11874 = vst [vmem:[#allocation94_spill] sm:$0xff] %v10131_v49  ;;  %v11875_v31 = vld [vmem:[#allocation262_spill] sm:$0xff]  ;;  %v11876_v46 = vld [vmem:[#allocation263_spill] sm:$0xff]  ;;  %v10138_v28 = vmul.f32 %v10014_v12, %v11864_v60  ;;  %v11878_v39 = vld [vmem:[#allocation264_spill] sm:$0xff] }
 0x56b   : > { %v2471_v61 = vadd.f32 %v11875_v31, %v2373_v16  ;;  %v2468_v0 = vadd.f32 %v11876_v46, %v2370_v3  ;;  %v11877_v45 = vld [vmem:[#allocation270_spill] sm:$0xff]  ;;  %v2473_v32 = vadd.f32 %v11878_v39, %v2375_v44  ;;  %v11879_v2 = vld [vmem:[#allocation49_spill] sm:$0xff]  ;;  %v11880_v29 = vld [vmem:[#allocation51_spill] sm:$0xff]  ;;  %v4636_v16 = vmul.f32 %v9961_v55, %v9460_v53 }
 0x56c   : > { %v2561_v58 = vadd.f32 %v11877_v45, %v2463_v52  ;;  %4598 = vrot.lane.b32.xlu0 %v11879_v2, %s5752_s23  ;;  %4592 = vrot.lane.b32.xlu1 %v11880_v29, %s5752_s23  ;;  %v11881_v3 = vld [vmem:[#allocation265_spill] sm:$0xff]  ;;  %v11882_v7 = vld [vmem:[#allocation266_spill] sm:$0xff]  ;;  %v11883_v31 = vld [vmem:[#allocation267_spill] sm:$0xff]  ;;  %v10159_v29 = vpop.permute.xlu0 %4288 }
 0x56d   : > { %v2470_v52 = vadd.f32 %v11881_v3, %v2372_v40  ;;  %v2475_v60 = vadd.f32 %v11882_v7, %v2377_v48  ;;  %v2472_v46 = vadd.f32 %v11883_v31, %v2374_v25  ;;  %v11884_v44 = vld [vmem:[#allocation286_spill] sm:$0xff]  ;;  %v11885_v39 = vld [vmem:[#allocation268_spill] sm:$0xff]  ;;  %v11886_v30 = vld [vmem:[#allocation269_spill] sm:$0xff]  ;;  %v10161_v59 = vpop.permute.xlu1 %4282 }
 0x56e   : > { %v2659_v45 = vadd.f32 %v11884_v44, %v2561_v58  ;;  %v2477_v17 = vadd.f32 %v11885_v39, %v2379_v15  ;;  %v2474_v49 = vadd.f32 %v11886_v30, %v2376_v33  ;;  %v11887_v21 = vld [vmem:[#allocation271_spill] sm:$0xff]  ;;  %v11888_v6 = vld [vmem:[#allocation272_spill] sm:$0xff]  ;;  %v11889_v55 = vld [vmem:[#allocation273_spill] sm:$0xff] }
 0x56f   : > { %v2476_v2 = vadd.f32 %v11887_v21, %v2378_v10  ;;  %v2563_v42 = vadd.f32 %v11888_v6, %v2465_v35  ;;  %v2478_v40 = vadd.f32 %v11889_v55, %v2380_v63  ;;  %v11890_v3 = vld [vmem:[#allocation274_spill] sm:$0xff]  ;;  %v11891_v7 = vld [vmem:[#allocation275_spill] sm:$0xff]  ;;  %v11893_v44 = vld [vmem:[#allocation276_spill] sm:$0xff] }
 0x570   : > { %v2565_v48 = vadd.f32 %v11890_v3, %v2467_v43  ;;  %v2562_v25 = vadd.f32 %v11891_v7, %v2464_v56  ;;  %v11892_v31 = vld [vmem:[#allocation302_spill] sm:$0xff]  ;;  %v2567_v15 = vadd.f32 %v11893_v44, %v2469_v23  ;;  %v11894_v39 = vld [vmem:[#allocation277_spill] sm:$0xff]  ;;  %4668 = vrot.lane.b32.xlu0 %v4636_v16, %s5752_s23  ;;  %v11896_v6 = vld [vmem:[#allocation52_spill] sm:$0xff] }
 0x571   : > { %v2757_v58 = vadd.f32 %v11892_v31, %v2659_v45  ;;  %v2564_v30 = vadd.f32 %v11894_v39, %v2466_v50  ;;  %v11895_v33 = vld [vmem:[#allocation278_spill] sm:$0xff]  ;;  %4596 = vrot.lane.b32.xlu1 %v11896_v6, %s5752_s23  ;;  %v11897_v35 = vld [vmem:[#allocation279_spill] sm:$0xff]  ;;  %v11898_v63 = vld [vmem:[#allocation280_spill] sm:$0xff] }
 0x572   : > { %v2569_v10 = vadd.f32 %v11895_v33, %v2471_v61  ;;  %v2566_v21 = vadd.f32 %v11897_v35, %v2468_v0  ;;  %v2571_v55 = vadd.f32 %v11898_v63, %v2473_v32  ;;  %v11899_v43 = vld [vmem:[#allocation281_spill] sm:$0xff]  ;;  %v11900_v56 = vld [vmem:[#allocation318_spill] sm:$0xff]  ;;  %v11902_v23 = vld [vmem:[#allocation283_spill] sm:$0xff]  ;;  %v10187_v33 = vpop.permute.xlu0 %4292  ;;  %v10189_v0 = vpop.permute.xlu1 %4286 }
 0x573   : > { %v2568_v3 = vadd.f32 %v11899_v43, %v2470_v52  ;;  %v2855_v7 = vadd.f32 %v11900_v56, %v2757_v58  ;;  %v11901_v45 = vld [vmem:[#allocation282_spill] sm:$0xff]  ;;  %v2570_v44 = vadd.f32 %v11902_v23, %v2472_v46  ;;  %v11903_v50 = vld [vmem:[#allocation483_spill] sm:$0xff]  ;;  %v11904_v16 = vld [vmem:[#allocation20_spill] sm:$0xff]  ;;  %11905 = vst [vmem:[#allocation95_spill] sm:$0xff] %v10187_v33 }
 0x574   : > { %v2573_v31 = vadd.f32 %v11901_v45, %v2475_v60  ;;  %v10181_v61 = vmul.f32 %v9585_v18, %v11903_v50  ;;  %v10185_v39 = vmul.f32 %v9585_v18, %v11904_v16  ;;  %11906 = vst [vmem:[#allocation96_spill] sm:$0xff] %v10189_v0  ;;  %v11907_v32 = vld [vmem:[#allocation284_spill] sm:$0xff]  ;;  %v11908_v6 = vld [vmem:[#allocation285_spill] sm:$0xff]  ;;  %v11909_v35 = vld [vmem:[#allocation287_spill] sm:$0xff]  ;;  %v10196_v46 = vmul.f32 %v9912_v24, %v11903_v50 }
 0x575   : > { %v2575_v52 = vadd.f32 %v11907_v32, %v2477_v17  ;;  %v2572_v58 = vadd.f32 %v11908_v6, %v2474_v49  ;;  %v2574_v60 = vadd.f32 %v11909_v35, %v2476_v2  ;;  %v11910_v63 = vld [vmem:[#allocation288_spill] sm:$0xff]  ;;  %v10201_v18 = vmul.f32 %v9717_v20, %v11903_v50  ;;  %v11911_v56 = vld [vmem:[#allocation30_spill] sm:$0xff]  ;;  %4600 = vrot.lane.b32.xlu1 %v9557_v62, %s5752_s23  ;;  %v11912_v17 = vld [vmem:[#allocation289_spill] sm:$0xff] }
 0x576   : > { %v2661_v43 = vadd.f32 %v11910_v63, %v2563_v42  ;;  %4672 = vrot.lane.b32.xlu0 %v11911_v56, %s5752_s23  ;;  %v4637_v49 = vmul.f32 %v10014_v12, %v9460_v53  ;;  %v2576_v2 = vadd.f32 %v11912_v17, %v2478_v40  ;;  %v2914_v24 = vadd.f32 %v10103_v27, %v2855_v7  ;;  %v11913_v23 = vld [vmem:[#allocation290_spill] sm:$0xff]  ;;  %v11914_v6 = vld [vmem:[#allocation291_spill] sm:$0xff]  ;;  %v11915_v62 = vld [vmem:[#allocation292_spill] sm:$0xff]  ;;  %v10223_v12 = vpop.permute.xlu0 %4296  ;;  %v10225_v40 = vpop.permute.xlu1 %4290 }
 0x577   : > { %v10213_v42 = vmul.f32 %v9717_v20, %v11904_v16  ;;  %v10217_v45 = vmul.f32 %v9965_v47, %v11903_v50  ;;  %v2663_v32 = vadd.f32 %v11913_v23, %v2565_v48  ;;  %v2660_v35 = vadd.f32 %v11914_v6, %v2562_v25  ;;  %v11916_v56 = vld [vmem:[#allocation304_spill] sm:$0xff]  ;;  %11917 = vst [vmem:[#allocation97_spill] sm:$0xff] %v10223_v12  ;;  %v11919_v27 = vld [vmem:[#allocation293_spill] sm:$0xff]  ;;  %v11920_v20 = vld [vmem:[#allocation294_spill] sm:$0xff] }
 0x578   : > { %v2665_v63 = vadd.f32 %v11915_v62, %v2567_v15  ;;  %v2759_v53 = vadd.f32 %v11916_v56, %v2661_v43  ;;  %11918 = vst [vmem:[#allocation98_spill] sm:$0xff] %v10225_v40  ;;  %v2662_v7 = vadd.f32 %v11919_v27, %v2564_v30  ;;  %v2667_v16 = vadd.f32 %v11920_v20, %v2569_v10  ;;  %v11921_v17 = vld [vmem:[#allocation295_spill] sm:$0xff]  ;;  %v11922_v47 = vld [vmem:[#allocation296_spill] sm:$0xff]  ;;  %v11923_v33 = vld [vmem:[#allocation297_spill] sm:$0xff] }
 0x579   : > { %v2664_v0 = vadd.f32 %v11921_v17, %v2566_v21  ;;  %v2669_v50 = vadd.f32 %v11922_v47, %v2571_v55  ;;  %v2666_v48 = vadd.f32 %v11923_v33, %v2568_v3  ;;  %v11924_v23 = vld [vmem:[#allocation298_spill] sm:$0xff]  ;;  %v11925_v6 = vld [vmem:[#allocation320_spill] sm:$0xff]  ;;  %4670 = vrot.lane.b32.xlu1 %v4637_v49, %s5752_s23  ;;  %v11926_v43 = vld [vmem:[#allocation299_spill] sm:$0xff]  ;;  %v2948_v21 = vadd.f32 %v10109_v26, %v2914_v24 }
 0x57a   : > { %v2671_v25 = vadd.f32 %v11924_v23, %v2573_v31  ;;  %v2857_v15 = vadd.f32 %v11925_v6, %v2759_v53  ;;  %4676 = vrot.lane.b32.xlu0 %v9561_v36, %s5752_s23  ;;  %v2668_v62 = vadd.f32 %v11926_v43, %v2570_v44  ;;  %v11927_v30 = vld [vmem:[#allocation300_spill] sm:$0xff]  ;;  %v11928_v10 = vld [vmem:[#allocation301_spill] sm:$0xff]  ;;  %v11929_v55 = vld [vmem:[#allocation303_spill] sm:$0xff]  ;;  %v10245_v23 = vpop.permute.xlu0 %4300  ;;  %v10247_v36 = vpop.permute.xlu1 %4294 }
 0x57b   : > { %v2673_v56 = vadd.f32 %v11927_v30, %v2575_v52  ;;  %v2670_v27 = vadd.f32 %v11928_v10, %v2572_v58  ;;  %v2672_v20 = vadd.f32 %v11929_v55, %v2574_v60  ;;  %v11930_v3 = vld [vmem:[#allocation305_spill] sm:$0xff]  ;;  %v11931_v31 = vld [vmem:[#allocation306_spill] sm:$0xff]  ;;  %v11932_v53 = vld [vmem:[#allocation307_spill] sm:$0xff]  ;;  %11933 = vst [vmem:[#allocation99_spill] sm:$0xff] %v10245_v23 }
 0x57c   : > { %v2674_v33 = vadd.f32 %v11930_v3, %v2576_v2  ;;  %v2761_v17 = vadd.f32 %v11931_v31, %v2663_v32  ;;  %v2758_v47 = vadd.f32 %v11932_v53, %v2660_v35  ;;  %11934 = vst [vmem:[#allocation100_spill] sm:$0xff] %v10247_v36  ;;  %v11935_v49 = vld [vmem:[#allocation308_spill] sm:$0xff]  ;;  %v11936_v6 = vld [vmem:[#allocation309_spill] sm:$0xff]  ;;  %v11937_v43 = vld [vmem:[#allocation310_spill] sm:$0xff]  ;;  %v2916_v32 = vadd.f32 %v10120_v4, %v2857_v15 }
 0x57d   : > { %v2763_v44 = vadd.f32 %v11935_v49, %v2665_v63  ;;  %v2760_v52 = vadd.f32 %v11936_v6, %v2662_v7  ;;  %v2765_v58 = vadd.f32 %v11937_v43, %v2667_v16  ;;  %v11938_v30 = vld [vmem:[#allocation311_spill] sm:$0xff]  ;;  %v11939_v24 = vld [vmem:[#allocation312_spill] sm:$0xff]  ;;  %v11940_v10 = vld [vmem:[#allocation313_spill] sm:$0xff] }
 0x57e   : > { %v2762_v26 = vadd.f32 %v11938_v30, %v2664_v0  ;;  %v2767_v60 = vadd.f32 %v11939_v24, %v2669_v50  ;;  %v2764_v2 = vadd.f32 %v11940_v10, %v2666_v48  ;;  %v11941_v35 = vld [vmem:[#allocation57_spill] sm:$0xff]  ;;  %v11942_v55 = vld [vmem:[#allocation31_spill] sm:$0xff]  ;;  %v11943_v3 = vld [vmem:[#allocation314_spill] sm:$0xff]  ;;  %v10268_v10 = vpop.permute.xlu0 %4304 }
 0x57f   : > { %4680 = vrot.lane.b32.xlu0 %v11941_v35, %s5752_s23  ;;  %4674 = vrot.lane.b32.xlu1 %v11942_v55, %s5752_s23  ;;  %v2769_v63 = vadd.f32 %v11943_v3, %v2671_v25  ;;  %v11944_v31 = vld [vmem:[#allocation315_spill] sm:$0xff]  ;;  %v11945_v53 = vld [vmem:[#allocation316_spill] sm:$0xff]  ;;  %v11946_v49 = vld [vmem:[#allocation493_spill] sm:$0xff]  ;;  %v10270_v35 = vpop.permute.xlu1 %4298 }
 0x580   : > { %v2766_v7 = vadd.f32 %v11944_v31, %v2668_v62  ;;  %v2771_v16 = vadd.f32 %v11945_v53, %v2673_v56  ;;  %v2982_v0 = vadd.f32 %v11946_v49, %v2948_v21  ;;  %v11947_v6 = vld [vmem:[#allocation317_spill] sm:$0xff]  ;;  %v11948_v43 = vld [vmem:[#allocation319_spill] sm:$0xff]  ;;  %v11949_v30 = vld [vmem:[#allocation322_spill] sm:$0xff]  ;;  %11951 = vst [vmem:[#allocation101_spill] sm:$0xff] %v10270_v35 }
 0x581   : > { %v2768_v50 = vadd.f32 %v11947_v6, %v2670_v27  ;;  %v2770_v48 = vadd.f32 %v11948_v43, %v2672_v20  ;;  %v2859_v4 = vadd.f32 %v11949_v30, %v2761_v17  ;;  %v11950_v15 = vld [vmem:[#allocation323_spill] sm:$0xff]  ;;  %v11952_v55 = vld [vmem:[#allocation321_spill] sm:$0xff]  ;;  %v11953_v3 = vld [vmem:[#allocation324_spill] sm:$0xff] }
 0x582   : > { %v2856_v24 = vadd.f32 %v11950_v15, %v2758_v47  ;;  %v2772_v25 = vadd.f32 %v11952_v55, %v2674_v33  ;;  %v2861_v62 = vadd.f32 %v11953_v3, %v2763_v44  ;;  %v11954_v31 = vld [vmem:[#allocation325_spill] sm:$0xff]  ;;  %v11955_v53 = vld [vmem:[#allocation326_spill] sm:$0xff]  ;;  %v11957_v6 = vld [vmem:[#allocation327_spill] sm:$0xff] }
 0x583   : > { %v2858_v56 = vadd.f32 %v11954_v31, %v2760_v52  ;;  %v2863_v21 = vadd.f32 %v11955_v53, %v2765_v58  ;;  %v11956_v49 = vld [vmem:[#allocation17_spill] sm:$0xff]  ;;  %v2860_v20 = vadd.f32 %v11957_v6, %v2762_v26  ;;  %v11958_v43 = vld [vmem:[#allocation328_spill] sm:$0xff]  ;;  %v11959_v47 = vld [vmem:[#allocation58_spill] sm:$0xff]  ;;  %v10293_v35 = vpop.permute.xlu1 %4302 }
 0x584   : > { %v2950_v27 = vadd.f32 %v11956_v49, %v2916_v32  ;;  %v2865_v17 = vadd.f32 %v11958_v43, %v2767_v60  ;;  %4684 = vrot.lane.b32.xlu0 %v11959_v47, %s5752_s23  ;;  %v11960_v30 = vld [vmem:[#allocation61_spill] sm:$0xff]  ;;  %v11962_v55 = vld [vmem:[#allocation330_spill] sm:$0xff]  ;;  %v11963_v3 = vld [vmem:[#allocation331_spill] sm:$0xff]  ;;  %v2915_v26 = vadd.f32 %v10127_v5, %v2856_v24  ;;  %v10291_v47 = vpop.permute.xlu0 %4374  ;;  %11968 = vst [vmem:[#allocation102_spill] sm:$0xff] %v10293_v35 }
 0x585   : > { %4678 = vrot.lane.b32.xlu1 %v11960_v30, %s5752_s23  ;;  %v11961_v15 = vld [vmem:[#allocation329_spill] sm:$0xff]  ;;  %v2867_v44 = vadd.f32 %v11962_v55, %v2769_v63  ;;  %v2864_v52 = vadd.f32 %v11963_v3, %v2766_v7  ;;  %v11964_v31 = vld [vmem:[#allocation494_spill] sm:$0xff]  ;;  %v11965_v53 = vld [vmem:[#allocation19_spill] sm:$0xff]  ;;  %v2917_v63 = vadd.f32 %v10143_v13, %v2858_v56 }
 0x586   : > { %v2862_v33 = vadd.f32 %v11961_v15, %v2764_v2  ;;  %v3016_v58 = vadd.f32 %v11964_v31, %v2982_v0  ;;  %v2918_v32 = vadd.f32 %v11965_v53, %v2859_v4  ;;  %v11966_v49 = vld [vmem:[#allocation332_spill] sm:$0xff]  ;;  %v11967_v6 = vld [vmem:[#allocation333_spill] sm:$0xff]  ;;  %v11970_v15 = vld [vmem:[#allocation478_spill] sm:$0xff] }
 0x587   : > { %v2869_v60 = vadd.f32 %v11966_v49, %v2771_v16  ;;  %v2866_v43 = vadd.f32 %v11967_v6, %v2768_v50  ;;  %v11969_v30 = vld [vmem:[#allocation21_spill] sm:$0xff]  ;;  %v2922_v7 = vadd.f32 %v11970_v15, %v2863_v21  ;;  %v11971_v55 = vld [vmem:[#allocation335_spill] sm:$0xff]  ;;  %v11972_v3 = vld [vmem:[#allocation480_spill] sm:$0xff] }
 0x588   : > { %v2920_v2 = vadd.f32 %v11969_v30, %v2861_v62  ;;  %v2868_v0 = vadd.f32 %v11971_v55, %v2770_v48  ;;  %v2919_v4 = vadd.f32 %v11972_v3, %v2860_v20  ;;  %v11973_v31 = vld [vmem:[#allocation27_spill] sm:$0xff]  ;;  %v11974_v24 = vld [vmem:[#allocation337_spill] sm:$0xff]  ;;  %v11976_v53 = vld [vmem:[#allocation60_spill] sm:$0xff] }
 0x589   : > { %v2924_v5 = vadd.f32 %v11973_v31, %v2865_v17  ;;  %v2870_v16 = vadd.f32 %v11974_v24, %v2772_v25  ;;  %v11975_v50 = vld [vmem:[#allocation55_spill] sm:$0xff]  ;;  %4682 = vrot.lane.b32.xlu1 %v11976_v53, %s5752_s23  ;;  %v11977_v49 = vld [vmem:[#allocation484_spill] sm:$0xff]  ;;  %v11978_v6 = vld [vmem:[#allocation486_spill] sm:$0xff]  ;;  %v2949_v17 = vadd.f32 %v10138_v28, %v2915_v26  ;;  %v10316_v24 = vpop.permute.xlu0 %4378 }
 0x58a   : > { %4688 = vrot.lane.b32.xlu0 %v11975_v50, %s5752_s23  ;;  %v2921_v62 = vadd.f32 %v11977_v49, %v2862_v33  ;;  %v2926_v13 = vadd.f32 %v11978_v6, %v2867_v44  ;;  %v11979_v56 = vld [vmem:[#allocation488_spill] sm:$0xff]  ;;  %v11980_v30 = vld [vmem:[#allocation495_spill] sm:$0xff]  ;;  %v11981_v20 = vld [vmem:[#allocation22_spill] sm:$0xff]  ;;  %v10318_v50 = vpop.permute.xlu1 %4306 }
 0x58b   : > { %v2923_v21 = vadd.f32 %v11979_v56, %v2864_v52  ;;  %v10310_v48 = vadd.f32 %v11980_v30, %v3016_v58  ;;  %v2952_v15 = vadd.f32 %v11981_v20, %v2918_v32  ;;  %v11982_v25 = vld [vmem:[#allocation28_spill] sm:$0xff]  ;;  %v11983_v3 = vld [vmem:[#allocation491_spill] sm:$0xff]  ;;  %v11988_v30 = vld [vmem:[#allocation481_spill] sm:$0xff] }
 0x58c   : > { %v2928_v55 = vadd.f32 %v11982_v25, %v2869_v60  ;;  %v2925_v31 = vadd.f32 %v11983_v3, %v2866_v43  ;;  %v11984_v33 = vld [vmem:[#allocation23_spill] sm:$0xff]  ;;  %v11985_v44 = vld [vmem:[#allocation24_spill] sm:$0xff]  ;;  %v2953_v32 = vadd.f32 %v11988_v30, %v2919_v4  ;;  %v11989_v20 = vld [vmem:[#allocation482_spill] sm:$0xff] }
 0x58d   : > { %v2954_v53 = vadd.f32 %v11984_v33, %v2920_v2  ;;  %v2951_v49 = vadd.f32 %v11985_v44, %v2917_v63  ;;  %v11986_v52 = vld [vmem:[#allocation479_spill] sm:$0xff]  ;;  %v11987_v58 = vld [vmem:[#allocation496_spill] sm:$0xff]  ;;  %v2958_v28 = vadd.f32 %v11989_v20, %v2924_v5  ;;  %v11992_v25 = vld [vmem:[#allocation62_spill] sm:$0xff] }
 0x58e   : > { %v2956_v6 = vadd.f32 %v11986_v52, %v2922_v7  ;;  %v2927_v56 = vadd.f32 %v11987_v58, %v2868_v0  ;;  %v11990_v26 = vld [vmem:[#allocation503_spill] sm:$0xff]  ;;  %4686 = vrot.lane.b32.xlu1 %v11992_v25, %s5752_s23  ;;  %v11993_v3 = vld [vmem:[#allocation485_spill] sm:$0xff]  ;;  %v11995_v44 = vld [vmem:[#allocation452_spill] sm:$0xff]  ;;  %v10341_v36 = vpop.permute.xlu1 %4376 }
 0x58f   : > { %v2929_v60 = vadd.f32 %v11990_v26, %v2870_v16  ;;  %v11991_v43 = vld [vmem:[#allocation35_spill] sm:$0xff]  ;;  %v2955_v2 = vadd.f32 %v11993_v3, %v2921_v62  ;;  %v2957_v7 = vadd.f32 %v11995_v44, %v2923_v21  ;;  %v11996_v52 = vld [vmem:[#allocation498_spill] sm:$0xff]  ;;  %v11997_v58 = vld [vmem:[#allocation29_spill] sm:$0xff] }
 0x590   : > { %4692 = vrot.lane.b32.xlu0 %v11991_v43, %s5752_s23  ;;  %v11994_v33 = vld [vmem:[#allocation487_spill] sm:$0xff]  ;;  %v2984_v0 = vadd.f32 %v11996_v52, %v2950_v27  ;;  %v2962_v4 = vadd.f32 %v11997_v58, %v2928_v55  ;;  %v11998_v30 = vld [vmem:[#allocation492_spill] sm:$0xff]  ;;  %v11999_v20 = vld [vmem:[#allocation505_spill] sm:$0xff]  ;;  %v10339_v43 = vpop.permute.xlu0 %4382 }
 0x591   : > { %v2960_v63 = vadd.f32 %v11994_v33, %v2926_v13  ;;  %v2959_v5 = vadd.f32 %v11998_v30, %v2925_v31  ;;  %v2986_v16 = vadd.f32 %v11999_v20, %v2952_v15  ;;  %v12000_v26 = vld [vmem:[#allocation508_spill] sm:$0xff]  ;;  %v12001_v25 = vld [vmem:[#allocation497_spill] sm:$0xff]  ;;  %v12002_v3 = vld [vmem:[#allocation510_spill] sm:$0xff] }
 0x592   : > { %v2983_v35 = vadd.f32 %v12000_v26, %v2949_v17  ;;  %v2961_v62 = vadd.f32 %v12001_v25, %v2927_v56  ;;  %v2988_v13 = vadd.f32 %v12002_v3, %v2954_v53  ;;  %v12003_v33 = vld [vmem:[#allocation514_spill] sm:$0xff]  ;;  %v12004_v44 = vld [vmem:[#allocation517_spill] sm:$0xff]  ;;  %v12005_v52 = vld [vmem:[#allocation504_spill] sm:$0xff]  ;;  %v10364_v40 = vpop.permute.xlu1 %4380 }
 0x593   : > { %v2985_v21 = vadd.f32 %v12003_v33, %v2951_v49  ;;  %v2990_v27 = vadd.f32 %v12004_v44, %v2956_v6  ;;  %v2963_v55 = vadd.f32 %v12005_v52, %v2929_v60  ;;  %v12006_v58 = vld [vmem:[#allocation520_spill] sm:$0xff]  ;;  %v12007_v30 = vld [vmem:[#allocation34_spill] sm:$0xff]  ;;  %v12008_v17 = vld [vmem:[#allocation63_spill] sm:$0xff] }
 0x594   : > { %v2987_v31 = vadd.f32 %v12006_v58, %v2953_v32  ;;  %v2992_v15 = vadd.f32 %v12007_v30, %v2958_v28  ;;  %4696 = vrot.lane.b32.xlu0 %v12008_v17, %s5752_s23  ;;  %v12009_v20 = vld [vmem:[#allocation539_spill] sm:$0xff]  ;;  %v12012_v3 = vld [vmem:[#allocation530_spill] sm:$0xff]  ;;  %v12013_v33 = vld [vmem:[#allocation36_spill] sm:$0xff]  ;;  %v10362_v17 = vpop.permute.xlu0 %4386 }
 0x595   : > { %4690 = vrot.lane.b32.xlu1 %v12009_v20, %s5752_s23  ;;  %v12010_v26 = vld [vmem:[#allocation499_spill] sm:$0xff]  ;;  %v2994_v49 = vadd.f32 %v12012_v3, %v2960_v63  ;;  %v2991_v6 = vadd.f32 %v12013_v33, %v2957_v7  ;;  %v12014_v44 = vld [vmem:[#allocation506_spill] sm:$0xff]  ;;  %v12015_v52 = vld [vmem:[#allocation32_spill] sm:$0xff] }
 0x596   : > { %v3018_v56 = vadd.f32 %v12010_v26, %v2984_v0  ;;  %v12011_v25 = vld [vmem:[#allocation527_spill] sm:$0xff]  ;;  %v3020_v60 = vadd.f32 %v12014_v44, %v2986_v16  ;;  %v3017_v32 = vadd.f32 %v12015_v52, %v2983_v35  ;;  %v12016_v58 = vld [vmem:[#allocation534_spill] sm:$0xff]  ;;  %v12018_v20 = vld [vmem:[#allocation33_spill] sm:$0xff]  ;;  %v10387_v12 = vpop.permute.xlu1 %4384 }
 0x597   : > { %v2989_v53 = vadd.f32 %v12011_v25, %v2955_v2  ;;  %v2996_v28 = vadd.f32 %v12016_v58, %v2962_v4  ;;  %v12017_v30 = vld [vmem:[#allocation535_spill] sm:$0xff]  ;;  %v3022_v0 = vadd.f32 %v12018_v20, %v2988_v13  ;;  %v12020_v25 = vld [vmem:[#allocation518_spill] sm:$0xff]  ;;  %v12022_v33 = vld [vmem:[#allocation521_spill] sm:$0xff]  ;;  %12034 = vst [vmem:[#allocation103_spill] sm:$0xff] %v10387_v12 }
 0x598   : > { %v2993_v23 = vadd.f32 %v12017_v30, %v2959_v5  ;;  %v12019_v26 = vld [vmem:[#allocation515_spill] sm:$0xff]  ;;  %v3024_v63 = vadd.f32 %v12020_v25, %v2990_v27  ;;  %v12021_v3 = vld [vmem:[#allocation38_spill] sm:$0xff]  ;;  %v3021_v16 = vadd.f32 %v12022_v33, %v2987_v31  ;;  %v12023_v44 = vld [vmem:[#allocation525_spill] sm:$0xff] }
 0x599   : > { %v3019_v2 = vadd.f32 %v12019_v26, %v2985_v21  ;;  %v2995_v7 = vadd.f32 %v12021_v3, %v2961_v62  ;;  %v3026_v35 = vadd.f32 %v12023_v44, %v2992_v15  ;;  %v12024_v52 = vld [vmem:[#allocation39_spill] sm:$0xff]  ;;  %v12025_v5 = vld [vmem:[#allocation540_spill] sm:$0xff]  ;;  %v12026_v58 = vld [vmem:[#allocation541_spill] sm:$0xff] }
 0x59a   : > { %v2997_v4 = vadd.f32 %v12024_v52, %v2963_v55  ;;  %4766 = vrot.lane.b32.xlu0 %v12025_v5, %s5752_s23  ;;  %4694 = vrot.lane.b32.xlu1 %v12026_v58, %s5752_s23  ;;  %v12027_v30 = vld [vmem:[#allocation502_spill] sm:$0xff]  ;;  %v12028_v20 = vld [vmem:[#allocation528_spill] sm:$0xff]  ;;  %v12029_v26 = vld [vmem:[#allocation531_spill] sm:$0xff]  ;;  %v3030_v55 = vadd.f32 %v10185_v39, %v2996_v28  ;;  %v10385_v5 = vpop.permute.xlu0 %4390 }
 0x59b   : > { %v3052_v13 = vadd.f32 %v12027_v30, %v3018_v56  ;;  %v3023_v21 = vadd.f32 %v12028_v20, %v2989_v53  ;;  %v3028_v27 = vadd.f32 %v12029_v26, %v2994_v49  ;;  %v12030_v25 = vld [vmem:[#allocation37_spill] sm:$0xff]  ;;  %v12031_v3 = vld [vmem:[#allocation507_spill] sm:$0xff]  ;;  %v12033_v44 = vld [vmem:[#allocation536_spill] sm:$0xff] }
 0x59c   : > { %v3025_v62 = vadd.f32 %v12030_v25, %v2991_v6  ;;  %v3054_v31 = vadd.f32 %v12031_v3, %v3020_v60  ;;  %v12032_v33 = vld [vmem:[#allocation509_spill] sm:$0xff]  ;;  %v3027_v52 = vadd.f32 %v12033_v44, %v2993_v23  ;;  %v12036_v30 = vld [vmem:[#allocation516_spill] sm:$0xff]  ;;  %v12037_v20 = vld [vmem:[#allocation519_spill] sm:$0xff]  ;;  %v3031_v39 = vadd.f32 %v10213_v42, %v2997_v4 }
 0x59d   : > { %v3051_v15 = vadd.f32 %v12032_v33, %v3017_v32  ;;  %v12035_v58 = vld [vmem:[#allocation513_spill] sm:$0xff]  ;;  %v3053_v53 = vadd.f32 %v12036_v30, %v3019_v2  ;;  %v3058_v49 = vadd.f32 %v12037_v20, %v3024_v63  ;;  %v12038_v26 = vld [vmem:[#allocation538_spill] sm:$0xff]  ;;  %v3062_v63 = vadd.f32 %v10181_v61, %v3028_v27 }
 0x59e   : > { %v3056_v56 = vadd.f32 %v12035_v58, %v3022_v0  ;;  %v3029_v6 = vadd.f32 %v12038_v26, %v2995_v7  ;;  %v12039_v25 = vld [vmem:[#allocation522_spill] sm:$0xff]  ;;  %v12044_v2 = vld [vmem:[#allocation529_spill] sm:$0xff]  ;;  %v3064_v42 = vadd.f32 %v10196_v46, %v3030_v55  ;;  %v3065_v46 = vadd.f32 %v10217_v45, %v3031_v39  ;;  %v12056_v55 = vld [vmem:[#allocation543_spill] sm:$0xff] }
 0x59f   : > { %v3055_v60 = vadd.f32 %v12039_v25, %v3021_v16  ;;  %v12040_v3 = vld [vmem:[#allocation526_spill] sm:$0xff]  ;;  %v3057_v44 = vadd.f32 %v12044_v2, %v3023_v21  ;;  %v12046_v16 = vld [vmem:[#allocation336_spill] sm:$0xff]  ;;  %v12048_v4 = vld [vmem:[#allocation537_spill] sm:$0xff]  ;;  %v10409_v25 = vpop.permute.xlu0 %4394 }
 0x5a0   : > { %v3060_v32 = vadd.f32 %v12040_v3, %v3026_v35  ;;  %v12041_v23 = vld [vmem:[#allocation542_spill] sm:$0xff]  ;;  %v3150_v30 = vadd.f32 %v12046_v16, %v3052_v13  ;;  %v3061_v26 = vadd.f32 %v12048_v4, %v3027_v52  ;;  %12049 = vst [vmem:[#allocation104_spill] sm:$0xff] %v10409_v25  ;;  %v10411_v3 = vpop.permute.xlu1 %4388  ;;  %v3063_v27 = vadd.f32 %v10201_v18, %v3029_v6  ;;  %v12055_v2 = vld [vmem:[#allocation343_spill] sm:$0xff]  ;;  %v12057_v52 = vld [vmem:[#allocation344_spill] sm:$0xff] }
 0x5a1   : > { %4770 = vrot.lane.b32.xlu0 %v12041_v23, %s5752_s23  ;;  %v12042_v28 = vld [vmem:[#allocation66_spill] sm:$0xff]  ;;  %12050 = vst [vmem:[#allocation105_spill] sm:$0xff] %v10411_v3  ;;  %v12051_v23 = vld [vmem:[#allocation339_spill] sm:$0xff]  ;;  %v12061_v6 = vld [vmem:[#allocation348_spill] sm:$0xff] }
 0x5a2   : > { %4698 = vrot.lane.b32.xlu1 %v12042_v28, %s5752_s23  ;;  %v12043_v0 = vld [vmem:[#allocation334_spill] sm:$0xff]  ;;  %v12052_v28 = vld [vmem:[#allocation340_spill] sm:$0xff]  ;;  %v12062_v4 = vld [vmem:[#allocation349_spill] sm:$0xff] }
 0x5a3   : > { %v3148_v33 = vadd.f32 %v12043_v0, %v10310_v48  ;;  %v12045_v7 = vld [vmem:[#allocation54_spill] sm:$0xff]  ;;  %v3149_v48 = vadd.f32 %v12051_v23, %v3051_v15  ;;  %v3154_v21 = vadd.f32 %v12052_v28, %v3056_v56  ;;  %v12053_v0 = vld [vmem:[#allocation341_spill] sm:$0xff]  ;;  %v3158_v15 = vadd.f32 %v12057_v52, %v3060_v32  ;;  %v12064_v39 = vld [vmem:[#allocation351_spill] sm:$0xff] }
 0x5a4   : > { %v3059_v58 = vadd.f32 %v12045_v7, %v3025_v62  ;;  %v12047_v35 = vld [vmem:[#allocation338_spill] sm:$0xff]  ;;  %v3151_v61 = vadd.f32 %v12053_v0, %v3053_v53  ;;  %v12058_v7 = vld [vmem:[#allocation345_spill] sm:$0xff]  ;;  %v3161_v28 = vadd.f32 %v12064_v39, %v3063_v27  ;;  %v10432_v0 = vpop.permute.xlu0 %4398  ;;  %v12070_v52 = vld [vmem:[#allocation355_spill] sm:$0xff] }
 0x5a5   : > { %v3152_v20 = vadd.f32 %v12047_v35, %v3054_v31  ;;  %v12054_v62 = vld [vmem:[#allocation342_spill] sm:$0xff]  ;;  %v3153_v31 = vadd.f32 %v12055_v2, %v3055_v60  ;;  %4774 = vrot.lane.b32.xlu0 %v12056_v55, %s5752_s23  ;;  %v3155_v56 = vadd.f32 %v12058_v7, %v3057_v44  ;;  %v12060_v35 = vld [vmem:[#allocation347_spill] sm:$0xff]  ;;  %v3159_v60 = vadd.f32 %v12062_v4, %v3061_v26  ;;  %v12068_v2 = vld [vmem:[#allocation353_spill] sm:$0xff] }
 0x5a6   : > { %v3156_v13 = vadd.f32 %v12054_v62, %v3058_v49  ;;  %4768 = vrot.lane.b32.xlu1 %v9645_v51, %s5752_s23  ;;  %v12059_v16 = vld [vmem:[#allocation346_spill] sm:$0xff]  ;;  %v3157_v18 = vadd.f32 %v12060_v35, %v3059_v58  ;;  %v3162_v49 = vadd.f32 %v12061_v6, %v3064_v42  ;;  %12065 = vst [vmem:[#allocation106_spill] sm:$0xff] %v10432_v0  ;;  %v10434_v62 = vpop.permute.xlu1 %4392  ;;  %v12067_v51 = vld [vmem:[#allocation352_spill] sm:$0xff]  ;;  %v12074_v27 = vld [vmem:[#allocation67_spill] sm:$0xff] }
 0x5a7   : > { %v3160_v53 = vadd.f32 %v12059_v16, %v3062_v63  ;;  %v12063_v23 = vld [vmem:[#allocation350_spill] sm:$0xff]  ;;  %12066 = vst [vmem:[#allocation107_spill] sm:$0xff] %v10434_v62  ;;  %v3248_v32 = vadd.f32 %v12067_v51, %v3150_v30  ;;  %v3163_v44 = vadd.f32 %v12068_v2, %v3065_v46  ;;  %v3247_v58 = vadd.f32 %v12070_v52, %v3149_v48  ;;  %v12071_v7 = vld [vmem:[#allocation356_spill] sm:$0xff]  ;;  %v12072_v16 = vld [vmem:[#allocation357_spill] sm:$0xff] }
 0x5a8   : > { %v3246_v45 = vadd.f32 %v12063_v23, %v3148_v33  ;;  %v12069_v55 = vld [vmem:[#allocation354_spill] sm:$0xff]  ;;  %v3252_v42 = vadd.f32 %v12071_v7, %v3154_v21  ;;  %v3249_v26 = vadd.f32 %v12072_v16, %v3151_v61  ;;  %v12075_v6 = vld [vmem:[#allocation359_spill] sm:$0xff]  ;;  %v12076_v4 = vld [vmem:[#allocation360_spill] sm:$0xff] }
 0x5a9   : > { %v3250_v63 = vadd.f32 %v12069_v55, %v3152_v20  ;;  %v12073_v35 = vld [vmem:[#allocation358_spill] sm:$0xff]  ;;  %4778 = vrot.lane.b32.xlu0 %v9655_v54, %s5752_s23  ;;  %v3251_v30 = vadd.f32 %v12075_v6, %v3153_v31  ;;  %v3256_v46 = vadd.f32 %v12076_v4, %v3158_v15  ;;  %v12077_v23 = vld [vmem:[#allocation361_spill] sm:$0xff]  ;;  %v12079_v51 = vld [vmem:[#allocation363_spill] sm:$0xff]  ;;  %v10455_v54 = vpop.permute.xlu0 %4402 }
 0x5aa   : > { %v3254_v33 = vadd.f32 %v12073_v35, %v3156_v13  ;;  %4772 = vrot.lane.b32.xlu1 %v12074_v27, %s5752_s23  ;;  %v3253_v20 = vadd.f32 %v12077_v23, %v3155_v56  ;;  %v12078_v39 = vld [vmem:[#allocation362_spill] sm:$0xff]  ;;  %v3255_v21 = vadd.f32 %v12079_v51, %v3157_v18  ;;  %v12080_v2 = vld [vmem:[#allocation364_spill] sm:$0xff]  ;;  %v12081_v55 = vld [vmem:[#allocation365_spill] sm:$0xff]  ;;  %v10457_v16 = vpop.permute.xlu1 %4396 }
 0x5ab   : > { %v3258_v48 = vadd.f32 %v12078_v39, %v3160_v53  ;;  %v3260_v61 = vadd.f32 %v12080_v2, %v3162_v49  ;;  %v3257_v13 = vadd.f32 %v12081_v55, %v3159_v60  ;;  %v12082_v52 = vld [vmem:[#allocation366_spill] sm:$0xff]  ;;  %12083 = vst [vmem:[#allocation108_spill] sm:$0xff] %v10457_v16  ;;  %v12084_v35 = vld [vmem:[#allocation367_spill] sm:$0xff]  ;;  %v12085_v27 = vld [vmem:[#allocation368_spill] sm:$0xff] }
 0x5ac   : > { %v3344_v7 = vadd.f32 %v12082_v52, %v3246_v45  ;;  %v3259_v31 = vadd.f32 %v12084_v35, %v3161_v28  ;;  %v3346_v15 = vadd.f32 %v12085_v27, %v3248_v32  ;;  %v12086_v6 = vld [vmem:[#allocation369_spill] sm:$0xff]  ;;  %v12087_v4 = vld [vmem:[#allocation370_spill] sm:$0xff]  ;;  %v12088_v23 = vld [vmem:[#allocation371_spill] sm:$0xff] }
 0x5ad   : > { %v3261_v56 = vadd.f32 %v12086_v6, %v3163_v44  ;;  %v3348_v53 = vadd.f32 %v12087_v4, %v3250_v63  ;;  %v3345_v18 = vadd.f32 %v12088_v23, %v3247_v58  ;;  %v12089_v39 = vld [vmem:[#allocation372_spill] sm:$0xff]  ;;  %v12090_v51 = vld [vmem:[#allocation373_spill] sm:$0xff]  ;;  %4782 = vrot.lane.b32.xlu0 %v9665_v57, %s5752_s23  ;;  %v12091_v45 = vld [vmem:[#allocation374_spill] sm:$0xff]  ;;  %v10478_v57 = vpop.permute.xlu0 %4472 }
 0x5ae   : > { %v3350_v49 = vadd.f32 %v12089_v39, %v3252_v42  ;;  %v3347_v60 = vadd.f32 %v12090_v51, %v3249_v26  ;;  %4776 = vrot.lane.b32.xlu1 %v9669_v14, %s5752_s23  ;;  %v3352_v28 = vadd.f32 %v12091_v45, %v3254_v33  ;;  %v12092_v2 = vld [vmem:[#allocation375_spill] sm:$0xff]  ;;  %v12093_v55 = vld [vmem:[#allocation376_spill] sm:$0xff]  ;;  %v12094_v52 = vld [vmem:[#allocation377_spill] sm:$0xff]  ;;  %v10480_v39 = vpop.permute.xlu1 %4400 }
 0x5af   : > { %v3349_v32 = vadd.f32 %v12092_v2, %v3251_v30  ;;  %v3354_v44 = vadd.f32 %v12093_v55, %v3256_v46  ;;  %v3351_v63 = vadd.f32 %v12094_v52, %v3253_v20  ;;  %v12095_v35 = vld [vmem:[#allocation378_spill] sm:$0xff]  ;;  %v12096_v27 = vld [vmem:[#allocation379_spill] sm:$0xff]  ;;  %v12097_v6 = vld [vmem:[#allocation380_spill] sm:$0xff]  ;;  %12099 = vst [vmem:[#allocation109_spill] sm:$0xff] %v10480_v39 }
 0x5b0   : > { %v3356_v58 = vadd.f32 %v12095_v35, %v3258_v48  ;;  %v3353_v42 = vadd.f32 %v12096_v27, %v3255_v21  ;;  %v3358_v26 = vadd.f32 %v12097_v6, %v3260_v61  ;;  %v12098_v4 = vld [vmem:[#allocation381_spill] sm:$0xff]  ;;  %v12100_v14 = vld [vmem:[#allocation382_spill] sm:$0xff]  ;;  %v12101_v51 = vld [vmem:[#allocation383_spill] sm:$0xff] }
 0x5b1   : > { %v3355_v23 = vadd.f32 %v12098_v4, %v3257_v13  ;;  %v3442_v33 = vadd.f32 %v12100_v14, %v3344_v7  ;;  %v3357_v30 = vadd.f32 %v12101_v51, %v3259_v31  ;;  %v12102_v45 = vld [vmem:[#allocation384_spill] sm:$0xff]  ;;  %v12103_v2 = vld [vmem:[#allocation385_spill] sm:$0xff]  ;;  %v12104_v55 = vld [vmem:[#allocation386_spill] sm:$0xff] }
 0x5b2   : > { %v3444_v46 = vadd.f32 %v12102_v45, %v3346_v15  ;;  %v3359_v20 = vadd.f32 %v12103_v2, %v3261_v56  ;;  %v3446_v48 = vadd.f32 %v12104_v55, %v3348_v53  ;;  %v12105_v52 = vld [vmem:[#allocation387_spill] sm:$0xff]  ;;  %v12106_v35 = vld [vmem:[#allocation388_spill] sm:$0xff]  ;;  %v12107_v13 = vld [vmem:[#allocation545_spill] sm:$0xff]  ;;  %v10503_v39 = vpop.permute.xlu1 %4404 }
 0x5b3   : > { %v3443_v21 = vadd.f32 %v12105_v52, %v3345_v18  ;;  %v3448_v61 = vadd.f32 %v12106_v35, %v3350_v49  ;;  %4786 = vrot.lane.b32.xlu0 %v12107_v13, %s5752_s23  ;;  %v12108_v27 = vld [vmem:[#allocation546_spill] sm:$0xff]  ;;  %v12109_v6 = vld [vmem:[#allocation389_spill] sm:$0xff]  ;;  %v12111_v14 = vld [vmem:[#allocation391_spill] sm:$0xff]  ;;  %v10501_v13 = vpop.permute.xlu0 %4476 }
 0x5b4   : > { %4780 = vrot.lane.b32.xlu1 %v12108_v27, %s5752_s23  ;;  %v3445_v7 = vadd.f32 %v12109_v6, %v3347_v60  ;;  %v12110_v4 = vld [vmem:[#allocation390_spill] sm:$0xff]  ;;  %v3447_v15 = vadd.f32 %v12111_v14, %v3349_v32  ;;  %v12112_v51 = vld [vmem:[#allocation392_spill] sm:$0xff]  ;;  %v12113_v45 = vld [vmem:[#allocation393_spill] sm:$0xff] }
 0x5b5   : > { %v3450_v31 = vadd.f32 %v12110_v4, %v3352_v28  ;;  %v3452_v56 = vadd.f32 %v12112_v51, %v3354_v44  ;;  %v3449_v53 = vadd.f32 %v12113_v45, %v3351_v63  ;;  %v12114_v2 = vld [vmem:[#allocation394_spill] sm:$0xff]  ;;  %v12115_v55 = vld [vmem:[#allocation395_spill] sm:$0xff]  ;;  %v12116_v52 = vld [vmem:[#allocation396_spill] sm:$0xff] }
 0x5b6   : > { %v3454_v18 = vadd.f32 %v12114_v2, %v3356_v58  ;;  %v3451_v49 = vadd.f32 %v12115_v55, %v3353_v42  ;;  %v3456_v35 = vadd.f32 %v12116_v52, %v3358_v26  ;;  %v12117_v27 = vld [vmem:[#allocation397_spill] sm:$0xff]  ;;  %v12118_v6 = vld [vmem:[#allocation398_spill] sm:$0xff]  ;;  %v12119_v4 = vld [vmem:[#allocation399_spill] sm:$0xff]  ;;  %v10526_v62 = vpop.permute.xlu1 %4474 }
 0x5b7   : > { %v3453_v60 = vadd.f32 %v12117_v27, %v3355_v23  ;;  %v3540_v28 = vadd.f32 %v12118_v6, %v3442_v33  ;;  %v3455_v32 = vadd.f32 %v12119_v4, %v3357_v30  ;;  %v12120_v14 = vld [vmem:[#allocation400_spill] sm:$0xff]  ;;  %v12121_v51 = vld [vmem:[#allocation401_spill] sm:$0xff]  ;;  %v12122_v45 = vld [vmem:[#allocation402_spill] sm:$0xff] }
 0x5b8   : > { %v3542_v44 = vadd.f32 %v12120_v14, %v3444_v46  ;;  %v3457_v63 = vadd.f32 %v12121_v51, %v3359_v20  ;;  %v3544_v58 = vadd.f32 %v12122_v45, %v3446_v48  ;;  %v12123_v2 = vld [vmem:[#allocation403_spill] sm:$0xff]  ;;  %v12124_v26 = vld [vmem:[#allocation549_spill] sm:$0xff]  ;;  %v12125_v55 = vld [vmem:[#allocation550_spill] sm:$0xff] }
 0x5b9   : > { %v3541_v42 = vadd.f32 %v12123_v2, %v3443_v21  ;;  %4790 = vrot.lane.b32.xlu0 %v12124_v26, %s5752_s23  ;;  %4784 = vrot.lane.b32.xlu1 %v12125_v55, %s5752_s23  ;;  %v12126_v52 = vld [vmem:[#allocation404_spill] sm:$0xff]  ;;  %v12127_v27 = vld [vmem:[#allocation405_spill] sm:$0xff]  ;;  %v12128_v6 = vld [vmem:[#allocation406_spill] sm:$0xff]  ;;  %v10524_v26 = vpop.permute.xlu0 %4480 }
 0x5ba   : > { %v3546_v23 = vadd.f32 %v12126_v52, %v3448_v61  ;;  %v3543_v33 = vadd.f32 %v12127_v27, %v3445_v7  ;;  %v3548_v30 = vadd.f32 %v12128_v6, %v3450_v31  ;;  %v12129_v4 = vld [vmem:[#allocation407_spill] sm:$0xff]  ;;  %v12130_v14 = vld [vmem:[#allocation408_spill] sm:$0xff]  ;;  %v12131_v51 = vld [vmem:[#allocation409_spill] sm:$0xff]  ;;  %v10549_v3 = vpop.permute.xlu1 %4478 }
 0x5bb   : > { %v3545_v46 = vadd.f32 %v12129_v4, %v3447_v15  ;;  %v3550_v20 = vadd.f32 %v12130_v14, %v3452_v56  ;;  %v3547_v48 = vadd.f32 %v12131_v51, %v3449_v53  ;;  %v12132_v45 = vld [vmem:[#allocation410_spill] sm:$0xff]  ;;  %v12133_v2 = vld [vmem:[#allocation411_spill] sm:$0xff]  ;;  %v12134_v55 = vld [vmem:[#allocation412_spill] sm:$0xff] }
 0x5bc   : > { %v3552_v21 = vadd.f32 %v12132_v45, %v3454_v18  ;;  %v3549_v16 = vadd.f32 %v12133_v2, %v3451_v49  ;;  %v3554_v61 = vadd.f32 %v12134_v55, %v3456_v35  ;;  %v12135_v52 = vld [vmem:[#allocation413_spill] sm:$0xff]  ;;  %v12136_v27 = vld [vmem:[#allocation414_spill] sm:$0xff]  ;;  %v12137_v6 = vld [vmem:[#allocation415_spill] sm:$0xff] }
 0x5bd   : > { %v3551_v7 = vadd.f32 %v12135_v52, %v3453_v60  ;;  %v3638_v31 = vadd.f32 %v12136_v27, %v3540_v28  ;;  %v3553_v15 = vadd.f32 %v12137_v6, %v3455_v32  ;;  %v12138_v4 = vld [vmem:[#allocation416_spill] sm:$0xff]  ;;  %v12139_v14 = vld [vmem:[#allocation417_spill] sm:$0xff]  ;;  %v12140_v51 = vld [vmem:[#allocation418_spill] sm:$0xff] }
 0x5be   : > { %v3640_v56 = vadd.f32 %v12138_v4, %v3542_v44  ;;  %v3555_v53 = vadd.f32 %v12139_v14, %v3457_v63  ;;  %v3642_v18 = vadd.f32 %v12140_v51, %v3544_v58  ;;  %v12141_v49 = vld [vmem:[#allocation551_spill] sm:$0xff]  ;;  %v12142_v45 = vld [vmem:[#allocation552_spill] sm:$0xff]  ;;  %v12145_v52 = vld [vmem:[#allocation421_spill] sm:$0xff]  ;;  %v10572_v12 = vpop.permute.xlu1 %4482 }
 0x5bf   : > { %4794 = vrot.lane.b32.xlu0 %v12141_v49, %s5752_s23  ;;  %4788 = vrot.lane.b32.xlu1 %v12142_v45, %s5752_s23  ;;  %v12143_v2 = vld [vmem:[#allocation419_spill] sm:$0xff]  ;;  %v12144_v55 = vld [vmem:[#allocation420_spill] sm:$0xff]  ;;  %v3641_v28 = vadd.f32 %v12145_v52, %v3543_v33  ;;  %v12147_v6 = vld [vmem:[#allocation422_spill] sm:$0xff]  ;;  %v10547_v49 = vpop.permute.xlu0 %4484  ;;  %12168 = vst [vmem:[#allocation110_spill] sm:$0xff] %v10572_v12 }
 0x5c0   : > { %v3639_v35 = vadd.f32 %v12143_v2, %v3541_v42  ;;  %v3644_v60 = vadd.f32 %v12144_v55, %v3546_v23  ;;  %v12146_v27 = vld [vmem:[#allocation428_spill] sm:$0xff]  ;;  %v3646_v44 = vadd.f32 %v12147_v6, %v3548_v30  ;;  %v12148_v4 = vld [vmem:[#allocation423_spill] sm:$0xff]  ;;  %v12150_v51 = vld [vmem:[#allocation425_spill] sm:$0xff] }
 0x5c1   : > { %v3652_v32 = vadd.f32 %v12146_v27, %v3554_v61  ;;  %v3643_v63 = vadd.f32 %v12148_v4, %v3545_v46  ;;  %v12149_v14 = vld [vmem:[#allocation424_spill] sm:$0xff]  ;;  %v3645_v0 = vadd.f32 %v12150_v51, %v3547_v48  ;;  %v12151_v45 = vld [vmem:[#allocation426_spill] sm:$0xff]  ;;  %v12152_v2 = vld [vmem:[#allocation427_spill] sm:$0xff] }
 0x5c2   : > { %v3648_v58 = vadd.f32 %v12149_v14, %v3550_v20  ;;  %v3650_v42 = vadd.f32 %v12151_v45, %v3552_v21  ;;  %v3647_v23 = vadd.f32 %v12152_v2, %v3549_v16  ;;  %v12153_v55 = vld [vmem:[#allocation429_spill] sm:$0xff]  ;;  %v12154_v52 = vld [vmem:[#allocation444_spill] sm:$0xff]  ;;  %v12155_v27 = vld [vmem:[#allocation430_spill] sm:$0xff] }
 0x5c3   : > { %v3649_v33 = vadd.f32 %v12153_v55, %v3551_v7  ;;  %v3750_v61 = vadd.f32 %v12154_v52, %v3652_v32  ;;  %v3736_v30 = vadd.f32 %v12155_v27, %v3638_v31  ;;  %v12156_v6 = vld [vmem:[#allocation431_spill] sm:$0xff]  ;;  %v12157_v4 = vld [vmem:[#allocation432_spill] sm:$0xff]  ;;  %v12159_v14 = vld [vmem:[#allocation553_spill] sm:$0xff] }
 0x5c4   : > { %v3651_v46 = vadd.f32 %v12156_v6, %v3553_v15  ;;  %v3738_v20 = vadd.f32 %v12157_v4, %v3640_v56  ;;  %v12158_v48 = vld [vmem:[#allocation68_spill] sm:$0xff]  ;;  %4792 = vrot.lane.b32.xlu1 %v12159_v14, %s5752_s23  ;;  %v12160_v51 = vld [vmem:[#allocation433_spill] sm:$0xff]  ;;  %v12161_v45 = vld [vmem:[#allocation434_spill] sm:$0xff] }
 0x5c5   : > { %4864 = vrot.lane.b32.xlu0 %v12158_v48, %s5752_s23  ;;  %v3653_v21 = vadd.f32 %v12160_v51, %v3555_v53  ;;  %v3740_v16 = vadd.f32 %v12161_v45, %v3642_v18  ;;  %v12162_v2 = vld [vmem:[#allocation435_spill] sm:$0xff]  ;;  %v12163_v55 = vld [vmem:[#allocation465_spill] sm:$0xff]  ;;  %v12164_v52 = vld [vmem:[#allocation436_spill] sm:$0xff]  ;;  %v10570_v48 = vpop.permute.xlu0 %4488 }
 0x5c6   : > { %v3737_v7 = vadd.f32 %v12162_v2, %v3639_v35  ;;  %v3848_v32 = vadd.f32 %v12163_v55, %v3750_v61  ;;  %v3742_v31 = vadd.f32 %v12164_v52, %v3644_v60  ;;  %v12165_v27 = vld [vmem:[#allocation437_spill] sm:$0xff]  ;;  %v12166_v6 = vld [vmem:[#allocation438_spill] sm:$0xff]  ;;  %v12167_v4 = vld [vmem:[#allocation439_spill] sm:$0xff] }
 0x5c7   : > { %v3739_v15 = vadd.f32 %v12165_v27, %v3641_v28  ;;  %v3744_v56 = vadd.f32 %v12166_v6, %v3646_v44  ;;  %v3741_v25 = vadd.f32 %v12167_v4, %v3643_v63  ;;  %v12169_v14 = vld [vmem:[#allocation440_spill] sm:$0xff]  ;;  %v12170_v51 = vld [vmem:[#allocation441_spill] sm:$0xff]  ;;  %v12171_v45 = vld [vmem:[#allocation446_spill] sm:$0xff] }
 0x5c8   : > { %v3746_v53 = vadd.f32 %v12169_v14, %v3648_v58  ;;  %v3743_v18 = vadd.f32 %v12170_v51, %v3645_v0  ;;  %v3834_v35 = vadd.f32 %v12171_v45, %v3736_v30  ;;  %v12172_v2 = vld [vmem:[#allocation25_spill] sm:$0xff]  ;;  %v12173_v55 = vld [vmem:[#allocation442_spill] sm:$0xff]  ;;  %v12174_v52 = vld [vmem:[#allocation443_spill] sm:$0xff] }
 0x5c9   : > { %v3946_v61 = vadd.f32 %v12172_v2, %v3848_v32  ;;  %v3748_v60 = vadd.f32 %v12173_v55, %v3650_v42  ;;  %v3745_v28 = vadd.f32 %v12174_v52, %v3647_v23  ;;  %v12175_v27 = vld [vmem:[#allocation445_spill] sm:$0xff]  ;;  %v12176_v63 = vld [vmem:[#allocation554_spill] sm:$0xff]  ;;  %v12178_v4 = vld [vmem:[#allocation447_spill] sm:$0xff]  ;;  %v10595_v12 = vpop.permute.xlu0 %4492 }
 0x5ca   : > { %v3747_v44 = vadd.f32 %v12175_v27, %v3649_v33  ;;  %4868 = vrot.lane.b32.xlu0 %v12176_v63, %s5752_s23  ;;  %v12177_v6 = vld [vmem:[#allocation69_spill] sm:$0xff]  ;;  %v10586_v58 = vadd.f32 %v12178_v4, %v3651_v46  ;;  %v12180_v0 = vld [vmem:[#allocation448_spill] sm:$0xff]  ;;  %v12181_v30 = vld [vmem:[#allocation467_spill] sm:$0xff] }
 0x5cb   : > { %4796 = vrot.lane.b32.xlu1 %v12177_v6, %s5752_s23  ;;  %v3836_v14 = vadd.f32 %v12180_v0, %v3738_v20  ;;  %v3932_v51 = vadd.f32 %v12181_v30, %v3834_v35  ;;  %v12182_v32 = vld [vmem:[#allocation43_spill] sm:$0xff]  ;;  %v12183_v42 = vld [vmem:[#allocation449_spill] sm:$0xff]  ;;  %v12184_v23 = vld [vmem:[#allocation450_spill] sm:$0xff]  ;;  %v10597_v6 = vpop.permute.xlu1 %4486 }
 0x5cc   : > { %12179 = vst [vmem:[#allocation111_spill] sm:$0xff] %v10586_v58  ;;  %v4044_v45 = vadd.f32 %v12182_v32, %v3946_v61  ;;  %v3751_v2 = vadd.f32 %v12183_v42, %v3653_v21  ;;  %v3838_v55 = vadd.f32 %v12184_v23, %v3740_v16  ;;  %v12185_v33 = vld [vmem:[#allocation451_spill] sm:$0xff]  ;;  %v12186_v27 = vld [vmem:[#allocation454_spill] sm:$0xff]  ;;  %v12189_v0 = vld [vmem:[#allocation489_spill] sm:$0xff] }
 0x5cd   : > { %v3835_v52 = vadd.f32 %v12185_v33, %v3737_v7  ;;  %v3840_v63 = vadd.f32 %v12186_v27, %v3742_v31  ;;  %v12187_v46 = vld [vmem:[#allocation455_spill] sm:$0xff]  ;;  %v4030_v35 = vadd.f32 %v12189_v0, %v3932_v51  ;;  %v12190_v30 = vld [vmem:[#allocation460_spill] sm:$0xff]  ;;  %v12191_v32 = vld [vmem:[#allocation461_spill] sm:$0xff] }
 0x5ce   : > { %v3837_v4 = vadd.f32 %v12187_v46, %v3739_v15  ;;  %v12188_v58 = vld [vmem:[#allocation459_spill] sm:$0xff]  ;;  %v4142_v61 = vadd.f32 %v9852_v9, %v4044_v45  ;;  %v3839_v21 = vadd.f32 %v12190_v30, %v3741_v25  ;;  %v3844_v16 = vadd.f32 %v12191_v32, %v3746_v53  ;;  %v12192_v42 = vld [vmem:[#allocation462_spill] sm:$0xff]  ;;  %v12193_v31 = vld [vmem:[#allocation556_spill] sm:$0xff]  ;;  %v10620_v32 = vpop.permute.xlu0 %4496 }
 0x5cf   : > { %v3842_v20 = vadd.f32 %v12188_v58, %v3744_v56  ;;  %v3841_v7 = vadd.f32 %v12192_v42, %v3743_v18  ;;  %4872 = vrot.lane.b32.xlu0 %v12193_v31, %s5752_s23  ;;  %4866 = vrot.lane.b32.xlu1 %v9732_v41, %s5752_s23  ;;  %v12194_v23 = vld [vmem:[#allocation469_spill] sm:$0xff]  ;;  %v12195_v33 = vld [vmem:[#allocation470_spill] sm:$0xff]  ;;  %v12196_v58 = vld [vmem:[#allocation56_spill] sm:$0xff]  ;;  %v10622_v41 = vpop.permute.xlu1 %4490 }
 0x5d0   : > { %v3934_v15 = vadd.f32 %v12194_v23, %v3836_v14  ;;  %v3849_v56 = vadd.f32 %v12195_v33, %v3751_v2  ;;  %v4128_v51 = vadd.f32 %v12196_v58, %v4030_v35  ;;  %v4240_v9 = vadd.f32 %v10048_v34, %v4142_v61  ;;  %v12197_v45 = vld [vmem:[#allocation463_spill] sm:$0xff]  ;;  %v12198_v27 = vld [vmem:[#allocation464_spill] sm:$0xff]  ;;  %v12199_v46 = vld [vmem:[#allocation466_spill] sm:$0xff] }
 0x5d1   : > { %v3846_v25 = vadd.f32 %v12197_v45, %v3748_v60  ;;  %v3843_v53 = vadd.f32 %v12198_v27, %v3745_v28  ;;  %v10617_v18 = vadd.f32 %v12199_v46, %v3747_v44  ;;  %v12200_v0 = vld [vmem:[#allocation471_spill] sm:$0xff]  ;;  %v12201_v14 = vld [vmem:[#allocation500_spill] sm:$0xff]  ;;  %v12202_v2 = vld [vmem:[#allocation501_spill] sm:$0xff] }
 0x5d2   : > { %v3936_v30 = vadd.f32 %v12200_v0, %v3838_v55  ;;  %v4032_v42 = vadd.f32 %v12201_v14, %v3934_v15  ;;  %v3947_v31 = vadd.f32 %v12202_v2, %v3849_v56  ;;  %v4226_v35 = vadd.f32 %v9875_v22, %v4128_v51  ;;  %v12203_v60 = vld [vmem:[#allocation472_spill] sm:$0xff]  ;;  %v12204_v28 = vld [vmem:[#allocation473_spill] sm:$0xff]  ;;  %v12205_v44 = vld [vmem:[#allocation474_spill] sm:$0xff] }
 0x5d3   : > { %v4338_v34 = vadd.f32 %v10268_v10, %v4240_v9  ;;  %v3933_v61 = vadd.f32 %v12203_v60, %v3835_v52  ;;  %v3938_v23 = vadd.f32 %v12204_v28, %v3840_v63  ;;  %v3935_v33 = vadd.f32 %v12205_v44, %v3837_v4  ;;  %4876 = vrot.lane.b32.xlu0 %v9735_v38, %s5752_s23  ;;  %v12206_v55 = vld [vmem:[#allocation557_spill] sm:$0xff]  ;;  %v12208_v45 = vld [vmem:[#allocation50_spill] sm:$0xff]  ;;  %v12209_v51 = vld [vmem:[#allocation475_spill] sm:$0xff]  ;;  %v4501_v38 = vpop.permute.xlu0 %4500  ;;  %v10643_v14 = vpop.permute.xlu1 %4494 }
 0x5d4   : > { %4870 = vrot.lane.b32.xlu1 %v12206_v55, %s5752_s23  ;;  %v12207_v58 = vld [vmem:[#allocation53_spill] sm:$0xff]  ;;  %v4045_v56 = vadd.f32 %v12208_v45, %v3947_v31  ;;  %v4324_v22 = vadd.f32 %v10071_v37, %v4226_v35  ;;  %v3940_v52 = vadd.f32 %v12209_v51, %v3842_v20  ;;  %v12210_v9 = vld [vmem:[#allocation476_spill] sm:$0xff]  ;;  %v12211_v27 = vld [vmem:[#allocation511_spill] sm:$0xff] }
 0x5d5   : > { %v4130_v15 = vadd.f32 %v12207_v58, %v4032_v42  ;;  %v4436_v10 = vadd.f32 %v10455_v54, %v4338_v34  ;;  %v3937_v63 = vadd.f32 %v12210_v9, %v3839_v21  ;;  %v4034_v4 = vadd.f32 %v12211_v27, %v3936_v30  ;;  %v12212_v46 = vld [vmem:[#allocation512_spill] sm:$0xff]  ;;  %v12214_v20 = vld [vmem:[#allocation453_spill] sm:$0xff]  ;;  %v12219_v55 = vld [vmem:[#allocation18_spill] sm:$0xff] }
 0x5d6   : > { %v4031_v0 = vadd.f32 %v12212_v46, %v3933_v61  ;;  %v4143_v42 = vadd.f32 %v9901_v1, %v4045_v56  ;;  %v4422_v31 = vadd.f32 %v10291_v47, %v4324_v22  ;;  %v12213_v54 = vld [vmem:[#allocation456_spill] sm:$0xff]  ;;  %v3939_v34 = vadd.f32 %v12214_v20, %v3841_v7  ;;  %v12216_v30 = vld [vmem:[#allocation65_spill] sm:$0xff]  ;;  %v12217_v61 = vld [vmem:[#allocation91_spill] sm:$0xff] }
 0x5d7   : > { %v4228_v2 = vadd.f32 %v9899_v19, %v4130_v15  ;;  %v10648_v37 = vadd.f32 %v4501_v38, %v4436_v10  ;;  %v3942_v35 = vadd.f32 %v12213_v54, %v3844_v16  ;;  %v12215_v21 = vld [vmem:[#allocation64_spill] sm:$0xff]  ;;  %4880 = vrot.lane.b32.xlu0 %v9745_v8, %s5752_s23  ;;  %v3944_v16 = vadd.f32 %v12219_v55, %v3846_v25  ;;  %v12220_v58 = vld [vmem:[#allocation523_spill] sm:$0xff]  ;;  %v4571_v8 = vpop.permute.xlu0 %4570  ;;  %v10665_v10 = vpop.permute.xlu1 %4498  ;;  %v12230_v54 = vld [vmem:[#allocation94_spill] sm:$0xff] }
 0x5d8   : > { %v4132_v60 = vadd.f32 %v12215_v21, %v4034_v4  ;;  %4874 = vrot.lane.b32.xlu1 %v9748_v11, %s5752_s23  ;;  %v4129_v19 = vadd.f32 %v12216_v30, %v4031_v0  ;;  %v12218_v28 = vld [vmem:[#allocation92_spill] sm:$0xff]  ;;  %v4520_v44 = vadd.f32 %v10478_v57, %v4422_v31  ;;  %v4036_v7 = vadd.f32 %v12220_v58, %v3938_v23  ;;  %v12222_v56 = vld [vmem:[#allocation79_spill] sm:$0xff]  ;;  %v12224_v57 = vld [vmem:[#allocation458_spill] sm:$0xff] }
 0x5d9   : > { %v4326_v1 = vadd.f32 %v12217_v61, %v4228_v2  ;;  %v4241_v47 = vadd.f32 %v12218_v28, %v4143_v42  ;;  %v12221_v15 = vld [vmem:[#allocation524_spill] sm:$0xff]  ;;  %v3941_v46 = vadd.f32 %v12224_v57, %v3843_v53  ;;  %v12225_v25 = vld [vmem:[#allocation547_spill] sm:$0xff]  ;;  %v12228_v2 = vld [vmem:[#allocation561_spill] sm:$0xff] }
 0x5da   : > { %v4033_v45 = vadd.f32 %v12221_v15, %v3935_v33  ;;  %v4230_v22 = vadd.f32 %v12222_v56, %v4132_v60  ;;  %v12223_v11 = vld [vmem:[#allocation80_spill] sm:$0xff]  ;;  %v10670_v4 = vadd.f32 %v4571_v8, %v4520_v44  ;;  %v4134_v0 = vadd.f32 %v12225_v25, %v4036_v7  ;;  %v12229_v42 = vld [vmem:[#allocation93_spill] sm:$0xff]  ;;  %v12238_v56 = vld [vmem:[#allocation562_spill] sm:$0xff] }
 0x5db   : > { %v4227_v51 = vadd.f32 %v12223_v11, %v4129_v19  ;;  %v4424_v9 = vadd.f32 %v10316_v24, %v4326_v1  ;;  %v4339_v27 = vadd.f32 %v10318_v50, %v4241_v47  ;;  %v12226_v23 = vld [vmem:[#allocation548_spill] sm:$0xff]  ;;  %v12232_v60 = vld [vmem:[#allocation533_spill] sm:$0xff]  ;;  %v12234_v1 = vld [vmem:[#allocation82_spill] sm:$0xff]  ;;  %v4575_v47 = vpop.permute.xlu0 %4574  ;;  %v4503_v44 = vpop.permute.xlu1 %4502 }
 0x5dc   : > { %v4131_v38 = vadd.f32 %v12226_v23, %v4033_v45  ;;  %v12227_v33 = vld [vmem:[#allocation560_spill] sm:$0xff]  ;;  %4878 = vrot.lane.b32.xlu1 %v12228_v2, %s5752_s23  ;;  %v4328_v31 = vadd.f32 %v12229_v42, %v4230_v22  ;;  %v4035_v30 = vadd.f32 %v12232_v60, %v3937_v63  ;;  %v12233_v19 = vld [vmem:[#allocation81_spill] sm:$0xff]  ;;  %v12236_v45 = vld [vmem:[#allocation559_spill] sm:$0xff] }
 0x5dd   : > { %4884 = vrot.lane.b32.xlu0 %v12227_v33, %s5752_s23  ;;  %v4325_v24 = vadd.f32 %v12230_v54, %v4227_v51  ;;  %v4522_v50 = vadd.f32 %v10501_v13, %v4424_v9  ;;  %v4437_v20 = vadd.f32 %v10503_v39, %v4339_v27  ;;  %v12231_v21 = vld [vmem:[#allocation532_spill] sm:$0xff]  ;;  %v4232_v61 = vadd.f32 %v12233_v19, %v4134_v0  ;;  %v12235_v13 = vld [vmem:[#allocation558_spill] sm:$0xff]  ;;  %v12241_v25 = vld [vmem:[#allocation41_spill] sm:$0xff] }
 0x5de   : > { %v4038_v53 = vadd.f32 %v12231_v21, %v3940_v52  ;;  %v4229_v28 = vadd.f32 %v12234_v1, %v4131_v38  ;;  %v4426_v55 = vadd.f32 %v10339_v43, %v4328_v31  ;;  %v4133_v52 = vadd.f32 %v12236_v45, %v4035_v30  ;;  %v12237_v63 = vld [vmem:[#allocation70_spill] sm:$0xff]  ;;  %v12239_v8 = vld [vmem:[#allocation544_spill] sm:$0xff]  ;;  %v12242_v23 = vld [vmem:[#allocation83_spill] sm:$0xff] }
 0x5df   : > { %v4423_v58 = vadd.f32 %v10341_v36, %v4325_v24  ;;  %v10689_v7 = vadd.f32 %v4575_v47, %v4522_v50  ;;  %v10691_v15 = vadd.f32 %v4503_v44, %v4437_v20  ;;  %v10699_v22 = vld [vmem:[#allocation4 + $0x2c] sm:$0x1]  ;;  %v4330_v36 = vadd.f32 %v10159_v29, %v4232_v61  ;;  %v12240_v27 = vld [vmem:[#allocation40_spill] sm:$0xff]  ;;  %v4579_v42 = vpop.permute.xlu0 %4578  ;;  %v4573_v31 = vpop.permute.xlu1 %4572  ;;  %v12247_v21 = vld [vmem:[#allocation563_spill] sm:$0xff] }
 0x5e0   : > { %v4136_v39 = vadd.f32 %v12235_v13, %v4038_v53  ;;  %4882 = vrot.lane.b32.xlu1 %v12238_v56, %s5752_s23  ;;  %v4846_v43 = vmul.f32 %v10699_v22, %v12239_v8  ;;  %v4327_v11 = vadd.f32 %v10161_v59, %v4229_v28  ;;  %v4524_v51 = vadd.f32 %v10524_v26, %v4426_v55  ;;  %v12243_v33 = vld [vmem:[#allocation84_spill] sm:$0xff]  ;;  %v12248_v53 = vld [vmem:[#allocation95_spill] sm:$0xff]  ;;  %v12250_v61 = vld [vmem:[#allocation42_spill] sm:$0xff] }
 0x5e1   : > { %4888 = vrot.lane.b32.xlu0 %v12237_v63, %s5752_s23  ;;  %v4521_v9 = vadd.f32 %v10526_v62, %v4423_v58  ;;  %v4040_v57 = vadd.f32 %v12240_v27, %v3942_v35  ;;  %v4037_v0 = vadd.f32 %v12241_v25, %v3939_v34  ;;  %v4231_v2 = vadd.f32 %v12243_v33, %v4133_v52  ;;  %v12244_v62 = vld [vmem:[#allocation477_spill] sm:$0xff]  ;;  %v12246_v34 = vld [vmem:[#allocation74_spill] sm:$0xff]  ;;  %v12249_v60 = vld [vmem:[#allocation96_spill] sm:$0xff] }
 0x5e2   : > { %v4234_v38 = vadd.f32 %v12242_v23, %v4136_v39  ;;  %v4428_v54 = vadd.f32 %v10362_v17, %v4330_v36  ;;  %v4425_v29 = vadd.f32 %v10364_v40, %v4327_v11  ;;  %v10713_v24 = vadd.f32 %v4579_v42, %v4524_v51  ;;  %v12245_v35 = vld [vmem:[#allocation73_spill] sm:$0xff]  ;;  %v12253_v55 = vld [vmem:[#allocation86_spill] sm:$0xff]  ;;  %v12254_v52 = vld [vmem:[#allocation103_spill] sm:$0xff] }
 0x5e3   : > { %v10715_v59 = vadd.f32 %v4573_v31, %v4521_v9  ;;  %v3943_v26 = vadd.f32 %v12244_v62, %v10617_v18  ;;  %v4138_v50 = vadd.f32 %v12245_v35, %v4040_v57  ;;  %v4135_v20 = vadd.f32 %v12246_v34, %v4037_v0  ;;  %v12251_v18 = vld [vmem:[#allocation26_spill] sm:$0xff]  ;;  %v12252_v47 = vld [vmem:[#allocation85_spill] sm:$0xff]  ;;  %v4583_v13 = vpop.permute.xlu0 %4582  ;;  %v4577_v39 = vpop.permute.xlu1 %4576  ;;  %v12256_v36 = vld [vmem:[#allocation76_spill] sm:$0xff] }
 0x5e4   : > { %4886 = vrot.lane.b32.xlu1 %v12247_v21, %s5752_s23  ;;  %v4332_v17 = vadd.f32 %v12248_v53, %v4234_v38  ;;  %v4329_v40 = vadd.f32 %v12249_v60, %v4231_v2  ;;  %v4526_v30 = vadd.f32 %v10547_v49, %v4428_v54  ;;  %v4523_v19 = vadd.f32 %v10549_v3, %v4425_v29  ;;  %v12255_v49 = vld [vmem:[#allocation75_spill] sm:$0xff]  ;;  %v12258_v11 = vld [vmem:[#allocation564_spill] sm:$0xff]  ;;  %v10744_v51 = vld [vmem:[#allocation4 + $0x2d] sm:$0x1] }
 0x5e5   : > { %4892 = vrot.lane.b32.xlu0 %v4846_v43, %s5752_s23  ;;  %v4042_v1 = vadd.f32 %v12250_v61, %v3944_v16  ;;  %v4039_v28 = vadd.f32 %v12251_v18, %v3941_v46  ;;  %v4236_v44 = vadd.f32 %v12252_v47, %v4138_v50  ;;  %v4233_v58 = vadd.f32 %v12253_v55, %v4135_v20  ;;  %v12257_v46 = vld [vmem:[#allocation71_spill] sm:$0xff]  ;;  %v12259_v9 = vld [vmem:[#allocation97_spill] sm:$0xff]  ;;  %v12260_v57 = vld [vmem:[#allocation98_spill] sm:$0xff] }
 0x5e6   : > { %v4430_v45 = vadd.f32 %v10385_v5, %v4332_v17  ;;  %v4427_v63 = vadd.f32 %v12254_v52, %v4329_v40  ;;  %v10734_v56 = vadd.f32 %v4583_v13, %v4526_v30  ;;  %v10736_v43 = vadd.f32 %v4577_v39, %v4523_v19  ;;  %v12261_v23 = vld [vmem:[#allocation110_spill] sm:$0xff]  ;;  %v12262_v33 = vld [vmem:[#allocation111_spill] sm:$0xff]  ;;  %v12263_v2 = vld [vmem:[#allocation468_spill] sm:$0xff] }
 0x5e7   : > { %v4140_v3 = vadd.f32 %v12255_v49, %v4042_v1  ;;  %v4137_v16 = vadd.f32 %v12256_v36, %v4039_v28  ;;  %v4847_v5 = vmul.f32 %v10744_v51, %v12239_v8  ;;  %v4334_v27 = vadd.f32 %v12259_v9, %v4236_v44  ;;  %v12264_v31 = vld [vmem:[#allocation44_spill] sm:$0xff]  ;;  %v12265_v29 = vld [vmem:[#allocation87_spill] sm:$0xff]  ;;  %v4587_v34 = vpop.permute.xlu0 %4586  ;;  %v4581_v20 = vpop.permute.xlu1 %4580  ;;  %v12268_v53 = vld [vmem:[#allocation105_spill] sm:$0xff] }
 0x5e8   : > { %4890 = vrot.lane.b32.xlu1 %v12258_v11, %s5752_s23  ;;  %v4331_v25 = vadd.f32 %v12260_v57, %v4233_v58  ;;  %v4528_v0 = vadd.f32 %v10570_v48, %v4430_v45  ;;  %v4525_v38 = vadd.f32 %v12261_v23, %v4427_v63  ;;  %v3847_v42 = vadd.f32 %v12263_v2, %v12262_v33  ;;  %v12266_v35 = vld [vmem:[#allocation88_spill] sm:$0xff]  ;;  %v12269_v40 = vld [vmem:[#allocation490_spill] sm:$0xff]  ;;  %v12270_v19 = vld [vmem:[#allocation77_spill] sm:$0xff] }
 0x5e9   : > { %4962 = vrot.lane.b32.xlu0 %v12257_v46, %s5752_s23  ;;  %v4041_v54 = vadd.f32 %v12264_v31, %v3943_v26  ;;  %v4238_v62 = vadd.f32 %v12265_v29, %v4140_v3  ;;  %v4235_v50 = vadd.f32 %v12266_v35, %v4137_v16  ;;  %v12267_v8 = vld [vmem:[#allocation104_spill] sm:$0xff]  ;;  %v12272_v1 = vld [vmem:[#allocation99_spill] sm:$0xff]  ;;  %v12275_v39 = vld [vmem:[#allocation89_spill] sm:$0xff] }
 0x5ea   : > { %v4432_v21 = vadd.f32 %v12267_v8, %v4334_v27  ;;  %v4429_v17 = vadd.f32 %v12268_v53, %v4331_v25  ;;  %v10759_v60 = vadd.f32 %v4587_v34, %v4528_v0  ;;  %v10761_v48 = vadd.f32 %v4581_v20, %v4525_v38  ;;  %v12271_v26 = vld [vmem:[#allocation72_spill] sm:$0xff]  ;;  %v12274_v58 = vld [vmem:[#allocation59_spill] sm:$0xff]  ;;  %v5599_v49 = vld [vmem:[#allocation4 + $0x24] sm:$0x1] }
 0x5eb   : > { %v3945_v30 = vadd.f32 %v12269_v40, %v3847_v42  ;;  %v4139_v61 = vadd.f32 %v12270_v19, %v4041_v54  ;;  %v4336_v18 = vadd.f32 %v12272_v1, %v4238_v62  ;;  %v12273_v28 = vld [vmem:[#allocation100_spill] sm:$0xff]  ;;  %v4591_v52 = vpop.permute.xlu0 %4590  ;;  %v4585_v63 = vpop.permute.xlu1 %4584  ;;  %v12276_v3 = vld [vmem:[#allocation555_spill] sm:$0xff]  ;;  %v5600_v16 = vld [vmem:[#allocation4 + $0x21] sm:$0x1] }
 0x5ec   : > { %4894 = vrot.lane.b32.xlu1 %v4847_v5, %s5752_s23  ;;  %v4333_v47 = vadd.f32 %v12273_v28, %v4235_v50  ;;  %v4530_v44 = vadd.f32 %v10595_v12, %v4432_v21  ;;  %v4527_v55 = vadd.f32 %v10597_v6, %v4429_v17  ;;  %v4934_v36 = vmul.f32 %v5599_v49, %v12276_v3  ;;  %v12277_v11 = vld [vmem:[#allocation106_spill] sm:$0xff]  ;;  %v12278_v9 = vld [vmem:[#allocation107_spill] sm:$0xff]  ;;  %v12280_v0 = vld [vmem:[#allocation101_spill] sm:$0xff] }
 0x5ed   : > { %4966 = vrot.lane.b32.xlu0 %v12271_v26, %s5752_s23  ;;  %v4043_v13 = vadd.f32 %v12274_v58, %v3945_v30  ;;  %v4237_v45 = vadd.f32 %v12275_v39, %v4139_v61  ;;  %v4931_v46 = vmul.f32 %v5600_v16, %v12276_v3  ;;  %v4434_v5 = vadd.f32 %v12277_v11, %v4336_v18  ;;  %v12279_v6 = vld [vmem:[#allocation78_spill] sm:$0xff]  ;;  %v5601_v31 = vld [vmem:[#allocation4 + $0x26] sm:$0x1]  ;;  %v5602_v29 = vld [vmem:[#allocation4 + $0x23] sm:$0x1] }
 0x5ee   : > { %v4431_v27 = vadd.f32 %v12278_v9, %v4333_v47  ;;  %v10778_v57 = vadd.f32 %v4591_v52, %v4530_v44  ;;  %v10780_v12 = vadd.f32 %v4585_v63, %v4527_v55  ;;  %v4936_v54 = vmul.f32 %v5601_v31, %v12276_v3  ;;  %v12281_v35 = vld [vmem:[#allocation90_spill] sm:$0xff]  ;;  %v12282_v34 = vld [vmem:[#allocation108_spill] sm:$0xff]  ;;  %v5604_v61 = vld [vmem:[#allocation4 + $0x25] sm:$0x1] }
 0x5ef   : > { %v4141_v25 = vadd.f32 %v12279_v6, %v4043_v13  ;;  %v4335_v23 = vadd.f32 %v12280_v0, %v4237_v45  ;;  %v4532_v38 = vadd.f32 %v10620_v32, %v4434_v5  ;;  %v4595_v2 = vpop.permute.xlu0 %4594  ;;  %v4589_v42 = vpop.permute.xlu1 %4588  ;;  %v4933_v62 = vmul.f32 %v5602_v29, %v12276_v3  ;;  %v12283_v32 = vld [vmem:[#allocation102_spill] sm:$0xff]  ;;  %v12284_v1 = vld [vmem:[#allocation109_spill] sm:$0xff] }
 0x5f0   : > { %4964 = vrot.lane.b32.xlu1 %v4931_v46, %s5752_s23  ;;  %v4529_v33 = vadd.f32 %v10622_v41, %v4431_v27  ;;  %v5603_v30 = vld [vmem:[#allocation4 + $0x28] sm:$0x1]  ;;  %v4935_v26 = vmul.f32 %v5604_v61, %v12276_v3  ;;  %v5605_v58 = vld [vmem:[#allocation4 + $0x2a] sm:$0x1]  ;;  %v5606_v39 = vld [vmem:[#allocation4 + $0x27] sm:$0x1] }
 0x5f1   : > { %4970 = vrot.lane.b32.xlu0 %v4934_v36, %s5752_s23  ;;  %v4239_v50 = vadd.f32 %v12281_v35, %v4141_v25  ;;  %v4433_v20 = vadd.f32 %v12282_v34, %v4335_v23  ;;  %v10792_v8 = vadd.f32 %v4595_v2, %v4532_v38  ;;  %v4938_v19 = vmul.f32 %v5603_v30, %v12276_v3  ;;  %v5607_v36 = vld [vmem:[#allocation4 + $0x29] sm:$0x1]  ;;  %v5609_v6 = vld [vmem:[#allocation4 + $0x2b] sm:$0x1]  ;;  %v5610_v2 = vld [vmem:[#allocation4 + $0x2f] sm:$0x1] }
 0x5f2   : > { %v10794_v21 = vadd.f32 %v4589_v42, %v4529_v33  ;;  %v4940_v13 = vmul.f32 %v5605_v58, %v12276_v3  ;;  %v4937_v45 = vmul.f32 %v5606_v39, %v12276_v3  ;;  %v4939_v16 = vmul.f32 %v5607_v36, %v12276_v3 }
 0x5f3   : > { %v4337_v41 = vadd.f32 %v12283_v32, %v4239_v50  ;;  %v4531_v53 = vadd.f32 %v10643_v14, %v4433_v20  ;;  %v4599_v17 = vpop.permute.xlu0 %4598  ;;  %v4593_v40 = vpop.permute.xlu1 %4592 }
 0x5f4   : > { %4968 = vrot.lane.b32.xlu1 %v4933_v62, %s5752_s23  ;;  %v4632_v28 = vadd.f32 %v4599_v17, %v10648_v37  ;;  %v4942_v37 = vmul.f32 %v10699_v22, %v12276_v3  ;;  %v4941_v22 = vmul.f32 %v5609_v6, %v12276_v3 }
 0x5f5   : > { %4974 = vrot.lane.b32.xlu0 %v4936_v54, %s5752_s23  ;;  %v4435_v18 = vadd.f32 %v12284_v1, %v4337_v41  ;;  %v4629_v47 = vadd.f32 %v4593_v40, %v4531_v53 }
 0x5f7   : > { %v4533_v44 = vadd.f32 %v10665_v10, %v4435_v18  ;;  %v4669_v14 = vpop.permute.xlu0 %4668  ;;  %v4597_v55 = vpop.permute.xlu1 %4596 }
 0x5f8   : > { %4972 = vrot.lane.b32.xlu1 %v4935_v26, %s5752_s23  ;;  %v4716_v52 = vadd.f32 %v4669_v14, %v10670_v4  ;;  %v5608_v4 = vld [vmem:[#allocation4 + $0x2e] sm:$0x1] }
 0x5f9   : > { %4978 = vrot.lane.b32.xlu0 %v4938_v19, %s5752_s23  ;;  %v4631_v63 = vadd.f32 %v4597_v55, %v4533_v44  ;;  %v4944_v5 = vmul.f32 %v5608_v4, %v12276_v3 }
 0x5fb   : > { %v4673_v49 = vpop.permute.xlu0 %4672  ;;  %v4601_v10 = vpop.permute.xlu1 %4600 }
 0x5fc   : > { %4976 = vrot.lane.b32.xlu1 %v4937_v45, %s5752_s23  ;;  %v4718_v46 = vadd.f32 %v4673_v49, %v10689_v7  ;;  %v4633_v11 = vadd.f32 %v4601_v10, %v10691_v15  ;;  %v4943_v7 = vmul.f32 %v10744_v51, %v12276_v3 }
 0x5fd   : > { %4982 = vrot.lane.b32.xlu0 %v4940_v13, %s5752_s23 }
 0x5ff   : > { %v4677_v9 = vpop.permute.xlu0 %4676  ;;  %v4671_v27 = vpop.permute.xlu1 %4670 }
 0x600   : > { %4980 = vrot.lane.b32.xlu1 %v4939_v16, %s5752_s23  ;;  %v4720_v25 = vadd.f32 %v4677_v9, %v10713_v24  ;;  %v4717_v0 = vadd.f32 %v4671_v27, %v10715_v59  ;;  %v4945_v24 = vmul.f32 %v5610_v2, %v12276_v3 }
 0x601   : > { %4986 = vrot.lane.b32.xlu0 %v4942_v37, %s5752_s23 }
 0x603   : > { %v4681_v15 = vpop.permute.xlu0 %4680  ;;  %v4675_v23 = vpop.permute.xlu1 %4674 }
 0x604   : > { %4984 = vrot.lane.b32.xlu1 %v4941_v22, %s5752_s23  ;;  %v10828_v38 = vadd.f32 %v4681_v15, %v10734_v56  ;;  %v4719_v33 = vadd.f32 %v4675_v23, %v10736_v43 }
 0x605   : > { %4990 = vrot.lane.b32.xlu0 %v4944_v5, %s5752_s23 }
 0x607   : > { %v4685_v59 = vpop.permute.xlu0 %4684  ;;  %v4679_v42 = vpop.permute.xlu1 %4678 }
 0x608   : > { %4988 = vrot.lane.b32.xlu1 %v4943_v7, %s5752_s23  ;;  %v4724_v31 = vadd.f32 %v4685_v59, %v10759_v60  ;;  %v4721_v54 = vadd.f32 %v4679_v42, %v10761_v48 }
 0x60b   : > { %v4689_v51 = vpop.permute.xlu0 %4688  ;;  %v4683_v29 = vpop.permute.xlu1 %4682 }
 0x60c   : > { %4992 = vrot.lane.b32.xlu1 %v4945_v24, %s5752_s23  ;;  %v4726_v56 = vadd.f32 %v4689_v51, %v10778_v57  ;;  %v10838_v62 = vadd.f32 %v4683_v29, %v10780_v12  ;;  %s220_s23 = scalar_lea.vmem [#allocation11], %s5329_s13 }
 0x60d   : > { %s5222_s11 = sshll.u32 %s220_s23, 4  ;;  %s10906_s11 = int_to_ptr.vmem [resolvable:$true] %s5222_s11 }
 0x60e   : > { %s5654_s22 = scalar_lea.vmem %s10906_s11, 256  ;;  %p5661_p1 = scmp.lt.s32.totalorder %s10906_s11, %s5659_s24 }
 0x60f   : > { %v4693_v43 = vpop.permute.xlu0 %4692  ;;  %v4687_v35 = vpop.permute.xlu1 %4686  ;;  %p5655_p3 = scmp.ne.s32.totalorder %s10906_s11, %s5654_s22  ;;  %p5662_p10 = scmp.lt.s32.totalorder %s5660_s30, %s5654_s22 }
 0x610   : > { %v4728_v50 = vadd.f32 %v4693_v43, %v10792_v8  ;;  %v4725_v3 = vadd.f32 %v4687_v35, %v10794_v21 }
 0x611   : > { %p5656_p12 = pnand %p5655_p3, %p12286_p7  ;;  %p5663_p8 = por %p5662_p10, %p5661_p1 }
 0x613   : > { %v4697_v34 = vpop.permute.xlu0 %4696  ;;  %v4691_v20 = vpop.permute.xlu1 %4690  ;;  %p5657_p2 = pneg %p5656_p12 }
 0x614   : > { %v10842_v60 = vadd.f32 %v4697_v34, %v4632_v28  ;;  %v4727_v48 = vadd.f32 %v4691_v20, %v4629_v47 }
 0x615   : > { %p5664_p9 = pnand %p5663_p8, %p5657_p2 }
 0x617   : > { %v4767_v32 = vpop.permute.xlu0 %4766  ;;  %v4695_v41 = vpop.permute.xlu1 %4694 }
 0x618   : > { %v4814_v53 = vadd.f32 %v4767_v32, %v4716_v52  ;;  %v4729_v17 = vadd.f32 %v4695_v41, %v4631_v63 }
 0x61b   : > { %v4771_v40 = vpop.permute.xlu0 %4770  ;;  %v4699_v57 = vpop.permute.xlu1 %4698 }
 0x61c   : > { %v4816_v30 = vadd.f32 %v4771_v40, %v4718_v46  ;;  %v10844_v12 = vadd.f32 %v4699_v57, %v4633_v11 }
 0x61f   : > { %v4775_v19 = vpop.permute.xlu0 %4774  ;;  %v4769_v61 = vpop.permute.xlu1 %4768 }
 0x620   : > { %v4818_v26 = vadd.f32 %v4775_v19, %v4720_v25  ;;  %v4815_v8 = vadd.f32 %v4769_v61, %v4717_v0 }
 0x623   : > { %v4779_v1 = vpop.permute.xlu0 %4778  ;;  %v4773_v21 = vpop.permute.xlu1 %4772 }
 0x624   : > { %v4817_v18 = vadd.f32 %v4773_v21, %v4719_v33 }
 0x627   : > { %v4783_v44 = vpop.permute.xlu0 %4782  ;;  %v4777_v28 = vpop.permute.xlu1 %4776 }
 0x628   : > { %v4822_v14 = vadd.f32 %v4783_v44, %v4724_v31  ;;  %v4819_v47 = vadd.f32 %v4777_v28, %v4721_v54 }
 0x62b   : > { %v4787_v55 = vpop.permute.xlu0 %4786  ;;  %v4781_v58 = vpop.permute.xlu1 %4780 }
 0x62c   : > { %v10846_v13 = vadd.f32 %v4787_v55, %v4726_v56  ;;  %v4821_v28 = vadd.f32 %v4781_v58, %v10838_v62 }
 0x62f   : > { %v4791_v39 = vpop.permute.xlu0 %4790  ;;  %v4785_v45 = vpop.permute.xlu1 %4784 }
 0x630   : > { %v10848_v52 = vadd.f32 %v4791_v39, %v4728_v50  ;;  %v10850_v63 = vadd.f32 %v4785_v45, %v4725_v3 }
 0x633   : > { %v10852_v37 = vpop.permute.xlu0 %4794  ;;  %v4789_v49 = vpop.permute.xlu1 %4788 }
 0x634   : > { %v10854_v10 = vadd.f32 %v4789_v49, %v4727_v48  ;;  %v4820_v48 = vadd.f32 %v4779_v1, %v10828_v38 }
 0x637   : > { %v4865_v36 = vpop.permute.xlu0 %4864  ;;  %v4793_v16 = vpop.permute.xlu1 %4792 }
 0x638   : > { %v10856_v46 = vadd.f32 %v4793_v16, %v4729_v17  ;;  %v4912_v24 = vadd.f32 %v4865_v36, %v4814_v53 }
 0x63c   : > { %v4869_v11 = vpop.permute.xlu0 %4868 }
 0x63d   : > { %v10858_v4 = vpop.permute.xlu1 %4796  ;;  %v4914_v54 = vadd.f32 %v4869_v11, %v4816_v30 }
 0x641   : > { %v4873_v5 = vpop.permute.xlu0 %4872  ;;  %v4867_v9 = vpop.permute.xlu1 %4866 }
 0x642   : > { %v4916_v35 = vadd.f32 %v4873_v5, %v4818_v26  ;;  %v4913_v50 = vadd.f32 %v4867_v9, %v4815_v8  ;;  %v5753_v9 = vmov 1966171168  }
 0x645   : > { %v4877_v27 = vpop.permute.xlu0 %4876 }
 0x646   : > { %v4871_v6 = vpop.permute.xlu1 %4870  ;;  %v4918_v53 = vadd.f32 %v4877_v27, %v4820_v48  ;;  %v5111_v27 = vunpack.c.l.s4 %v5753_v9 }
 0x647   : > { %v4915_v17 = vadd.f32 %v4871_v6, %v4817_v18 }
 0x649   : > { %v4881_v22 = vpop.permute.xlu0 %4880 }
 0x64a   : > { %v4875_v25 = vpop.permute.xlu1 %4874  ;;  %v4920_v26 = vadd.f32 %v4881_v22, %v4822_v14 }
 0x64b   : > { %v4917_v8 = vadd.f32 %v4875_v25, %v4819_v47 }
 0x64e   : > { %v4879_v7 = vpop.permute.xlu1 %4878 }
 0x64f   : > { %v4885_v0 = vpop.permute.xlu0 %4884  ;;  %v4919_v49 = vadd.f32 %v4879_v7, %v4821_v28 }
 0x650   : > { %v4922_v18 = vadd.f32 %v4885_v0, %v10846_v13  ;;  %v4828_v13 = vadd.f32 %v10852_v37, %v10842_v60 }
 0x652   : > { %v4883_v23 = vpop.permute.xlu1 %4882 }
 0x653   : > { %v4889_v15 = vpop.permute.xlu0 %4888  ;;  %v4921_v6 = vadd.f32 %v4883_v23, %v10850_v63 }
 0x654   : > { %v4924_v58 = vadd.f32 %v4889_v15, %v10848_v52 }
 0x656   : > { %v10862_v2 = vpop.permute.xlu1 %4886 }
 0x657   : > { %v10860_v33 = vpop.permute.xlu0 %4892  ;;  %v4923_v52 = vadd.f32 %v10862_v2, %v10854_v10 }
 0x65a   : > { %v10864_v42 = vpop.permute.xlu1 %4890 }
 0x65b   : > { %v4963_v59 = vpop.permute.xlu0 %4962  ;;  %v4925_v10 = vadd.f32 %v10864_v42, %v10856_v46 }
 0x65c   : > { %v5010_v31 = vadd.f32 %v4963_v59, %v4912_v24 }
 0x65e   : > { %v10866_v29 = vpop.permute.xlu1 %4894  ;;  %v5026_v43 = vmul.f32 0.5, %v5010_v31 }
 0x65f   : > { %v4967_v51 = vpop.permute.xlu0 %4966 }
 0x660   : > { %v5012_v56 = vadd.f32 %v4967_v51, %v4914_v54  ;;  %5479 = vtanh.f32 %v5026_v43  ;;  %v5112_v54 = vunpack.c.0.s8 %v5111_v27  ;;  %v4926_v43 = vadd.f32 %v10860_v33, %v4828_v13 }
 0x662   : > { %v5028_v3 = vmul.f32 0.5, %v5012_v56  ;;  %v4965_v20 = vpop.permute.xlu1 %4964 }
 0x663   : > { %v4971_v34 = vpop.permute.xlu0 %4970  ;;  %v5011_v41 = vadd.f32 %v4965_v20, %v4913_v50  ;;  %v12285_v20 = vld [vmem:[#allocation15_spill] sm:$0xff] }
 0x664   : > { %v5014_v32 = vadd.f32 %v4971_v34, %v4916_v35  ;;  %5481 = vtanh.f32 %v5028_v3  ;;  %v10879_v48 = vsub.s32 %v5112_v54, %v12285_v20 }
 0x665   : > { %v5027_v40 = vmul.f32 0.5, %v5011_v41 }
 0x666   : > { %v4969_v30 = vpop.permute.xlu1 %4968  ;;  %v5030_v19 = vmul.f32 0.5, %v5014_v32 }
 0x667   : > { %v4975_v57 = vpop.permute.xlu0 %4974  ;;  %v5013_v21 = vadd.f32 %v4969_v30, %v4915_v17  ;;  %5483 = vtanh.f32 %v5027_v40  ;;  %v4829_v30 = vadd.f32 %v10858_v4, %v10844_v12 }
 0x668   : > { %v5016_v61 = vadd.f32 %v4975_v57, %v4918_v53  ;;  %5485 = vtanh.f32 %v5030_v19 }
 0x669   : > { %v5029_v44 = vmul.f32 0.5, %v5013_v21  ;;  %v4927_v46 = vadd.f32 %v10866_v29, %v4829_v30 }
 0x66a   : > { %v4973_v38 = vpop.permute.xlu1 %4972  ;;  %v5032_v1 = vmul.f32 0.5, %v5016_v61 }
 0x66b   : > { %v4979_v55 = vpop.permute.xlu0 %4978  ;;  %v5015_v45 = vadd.f32 %v4973_v38, %v4917_v8  ;;  %5487 = vtanh.f32 %v5029_v44 }
 0x66c   : > { %v5018_v39 = vadd.f32 %v4979_v55, %v4920_v26  ;;  %5489 = vtanh.f32 %v5032_v1 }
 0x66d   : > { %v5031_v36 = vmul.f32 0.5, %v5015_v45  ;;  %v5480_v62 = vpop.eup %5479 }
 0x66e   : > { %v4977_v11 = vpop.permute.xlu1 %4976  ;;  %v5034_v5 = vmul.f32 0.5, %v5018_v39  ;;  %v5058_v51 = vmul.f32 0.5, %v5480_v62 }
 0x66f   : > { %v4983_v16 = vpop.permute.xlu0 %4982  ;;  %v5017_v47 = vadd.f32 %v4977_v11, %v4919_v49  ;;  %5491 = vtanh.f32 %v5031_v36 }
 0x670   : > { %v5020_v14 = vadd.f32 %v4983_v16, %v4922_v18  ;;  %5493 = vtanh.f32 %v5034_v5  ;;  %v5074_v32 = vadd.f32 0.5, %v5058_v51 }
 0x671   : > { %v5033_v22 = vmul.f32 0.5, %v5017_v47  ;;  %v5482_v7 = vpop.eup %5481 }
 0x672   : > { %v4981_v0 = vpop.permute.xlu1 %4980  ;;  %v5036_v24 = vmul.f32 0.5, %v5020_v14  ;;  %v5060_v15 = vmul.f32 0.5, %v5482_v7 }
 0x673   : > { %v4987_v25 = vpop.permute.xlu0 %4986  ;;  %v5019_v31 = vadd.f32 %v4981_v0, %v4921_v6  ;;  %5495 = vtanh.f32 %v5033_v22 }
 0x674   : > { %v5022_v59 = vadd.f32 %v4987_v25, %v4924_v58  ;;  %v5484_v56 = vpop.eup %5483  ;;  %5497 = vtanh.f32 %v5036_v24  ;;  %v5076_v19 = vadd.f32 0.5, %v5060_v15 }
 0x675   : > { %v5035_v63 = vmul.f32 0.5, %v5019_v31  ;;  %v5059_v23 = vmul.f32 0.5, %v5484_v56  ;;  %v5486_v34 = vpop.eup %5485 }
 0x676   : > { %v4985_v37 = vpop.permute.xlu1 %4984  ;;  %v5038_v35 = vmul.f32 0.5, %v5022_v59  ;;  %v5062_v26 = vmul.f32 0.5, %v5486_v34 }
 0x677   : > { %v4991_v60 = vpop.permute.xlu0 %4990  ;;  %v5021_v3 = vadd.f32 %v4985_v37, %v4923_v52  ;;  %v5075_v41 = vadd.f32 0.5, %v5059_v23  ;;  %5499 = vtanh.f32 %v5035_v63 }
 0x678   : > { %v5024_v50 = vadd.f32 %v4991_v60, %v4926_v43  ;;  %v5488_v33 = vpop.eup %5487  ;;  %5501 = vtanh.f32 %v5038_v35  ;;  %v5078_v45 = vadd.f32 0.5, %v5062_v26 }
 0x679   : > { %v5037_v2 = vmul.f32 0.5, %v5021_v3  ;;  %v5106_v53 = vcombine.low %v5074_v32, %v5075_v41  ;;  %v5061_v17 = vmul.f32 0.5, %v5488_v33  ;;  %v5490_v21 = vpop.eup %5489 }
 0x67a   : > { %v5040_v40 = vmul.f32 0.5, %v5024_v50  ;;  %v4989_v57 = vpop.permute.xlu1 %4988  ;;  %v5064_v39 = vmul.f32 0.5, %v5490_v21 }
 0x67b   : > { %v5023_v61 = vadd.f32 %v4989_v57, %v4925_v10  ;;  %v5116_v8 = vrot.slane %v5106_v53, %v10879_v48  ;;  %v5077_v44 = vadd.f32 0.5, %v5061_v17  ;;  %5503 = vtanh.f32 %v5037_v2 }
 0x67c   : > { %v5492_v28 = vpop.eup %5491  ;;  %5505 = vtanh.f32 %v5040_v40  ;;  %v5080_v47 = vadd.f32 0.5, %v5064_v39 }
 0x67d   : > { %v5039_v42 = vmul.f32 0.5, %v5023_v61  ;;  %v5107_v55 = vcombine.low %v5076_v19, %v5077_v44  ;;  %v5063_v38 = vmul.f32 0.5, %v5492_v28  ;;  %v5494_v4 = vpop.eup %5493 }
 0x67e   : > { %v4993_v1 = vpop.permute.xlu1 %4992  ;;  %v5066_v27 = vmul.f32 0.5, %v5494_v4 }
 0x67f   : > { %5507 = vtanh.f32 %v5039_v42  ;;  %v5025_v12 = vadd.f32 %v4993_v1, %v4927_v46  ;;  %v5123_v18 = vrot.slane %v5107_v55, %v10879_v48  ;;  %v5079_v49 = vadd.f32 0.5, %v5063_v38 }
 0x680   : > { %v5496_v36 = vpop.eup %5495  ;;  %v5082_v0 = vadd.f32 0.5, %v5066_v27 }
 0x681   : > { %v5041_v16 = vmul.f32 0.5, %v5025_v12  ;;  %v5138_v11 = vcombine.low %v5116_v8, %v5123_v18  ;;  %v5108_v5 = vcombine.low %v5078_v45, %v5079_v49  ;;  %v5065_v14 = vmul.f32 0.5, %v5496_v36  ;;  %v5498_v29 = vpop.eup %5497 }
 0x682   : > { %v5068_v7 = vmul.f32 0.5, %v5498_v29 }
 0x683   : > { %5509 = vtanh.f32 %v5041_v16  ;;  %v5146_v9 = vrot.slane %v5138_v11, %v10879_v48  ;;  %v5130_v62 = vrot.slane %v5108_v5, %v10879_v48  ;;  %v5081_v58 = vadd.f32 0.5, %v5065_v14 }
 0x684   : > { %v5500_v6 = vpop.eup %5499  ;;  %v5084_v15 = vadd.f32 0.5, %v5068_v7 }
 0x685   : > { %v5109_v22 = vcombine.low %v5080_v47, %v5081_v58  ;;  %v5067_v13 = vmul.f32 0.5, %v5500_v6  ;;  %v5502_v25 = vpop.eup %5501 }
 0x686   : > { %v5070_v52 = vmul.f32 0.5, %v5502_v25 }
 0x687   : > { %v5137_v24 = vrot.slane %v5109_v22, %v10879_v48  ;;  %v5083_v59 = vadd.f32 0.5, %v5067_v13 }
 0x688   : > { %v5504_v31 = vpop.eup %5503  ;;  %v5086_v34 = vadd.f32 0.5, %v5070_v52 }
 0x689   : > { %v5139_v54 = vcombine.low %v5130_v62, %v5137_v24  ;;  %v5155_v51 = vcombine.low %v5082_v0, %v5083_v59  ;;  %v5069_v56 = vmul.f32 0.5, %v5504_v31  ;;  %v5506_v43 = vpop.eup %5505 }
 0x68a   : > { %v5072_v20 = vmul.f32 0.5, %v5506_v43 }
 0x68b   : > { %v5153_v23 = vrot.slane %v5139_v54, %v10879_v48  ;;  %v5165_v60 = vrot.slane %v5155_v51, %v10879_v48  ;;  %v5085_v37 = vadd.f32 0.5, %v5069_v56 }
 0x68c   : > { %v5508_v63 = vpop.eup %5507  ;;  %v5088_v17 = vadd.f32 0.5, %v5072_v20 }
 0x68d   : > { %v5071_v35 = vmul.f32 0.5, %v5508_v63  ;;  %v5154_v50 = vcombine.low %v5146_v9, %v5153_v23  ;;  %v5156_v3 = vcombine.low %v5084_v15, %v5085_v37 }
 0x68f   : > { %v5087_v32 = vadd.f32 0.5, %v5071_v35  ;;  %v5172_v33 = vrot.slane %v5156_v3, %v10879_v48  ;;  %5206 = vst.msk [vmem:[%s220_s23] sm:$0xff] %vm226_vm0, %v5154_v50 }
 0x690   : > { %v5510_v41 = vpop.eup %5509 }
 0x691   : > { %v5157_v10 = vcombine.low %v5086_v34, %v5087_v32  ;;  %v5073_v2 = vmul.f32 0.5, %v5510_v41  ;;  %v5187_v53 = vcombine.low %v5165_v60, %v5172_v33 }
 0x693   : > { %v5179_v40 = vrot.slane %v5157_v10, %v10879_v48  ;;  %v5089_v57 = vadd.f32 0.5, %v5073_v2  ;;  %v5195_v30 = vrot.slane %v5187_v53, %v10879_v48 }
 0x695   : > { %v5158_v19 = vcombine.low %v5088_v17, %v5089_v57 }
 0x697   : > { %v5186_v61 = vrot.slane %v5158_v19, %v10879_v48 }
 0x699   : > { %v5188_v21 = vcombine.low %v5179_v40, %v5186_v61 }
 0x69b   : > { %v5202_v26 = vrot.slane %v5188_v21, %v10879_v48 }
 0x69d   : > { %v5203_v8 = vcombine.low %v5195_v30, %v5202_v26 }
 0x69f   : > { %5207 = vst.msk [vmem:[%s220_s23 + $0x8] sm:$0xff] %vm226_vm0, %v5203_v8 }
 0x6a0   : > { %5667 = shalt.err (!%p5664_p9)
}
 0x6a1   : > { %s5668_s27 = scalar_lea.hbm %s10904_s20, 256  ;;  %s5672_s29 = scalar_lea.hbm %s10958_s3, 512 }
 0x6a2   : > { %p5669_p13 = scmp.ne.s32.totalorder %s10904_s20, %s5668_s27  ;;  %p5673_p11 = scmp.lt.s32.totalorder %s10904_s20, %s10958_s3 }
 0x6a3   : > { %p5674_p5 = scmp.lt.s32.totalorder %s5672_s29, %s5668_s27 }
 0x6a4   : > { %p5670_p4 = pnand %p5669_p13, %p12286_p7 }
 0x6a5   : > { %p5675_p0 = por %p5674_p5, %p5673_p11 }
 0x6a6   : > { %p5671_p6 = pneg %p5670_p4 }
 0x6a8   : > { %p5676_p3 = pnand %p5675_p0, %p5671_p6 }
 0x6aa   : > { %5679 = shalt.err (!%p5676_p3)
}
 0x6ab   : > { %s5755_s13 = smov 128   ;;  %s5756_s23 = smov 8  }
 0x6ac   : > { %5398 = dma.vmem_to_hbm [thread:$0]  (%p12286_p7), %s10906_s11, 256, %s10904_s20, %s5209_s4, %s5755_s13, %s5755_s13, %s5756_s23  }
 0x6ad PF: > { %s5237_s12 = sand.u32 1, %s5718_s14   ;;  %p12287_p12 = scmp.ne.s32.totalorder %s10979_s26, 0 }
 0x6ae   : > { %p12288_p2 = scmp.ge.s32.totalorder %s5738_s19, 2  ;;  %s5238_s21 = scalar_lea.sflag [#allocation8], %s5237_s12 }
 0x6b0   : > { %p5409_p1 = pnand %p12288_p2, %p12287_p12 }
 0x6b2   : > { %p5410_p10 = pneg %p5409_p1 }
 0x6b4   : > { %5713 = dma.done.wait (%p5410_p10), %s5238_s21, 256  }
 0x6b5   : > { %5715 = vsyncadd (%p5410_p10), %s5238_s21, 4294967040  ;;  %s21_s19 = sadd.s32 1, %s5738_s19   ;;  %s12289_s14 = smov %s5722_s15 }
 0x6b6   : > { %p18_p8 = scmp.ge.s32.totalorder %s21_s19, 4   ;;  %s12290_s15 = smov %s5726_s16 }
 0x6b7   : > { %s12291_s16 = smov %s5888_s5  ;;  %s12292_s17 = smov %s5734_s18 }
 0x6b8   : > { %s12293_s18 = smov %s12295_s6  ;;  %20 = sbr.rel (!%p18_p8) target bundleno = 9 (0x9), region = 97 }
 0x6bd   :  { %5243 = vsyncpa [#allocation7], 1 }
 0x6be   :  { %5245 = vsyncpa [#allocation7 + $0x1], 1 }
 0x6bf   :  { %5246 = vsyncpa [#allocation8], 1 }
 0x6c0   :  { %5248 = vsyncpa [#allocation8 + $0x1], 1 }
 0x6c1   :  { %5249 = vsyncpa [#allocation9], 1 }
 0x6c2   :  { %5251 = vsyncpa [#allocation9 + $0x1], 1 }

// kernel: tpu_custom_call.1
= control target key start
LH: loop header
LB: loop body
LE: loop exit
PB: predicated region body
PF: predicated region fallthrough
CT: control target
= control target key end

     0   :  { %s2461_s0 = inlined_call_operand.hbm [shape: f32[2,4,16,16], index: 0, kind: input, shape index: {}]   ;;  %s2462_s1 = inlined_call_operand.vmem [shape: f32[50], index: 1, kind: input, shape index: {}]   ;;  %s2463_s2 = inlined_call_operand.<no memory space> [shape: f32[1], index: 2, kind: input, shape index: {}]   ;;  %s2464_s3 = inlined_call_operand.hbm [shape: f32[2,16,16], index: 3, kind: output, shape index: {}]  }
   0x1   :  { %2475 = sst [smem:[#allocation22_spill]] %s2461_s0 }
   0x2   :  { %2476 = sst [smem:[#allocation23_spill]] %s2462_s1 }
   0x3   :  { %8 = sst [smem:[#allocation5]] %s2463_s2 }
   0x4   :  { %9 = vsyncpa [#allocation7], 0 }
   0x5   :  { %11 = vsyncpa [#allocation7 + $0x1], 0 }
   0x6   :  { %12 = vsyncpa [#allocation9], 0 }
   0x7   :  { %13 = vsyncpa [#allocation8], 0 }
   0x8   :  { %15 = vsyncpa [#allocation8 + $0x1], 0  ;;  %s1635_s14 = smov 0   ;;  %s1637_s15 = smov 0  }
   0x9   :  { %s1639_s16 = smov 0   ;;  %s1641_s17 = smov 0  }
   0xa   :  { %s1643_s18 = smov 0   ;;  %s1645_s19 = smov 0  }
   0xb LB: > { %2477 = sst [smem:[#allocation15_spill]] %s1580_s15  ;;  %s1304_s2 = sadd.s32 4294967295, %s1596_s19   ;;  %s1596_s19 = sphi %s1645_s19, %s21_s19   ;;  %s1592_s18 = sphi %s1643_s18, %s2505_s18   ;;  %s1588_s17 = sphi %s1641_s17, %s2504_s17   ;;  %s1584_s16 = sphi %s1639_s16, %s2503_s16   ;;  %s1580_s15 = sphi %s1637_s15, %s2502_s15   ;;  %s1576_s14 = sphi %s1635_s14, %s2501_s14  }
   0xc   : > { %2478 = sst [smem:[#allocation16_spill]] %s1584_s16  ;;  %s1305_s20 = sadd.s32 4294967294, %s1596_s19  }
   0xd   : > { %2479 = sst [smem:[#allocation17_spill]] %s1592_s18  ;;  %s42_s21 = sadd.s32 1, %s1584_s16 }
   0xe   : > { %2480 = sst [smem:[#allocation18_spill]] %s1596_s19  ;;  %p49_p0 = scmp.ne.s32.totalorder %s1584_s16, %s1580_s15 }
   0xf   : > { %p50_p1 = scmp.eq.s32.totalorder %s1596_s19, 0  ;;  %p55_p2 = scmp.ne.s32.totalorder %s1580_s15, %s1576_s14 }
  0x10   : > { %p1673_p3 = scmp.eq.s32.totalorder %s1304_s2, 0  ;;  %p121_p4 = scmp.eq.s32.totalorder %s1304_s2, 1 }
  0x11   : > { %p1677_p5 = por %p50_p1, %p49_p0  ;;  %p127_p6 = scmp.eq.s32.totalorder %s1305_s20, 1 }
  0x12   : > { %p1683_p7 = por %p1673_p3, %p55_p2  ;;  %p1687_p8 = por %p121_p4, %p49_p0 }
  0x13   : > { %p1691_p9 = por %p127_p6, %p55_p2  ;;  %p1306_p10 = scmp.ge.s32.totalorder %s1596_s19, 1 }
  0x14   : > { %s2484_s25 = scalar_select %p1687_p8, 1, 0 }
  0x15   : > { %s2485_s26 = scalar_select %p1691_p9, 1, 0 }
  0x16   : > { %p134_p11 = scmp.lt.s32.totalorder %s1596_s19, 3  ;;  %s2487_s1 = sld [smem:[#allocation23_spill]] }
  0x17   : > { %2486 = sst [smem:[#allocation19_spill]] %s2485_s26  ;;  %p1399_p0 = scmp.lt.s32.totalorder %s1596_s19, 2 }
  0x18   : > { %p1700_p12 = pnand %p1306_p10, %p134_p11  ;;  %s33_s6 = sadd.s32 1, %s1592_s18 }
  0x19   : > { %p1710_p2 = pnand %p1399_p0, %p1677_p5  ;;  %p1721_p6 = scmp.ge.s32.totalorder %s33_s6, 2 }
  0x1a   : > { %p1386_p1 = pneg %p1700_p12  ;;  %s161_s8 = sand.u32 1, %s1584_s16  }
  0x1c   : > { %s147_s29 = sshll.u32 %s2487_s1, 4  ;;  %p1716_p4 = pnand %p1386_p1, %p1673_p3  ;;  %s148_s29 = int_to_ptr.vmem [resolvable:$true] %s147_s29 }
  0x1d   : > { %s1469_s9 = scalar_lea.vmem %s148_s29, 16  ;;  %p1477_p13 = scmp.lt.s32.totalorder %s148_s29, %s148_s29 }
  0x1e   : > { %p1470_p10 = scmp.ne.s32.totalorder %s148_s29, %s1469_s9  ;;  %p1471_p11 = pneg %p1716_p4 }
  0x1f   : > { %p1478_p9 = scmp.lt.s32.totalorder %s1469_s9, %s1469_s9 }
  0x20   : > { %p1472_p5 = pnand %p1471_p11, %p1470_p10 }
  0x21   : > { %p1479_p8 = por %p1478_p9, %p1477_p13 }
  0x22   : > { %p1473_p0 = pneg %p1472_p5 }
  0x24   : > { %p1480_p1 = pnand %p1479_p8, %p1473_p0 }
  0x26   : > { %1483 = shalt.err (!%p1480_p1)
}
  0x27   : > { %s1598_s10 = smov [#allocation10]   ;;  %s2507_s6 = smov (%p1721_p6, %s33_s6), 0 }
  0x28   : > { %1389 = dma.vmem_to_smem (!%p1716_p4), %s148_s29, 16, %s1598_s10, [#allocation9]  }
  0x29   : > { %2492 = sst [smem:[#allocation20_spill]] %s2507_s6  ;;  %s1309_s11 = sshll.u32 %s161_s8, 6 }
  0x2a   : > { %s37_s12 = ssub.s32 %s1592_s18, %s2507_s6  ;;  %s1376_s13 = sshll.u32 %s1592_s18, 10 }
  0x2b   : > { %p40_p10 = scmp.eq.s32.totalorder %s37_s12, 0  ;;  %s2493_s0 = sld [smem:[#allocation22_spill]] }
  0x2c   : > { %s165_s27 = scalar_lea.vmem [#allocation6], %s1309_s11  ;;  %s162_s9 = scalar_lea.sflag [#allocation7], %s161_s8 }
  0x2d   : > { %s175_s28 = sshll.u32 %s165_s27, 4  ;;  %p1486_p8 = pneg %p1710_p2  ;;  %s176_s28 = int_to_ptr.vmem [resolvable:$true] %s175_s28 }
  0x2e   : > { %s1743_s5 = scalar_select %p40_p10, %s1584_s16, %s42_s21  }
  0x2f   : > { %s1497_s29 = scalar_lea.vmem %s176_s28, 1024  ;;  %s1599_s7 = smov [#allocation6]  }
  0x30   : > { %2494 = sst [smem:[#allocation21_spill]] %s1743_s5  ;;  %p1498_p9 = scmp.ne.s32.totalorder %s176_s28, %s1497_s29 }
  0x31   : > { %s174_s23 = scalar_lea.hbm %s2493_s0, %s1376_s13  ;;  %s1502_s10 = sshll.u32 %s1599_s7, 4  ;;  %s1503_s10 = int_to_ptr.vmem [resolvable:$false] %s1502_s10 }
  0x32   : > { %p1500_p13 = pnand %p1498_p9, %p1486_p8  ;;  %s1504_s12 = scalar_lea.vmem %s1503_s10, 2048 }
  0x33   : > { %p1505_p6 = scmp.lt.s32.totalorder %s176_s28, %s1503_s10  ;;  %p1506_p11 = scmp.lt.s32.totalorder %s1504_s12, %s1497_s29 }
  0x34   : > { %p1501_p4 = pneg %p1500_p13 }
  0x35   : > { %p1507_p5 = por %p1506_p11, %p1505_p6 }
  0x37   : > { %p1508_p0 = pnand %p1507_p5, %p1501_p4 }
  0x39   : > { %1511 = shalt.err (!%p1508_p0)
}
  0x3a   : > { %s1600_s11 = smov 128   ;;  %s1601_s21 = smov 8  }
  0x3b   : > { %1393 = dma.hbm_to_vmem [thread:$0]  (!%p1710_p2), %s174_s23, 1024, %s176_s28, %s162_s9, %s1600_s11, %s1600_s11, %s1601_s21  }
  0x3c   : > { %187 = sbr.rel (%p1700_p12) target bundleno = 523 (0x20b), region = 32  ;;  %s1752_s8 = sand.u32 (!%p1700_p12), 1, %s1580_s15  }
  0x3d   : > { %s1313_s13 = sshll.u32 (!%p1700_p12), %s1752_s8, 6  ;;  %s190_s2 = scalar_lea.sflag (!%p1700_p12), [#allocation7], %s1752_s8 }
  0x3e   : > { %s1756_s20 = scalar_lea.vmem (!%p1700_p12), [#allocation6], %s1313_s13 }
  0x41   : > { %1563 = dma.done.wait (%p1683_p7), %s190_s2, 1024  }
  0x42   : > { %1565 = vsyncadd (%p1683_p7), %s190_s2, 4294966272 }
  0x43   : > { %1567 = dma.done.wait (%p1673_p3), [#allocation9], 16  }
  0x44   : > { %1569 = vsyncadd (%p1673_p3), [#allocation9], 4294967280 }
  0x45   : > { %202 = sfence }
  0x46   : > { %vm226_vm0 = vcmask 130048   ;;  %v1602_v0 = vmov -inf   ;;  %vm272_vm1 = vcmask 191488   ;;  %vm277_vm2 = vcmask 31744   ;;  %v235_v2 = vld [vmem:[%s1756_s20] sm:$0xff]  ;;  %v236_v3 = vld [vmem:[%s1756_s20 + $0x8] sm:$0xff] }
  0x47   : > { %229 = vst.msk [vmem:[#allocation3] sm:$0xff] %vm226_vm0, %v1602_v0  ;;  %230 = vst.msk [vmem:[#allocation3 + $0x8] sm:$0xff] %vm226_vm0, %v1602_v0  ;;  %v1603_v1 = vmov 0.0   ;;  %vm281_vm3 = vcmask 27648   ;;  %vm287_vm4 = vcmask 195744   ;;  %vm291_vm5 = vcmask 191648  }
  0x48   : > { %227 = vst.msk [vmem:[#allocation2] sm:$0xff] %vm226_vm0, %v1603_v1  ;;  %228 = vst.msk [vmem:[#allocation2 + $0x8] sm:$0xff] %vm226_vm0, %v1603_v1  ;;  %v1316_v4 = vld [vmem:[%s1756_s20 + $0x10] sm:$0xff]  ;;  %v1317_v7 = vld [vmem:[%s1756_s20 + $0x18] sm:$0xff]  ;;  %s1604_s22 = smov 4   ;;  %s1788_s24 = sld [smem:[#allocation10 + $0x1a]] }
  0x49   : > { %273 = vst.msk [vmem:[#allocation4 + $0x4] sm:$0xf] %vm272_vm1, %v1603_v1  ;;  %274 = vst.msk [vmem:[#allocation4 + $0x24] sm:$0xf] %vm272_vm1, %v1603_v1  ;;  %v1318_v12 = vld [vmem:[%s1756_s20 + $0x20] sm:$0xff]  ;;  %v1319_v14 = vld [vmem:[%s1756_s20 + $0x28] sm:$0xff] }
  0x4a   : > { %275 = vst.msk [vmem:[#allocation4 + $0x18] sm:$0xf] %vm272_vm1, %v1603_v1  ;;  %276 = vst.msk [vmem:[#allocation4 + $0x38] sm:$0xf] %vm272_vm1, %v1603_v1  ;;  %v1320_v18 = vld [vmem:[%s1756_s20 + $0x30] sm:$0xff]  ;;  %v1321_v20 = vld [vmem:[%s1756_s20 + $0x38] sm:$0xff] }
  0x4b   : > { %284 = vst.msk [vmem:[#allocation4 + $0x28] sm:$0xff] %vm277_vm2, %v1603_v1  ;;  %279 = vst.msk [vmem:[#allocation4 + $0x8] sm:$0xff] %vm277_vm2, %v1603_v1  ;;  %vm305_vm6 = vcmask 162848   ;;  %s1790_s30 = sld [smem:[#allocation10 + $0x1b]]  ;;  %s2469_s2 = smov 126   ;;  %vm338_vm7 = vcmask 1045504  }
  0x4c   : > { %280 = vst.msk [vmem:[#allocation4 + $0x10] sm:$0xff] %vm277_vm2, %v1603_v1  ;;  %285 = vst.msk [vmem:[#allocation4 + $0x30] sm:$0xff] %vm277_vm2, %v1603_v1  ;;  %s1792_s4 = sld [smem:[#allocation10 + $0x1f]]  ;;  %s1606_s18 = smov 124   ;;  %vm356_vm8 = vcmask 1043456   ;;  %vm374_vm9 = vcmask 1041408  }
  0x4d   : > { %278 = vst.msk [vmem:[#allocation4] sm:$0xff] %vm277_vm2, %v1603_v1  ;;  %283 = vst.msk [vmem:[#allocation4 + $0x20] sm:$0xff] %vm277_vm2, %v1603_v1  ;;  %s1794_s23 = sld [smem:[#allocation10 + $0x24]]  ;;  %s2495_s15 = smov 126  }
  0x4e   : > { %282 = vst.msk [vmem:[#allocation4 + $0x18] sm:$0xf] %vm281_vm3, %v1603_v1  ;;  %286 = vst.msk [vmem:[#allocation4 + $0x38] sm:$0xf] %vm281_vm3, %v1603_v1  ;;  %v233_v5 = vld [vmem:[#allocation3] sm:$0xff]  ;;  %v234_v6 = vld [vmem:[#allocation3 + $0x8] sm:$0xff]  ;;  %v821_v35 = vstv %s1788_s24 }
  0x4f   : > { %294 = vst.msk [vmem:[#allocation4 + $0x28] sm:$0xff] %vm287_vm4, %v1603_v1  ;;  %289 = vst.msk [vmem:[#allocation4 + $0x8] sm:$0xff] %vm287_vm4, %v1603_v1  ;;  %v239_v8 = vmax.f32 %v233_v5, %v235_v2  ;;  %v231_v9 = vld [vmem:[#allocation2] sm:$0xff]  ;;  %v240_v10 = vmax.f32 %v234_v6, %v236_v3  ;;  %v232_v11 = vld [vmem:[#allocation2 + $0x8] sm:$0xff]  ;;  %s1797_s27 = sld [smem:[#allocation10 + $0x2e]]  ;;  %p2496_p7 = scmp.ne.s32.totalorder %s2484_s25, 0 }
  0x50   : > { %290 = vst.msk [vmem:[#allocation4 + $0x10] sm:$0xff] %vm287_vm4, %v1603_v1  ;;  %295 = vst.msk [vmem:[#allocation4 + $0x30] sm:$0xff] %vm287_vm4, %v1603_v1  ;;  %v237_v13 = vadd.f32 %v235_v2, %v231_v9  ;;  %v238_v15 = vadd.f32 %v236_v3, %v232_v11  ;;  %s1799_s28 = sld [smem:[#allocation10 + $0x29]] }
  0x51   : > { %288 = vst.msk [vmem:[#allocation4] sm:$0xff] %vm287_vm4, %v1603_v1  ;;  %293 = vst.msk [vmem:[#allocation4 + $0x20] sm:$0xff] %vm287_vm4, %v1603_v1  ;;  %v246_v16 = vmax.f32 %v239_v8, %v1316_v4  ;;  %v247_v17 = vmax.f32 %v240_v10, %v1317_v7  ;;  %s1801_s9 = sld [smem:[#allocation10 + $0x20]]  ;;  %v912_v44 = vstv %s1790_s30 }
  0x52   : > { %292 = vst.msk [vmem:[#allocation4 + $0x18] sm:$0xf] %vm291_vm5, %v1603_v1  ;;  %296 = vst.msk [vmem:[#allocation4 + $0x38] sm:$0xf] %vm291_vm5, %v1603_v1  ;;  %v244_v19 = vadd.f32 %v1316_v4, %v237_v13  ;;  %v245_v21 = vadd.f32 %v1317_v7, %v238_v15  ;;  %s1804_s29 = sld [smem:[#allocation10 + $0x1]]  ;;  %v1880_v55 = vstv %s1792_s4 }
  0x53   : > { %v253_v22 = vmax.f32 %v246_v16, %v1318_v12  ;;  %v254_v23 = vmax.f32 %v247_v17, %v1319_v14  ;;  %s1807_s7 = sld [smem:[#allocation10 + $0x15]]  ;;  %v1884_v57 = vstv %s1794_s23 }
  0x54   : > { %v251_v24 = vadd.f32 %v1318_v12, %v244_v19  ;;  %v252_v25 = vadd.f32 %v1319_v14, %v245_v21  ;;  %s1810_s10 = sld [smem:[#allocation10 + $0x2]] }
  0x55   : > { %v260_v26 = vmax.f32 %v253_v22, %v1320_v18  ;;  %v261_v27 = vmax.f32 %v254_v23, %v1321_v20  ;;  %s1812_s12 = sld [smem:[#allocation10 + $0x16]]  ;;  %v898_v39 = vstv %s1797_s27 }
  0x56   : > { %v258_v28 = vadd.f32 %v1320_v18, %v251_v24  ;;  %v259_v29 = vadd.f32 %v1321_v20, %v252_v25  ;;  %s1817_s11 = sld [smem:[#allocation10 + $0x3]]  ;;  %v1887_v58 = vstv %s1799_s28 }
  0x57   : > { %310 = vrot.lane.b32.xlu1 %v260_v26, %s1604_s22  ;;  %265 = vst.msk [vmem:[#allocation3] sm:$0xff] %vm226_vm0, %v260_v26  ;;  %266 = vst.msk [vmem:[#allocation3 + $0x8] sm:$0xff] %vm226_vm0, %v261_v27  ;;  %s1820_s21 = sld [smem:[#allocation10 + $0x17]]  ;;  %v1890_v59 = vstv %s1801_s9 }
  0x58   : > { %v270_v30 = vmul.f32 0.25, %v258_v28  ;;  %263 = vst.msk [vmem:[#allocation2] sm:$0xff] %vm226_vm0, %v258_v28  ;;  %264 = vst.msk [vmem:[#allocation2 + $0x8] sm:$0xff] %vm226_vm0, %v259_v29  ;;  %v271_v31 = vmul.f32 0.25, %v259_v29  ;;  %s1823_s13 = sld [smem:[#allocation10 + $0x4]]  ;;  %v391_v45 = vstv %s1804_s29 }
  0x59   : > { %s1826_s20 = sld [smem:[#allocation10 + $0x18]]  ;;  %v468_v51 = vstv %s1807_s7 }
  0x5a   : > { %299 = vrot.lane.b32.xlu0 %v270_v30, %s1604_s22  ;;  %s1834_s24 = sld [smem:[#allocation10 + $0xb]]  ;;  %v482_v56 = vstv %s1810_s10 }
  0x5b   : > { %312 = vrot.lane.b32.xlu1 %v261_v27, %s1604_s22  ;;  %s1839_s27 = sld [smem:[#allocation10 + $0x8]]  ;;  %v559_v60 = vstv %s1812_s12 }
  0x5c   : > { %s1843_s0 = sld [smem:[#allocation10 + $0xd]]  ;;  %v573_v61 = vstv %s1817_s11 }
  0x5d   : > { %s1846_s1 = sld [smem:[#allocation10 + $0x12]]  ;;  %v650_v63 = vstv %s1820_s21 }
  0x5e   : > { %301 = vrot.lane.b32.xlu0 %v271_v31, %s1604_s22  ;;  %s1830_s22 = sld [smem:[#allocation10 + $0x6]]  ;;  %v664_v0 = vstv %s1823_s13 }
  0x5f   : > { %s1850_s6 = sld [smem:[#allocation10 + $0x9]]  ;;  %v741_v1 = vstv %s1826_s20 }
  0x60   : > { %s1854_s30 = sld [smem:[#allocation10 + $0xe]]  ;;  %v1907_v5 = vstv %s1834_s24 }
  0x61   : > { %s1859_s29 = sld [smem:[#allocation10 + $0x13]]  ;;  %v587_v6 = vstv %s1839_s27 }
  0x62   : > { %s1861_s5 = sld [smem:[#allocation10 + $0x5]]  ;;  %v608_v7 = vstv %s1843_s0  ;;  %s1607_s0 = smov 122  }
  0x63   : > { %s1864_s16 = sld [smem:[#allocation10]]  ;;  %v629_v8 = vstv %s1846_s1 }
  0x64   : > { %s1871_s19 = sld [smem:[#allocation5]]  ;;  %v1902_v2 = vstv %s1830_s22 }
  0x65   : > { %s1875_s26 = sld [smem:[#allocation10 + $0xf]]  ;;  %v678_v9 = vstv %s1850_s6 }
  0x66   : > { %v1914_v10 = vstv %s1854_s30  ;;  %s1974_s1 = sld [smem:[#allocation10 + $0x14]] }
  0x67   : > { %v1919_v11 = vstv %s1859_s29  ;;  %s2088_s6 = sld [smem:[#allocation10 + $0x10]]  ;;  %s1315_s29 = sshll.u32 %s1752_s8, 4 }
  0x68   : > { %v1922_v12 = vstv %s1861_s5  ;;  %s2107_s5 = sld [smem:[#allocation10 + $0x7]] }
  0x69   : > { %v325_v14 = vstv %s1864_s16  ;;  %s1333_s16 = sld [smem:[#allocation10 + $0xc]] }
  0x6a   : > { %v320_v13 = vstv %s1871_s19  ;;  %s1334_s19 = sld [smem:[#allocation10 + $0x11]] }
  0x6b   : > { %v1930_v16 = vstv %s1875_s26  ;;  %s1608_s26 = smov 120   ;;  %s1359_s4 = sld [smem:[#allocation10 + $0x2a]] }
  0x6c   : > { %s2207_s23 = sld [smem:[#allocation10 + $0x2f]] }
  0x6d   : > { %s1362_s28 = sld [smem:[#allocation10 + $0x21]] }
  0x6e   : > { %s2216_s9 = sld [smem:[#allocation10 + $0x1c]] }
  0x6f   : > { %s1363_s7 = sld [smem:[#allocation10 + $0x26]] }
  0x70   : > { %s1364_s10 = sld [smem:[#allocation10 + $0x2b]] }
  0x71   : > { %s2254_s12 = sld [smem:[#allocation10 + $0x30]] }
  0x72   : > { %s2266_s11 = sld [smem:[#allocation10 + $0x1d]] }
  0x73   : > { %s1368_s21 = sld [smem:[#allocation10 + $0x27]] }
  0x74   : > { %s1369_s13 = sld [smem:[#allocation10 + $0x2c]] }
  0x75   : > { %s1347_s20 = sld [smem:[#allocation10 + $0x1e]] }
  0x76   : > { %s1348_s22 = sld [smem:[#allocation10 + $0x23]] }
  0x77   : > { %s2373_s24 = sld [smem:[#allocation10 + $0x19]] }
  0x78   : > { %s1349_s27 = sld [smem:[#allocation10 + $0x28]] }
  0x79   : > { %s2379_s30 = sld [smem:[#allocation10 + $0x2d]] }
  0xc9   : > { %v311_v32 = vpop.permute.xlu1 %310 }
  0xca   : > { %317 = vst.msk [vmem:[#allocation4 + $0x28] sm:$0xff] %vm305_vm6, %v311_v32 }
  0xcc   : > { %v300_v33 = vpop.permute.xlu0 %299 }
  0xcd   : > { %306 = vst.msk [vmem:[#allocation4 + $0x8] sm:$0xff] %vm305_vm6, %v300_v33  ;;  %v313_v34 = vpop.permute.xlu1 %312 }
  0xce   : > { %318 = vst.msk [vmem:[#allocation4 + $0x30] sm:$0xff] %vm305_vm6, %v313_v34 }
  0xd0   : > { %v302_v36 = vpop.permute.xlu0 %301 }
  0xd1   : > { %v1814_v37 = vld [vmem:[#allocation4 + $0x24] sm:$0xff]  ;;  %307 = vst.msk [vmem:[#allocation4 + $0x10] sm:$0xff] %vm305_vm6, %v302_v36 }
  0xd2   : > { %v822_v38 = vmul.f32 %v821_v35, %v1814_v37  ;;  %v913_v47 = vmul.f32 %v912_v44, %v1814_v37  ;;  %v1936_v19 = vmul.f32 %v1880_v55, %v1814_v37  ;;  %v1942_v22 = vmul.f32 %v1884_v57, %v1814_v37 }
  0xd3   : > { %v1946_v23 = vmul.f32 %v1887_v58, %v1814_v37 }
  0xd4   : > { %826 = vrot.lane.b32.xlu0 %v822_v38, %s2469_s2  ;;  %v1852_v48 = vld [vmem:[#allocation4 + $0x4] sm:$0xff] }
  0xd5   : > { %v1828_v40 = vld [vmem:[#allocation4 + $0x2c] sm:$0xff]  ;;  %v1836_v43 = vld [vmem:[#allocation4 + $0x34] sm:$0xff]  ;;  %v392_v49 = vmul.f32 %v391_v45, %v1852_v48  ;;  %v483_v3 = vmul.f32 %v482_v56, %v1852_v48  ;;  %v588_v20 = vmul.f32 %v587_v6, %v1852_v48  ;;  %v574_v21 = vmul.f32 %v573_v61, %v1852_v48 }
  0xd6   : > { %v823_v41 = vmul.f32 %v821_v35, %v1828_v40  ;;  %v899_v42 = vmul.f32 %v898_v39, %v1828_v40  ;;  %v900_v46 = vmul.f32 %v898_v39, %v1836_v43  ;;  %v914_v50 = vmul.f32 %v912_v44, %v1828_v40 }
  0xd7   : > { %v665_v25 = vmul.f32 %v664_v0, %v1852_v48  ;;  %v594_v26 = vrot.slane %v588_v20, 2  ;;  %v609_v27 = vmul.f32 %v608_v7, %v1852_v48  ;;  %v630_v35 = vmul.f32 %v629_v8, %v1852_v48 }
  0xd8   : > { %828 = vrot.lane.b32.xlu1 %v823_v41, %s2469_s2  ;;  %903 = vrot.lane.b32.xlu0 %v899_v42, %s2469_s2  ;;  %v1873_v52 = vld [vmem:[#allocation4 + $0xc] sm:$0xff]  ;;  %v1896_v62 = vld [vmem:[#allocation4 + $0x14] sm:$0xff] }
  0xd9   : > { %v469_v53 = vmul.f32 %v468_v51, %v1873_v52  ;;  %v393_v54 = vmul.f32 %v391_v45, %v1873_v52  ;;  %v470_v4 = vmul.f32 %v468_v51, %v1896_v62  ;;  %v560_v17 = vmul.f32 %v559_v60, %v1873_v52 }
  0xda   : > { %v484_v18 = vmul.f32 %v482_v56, %v1873_v52  ;;  %v589_v24 = vmul.f32 %v587_v6, %v1873_v52  ;;  %v610_v28 = vmul.f32 %v608_v7, %v1873_v52  ;;  %v561_v29 = vmul.f32 %v559_v60, %v1896_v62 }
  0xdb   : > { %v651_v30 = vmul.f32 %v650_v63, %v1873_v52  ;;  %v590_v32 = vmul.f32 %v587_v6, %v1896_v62  ;;  %v615_v33 = vrot.slane %v609_v27, 4  ;;  %v631_v36 = vmul.f32 %v629_v8, %v1873_v52 }
  0xdc   : > { %905 = vrot.lane.b32.xlu1 %v900_v46, %s2469_s2  ;;  %917 = vrot.lane.b32.xlu0 %v913_v47, %s1606_s18  ;;  %s1867_s2 = sld [smem:[#allocation10 + $0xa]]  ;;  %v595_v31 = vrot.slane %v589_v24, 2  ;;  %v616_v34 = vrot.slane %v610_v28, 4  ;;  %v575_v38 = vmul.f32 %v573_v61, %v1873_v52  ;;  %v611_v42 = vmul.f32 %v608_v7, %v1896_v62 }
  0xdd   : > { %v597_v41 = vrot.slane %v590_v32, 2  ;;  %v636_v45 = vrot.slane %v630_v35, 6  ;;  %v637_v46 = vrot.slane %v631_v36, 6  ;;  %v679_v47 = vmul.f32 %v678_v9, %v1852_v48 }
  0xde   : > { %v1965_v39 = vsel %vm338_vm7, %v594_v26, %v595_v31  ;;  %v1971_v44 = vsel %vm356_vm8, %v615_v33, %v616_v34  ;;  %v680_v51 = vmul.f32 %v678_v9, %v1873_v52  ;;  %v700_v60 = vmul.f32 %v1914_v10, %v1852_v48 }
  0xdf   : > { %v685_v56 = vrot.slane %v679_v47, 2  ;;  %v701_v61 = vmul.f32 %v1914_v10, %v1873_v52  ;;  %v681_v7 = vmul.f32 %v678_v9, %v1896_v62  ;;  %v722_v20 = vmul.f32 %v1919_v11, %v1873_v52 }
  0xe0   : > { %919 = vrot.lane.b32.xlu1 %v914_v50, %s1606_s18  ;;  %396 = vrot.lane.b32.xlu0 %v392_v49, %s2495_s15  ;;  %v1977_v49 = vsel %vm338_vm7, %v595_v31, %v597_v41  ;;  %v618_v50 = vrot.slane %v611_v42, 4  ;;  %v702_v9 = vmul.f32 %v1914_v10, %v1896_v62  ;;  %v652_v27 = vmul.f32 %v650_v63, %v1896_v62 }
  0xe1   : > { %v688_v26 = vrot.slane %v681_v7, 2  ;;  %v837_v31 = vmul.f32 %v1880_v55, %v1828_v40  ;;  %v723_v10 = vmul.f32 %v1919_v11, %v1896_v62  ;;  %v842_v63 = vrot.slane %v1936_v19, 2 }
  0xe2   : > { %v1927_v15 = vstv %s1867_s2  ;;  %v709_v33 = vrot.slane %v702_v9, 4  ;;  %v385_v36 = vstv %s1974_s1  ;;  %v742_v41 = vmul.f32 %v741_v1, %v1873_v52  ;;  %s2309_s2 = sld [smem:[#allocation10 + $0x31]]  ;;  %s220_s1 = scalar_lea.vmem [#allocation11], %s1315_s29 }
  0xe3   : > { %v730_v19 = vrot.slane %v723_v10, 6  ;;  %v666_v42 = vmul.f32 %v664_v0, %v1873_v52  ;;  %v843_v47 = vrot.slane %v837_v31, 2  ;;  %v743_v0 = vmul.f32 %v741_v1, %v1896_v62 }
  0xe4   : > { %473 = vrot.lane.b32.xlu0 %v469_v53, %s2495_s15  ;;  %398 = vrot.lane.b32.xlu1 %v393_v54, %s2495_s15  ;;  %v632_v53 = vmul.f32 %v629_v8, %v1896_v62  ;;  %v1982_v54 = vsel %vm374_vm9, %v636_v45, %v637_v46  ;;  %v706_v8 = vrot.slane %v700_v60, 4  ;;  %v863_v45 = vrot.slane %v1942_v22, 4 }
  0xe5   : > { %v2061_v22 = vmul.f32 %v1890_v59, %v1828_v40  ;;  %v332_v60 = vmul.f32 %v1922_v12, %v1852_v48  ;;  %v351_v7 = vmul.f32 %v1927_v15, %v1873_v52  ;;  %v880_v31 = vmul.f32 %v1887_v58, %v1836_v43 }
  0xe6   : > { %v639_v6 = vrot.slane %v632_v53, 6 }
  0xe8   : > { %487 = vrot.lane.b32.xlu0 %v483_v3, %s1606_s18  ;;  %475 = vrot.lane.b32.xlu1 %v470_v4, %s2495_s15  ;;  %v1989_v3 = vsel %vm356_vm8, %v616_v34, %v618_v50  ;;  %v686_v4 = vrot.slane %v680_v51, 2  ;;  %v2002_v24 = vsel %vm374_vm9, %v637_v46, %v639_v6  ;;  %v2024_v34 = vmul.f32 %v1890_v59, %v1814_v37 }
  0xe9   : > { %v2046_v46 = vmul.f32 %v1887_v58, %v1828_v40  ;;  %v859_v50 = vmul.f32 %v1884_v57, %v1836_v43  ;;  %v350_v6 = vmul.f32 %v1927_v15, %v1852_v48  ;;  %v334_v58 = vmul.f32 %v1922_v12, %v1896_v62 }
  0xea   : > { %v2015_v32 = vsel %vm338_vm7, %v686_v4, %v688_v26  ;;  %v933_v53 = vrot.slane %v2024_v34, 2 }
  0xeb   : > { %v866_v26 = vrot.slane %v859_v50, 4  ;;  %v357_v9 = vrot.slane %v350_v6, 4 }
  0xec   : > { %564 = vrot.lane.b32.xlu0 %v560_v17, %s1606_s18  ;;  %489 = vrot.lane.b32.xlu1 %v484_v18, %s1606_s18  ;;  %v707_v17 = vrot.slane %v701_v61, 4  ;;  %v721_v18 = vmul.f32 %v1919_v11, %v1852_v48  ;;  %v838_v11 = vmul.f32 %v1880_v55, %v1836_v43  ;;  %v884_v55 = vrot.slane %v1946_v23, 6 }
  0xed   : > { %v326_v23 = vmul.f32 %v325_v14, %v1852_v48  ;;  %v333_v61 = vmul.f32 %v1922_v12, %v1873_v52  ;;  %v887_v12 = vrot.slane %v880_v31, 6 }
  0xee   : > { %v2010_v28 = vsel %vm356_vm8, %v706_v8, %v707_v17  ;;  %v844_v8 = vsel %vm338_vm7, %v842_v63, %v843_v47 }
  0xef   : > { %v328_v1 = vadd.f32 %v326_v23, %v320_v13 }
  0xf0   : > { %578 = vrot.lane.b32.xlu0 %v574_v21, %s1607_s0  ;;  %566 = vrot.lane.b32.xlu1 %v561_v29, %s1606_s18  ;;  %v1999_v21 = vsel %vm338_vm7, %v685_v56, %v686_v4  ;;  %v727_v29 = vrot.slane %v721_v18, 6  ;;  %v845_v56 = vrot.slane %v838_v11, 2  ;;  %v885_v4 = vrot.slane %v2046_v46, 6 }
  0xf1   : > { %v340_v18 = vrot.slane %v333_v61, 2 }
  0xf2   : > { %v846_v63 = vsel %vm338_vm7, %v843_v47, %v845_v56  ;;  %v386_v56 = vmul.f32 %v385_v36, %v1873_v52 }
  0xf4   : > { %655 = vrot.lane.b32.xlu0 %v651_v30, %s1607_s0  ;;  %580 = vrot.lane.b32.xlu1 %v575_v38, %s1607_s0  ;;  %v728_v30 = vrot.slane %v722_v20, 6  ;;  %v858_v38 = vmul.f32 %v1884_v57, %v1828_v40  ;;  %v368_v20 = vmul.f32 %v1930_v16, %v1852_v48 }
  0xf6   : > { %v2027_v35 = vsel %vm374_vm9, %v727_v29, %v728_v30  ;;  %v2052_v51 = vsel %vm374_vm9, %v728_v30, %v730_v19  ;;  %v864_v57 = vrot.slane %v858_v38, 4  ;;  %v369_v29 = vmul.f32 %v1930_v16, %v1873_v52 }
  0xf7   : > { %v375_v10 = vrot.slane %v368_v20, 6  ;;  %v886_v19 = vsel %vm374_vm9, %v884_v55, %v885_v4  ;;  %v370_v55 = vmul.f32 %v1930_v16, %v1896_v62  ;;  %v407_v16 = vmul.f32 %v1902_v2, %v1873_v52 }
  0xf8   : > { %669 = vrot.lane.b32.xlu0 %v665_v25, %s1608_s26  ;;  %657 = vrot.lane.b32.xlu1 %v652_v27, %s1607_s0  ;;  %v2035_v25 = vsel %vm356_vm8, %v707_v17, %v709_v33  ;;  %v339_v17 = vrot.slane %v332_v60, 2  ;;  %v358_v27 = vrot.slane %v351_v7, 4  ;;  %v865_v30 = vsel %vm356_vm8, %v863_v45, %v864_v57 }
  0xf9   : > { %v376_v11 = vrot.slane %v369_v29, 6  ;;  %v934_v45 = vrot.slane %v2061_v22, 2  ;;  %v867_v50 = vsel %vm356_vm8, %v864_v57, %v866_v26  ;;  %v378_v22 = vrot.slane %v370_v55, 6 }
  0xfa   : > { %v341_v33 = vsel %vm338_vm7, %v339_v17, %v340_v18  ;;  %v359_v38 = vsel %vm356_vm8, %v357_v9, %v358_v27  ;;  %v327_v60 = vmul.f32 %v325_v14, %v1873_v52  ;;  %v929_v57 = vmul.f32 %v1890_v59, %v1836_v43 }
  0xfb   : > { %v346_v34 = vadd.f32 %v341_v33, %v328_v1  ;;  %v377_v47 = vsel %vm374_vm9, %v375_v10, %v376_v11  ;;  %v379_v14 = vsel %vm374_vm9, %v376_v11, %v378_v22  ;;  %v447_v17 = vstv %s2088_s6 }
  0xfc   : > { %746 = vrot.lane.b32.xlu0 %v742_v41, %s1608_s26  ;;  %671 = vrot.lane.b32.xlu1 %v666_v42, %s1608_s26  ;;  %v406_v41 = vmul.f32 %v1902_v2, %v1852_v48  ;;  %v352_v42 = vmul.f32 %v1927_v15, %v1896_v62  ;;  %v329_v7 = vadd.f32 %v327_v60, %v320_v13  ;;  %v936_v29 = vrot.slane %v929_v57, 2 }
  0xfd   : > { %v364_v46 = vadd.f32 %v359_v38, %v346_v34  ;;  %v428_v20 = vmul.f32 %v1907_v5, %v1873_v52  ;;  %v888_v9 = vsel %vm374_vm9, %v885_v4, %v887_v12  ;;  %v408_v13 = vmul.f32 %v1902_v2, %v1896_v62 }
  0xfe   : > { %v360_v15 = vrot.slane %v352_v42, 4  ;;  %v412_v59 = vrot.slane %v406_v41, 2  ;;  %v448_v31 = vmul.f32 %v447_v17, %v1852_v48  ;;  %v496_v33 = vstv %s2107_s5 }
  0xff   : > { %v382_v23 = vadd.f32 %v377_v47, %v364_v46  ;;  %v449_v4 = vmul.f32 %v447_v17, %v1873_v52  ;;  %v937_v2 = vsel %vm338_vm7, %v934_v45, %v936_v29  ;;  %v415_v11 = vrot.slane %v408_v13, 2 }
 0x100   : > { %847 = vrot.lane.b32.xlu0 %v844_v8, %s2495_s15  ;;  %748 = vrot.lane.b32.xlu1 %v743_v0, %s1608_s26  ;;  %v342_v0 = vrot.slane %v334_v58, 2  ;;  %v361_v1 = vsel %vm356_vm8, %v358_v27, %v360_v15  ;;  %v935_v8 = vsel %vm338_vm7, %v933_v53, %v934_v45  ;;  %v413_v27 = vrot.slane %v407_v16, 2 }
 0x101   : > { %v2123_v6 = vadd.f32 %v386_v56, %v382_v23  ;;  %v387_v53 = vmul.f32 %v385_v36, %v1896_v62  ;;  %v517_v41 = vstv %s1333_s16  ;;  %v454_v42 = vrot.slane %v448_v31, 6 }
 0x102   : > { %v343_v61 = vsel %vm338_vm7, %v340_v18, %v342_v0  ;;  %v427_v18 = vmul.f32 %v1907_v5, %v1852_v48  ;;  %v414_v38 = vsel %vm338_vm7, %v412_v59, %v413_v27  ;;  %v455_v46 = vrot.slane %v449_v4, 6 }
 0x103   : > { %v347_v26 = vadd.f32 %v343_v61, %v329_v7  ;;  %v497_v47 = vmul.f32 %v496_v33, %v1852_v48  ;;  %v416_v55 = vsel %vm338_vm7, %v413_v27, %v415_v11  ;;  %v538_v12 = vstv %s1334_s19 }
 0x104   : > { %868 = vrot.lane.b32.xlu0 %v865_v30, %s2495_s15  ;;  %849 = vrot.lane.b32.xlu1 %v846_v63, %s2495_s15  ;;  %v433_v10 = vrot.slane %v427_v18, 4  ;;  %v434_v63 = vrot.slane %v428_v20, 4  ;;  %v456_v0 = vsel %vm374_vm9, %v454_v42, %v455_v46  ;;  %v518_v23 = vmul.f32 %v517_v41, %v1852_v48 }
 0x105   : > { %v365_v30 = vadd.f32 %v361_v1, %v347_v26  ;;  %v503_v15 = vrot.slane %v497_v47, 2  ;;  %v519_v56 = vmul.f32 %v517_v41, %v1873_v52  ;;  %v499_v57 = vmul.f32 %v496_v33, %v1896_v62 }
 0x106   : > { %v435_v58 = vsel %vm356_vm8, %v433_v10, %v434_v63  ;;  %v524_v61 = vrot.slane %v518_v23, 4  ;;  %v539_v7 = vmul.f32 %v538_v12, %v1852_v48  ;;  %v520_v18 = vmul.f32 %v517_v41, %v1896_v62 }
 0x107   : > { %v383_v34 = vadd.f32 %v379_v14, %v365_v30  ;;  %v525_v1 = vrot.slane %v519_v56, 4  ;;  %v540_v14 = vmul.f32 %v538_v12, %v1873_v52  ;;  %v506_v59 = vrot.slane %v499_v57, 2 }
 0x108   : > { %889 = vrot.lane.b32.xlu0 %v886_v19, %s2495_s15  ;;  %870 = vrot.lane.b32.xlu1 %v867_v50, %s2495_s15  ;;  %v429_v19 = vmul.f32 %v1907_v5, %v1896_v62  ;;  %v498_v50 = vmul.f32 %v496_v33, %v1873_v52  ;;  %v450_v5 = vmul.f32 %v447_v17, %v1896_v62  ;;  %v545_v26 = vrot.slane %v539_v7, 6 }
 0x109   : > { %v2151_v36 = vadd.f32 %v387_v53, %v383_v34  ;;  %v526_v20 = vsel %vm356_vm8, %v524_v61, %v525_v1  ;;  %v546_v27 = vrot.slane %v540_v14, 6  ;;  %v527_v48 = vrot.slane %v520_v18, 4 }
 0x10a   : > { %v436_v45 = vrot.slane %v429_v19, 4  ;;  %v504_v60 = vrot.slane %v498_v50, 2  ;;  %v457_v16 = vrot.slane %v450_v5, 6  ;;  %v541_v52 = vmul.f32 %v538_v12, %v1896_v62 }
 0x10b   : > { %v547_v29 = vsel %vm374_vm9, %v545_v26, %v546_v27  ;;  %v528_v13 = vsel %vm356_vm8, %v525_v1, %v527_v48  ;;  %v989_v4 = vstv %s2207_s23  ;;  %v1017_v11 = vstv %s1362_s28 }
 0x10c   : > { %938 = vrot.lane.b32.xlu0 %v935_v8, %s1606_s18  ;;  %891 = vrot.lane.b32.xlu1 %v888_v9, %s2495_s15  ;;  %v437_v22 = vsel %vm356_vm8, %v434_v63, %v436_v45  ;;  %v505_v8 = vsel %vm338_vm7, %v503_v15, %v504_v60  ;;  %v458_v17 = vsel %vm374_vm9, %v455_v46, %v457_v16  ;;  %v548_v53 = vrot.slane %v541_v52, 6 }
 0x10d   : > { %v507_v9 = vsel %vm338_vm7, %v504_v60, %v506_v59  ;;  %v1003_v19 = vstv %s2216_s9  ;;  %v1019_v41 = vmul.f32 %v1017_v11, %v1828_v40  ;;  %v1038_v42 = vstv %s1363_s7 }
 0x10e   : > { %v549_v30 = vsel %vm374_vm9, %v546_v27, %v548_v53  ;;  %v991_v45 = vmul.f32 %v989_v4, %v1836_v43  ;;  %v1040_v50 = vmul.f32 %v1038_v42, %v1828_v40  ;;  %v1020_v12 = vmul.f32 %v1017_v11, %v1836_v43 }
 0x10f   : > { %v1025_v5 = vrot.slane %v1019_v41, 2  ;;  %v1059_v16 = vstv %s1364_s10  ;;  %v1041_v7 = vmul.f32 %v1038_v42, %v1836_v43 }
 0x110   : > { %417 = vrot.lane.b32.xlu0 %v414_v38, %s2495_s15  ;;  %940 = vrot.lane.b32.xlu1 %v937_v2, %s1606_s18  ;;  %v990_v2 = vmul.f32 %v989_v4, %v1828_v40  ;;  %v1046_v60 = vrot.slane %v1040_v50, 4  ;;  %v1027_v61 = vrot.slane %v1020_v12, 2  ;;  %v1061_v1 = vmul.f32 %v1059_v16, %v1828_v40 }
 0x111   : > { %v1062_v27 = vmul.f32 %v1059_v16, %v1836_v43 }
 0x112   : > { %v1067_v26 = vrot.slane %v1061_v1, 6 }
 0x114   : > { %438 = vrot.lane.b32.xlu0 %v435_v58, %s2495_s15  ;;  %419 = vrot.lane.b32.xlu1 %v416_v55, %s2495_s15  ;;  %v1018_v58 = vmul.f32 %v1017_v11, %v1814_v37  ;;  %v1004_v55 = vmul.f32 %v1003_v19, %v1814_v37 }
 0x116   : > { %v1024_v15 = vrot.slane %v1018_v58, 2  ;;  %v1150_v58 = vstv %s1369_s13 }
 0x117   : > { %v1151_v12 = vmul.f32 %v1150_v58, %v1814_v37 }
 0x118   : > { %459 = vrot.lane.b32.xlu0 %v456_v0, %s2495_s15  ;;  %440 = vrot.lane.b32.xlu1 %v437_v22, %s2495_s15  ;;  %v1039_v0 = vmul.f32 %v1038_v42, %v1814_v37  ;;  %v1005_v22 = vmul.f32 %v1003_v19, %v1828_v40  ;;  %v1026_v57 = vsel %vm338_vm7, %v1024_v15, %v1025_v5 }
 0x119   : > { %v1157_v1 = vrot.slane %v1151_v12, 6 }
 0x11a   : > { %v1045_v14 = vrot.slane %v1039_v0, 4 }
 0x11c   : > { %508 = vrot.lane.b32.xlu0 %v505_v8, %s1606_s18  ;;  %461 = vrot.lane.b32.xlu1 %v458_v17, %s2495_s15  ;;  %s1358_s15 = sld [smem:[#allocation10 + $0x25]]  ;;  %v1060_v8 = vmul.f32 %v1059_v16, %v1814_v37  ;;  %v1047_v18 = vsel %vm356_vm8, %v1045_v14, %v1046_v60 }
 0x11e   : > { %v1066_v48 = vrot.slane %v1060_v8, 6 }
 0x120   : > { %529 = vrot.lane.b32.xlu0 %v526_v20, %s1606_s18  ;;  %510 = vrot.lane.b32.xlu1 %v507_v9, %s1606_s18  ;;  %v1028_v20 = vsel %vm338_vm7, %v1025_v5, %v1027_v61  ;;  %v1048_v9 = vrot.slane %v1041_v7, 4  ;;  %v1153_v61 = vmul.f32 %v1150_v58, %v1836_v43 }
 0x122   : > { %v947_v62 = vstv %s1358_s15  ;;  %v1049_v53 = vsel %vm356_vm8, %v1046_v60, %v1048_v9  ;;  %s1609_s15 = smov [#allocation11]  }
 0x124   : > { %550 = vrot.lane.b32.xlu0 %v547_v29, %s1606_s18  ;;  %531 = vrot.lane.b32.xlu1 %v528_v13, %s1606_s18  ;;  %v1068_v13 = vsel %vm374_vm9, %v1066_v48, %v1067_v26 }
 0x128   : > { %599 = vrot.lane.b32.xlu0 %v1965_v39, %s1607_s0  ;;  %552 = vrot.lane.b32.xlu1 %v549_v30, %s1606_s18  ;;  %v949_v39 = vmul.f32 %v947_v62, %v1828_v40  ;;  %v1080_v30 = vstv %s2254_s12 }
 0x12c   : > { %620 = vrot.lane.b32.xlu0 %v1971_v44, %s1607_s0  ;;  %601 = vrot.lane.b32.xlu1 %v1977_v49, %s1607_s0  ;;  %v948_v44 = vmul.f32 %v947_v62, %v1814_v37  ;;  %v968_v49 = vstv %s1359_s4  ;;  %s1516_s4 = sshll.u32 %s1609_s15, 4  ;;  %s1517_s4 = int_to_ptr.vmem [resolvable:$false] %s1516_s4 }
 0x12d   : > { %v971_v10 = vmul.f32 %v968_v49, %v1836_v43  ;;  %s1518_s23 = scalar_lea.vmem %s1517_s4, 512 }
 0x12f   : > { %v978_v34 = vrot.slane %v971_v10, 6 }
 0x130   : > { %641 = vrot.lane.b32.xlu0 %v1982_v54, %s1607_s0  ;;  %622 = vrot.lane.b32.xlu1 %v1989_v3, %s1607_s0  ;;  %v955_v54 = vrot.slane %v949_v39, 4  ;;  %v970_v3 = vmul.f32 %v968_v49, %v1828_v40 }
 0x132   : > { %v976_v31 = vrot.slane %v970_v3, 6 }
 0x134   : > { %690 = vrot.lane.b32.xlu0 %v1999_v21, %s1608_s26  ;;  %643 = vrot.lane.b32.xlu1 %v2002_v24, %s1607_s0  ;;  %v950_v21 = vmul.f32 %v947_v62, %v1836_v43  ;;  %v954_v24 = vrot.slane %v948_v44, 4  ;;  %v1069_v62 = vrot.slane %v1062_v27, 6 }
 0x136   : > { %v957_v33 = vrot.slane %v950_v21, 4  ;;  %v1070_v3 = vsel %vm374_vm9, %v1067_v26, %v1069_v62  ;;  %v1094_v21 = vstv %s2266_s11 }
 0x137   : > { %v1095_v10 = vmul.f32 %v1094_v21, %v1814_v37  ;;  %v1096_v19 = vmul.f32 %v1094_v21, %v1828_v40 }
 0x138   : > { %711 = vrot.lane.b32.xlu0 %v2010_v28, %s1608_s26  ;;  %692 = vrot.lane.b32.xlu1 %v2015_v32, %s1608_s26  ;;  %v969_v28 = vmul.f32 %v968_v49, %v1814_v37  ;;  %v956_v32 = vsel %vm356_vm8, %v954_v24, %v955_v54  ;;  %v958_v63 = vsel %vm356_vm8, %v955_v54, %v957_v33 }
 0x139   : > { %v1081_v49 = vmul.f32 %v1080_v30, %v1828_v40 }
 0x13c   : > { %732 = vrot.lane.b32.xlu0 %v2027_v35, %s1608_s26  ;;  %713 = vrot.lane.b32.xlu1 %v2035_v25, %s1608_s26  ;;  %v975_v35 = vrot.slane %v969_v28, 6 }
 0x13e   : > { %v977_v25 = vsel %vm374_vm9, %v975_v35, %v976_v31  ;;  %v1082_v35 = vmul.f32 %v1080_v30, %v1836_v43 }
 0x140   : > { %959 = vrot.lane.b32.xlu0 %v956_v32, %s1606_s18  ;;  %734 = vrot.lane.b32.xlu1 %v2052_v51, %s1608_s26  ;;  %v979_v51 = vsel %vm374_vm9, %v976_v31, %v978_v34  ;;  %v1129_v32 = vstv %s1368_s21 }
 0x141   : > { %v1130_v34 = vmul.f32 %v1129_v32, %v1814_v37  ;;  %v1132_v50 = vmul.f32 %v1129_v32, %v1836_v43 }
 0x143   : > { %v1136_v5 = vrot.slane %v1130_v34, 4 }
 0x144   : > { %980 = vrot.lane.b32.xlu0 %v977_v25, %s1606_s18  ;;  %961 = vrot.lane.b32.xlu1 %v958_v63, %s1606_s18  ;;  %v1131_v25 = vmul.f32 %v1129_v32, %v1828_v40 }
 0x146   : > { %v2226_v38 = vpop.permute.xlu0 %826  ;;  %v1137_v41 = vrot.slane %v1131_v25, 4 }
 0x148   : > { %994 = vrot.lane.b32.xlu0 %v990_v2, %s1606_s18  ;;  %982 = vrot.lane.b32.xlu1 %v979_v51, %s1606_s18 }
 0x14a   : > { %v2235_v46 = vpop.permute.xlu1 %828  ;;  %v2237_v47 = vpop.permute.xlu0 %903 }
 0x14c   : > { %1008 = vrot.lane.b32.xlu0 %v1004_v55, %s1607_s0  ;;  %996 = vrot.lane.b32.xlu1 %v991_v45, %s1606_s18  ;;  %s1367_s18 = sld [smem:[#allocation10 + $0x22]]  ;;  %v1152_v45 = vmul.f32 %v1150_v58, %v1828_v40 }
 0x14e   : > { %v2246_v23 = vpop.permute.xlu1 %905  ;;  %v2248_v56 = vpop.permute.xlu0 %917  ;;  %v1158_v16 = vrot.slane %v1152_v45, 6 }
 0x150   : > { %1029 = vrot.lane.b32.xlu0 %v1026_v57, %s1607_s0  ;;  %1010 = vrot.lane.b32.xlu1 %v1005_v22, %s1607_s0  ;;  %v1138_v22 = vsel %vm356_vm8, %v1136_v5, %v1137_v41  ;;  %v1139_v57 = vrot.slane %v1132_v50, 4  ;;  %v1159_v14 = vsel %vm374_vm9, %v1157_v1, %v1158_v16 }
 0x152   : > { %v2259_v17 = vpop.permute.xlu1 %919  ;;  %v2261_v59 = vpop.permute.xlu0 %396  ;;  %v1108_v54 = vstv %s1367_s18  ;;  %v1140_v8 = vsel %vm356_vm8, %v1137_v41, %v1139_v57 }
 0x153   : > { %v1110_v24 = vmul.f32 %v1108_v54, %v1828_v40  ;;  %v1109_v28 = vmul.f32 %v1108_v54, %v1814_v37  ;;  %v1111_v4 = vmul.f32 %v1108_v54, %v1836_v43 }
 0x154   : > { %1050 = vrot.lane.b32.xlu0 %v1047_v18, %s1607_s0  ;;  %1031 = vrot.lane.b32.xlu1 %v1028_v20, %s1607_s0  ;;  %v1171_v18 = vstv %s2309_s2  ;;  %v1160_v20 = vrot.slane %v1153_v61, 6 }
 0x155   : > { %v1116_v63 = vrot.slane %v1110_v24, 2  ;;  %v1115_v2 = vrot.slane %v1109_v28, 2  ;;  %v1118_v55 = vrot.slane %v1111_v4, 2  ;;  %v1172_v27 = vmul.f32 %v1171_v18, %v1828_v40 }
 0x156   : > { %v2270_v52 = vpop.permute.xlu1 %398  ;;  %v2272_v29 = vpop.permute.xlu0 %473  ;;  %v1161_v48 = vsel %vm374_vm9, %v1158_v16, %v1160_v20  ;;  %v1173_v30 = vmul.f32 %v1171_v18, %v1836_v43  ;;  %v402_v43 = vadd.f32 %v2261_v59, %v2123_v6 }
 0x157   : > { %v1117_v42 = vsel %vm338_vm7, %v1115_v2, %v1116_v63  ;;  %v1119_v60 = vsel %vm338_vm7, %v1116_v63, %v1118_v55  ;;  %v403_v25 = vadd.f32 %v2270_v52, %v2151_v36 }
 0x158   : > { %1071 = vrot.lane.b32.xlu0 %v1068_v13, %s1607_s0  ;;  %1052 = vrot.lane.b32.xlu1 %v1049_v53, %s1607_s0 }
 0x15a   : > { %v2279_v39 = vpop.permute.xlu1 %475  ;;  %v2281_v44 = vpop.permute.xlu0 %487 }
 0x15c   : > { %1085 = vrot.lane.b32.xlu0 %v1081_v49, %s1607_s0  ;;  %1073 = vrot.lane.b32.xlu1 %v1070_v3, %s1607_s0 }
 0x15e   : > { %v2290_v31 = vpop.permute.xlu1 %489  ;;  %v2292_v33 = vpop.permute.xlu0 %564 }
 0x160   : > { %1099 = vrot.lane.b32.xlu0 %v1095_v10, %s1608_s26  ;;  %1087 = vrot.lane.b32.xlu1 %v1082_v35, %s1607_s0  ;;  %s1377_s0 = sshll.u32 %s1588_s17, 8  ;;  %s1195_s17 = scalar_lea.sflag [#allocation8], %s1752_s8 }
 0x161   : > { %s2410_s16 = scalar_lea.hbm %s2464_s3, %s1377_s0 }
 0x162   : > { %v2301_v11 = vpop.permute.xlu1 %566  ;;  %v2303_v51 = vpop.permute.xlu0 %578 }
 0x164   : > { %1120 = vrot.lane.b32.xlu0 %v1117_v42, %s1608_s26  ;;  %1101 = vrot.lane.b32.xlu1 %v1096_v19, %s1608_s26 }
 0x166   : > { %v2314_v0 = vpop.permute.xlu1 %580  ;;  %v2316_v15 = vpop.permute.xlu0 %655 }
 0x168   : > { %1141 = vrot.lane.b32.xlu0 %v1138_v22, %s1608_s26  ;;  %1122 = vrot.lane.b32.xlu1 %v1119_v60, %s1608_s26 }
 0x16a   : > { %v2323_v7 = vpop.permute.xlu1 %657  ;;  %v2325_v37 = vpop.permute.xlu0 %669 }
 0x16c   : > { %1162 = vrot.lane.b32.xlu0 %v1159_v14, %s1608_s26  ;;  %1143 = vrot.lane.b32.xlu1 %v1140_v8, %s1608_s26 }
 0x16e   : > { %v2332_v26 = vpop.permute.xlu1 %671  ;;  %v2334_v9 = vpop.permute.xlu0 %746 }
 0x170   : > { %1176 = vrot.lane.b32.xlu0 %v1172_v27, %s1608_s26  ;;  %1164 = vrot.lane.b32.xlu1 %v1161_v48, %s1608_s26 }
 0x172   : > { %v2340_v13 = vpop.permute.xlu1 %748  ;;  %v2342_v53 = vpop.permute.xlu0 %847 }
 0x174   : > { %1178 = vrot.lane.b32.xlu1 %v1173_v30, %s1608_s26  ;;  %s1208_s26 = sshll.u32 %s220_s1, 4  ;;  %s2412_s26 = int_to_ptr.vmem [resolvable:$true] %s1208_s26 }
 0x175   : > { %s1512_s19 = scalar_lea.vmem %s2412_s26, 256  ;;  %p1519_p1 = scmp.lt.s32.totalorder %s2412_s26, %s1517_s4 }
 0x176   : > { %v2346_v62 = vpop.permute.xlu1 %849  ;;  %v2348_v49 = vpop.permute.xlu0 %868  ;;  %p1513_p3 = scmp.ne.s32.totalorder %s2412_s26, %s1512_s19  ;;  %p1520_p10 = scmp.lt.s32.totalorder %s1518_s23, %s1512_s19 }
 0x178   : > { %p1514_p12 = pnand %p1513_p3, %p2496_p7  ;;  %p1521_p8 = por %p1520_p10, %p1519_p1 }
 0x17a   : > { %v2350_v54 = vpop.permute.xlu1 %870  ;;  %v2352_v40 = vpop.permute.xlu0 %889  ;;  %p1515_p2 = pneg %p1514_p12 }
 0x17c   : > { %p1522_p9 = pnand %p1521_p8, %p1515_p2 }
 0x17e   : > { %v2354_v3 = vpop.permute.xlu1 %891  ;;  %v2356_v21 = vpop.permute.xlu0 %938 }
 0x182   : > { %v2358_v24 = vpop.permute.xlu1 %940  ;;  %v418_v28 = vpop.permute.xlu0 %417 }
 0x183   : > { %v423_v35 = vadd.f32 %v418_v28, %v402_v43 }
 0x186   : > { %v420_v32 = vpop.permute.xlu1 %419  ;;  %v439_v10 = vpop.permute.xlu0 %438 }
 0x187   : > { %v444_v63 = vadd.f32 %v439_v10, %v423_v35  ;;  %v424_v2 = vadd.f32 %v420_v32, %v403_v25 }
 0x18a   : > { %v441_v4 = vpop.permute.xlu1 %440  ;;  %v460_v34 = vpop.permute.xlu0 %459 }
 0x18b   : > { %v465_v19 = vadd.f32 %v460_v34, %v444_v63  ;;  %v445_v41 = vadd.f32 %v441_v4, %v424_v2 }
 0x18d   : > { %v479_v58 = vadd.f32 %v2272_v29, %v465_v19  ;;  %v764_v19 = vstv %s1347_s20 }
 0x18e   : > { %v462_v42 = vpop.permute.xlu1 %461  ;;  %v509_v55 = vpop.permute.xlu0 %508 }
 0x18f   : > { %v466_v45 = vadd.f32 %v462_v42, %v445_v41  ;;  %v493_v50 = vadd.f32 %v2281_v44, %v479_v58  ;;  %v1466_v41 = vld [vmem:[#allocation4 + $0x2c] sm:$0xff] }
 0x190   : > { %v766_v58 = vmul.f32 %v1466_v41, %v764_v19 }
 0x191   : > { %v480_v6 = vadd.f32 %v2279_v39, %v466_v45  ;;  %v514_v59 = vadd.f32 %v509_v55, %v493_v50  ;;  %v758_v50 = vstv %s2373_s24 }
 0x192   : > { %v511_v5 = vpop.permute.xlu1 %510  ;;  %v530_v12 = vpop.permute.xlu0 %529 }
 0x193   : > { %v494_v36 = vadd.f32 %v2290_v31, %v480_v6  ;;  %v535_v22 = vadd.f32 %v530_v12, %v514_v59  ;;  %v1467_v6 = vld [vmem:[#allocation4 + $0x24] sm:$0xff]  ;;  %v798_v12 = vstv %s1349_s27 }
 0x194   : > { %v765_v59 = vmul.f32 %v1467_v6, %v764_v19 }
 0x195   : > { %v515_v52 = vadd.f32 %v511_v5, %v494_v36 }
 0x196   : > { %v532_v60 = vpop.permute.xlu1 %531  ;;  %v551_v16 = vpop.permute.xlu0 %550 }
 0x197   : > { %v556_v57 = vadd.f32 %v551_v16, %v535_v22  ;;  %v536_v61 = vadd.f32 %v532_v60, %v515_v52  ;;  %v772_v52 = vrot.slane %v766_v58, 2  ;;  %v800_v22 = vmul.f32 %v1466_v41, %v798_v12 }
 0x199   : > { %v570_v29 = vadd.f32 %v2292_v33, %v556_v57  ;;  %v759_v57 = vmul.f32 %v1467_v6, %v758_v50 }
 0x19a   : > { %v553_v1 = vpop.permute.xlu1 %552  ;;  %v600_v14 = vpop.permute.xlu0 %599 }
 0x19b   : > { %v557_v8 = vadd.f32 %v553_v1, %v536_v61  ;;  %v584_v44 = vadd.f32 %v2303_v51, %v570_v29  ;;  %v771_v29 = vrot.slane %v765_v59, 2 }
 0x19d   : > { %v571_v39 = vadd.f32 %v2301_v11, %v557_v8  ;;  %v605_v18 = vadd.f32 %v600_v14, %v584_v44  ;;  %v799_v14 = vmul.f32 %v1467_v6, %v798_v12 }
 0x19e   : > { %v602_v20 = vpop.permute.xlu1 %601  ;;  %v621_v27 = vpop.permute.xlu0 %620 }
 0x19f   : > { %v585_v31 = vadd.f32 %v2314_v0, %v571_v39  ;;  %v626_v30 = vadd.f32 %v621_v27, %v605_v18 }
 0x1a1   : > { %v606_v48 = vadd.f32 %v602_v20, %v585_v31  ;;  %v773_v31 = vsel %vm338_vm7, %v771_v29, %v772_v52 }
 0x1a2   : > { %v623_v28 = vpop.permute.xlu1 %622  ;;  %v642_v43 = vpop.permute.xlu0 %641 }
 0x1a3   : > { %v647_v32 = vadd.f32 %v642_v43, %v626_v30  ;;  %v627_v33 = vadd.f32 %v623_v28, %v606_v48  ;;  %v806_v48 = vrot.slane %v800_v22, 6 }
 0x1a5   : > { %v661_v10 = vadd.f32 %v2316_v15, %v647_v32  ;;  %v781_v15 = vstv %s1348_s22  ;;  %v760_v32 = vmul.f32 %v1466_v41, %v758_v50 }
 0x1a6   : > { %v644_v35 = vpop.permute.xlu1 %643  ;;  %v691_v25 = vpop.permute.xlu0 %690  ;;  %v783_v5 = vmul.f32 %v1466_v41, %v781_v15 }
 0x1a7   : > { %v648_v11 = vadd.f32 %v644_v35, %v627_v33  ;;  %v675_v51 = vadd.f32 %v2325_v37, %v661_v10  ;;  %v805_v10 = vrot.slane %v799_v14, 6  ;;  %v815_v35 = vstv %s2379_s30 }
 0x1a8   : > { %v789_v1 = vrot.slane %v783_v5, 4 }
 0x1a9   : > { %v662_v0 = vadd.f32 %v2323_v7, %v648_v11  ;;  %v696_v63 = vadd.f32 %v691_v25, %v675_v51  ;;  %v782_v7 = vmul.f32 %v1467_v6, %v781_v15 }
 0x1aa   : > { %v693_v4 = vpop.permute.xlu1 %692  ;;  %v712_v34 = vpop.permute.xlu0 %711 }
 0x1ab   : > { %v676_v2 = vadd.f32 %v2332_v26, %v662_v0  ;;  %v717_v55 = vadd.f32 %v712_v34, %v696_v63  ;;  %v1468_v26 = vld [vmem:[#allocation4 + $0x34] sm:$0xff]  ;;  %v788_v18 = vrot.slane %v782_v7, 4 }
 0x1ac   : > { %v767_v60 = vmul.f32 %v1468_v26, %v764_v19  ;;  %v784_v8 = vmul.f32 %v1468_v26, %v781_v15  ;;  %v801_v28 = vmul.f32 %v1468_v26, %v798_v12  ;;  %v816_v19 = vmul.f32 %v1466_v41, %v815_v35 }
 0x1ad   : > { %v697_v42 = vadd.f32 %v693_v4, %v676_v2  ;;  %v807_v4 = vsel %vm374_vm9, %v805_v10, %v806_v48  ;;  %v817_v59 = vmul.f32 %v1468_v26, %v815_v35 }
 0x1ae   : > { %v714_v45 = vpop.permute.xlu1 %713  ;;  %v733_v37 = vpop.permute.xlu0 %732  ;;  %v774_v30 = vrot.slane %v767_v60, 2  ;;  %v791_v25 = vrot.slane %v784_v8, 4  ;;  %v808_v2 = vrot.slane %v801_v28, 6 }
 0x1af   : > { %v738_v36 = vadd.f32 %v733_v37, %v717_v55  ;;  %v718_v16 = vadd.f32 %v714_v45, %v697_v42 }
 0x1b0   : > { %v775_v34 = vsel %vm338_vm7, %v772_v52, %v774_v30  ;;  %v792_v42 = vsel %vm356_vm8, %v789_v1, %v791_v25  ;;  %v809_v6 = vsel %vm374_vm9, %v806_v48, %v808_v2 }
 0x1b1   : > { %v752_v61 = vadd.f32 %v2334_v9, %v738_v36  ;;  %v790_v9 = vsel %vm356_vm8, %v788_v18, %v789_v1 }
 0x1b2   : > { %v735_v44 = vpop.permute.xlu1 %734  ;;  %v960_v39 = vpop.permute.xlu0 %959 }
 0x1b3   : > { %v761_v20 = vadd.f32 %v759_v57, %v752_v61  ;;  %v739_v27 = vadd.f32 %v735_v44, %v718_v16 }
 0x1b5   : > { %v778_v43 = vadd.f32 %v773_v31, %v761_v20  ;;  %v753_v33 = vadd.f32 %v2340_v13, %v739_v27 }
 0x1b6   : > { %v962_v11 = vpop.permute.xlu1 %961  ;;  %v981_v51 = vpop.permute.xlu0 %980 }
 0x1b7   : > { %v795_v0 = vadd.f32 %v790_v9, %v778_v43  ;;  %v762_v63 = vadd.f32 %v760_v32, %v753_v33 }
 0x1b9   : > { %v812_v58 = vadd.f32 %v807_v4, %v795_v0  ;;  %v779_v15 = vadd.f32 %v775_v34, %v762_v63 }
 0x1ba   : > { %v983_v13 = vpop.permute.xlu1 %982  ;;  %v995_v55 = vpop.permute.xlu0 %994 }
 0x1bb   : > { %v818_v45 = vadd.f32 %v816_v19, %v812_v58  ;;  %v796_v50 = vadd.f32 %v792_v42, %v779_v15 }
 0x1bd   : > { %v813_v5 = vadd.f32 %v809_v6, %v796_v50  ;;  %v832_v37 = vadd.f32 %v2226_v38, %v818_v45 }
 0x1be   : > { %v997_v7 = vpop.permute.xlu1 %996  ;;  %v1009_v12 = vpop.permute.xlu0 %1008 }
 0x1bf   : > { %v819_v36 = vadd.f32 %v817_v59, %v813_v5  ;;  %v853_v52 = vadd.f32 %v2342_v53, %v832_v37 }
 0x1c1   : > { %v874_v41 = vadd.f32 %v2348_v49, %v853_v52  ;;  %v833_v22 = vadd.f32 %v2235_v46, %v819_v36 }
 0x1c2   : > { %v1011_v60 = vpop.permute.xlu1 %1010  ;;  %v1030_v16 = vpop.permute.xlu0 %1029 }
 0x1c3   : > { %v895_v57 = vadd.f32 %v2352_v40, %v874_v41  ;;  %v854_v61 = vadd.f32 %v2346_v62, %v833_v22 }
 0x1c5   : > { %v909_v26 = vadd.f32 %v2237_v47, %v895_v57  ;;  %v875_v29 = vadd.f32 %v2350_v54, %v854_v61 }
 0x1c6   : > { %v1032_v38 = vpop.permute.xlu1 %1031  ;;  %v1051_v1 = vpop.permute.xlu0 %1050 }
 0x1c7   : > { %v923_v14 = vadd.f32 %v2248_v56, %v909_v26  ;;  %v896_v53 = vadd.f32 %v2354_v3, %v875_v29 }
 0x1c9   : > { %v944_v49 = vadd.f32 %v2356_v21, %v923_v14  ;;  %v910_v46 = vadd.f32 %v2246_v23, %v896_v53 }
 0x1ca   : > { %v1053_v8 = vpop.permute.xlu1 %1052  ;;  %v1072_v44 = vpop.permute.xlu0 %1071 }
 0x1cb   : > { %v965_v18 = vadd.f32 %v960_v39, %v944_v49  ;;  %v924_v40 = vadd.f32 %v2259_v17, %v910_v46 }
 0x1cd   : > { %v945_v62 = vadd.f32 %v2358_v24, %v924_v40  ;;  %v986_v47 = vadd.f32 %v981_v51, %v965_v18 }
 0x1ce   : > { %v1074_v20 = vpop.permute.xlu1 %1073  ;;  %v1086_v54 = vpop.permute.xlu0 %1085 }
 0x1cf   : > { %v966_v27 = vadd.f32 %v962_v11, %v945_v62  ;;  %v1000_v31 = vadd.f32 %v995_v55, %v986_v47 }
 0x1d1   : > { %v987_v48 = vadd.f32 %v983_v13, %v966_v27  ;;  %v1014_v56 = vadd.f32 %v1009_v12, %v1000_v31 }
 0x1d2   : > { %v1088_v30 = vpop.permute.xlu1 %1087  ;;  %v1100_v3 = vpop.permute.xlu0 %1099 }
 0x1d3   : > { %v1001_v28 = vadd.f32 %v997_v7, %v987_v48  ;;  %v1035_v21 = vadd.f32 %v1030_v16, %v1014_v56 }
 0x1d5   : > { %v1015_v43 = vadd.f32 %v1011_v60, %v1001_v28  ;;  %v1056_v23 = vadd.f32 %v1051_v1, %v1035_v21 }
 0x1d6   : > { %v1102_v32 = vpop.permute.xlu1 %1101  ;;  %v1121_v33 = vpop.permute.xlu0 %1120 }
 0x1d7   : > { %v1036_v39 = vadd.f32 %v1032_v38, %v1015_v43  ;;  %v1077_v9 = vadd.f32 %v1072_v44, %v1056_v23 }
 0x1d9   : > { %v1057_v17 = vadd.f32 %v1053_v8, %v1036_v39  ;;  %v1091_v10 = vadd.f32 %v1086_v54, %v1077_v9 }
 0x1da   : > { %v1123_v24 = vpop.permute.xlu1 %1122  ;;  %v1142_v35 = vpop.permute.xlu0 %1141 }
 0x1db   : > { %v1078_v25 = vadd.f32 %v1074_v20, %v1057_v17  ;;  %v1105_v51 = vadd.f32 %v1100_v3, %v1091_v10 }
 0x1dd   : > { %v1092_v11 = vadd.f32 %v1088_v30, %v1078_v25  ;;  %v1126_v0 = vadd.f32 %v1121_v33, %v1105_v51 }
 0x1de   : > { %v1144_v63 = vpop.permute.xlu1 %1143  ;;  %v1163_v4 = vpop.permute.xlu0 %1162 }
 0x1df   : > { %v1106_v34 = vadd.f32 %v1102_v32, %v1092_v11  ;;  %v1147_v2 = vadd.f32 %v1142_v35, %v1126_v0 }
 0x1e1   : > { %v1127_v19 = vadd.f32 %v1123_v24, %v1106_v34  ;;  %v1168_v58 = vadd.f32 %v1163_v4, %v1147_v2 }
 0x1e2   : > { %v1165_v15 = vpop.permute.xlu1 %1164  ;;  %v1177_v42 = vpop.permute.xlu0 %1176 }
 0x1e3   : > { %v1148_v13 = vadd.f32 %v1144_v63, %v1127_v19  ;;  %v1182_v55 = vadd.f32 %v1177_v42, %v1168_v58 }
 0x1e5   : > { %v1169_v45 = vadd.f32 %v1165_v15, %v1148_v13  ;;  %v1184_v50 = vmul.f32 0.5, %v1182_v55 }
 0x1e6   : > { %v1179_v6 = vpop.permute.xlu1 %1178 }
 0x1e7   : > { %1462 = vtanh.f32 %v1184_v50  ;;  %v1183_v59 = vadd.f32 %v1179_v6, %v1169_v45 }
 0x1e9   : > { %v1185_v5 = vmul.f32 0.5, %v1183_v59 }
 0x1eb   : > { %1464 = vtanh.f32 %v1185_v5 }
 0x1f4   : > { %v1463_v37 = vpop.eup %1462 }
 0x1f5   : > { %v1188_v7 = vmul.f32 0.5, %v1463_v37 }
 0x1f7   : > { %v1190_v12 = vadd.f32 0.5, %v1188_v7 }
 0x1f8   : > { %v1465_v36 = vpop.eup %1464 }
 0x1f9   : > { %1192 = vst.msk [vmem:[%s220_s1] sm:$0xff] %vm226_vm0, %v1190_v12  ;;  %v1189_v52 = vmul.f32 0.5, %v1465_v36 }
 0x1fb   : > { %v1191_v41 = vadd.f32 0.5, %v1189_v52 }
 0x1fd   : > { %1193 = vst.msk [vmem:[%s220_s1 + $0x8] sm:$0xff] %vm226_vm0, %v1191_v41 }
 0x1fe   : > { %1525 = shalt.err (!%p1522_p9)
}
 0x1ff   : > { %s1526_s28 = scalar_lea.hbm %s2410_s16, 256  ;;  %s1530_s10 = scalar_lea.hbm %s2464_s3, 512 }
 0x200   : > { %p1527_p13 = scmp.ne.s32.totalorder %s2410_s16, %s1526_s28  ;;  %p1531_p11 = scmp.lt.s32.totalorder %s2410_s16, %s2464_s3 }
 0x201   : > { %p1532_p5 = scmp.lt.s32.totalorder %s1530_s10, %s1526_s28 }
 0x202   : > { %p1528_p4 = pnand %p1527_p13, %p2496_p7 }
 0x203   : > { %p1533_p0 = por %p1532_p5, %p1531_p11 }
 0x204   : > { %p1529_p6 = pneg %p1528_p4 }
 0x206   : > { %p1534_p3 = pnand %p1533_p0, %p1529_p6 }
 0x208   : > { %1537 = shalt.err (!%p1534_p3)
}
 0x209   : > { %s1610_s11 = smov 128   ;;  %s1611_s21 = smov 8  }
 0x20a   : > { %1384 = dma.vmem_to_hbm [thread:$0]  (%p2496_p7), %s2412_s26, 256, %s2410_s16, %s1195_s17, %s1610_s11, %s1610_s11, %s1611_s21  }
 0x20b PF: > { %s2497_s13 = sld [smem:[#allocation19_spill]]  ;;  %s1223_s20 = sand.u32 1, %s1576_s14  }
 0x20c   : > { %s2498_s2 = sld [smem:[#allocation18_spill]]  ;;  %s1224_s22 = scalar_lea.sflag [#allocation8], %s1223_s20 }
 0x211   : > { %p2499_p12 = scmp.ne.s32.totalorder %s2497_s13, 0 }
 0x212   : > { %p2500_p2 = scmp.ge.s32.totalorder %s2498_s2, 2 }
 0x214   : > { %p1395_p1 = pnand %p2500_p2, %p2499_p12 }
 0x216   : > { %p1396_p10 = pneg %p1395_p1 }
 0x218   : > { %1571 = dma.done.wait (%p1396_p10), %s1224_s22, 256  }
 0x219   : > { %1573 = vsyncadd (%p1396_p10), %s1224_s22, 4294967040  ;;  %s21_s19 = sadd.s32 1, %s2498_s2   ;;  %s2501_s14 = sld [smem:[#allocation15_spill]] }
 0x21a   : > { %p18_p8 = scmp.ge.s32.totalorder %s21_s19, 4   ;;  %s2502_s15 = sld [smem:[#allocation16_spill]] }
 0x21b   : > { %s2503_s16 = sld [smem:[#allocation21_spill]] }
 0x21c   : > { %s2504_s17 = sld [smem:[#allocation17_spill]]  ;;  %20 = sbr.rel (!%p18_p8) target bundleno = 11 (0xb), region = 94 }
 0x21d   : > { %s2505_s18 = sld [smem:[#allocation20_spill]] }
 0x221   :  { %1229 = vsyncpa [#allocation7], 1 }
 0x222   :  { %1231 = vsyncpa [#allocation7 + $0x1], 1 }
 0x223   :  { %1232 = vsyncpa [#allocation8], 1 }
 0x224   :  { %1234 = vsyncpa [#allocation8 + $0x1], 1 }
 0x225   :  { %1235 = vsyncpa [#allocation9], 1 }
 0x226   :  { %1237 = vsyncpa [#allocation9 + $0x1], 1 }

</bundles_post_ra>
